<compile_context>
chip_gen: v6e
topology: v6e:2x2x1
jax: 0.10.0
libtpu: 0.0.40
codegen_flags: <defaults>
</compile_context>

<pallas_src>
import numpy as np
import jax
import jax.numpy as jnp
from jax.experimental import pallas as pl
from jax.experimental.pallas import tpu as pltpu

STAGE = tuple(2 * c for c in (32, 64, 64, 128, 128, 256, 256))  # (64,128,128,256,256,512,512)
NUM_CLASS = 100
BN_EPS = 1e-5
LANE = 128
_VMEM_LIMIT = 32 * 1024 * 1024  # conservative: fits v7x's 64 MiB VMEM as well as v5e/v6e


def _round_up(x, m):
    return (x + m - 1) // m * m


def _pick_tm(m):
    for t in (256, 128):
        if m % t == 0:
            return t
    return m  # small M: full-dim block (always legal)


def _pick_tn(n_pad):
    return 256 if n_pad % 256 == 0 else 128


def _pick_tk(k_pad, cap=2048):
    cap = min(cap, k_pad)          # k_pad is always a multiple of 128
    for t in range(cap, 0, -LANE):
        if k_pad % t == 0:
            return t
    return k_pad


def _block_strides():
    return [1 if (i == 0 or STAGE[i - 1] == c) else 2 for i, c in enumerate(STAGE)]


# ---------------- Pallas kernels ----------------

def _mm_bias_kernel(a_ref, b_ref, bias_ref, o_ref, acc_ref):
    @pl.when(pl.program_id(2) == 0)
    def _():
        acc_ref[...] = jnp.zeros_like(acc_ref)

    acc_ref[...] += jnp.dot(a_ref[...], b_ref[...], preferred_element_type=jnp.float32)

    @pl.when(pl.program_id(2) == pl.num_programs(2) - 1)
    def _():
        o_ref[...] = (acc_ref[...] + bias_ref[...]).astype(o_ref.dtype)


def _mm_bias_res_kernel(a_ref, b_ref, bias_ref, r_ref, o_ref, acc_ref):
    @pl.when(pl.program_id(2) == 0)
    def _():
        acc_ref[...] = jnp.zeros_like(acc_ref)

    acc_ref[...] += jnp.dot(a_ref[...], b_ref[...], preferred_element_type=jnp.float32)

    @pl.when(pl.program_id(2) == pl.num_programs(2) - 1)
    def _():
        o_ref[...] = (acc_ref[...] + bias_ref[...]
                      + r_ref[...].astype(jnp.float32)).astype(o_ref.dtype)


def _pool_fc_kernel(x_ref, w_ref, b_ref, o_ref):
    # AdaptiveAvgPool2d(1) + flatten + Linear fused in one kernel.
    pooled = jnp.mean(x_ref[...].astype(jnp.float32), axis=1)          # (N, C)
    o_ref[...] = jnp.dot(pooled.astype(jnp.bfloat16), w_ref[...],
                         preferred_element_type=jnp.float32) + b_ref[...]


# ---------------- wrappers ----------------

def matmul_bias(a, b, bias, residual=None, out_dtype=jnp.bfloat16):
    """out = a @ b + bias (+ residual). Tiled (M,N,K) grid, bf16 operands, f32 accum."""
    M, K = a.shape
    K2, N = b.shape
    assert K == K2 and K % LANE == 0 and N % LANE == 0
    tm, tn, tk = _pick_tm(M), _pick_tn(N), _pick_tk(K)
    grid = (M // tm, N // tn, K // tk)

    in_specs = [
        pl.BlockSpec((tm, tk), lambda i, j, k: (i, k)),
        pl.BlockSpec((tk, tn), lambda i, j, k: (k, j)),
        pl.BlockSpec((1, tn), lambda i, j, k: (0, j)),
    ]
    args = [a.astype(jnp.bfloat16), b.astype(jnp.bfloat16),
            bias.reshape(1, N).astype(jnp.float32)]
    kernel = _mm_bias_kernel
    if residual is not None:
        assert residual.shape == (M, N)
        in_specs.append(pl.BlockSpec((tm, tn), lambda i, j, k: (i, j)))
        args.append(residual.astype(jnp.bfloat16))
        kernel = _mm_bias_res_kernel

    return pl.pallas_call(
        kernel,
        out_shape=jax.ShapeDtypeStruct((M, N), out_dtype),
        grid_spec=pltpu.PrefetchScalarGridSpec(
            num_scalar_prefetch=0,
            grid=grid,
            in_specs=in_specs,
            out_specs=pl.BlockSpec((tm, tn), lambda i, j, k: (i, j)),
            scratch_shapes=[pltpu.VMEM((tm, tn), jnp.float32)],
        ),
        compiler_params=pltpu.CompilerParams(
            dimension_semantics=("parallel", "parallel", "arbitrary"),
            vmem_limit_bytes=_VMEM_LIMIT,
        ),
    )(*args)


def conv3x3_bn(x_nhwc, w2d_pad, bias_pad, stride, out_c, residual_nhwc=None):
    """3x3 conv (pad=1, no bias) with BN folded into w2d_pad/bias_pad (+ optional residual).
    im2col is thin bf16 JAX glue; the K-tiled matmul + bias (+ residual) runs in Pallas."""
    N, H, W, Cin = x_nhwc.shape
    Ho = (H - 1) // stride + 1
    Wo = (W - 1) // stride + 1
    xp = jnp.pad(x_nhwc, ((0, 0), (1, 1), (1, 1), (0, 0)))
    cols = []
    for kh in range(3):
        for kw in range(3):
            cols.append(xp[:, kh:kh + (Ho - 1) * stride + 1:stride,
                           kw:kw + (Wo - 1) * stride + 1:stride, :])
    patches = jnp.stack(cols, axis=3).reshape(N * Ho * Wo, 9 * Cin)
    K = 9 * Cin
    K_pad, N_pad = w2d_pad.shape
    if K_pad != K:
        patches = jnp.pad(patches, ((0, 0), (0, K_pad - K)))  # zero rows in weights anyway
    res = None
    if residual_nhwc is not None:
        res = residual_nhwc.reshape(N * Ho * Wo, out_c)
        if N_pad != out_c:
            res = jnp.pad(res, ((0, 0), (0, N_pad - out_c)))
    out = matmul_bias(patches, w2d_pad, bias_pad, residual=res)
    if N_pad != out_c:
        out = out[:, :out_c]
    return out.reshape(N, Ho, Wo, out_c)


def _shortcut(x_nhwc, stride, out_c):
    # ReActNet-style shortcut: 2x2 avg-pool on downsample + channel duplication.
    N, H, W, C = x_nhwc.shape
    y = x_nhwc
    if stride == 2:
        y = y.astype(jnp.float32).reshape(N, H // 2, 2, W // 2, 2, C).mean(axis=(2, 4))
    if out_c != C:
        assert out_c == 2 * C
        y = jnp.concatenate([y, y], axis=-1)
    return y.astype(jnp.bfloat16)


def pool_fc(x_nhwc, fc_wT, fc_b):
    """AdaptiveAvgPool2d(1) + view(N,-1) + nn.Linear, fused into one Pallas kernel."""
    N, H, W, C = x_nhwc.shape
    x = x_nhwc.reshape(N, H * W, C)
    Np = fc_wT.shape[1]
    logits = pl.pallas_call(
        _pool_fc_kernel,
        out_shape=jax.ShapeDtypeStruct((N, Np), jnp.float32),
        grid=(1,),
        in_specs=[
            pl.BlockSpec((N, H * W, C), lambda i: (0, 0, 0)),
            pl.BlockSpec((C, Np), lambda i: (0, 0)),
            pl.BlockSpec((1, Np), lambda i: (0, 0)),
        ],
        out_specs=pl.BlockSpec((N, Np), lambda i: (0, 0)),
        compiler_params=pltpu.CompilerParams(vmem_limit_bytes=_VMEM_LIMIT),
    )(x, fc_wT, fc_b.reshape(1, Np))
    return logits[:, :NUM_CLASS]


# ---------------- parameters (deterministic, in-script) ----------------

def init_params(key):
    params = {"blocks": []}
    strides = _block_strides()
    in_c = 3
    for i, out_c in enumerate(STAGE):
        key, kw, kg, kb = jax.random.split(key, 4)
        w = jax.random.normal(kw, (out_c, in_c, 3, 3), jnp.float32) / np.sqrt(9 * in_c)
        gamma = jax.random.uniform(kg, (out_c,), jnp.float32, 0.5, 1.5)
        beta = jax.random.uniform(kb, (out_c,), jnp.float32, -0.1, 0.1)
        run_mean = jnp.zeros((out_c,), jnp.float32)  # inference-mode BatchNorm2d stats
        run_var = jnp.ones((out_c,), jnp.float32)
        scale = gamma / jnp.sqrt(run_var + BN_EPS)
        bias = beta - run_mean * scale
        # Fold BN scale into the conv weight, reorder OIHW -> (kh,kw,Cin,Cout), and pad
        # K/N to 128 multiples ONCE at init (no per-forward relayout; lane-dense tiles).
        K = 9 * in_c
        K_pad = _round_up(K, LANE)
        N_pad = _round_up(out_c, LANE)
        w2d = jnp.transpose(w, (2, 3, 1, 0)).reshape(K, out_c) * scale[None, :]
        w2d = jnp.pad(w2d, ((0, K_pad - K), (0, N_pad - out_c))).astype(jnp.bfloat16)
        bias_pad = jnp.pad(bias, (0, N_pad - out_c)).astype(jnp.float32)
        params["blocks"].append({"w2d": w2d, "bias": bias_pad})
        in_c = out_c
        del strides[i:i]  # no-op; strides derived statically in forward
    key, kfw, kfb = jax.random.split(key, 3)
    bound = 1.0 / np.sqrt(STAGE[-1])
    fc_w = jax.random.uniform(kfw, (NUM_CLASS, STAGE[-1]), jnp.float32, -bound, bound)
    fc_b = jax.random.uniform(kfb, (NUM_CLASS,), jnp.float32, -bound, bound)
    Np = _round_up(NUM_CLASS, LANE)  # pad FC to 128 lanes for dense stores; slice after
    params["fc_wT"] = jnp.pad(fc_w.T, ((0, 0), (0, Np - NUM_CLASS))).astype(jnp.bfloat16)
    params["fc_b"] = jnp.pad(fc_b, (0, Np - NUM_CLASS)).astype(jnp.float32)
    return params


# ---------------- forward ----------------

def custom_react_forward(params, x_nchw):
    strides = _block_strides()
    x = jnp.transpose(x_nchw, (0, 2, 3, 1)).astype(jnp.bfloat16)  # NCHW -> NHWC, bf16 for MXU
    for i, blk in enumerate(params["blocks"]):
        out_c, stride = STAGE[i], strides[i]
        if i == 0:
            # pre_conv: conv3x3(stride=1, pad=1, no bias) + BatchNorm2d
            x = conv3x3_bn(x, blk["w2d"], blk["bias"], stride, out_c)
        else:
            # TODO(synk): Aresblock1_1 is referenced but not defined in the source module;
            # approximated as conv3x3(stride)+BN with a ReActNet-style residual shortcut.
            sc = _shortcut(x, stride, out_c)
            x = conv3x3_bn(x, blk["w2d"], blk["bias"], stride, out_c, residual_nhwc=sc)
    # pool + view(N,-1) + nn.Linear; nn.Softmax is built in __init__ but unused in forward()
    return pool_fc(x, params["fc_wT"], params["fc_b"])


if __name__ == "__main__":
    key = jax.random.PRNGKey(0)
    pkey, xkey = jax.random.split(key)
    params = init_params(pkey)
    x = jax.random.normal(xkey, (2, 3, 16, 16), jnp.float32)  # NCHW like PyTorch
    fwd = jax.jit(custom_react_forward)
    out = fwd(params, x)
    out = jax.block_until_ready(out)
    assert out.shape == (2, NUM_CLASS)
    assert bool(jnp.all(jnp.isfinite(out)))
    print("KERNEL_OK")
</pallas_src>

<mosaic_0001>
module attributes {stable_mosaic.version = 11 : i64} {
  func.func @_mm_bias_kernel(%arg0: i32, %arg1: i32, %arg2: i32, %arg3: memref<256x128xbf16, #tpu.memory_space<vmem>>, %arg4: memref<128x128xbf16, #tpu.memory_space<vmem>>, %arg5: memref<1x128xf32, #tpu.memory_space<vmem>>, %arg6: memref<256x128xbf16, #tpu.memory_space<vmem>>, %arg7: memref<256x128xf32, #tpu.memory_space<vmem>>) attributes {dimension_semantics = [#tpu.dimension_semantics<parallel>, #tpu.dimension_semantics<parallel>, #tpu.dimension_semantics<arbitrary>], iteration_bounds = array<i64: 2, 1, 1>, scalar_prefetch = 0 : i64, scratch_operands = 1 : i64, tpu.core_type = #tpu.core_type<tc>, window_params = [{transform_indices = @transform_0, window_bounds = array<i64: 256, 128>}, {transform_indices = @transform_1, window_bounds = array<i64: 128, 128>}, {transform_indices = @transform_2, window_bounds = array<i64: 1, 128>}, {transform_indices = @transform_3, window_bounds = array<i64: 256, 128>}]} {
    %c0_i32 = arith.constant 0 : i32
    %0 = arith.cmpi eq, %arg2, %c0_i32 : i32
    %1 = arith.extui %0 : i1 to i32
    %c0_i32_0 = arith.constant 0 : i32
    %2 = arith.cmpi ne, %1, %c0_i32_0 : i32
    scf.if %2 {
      %cst_10 = arith.constant 0.000000e+00 : f32
      %12 = vector.broadcast %cst_10 : f32 to vector<256x128xf32>
      %c0_11 = arith.constant 0 : index
      %c0_12 = arith.constant 0 : index
      %13 = vector.load %arg7[%c0_11, %c0_12] : memref<256x128xf32, #tpu.memory_space<vmem>>, vector<256x128xf32>
      tpu.vector_store %arg7[%c0_11, %c0_12], %12 {strides = array<i32>} : memref<256x128xf32, #tpu.memory_space<vmem>>, vector<256x128xf32>,
    } else {
    }
    %c0 = arith.constant 0 : index
    %c0_1 = arith.constant 0 : index
    %3 = vector.load %arg7[%c0, %c0_1] : memref<256x128xf32, #tpu.memory_space<vmem>>, vector<256x128xf32>
    %c0_2 = arith.constant 0 : index
    %c0_3 = arith.constant 0 : index
    %4 = vector.load %arg3[%c0_2, %c0_3] : memref<256x128xbf16, #tpu.memory_space<vmem>>, vector<256x128xbf16>
    %c0_4 = arith.constant 0 : index
    %c0_5 = arith.constant 0 : index
    %5 = vector.load %arg4[%c0_4, %c0_5] : memref<128x128xbf16, #tpu.memory_space<vmem>>, vector<128x128xbf16>
    %cst = arith.constant dense<0.000000e+00> : vector<256x128xf32>
    %6 = tpu.matmul %4, %5, %cst {dimension_numbers = #tpu.dot_dimension_numbers<[1], [0], [0], [1], [0, 0, 1, 1], [], []>} : vector<256x128xbf16>, vector<128x128xbf16>, vector<256x128xf32> -> vector<256x128xf32>
    %7 = arith.addf %3, %6 : vector<256x128xf32>
    %c0_6 = arith.constant 0 : index
    %c0_7 = arith.constant 0 : index
    %8 = vector.load %arg7[%c0_6, %c0_7] : memref<256x128xf32, #tpu.memory_space<vmem>>, vector<256x128xf32>
    tpu.vector_store %arg7[%c0_6, %c0_7], %7 {strides = array<i32>} : memref<256x128xf32, #tpu.memory_space<vmem>>, vector<256x128xf32>,
    %c0_i32_8 = arith.constant 0 : i32
    %9 = arith.cmpi eq, %arg2, %c0_i32_8 : i32
    %10 = arith.extui %9 : i1 to i32
    %c0_i32_9 = arith.constant 0 : i32
    %11 = arith.cmpi ne, %10, %c0_i32_9 : i32
    scf.if %11 {
      %c0_10 = arith.constant 0 : index
      %c0_11 = arith.constant 0 : index
      %12 = vector.load %arg7[%c0_10, %c0_11] : memref<256x128xf32, #tpu.memory_space<vmem>>, vector<256x128xf32>
      %c0_12 = arith.constant 0 : index
      %c0_13 = arith.constant 0 : index
      %13 = vector.load %arg5[%c0_12, %c0_13] : memref<1x128xf32, #tpu.memory_space<vmem>>, vector<1x128xf32>
      %14 = vector.broadcast %13 : vector<1x128xf32> to vector<256x128xf32>
      %15 = arith.addf %12, %14 : vector<256x128xf32>
      %16 = arith.truncf %15 : vector<256x128xf32> to vector<256x128xbf16>
      %c0_14 = arith.constant 0 : index
      %c0_15 = arith.constant 0 : index
      %17 = vector.load %arg6[%c0_14, %c0_15] : memref<256x128xbf16, #tpu.memory_space<vmem>>, vector<256x128xbf16>
      tpu.vector_store %arg6[%c0_14, %c0_15], %16 {strides = array<i32>} : memref<256x128xbf16, #tpu.memory_space<vmem>>, vector<256x128xbf16>,
    } else {
    }
    return
  }
  func.func @transform_0(%arg0: i32, %arg1: i32, %arg2: i32) -> (i32, i32) {
    %c0_i32 = arith.constant 0 : i32
    return %arg0, %arg2 : i32, i32
  }
  func.func @transform_1(%arg0: i32, %arg1: i32, %arg2: i32) -> (i32, i32) {
    %c0_i32 = arith.constant 0 : i32
    return %arg2, %arg1 : i32, i32
  }
  func.func @transform_2(%arg0: i32, %arg1: i32, %arg2: i32) -> (i32, i32) {
    %c0_i32 = arith.constant 0 : i32
    %c0_i32_0 = arith.constant 0 : i32
    return %c0_i32, %arg1 : i32, i32
  }
  func.func @transform_3(%arg0: i32, %arg1: i32, %arg2: i32) -> (i32, i32) {
    %c0_i32 = arith.constant 0 : i32
    return %arg0, %arg1 : i32, i32
  }
}

module attributes {stable_mosaic.version = 11 : i64} {
  func.func @_mm_bias_res_kernel(%arg0: i32, %arg1: i32, %arg2: i32, %arg3: memref<128x640xbf16, #tpu.memory_space<vmem>>, %arg4: memref<640x128xbf16, #tpu.memory_space<vmem>>, %arg5: memref<1x128xf32, #tpu.memory_space<vmem>>, %arg6: memref<128x128xbf16, #tpu.memory_space<vmem>>, %arg7: memref<128x128xbf16, #tpu.memory_space<vmem>>, %arg8: memref<128x128xf32, #tpu.memory_space<vmem>>) attributes {dimension_semantics = [#tpu.dimension_semantics<parallel>, #tpu.dimension_semantics<parallel>, #tpu.dimension_semantics<arbitrary>], iteration_bounds = array<i64: 1, 1, 1>, scalar_prefetch = 0 : i64, scratch_operands = 1 : i64, tpu.core_type = #tpu.core_type<tc>, window_params = [{transform_indices = @transform_0, window_bounds = array<i64: 128, 640>}, {transform_indices = @transform_1, window_bounds = array<i64: 640, 128>}, {transform_indices = @transform_2, window_bounds = array<i64: 1, 128>}, {transform_indices = @transform_3, window_bounds = array<i64: 128, 128>}, {transform_indices = @transform_4, window_bounds = array<i64: 128, 128>}]} {
    %c0_i32 = arith.constant 0 : i32
    %0 = arith.cmpi eq, %arg2, %c0_i32 : i32
    %1 = arith.extui %0 : i1 to i32
    %c0_i32_0 = arith.constant 0 : i32
    %2 = arith.cmpi ne, %1, %c0_i32_0 : i32
    scf.if %2 {
      %cst_10 = arith.constant 0.000000e+00 : f32
      %12 = vector.broadcast %cst_10 : f32 to vector<128x128xf32>
      %c0_11 = arith.constant 0 : index
      %c0_12 = arith.constant 0 : index
      %13 = vector.load %arg8[%c0_11, %c0_12] : memref<128x128xf32, #tpu.memory_space<vmem>>, vector<128x128xf32>
      tpu.vector_store %arg8[%c0_11, %c0_12], %12 {strides = array<i32>} : memref<128x128xf32, #tpu.memory_space<vmem>>, vector<128x128xf32>,
    } else {
    }
    %c0 = arith.constant 0 : index
    %c0_1 = arith.constant 0 : index
    %3 = vector.load %arg8[%c0, %c0_1] : memref<128x128xf32, #tpu.memory_space<vmem>>, vector<128x128xf32>
    %c0_2 = arith.constant 0 : index
    %c0_3 = arith.constant 0 : index
    %4 = vector.load %arg3[%c0_2, %c0_3] : memref<128x640xbf16, #tpu.memory_space<vmem>>, vector<128x640xbf16>
    %c0_4 = arith.constant 0 : index
    %c0_5 = arith.constant 0 : index
    %5 = vector.load %arg4[%c0_4, %c0_5] : memref<640x128xbf16, #tpu.memory_space<vmem>>, vector<640x128xbf16>
    %cst = arith.constant dense<0.000000e+00> : vector<128x128xf32>
    %6 = tpu.matmul %4, %5, %cst {dimension_numbers = #tpu.dot_dimension_numbers<[1], [0], [0], [1], [0, 0, 1, 1], [], []>} : vector<128x640xbf16>, vector<640x128xbf16>, vector<128x128xf32> -> vector<128x128xf32>
    %7 = arith.addf %3, %6 : vector<128x128xf32>
    %c0_6 = arith.constant 0 : index
    %c0_7 = arith.constant 0 : index
    %8 = vector.load %arg8[%c0_6, %c0_7] : memref<128x128xf32, #tpu.memory_space<vmem>>, vector<128x128xf32>
    tpu.vector_store %arg8[%c0_6, %c0_7], %7 {strides = array<i32>} : memref<128x128xf32, #tpu.memory_space<vmem>>, vector<128x128xf32>,
    %c0_i32_8 = arith.constant 0 : i32
    %9 = arith.cmpi eq, %arg2, %c0_i32_8 : i32
    %10 = arith.extui %9 : i1 to i32
    %c0_i32_9 = arith.constant 0 : i32
    %11 = arith.cmpi ne, %10, %c0_i32_9 : i32
    scf.if %11 {
      %c0_10 = arith.constant 0 : index
      %c0_11 = arith.constant 0 : index
      %12 = vector.load %arg8[%c0_10, %c0_11] : memref<128x128xf32, #tpu.memory_space<vmem>>, vector<128x128xf32>
      %c0_12 = arith.constant 0 : index
      %c0_13 = arith.constant 0 : index
      %13 = vector.load %arg5[%c0_12, %c0_13] : memref<1x128xf32, #tpu.memory_space<vmem>>, vector<1x128xf32>
      %14 = vector.broadcast %13 : vector<1x128xf32> to vector<128x128xf32>
      %15 = arith.addf %12, %14 : vector<128x128xf32>
      %c0_14 = arith.constant 0 : index
      %c0_15 = arith.constant 0 : index
      %16 = vector.load %arg6[%c0_14, %c0_15] : memref<128x128xbf16, #tpu.memory_space<vmem>>, vector<128x128xbf16>
      %17 = arith.extf %16 : vector<128x128xbf16> to vector<128x128xf32>
      %18 = arith.addf %15, %17 : vector<128x128xf32>
      %19 = arith.truncf %18 : vector<128x128xf32> to vector<128x128xbf16>
      %c0_16 = arith.constant 0 : index
      %c0_17 = arith.constant 0 : index
      %20 = vector.load %arg7[%c0_16, %c0_17] : memref<128x128xbf16, #tpu.memory_space<vmem>>, vector<128x128xbf16>
      tpu.vector_store %arg7[%c0_16, %c0_17], %19 {strides = array<i32>} : memref<128x128xbf16, #tpu.memory_space<vmem>>, vector<128x128xbf16>,
    } else {
    }
    return
  }
  func.func @transform_0(%arg0: i32, %arg1: i32, %arg2: i32) -> (i32, i32) {
    %c0_i32 = arith.constant 0 : i32
    return %arg0, %arg2 : i32, i32
  }
  func.func @transform_1(%arg0: i32, %arg1: i32, %arg2: i32) -> (i32, i32) {
    %c0_i32 = arith.constant 0 : i32
    return %arg2, %arg1 : i32, i32
  }
  func.func @transform_2(%arg0: i32, %arg1: i32, %arg2: i32) -> (i32, i32) {
    %c0_i32 = arith.constant 0 : i32
    %c0_i32_0 = arith.constant 0 : i32
    return %c0_i32, %arg1 : i32, i32
  }
  func.func @transform_3(%arg0: i32, %arg1: i32, %arg2: i32) -> (i32, i32) {
    %c0_i32 = arith.constant 0 : i32
    return %arg0, %arg1 : i32, i32
  }
  func.func @transform_4(%arg0: i32, %arg1: i32, %arg2: i32) -> (i32, i32) {
    %c0_i32 = arith.constant 0 : i32
    return %arg0, %arg1 : i32, i32
  }
}

module attributes {stable_mosaic.version = 11 : i64} {
  func.func @_mm_bias_res_kernel(%arg0: i32, %arg1: i32, %arg2: i32, %arg3: memref<128x1152xbf16, #tpu.memory_space<vmem>>, %arg4: memref<1152x128xbf16, #tpu.memory_space<vmem>>, %arg5: memref<1x128xf32, #tpu.memory_space<vmem>>, %arg6: memref<128x128xbf16, #tpu.memory_space<vmem>>, %arg7: memref<128x128xbf16, #tpu.memory_space<vmem>>, %arg8: memref<128x128xf32, #tpu.memory_space<vmem>>) attributes {dimension_semantics = [#tpu.dimension_semantics<parallel>, #tpu.dimension_semantics<parallel>, #tpu.dimension_semantics<arbitrary>], iteration_bounds = array<i64: 1, 1, 1>, scalar_prefetch = 0 : i64, scratch_operands = 1 : i64, tpu.core_type = #tpu.core_type<tc>, window_params = [{transform_indices = @transform_0, window_bounds = array<i64: 128, 1152>}, {transform_indices = @transform_1, window_bounds = array<i64: 1152, 128>}, {transform_indices = @transform_2, window_bounds = array<i64: 1, 128>}, {transform_indices = @transform_3, window_bounds = array<i64: 128, 128>}, {transform_indices = @transform_4, window_bounds = array<i64: 128, 128>}]} {
    %c0_i32 = arith.constant 0 : i32
    %0 = arith.cmpi eq, %arg2, %c0_i32 : i32
    %1 = arith.extui %0 : i1 to i32
    %c0_i32_0 = arith.constant 0 : i32
    %2 = arith.cmpi ne, %1, %c0_i32_0 : i32
    scf.if %2 {
      %cst_10 = arith.constant 0.000000e+00 : f32
      %12 = vector.broadcast %cst_10 : f32 to vector<128x128xf32>
      %c0_11 = arith.constant 0 : index
      %c0_12 = arith.constant 0 : index
      %13 = vector.load %arg8[%c0_11, %c0_12] : memref<128x128xf32, #tpu.memory_space<vmem>>, vector<128x128xf32>
      tpu.vector_store %arg8[%c0_11, %c0_12], %12 {strides = array<i32>} : memref<128x128xf32, #tpu.memory_space<vmem>>, vector<128x128xf32>,
    } else {
    }
    %c0 = arith.constant 0 : index
    %c0_1 = arith.constant 0 : index
    %3 = vector.load %arg8[%c0, %c0_1] : memref<128x128xf32, #tpu.memory_space<vmem>>, vector<128x128xf32>
    %c0_2 = arith.constant 0 : index
    %c0_3 = arith.constant 0 : index
    %4 = vector.load %arg3[%c0_2, %c0_3] : memref<128x1152xbf16, #tpu.memory_space<vmem>>, vector<128x1152xbf16>
    %c0_4 = arith.constant 0 : index
    %c0_5 = arith.constant 0 : index
    %5 = vector.load %arg4[%c0_4, %c0_5] : memref<1152x128xbf16, #tpu.memory_space<vmem>>, vector<1152x128xbf16>
    %cst = arith.constant dense<0.000000e+00> : vector<128x128xf32>
    %6 = tpu.matmul %4, %5, %cst {dimension_numbers = #tpu.dot_dimension_numbers<[1], [0], [0], [1], [0, 0, 1, 1], [], []>} : vector<128x1152xbf16>, vector<1152x128xbf16>, vector<128x128xf32> -> vector<128x128xf32>
    %7 = arith.addf %3, %6 : vector<128x128xf32>
    %c0_6 = arith.constant 0 : index
    %c0_7 = arith.constant 0 : index
    %8 = vector.load %arg8[%c0_6, %c0_7] : memref<128x128xf32, #tpu.memory_space<vmem>>, vector<128x128xf32>
    tpu.vector_store %arg8[%c0_6, %c0_7], %7 {strides = array<i32>} : memref<128x128xf32, #tpu.memory_space<vmem>>, vector<128x128xf32>,
    %c0_i32_8 = arith.constant 0 : i32
    %9 = arith.cmpi eq, %arg2, %c0_i32_8 : i32
    %10 = arith.extui %9 : i1 to i32
    %c0_i32_9 = arith.constant 0 : i32
    %11 = arith.cmpi ne, %10, %c0_i32_9 : i32
    scf.if %11 {
      %c0_10 = arith.constant 0 : index
      %c0_11 = arith.constant 0 : index
      %12 = vector.load %arg8[%c0_10, %c0_11] : memref<128x128xf32, #tpu.memory_space<vmem>>, vector<128x128xf32>
      %c0_12 = arith.constant 0 : index
      %c0_13 = arith.constant 0 : index
      %13 = vector.load %arg5[%c0_12, %c0_13] : memref<1x128xf32, #tpu.memory_space<vmem>>, vector<1x128xf32>
      %14 = vector.broadcast %13 : vector<1x128xf32> to vector<128x128xf32>
      %15 = arith.addf %12, %14 : vector<128x128xf32>
      %c0_14 = arith.constant 0 : index
      %c0_15 = arith.constant 0 : index
      %16 = vector.load %arg6[%c0_14, %c0_15] : memref<128x128xbf16, #tpu.memory_space<vmem>>, vector<128x128xbf16>
      %17 = arith.extf %16 : vector<128x128xbf16> to vector<128x128xf32>
      %18 = arith.addf %15, %17 : vector<128x128xf32>
      %19 = arith.truncf %18 : vector<128x128xf32> to vector<128x128xbf16>
      %c0_16 = arith.constant 0 : index
      %c0_17 = arith.constant 0 : index
      %20 = vector.load %arg7[%c0_16, %c0_17] : memref<128x128xbf16, #tpu.memory_space<vmem>>, vector<128x128xbf16>
      tpu.vector_store %arg7[%c0_16, %c0_17], %19 {strides = array<i32>} : memref<128x128xbf16, #tpu.memory_space<vmem>>, vector<128x128xbf16>,
    } else {
    }
    return
  }
  func.func @transform_0(%arg0: i32, %arg1: i32, %arg2: i32) -> (i32, i32) {
    %c0_i32 = arith.constant 0 : i32
    return %arg0, %arg2 : i32, i32
  }
  func.func @transform_1(%arg0: i32, %arg1: i32, %arg2: i32) -> (i32, i32) {
    %c0_i32 = arith.constant 0 : i32
    return %arg2, %arg1 : i32, i32
  }
  func.func @transform_2(%arg0: i32, %arg1: i32, %arg2: i32) -> (i32, i32) {
    %c0_i32 = arith.constant 0 : i32
    %c0_i32_0 = arith.constant 0 : i32
    return %c0_i32, %arg1 : i32, i32
  }
  func.func @transform_3(%arg0: i32, %arg1: i32, %arg2: i32) -> (i32, i32) {
    %c0_i32 = arith.constant 0 : i32
    return %arg0, %arg1 : i32, i32
  }
  func.func @transform_4(%arg0: i32, %arg1: i32, %arg2: i32) -> (i32, i32) {
    %c0_i32 = arith.constant 0 : i32
    return %arg0, %arg1 : i32, i32
  }
}

module attributes {stable_mosaic.version = 11 : i64} {
  func.func @_mm_bias_res_kernel(%arg0: i32, %arg1: i32, %arg2: i32, %arg3: memref<32x1152xbf16, #tpu.memory_space<vmem>>, %arg4: memref<1152x256xbf16, #tpu.memory_space<vmem>>, %arg5: memref<1x256xf32, #tpu.memory_space<vmem>>, %arg6: memref<32x256xbf16, #tpu.memory_space<vmem>>, %arg7: memref<32x256xbf16, #tpu.memory_space<vmem>>, %arg8: memref<32x256xf32, #tpu.memory_space<vmem>>) attributes {dimension_semantics = [#tpu.dimension_semantics<parallel>, #tpu.dimension_semantics<parallel>, #tpu.dimension_semantics<arbitrary>], iteration_bounds = array<i64: 1, 1, 1>, scalar_prefetch = 0 : i64, scratch_operands = 1 : i64, tpu.core_type = #tpu.core_type<tc>, window_params = [{transform_indices = @transform_0, window_bounds = array<i64: 32, 1152>}, {transform_indices = @transform_1, window_bounds = array<i64: 1152, 256>}, {transform_indices = @transform_2, window_bounds = array<i64: 1, 256>}, {transform_indices = @transform_3, window_bounds = array<i64: 32, 256>}, {transform_indices = @transform_4, window_bounds = array<i64: 32, 256>}]} {
    %c0_i32 = arith.constant 0 : i32
    %0 = arith.cmpi eq, %arg2, %c0_i32 : i32
    %1 = arith.extui %0 : i1 to i32
    %c0_i32_0 = arith.constant 0 : i32
    %2 = arith.cmpi ne, %1, %c0_i32_0 : i32
    scf.if %2 {
      %cst_10 = arith.constant 0.000000e+00 : f32
      %12 = vector.broadcast %cst_10 : f32 to vector<32x256xf32>
      %c0_11 = arith.constant 0 : index
      %c0_12 = arith.constant 0 : index
      %13 = vector.load %arg8[%c0_11, %c0_12] : memref<32x256xf32, #tpu.memory_space<vmem>>, vector<32x256xf32>
      tpu.vector_store %arg8[%c0_11, %c0_12], %12 {strides = array<i32>} : memref<32x256xf32, #tpu.memory_space<vmem>>, vector<32x256xf32>,
    } else {
    }
    %c0 = arith.constant 0 : index
    %c0_1 = arith.constant 0 : index
    %3 = vector.load %arg8[%c0, %c0_1] : memref<32x256xf32, #tpu.memory_space<vmem>>, vector<32x256xf32>
    %c0_2 = arith.constant 0 : index
    %c0_3 = arith.constant 0 : index
    %4 = vector.load %arg3[%c0_2, %c0_3] : memref<32x1152xbf16, #tpu.memory_space<vmem>>, vector<32x1152xbf16>
    %c0_4 = arith.constant 0 : index
    %c0_5 = arith.constant 0 : index
    %5 = vector.load %arg4[%c0_4, %c0_5] : memref<1152x256xbf16, #tpu.memory_space<vmem>>, vector<1152x256xbf16>
    %cst = arith.constant dense<0.000000e+00> : vector<32x256xf32>
    %6 = tpu.matmul %4, %5, %cst {dimension_numbers = #tpu.dot_dimension_numbers<[1], [0], [0], [1], [0, 0, 1, 1], [], []>} : vector<32x1152xbf16>, vector<1152x256xbf16>, vector<32x256xf32> -> vector<32x256xf32>
    %7 = arith.addf %3, %6 : vector<32x256xf32>
    %c0_6 = arith.constant 0 : index
    %c0_7 = arith.constant 0 : index
    %8 = vector.load %arg8[%c0_6, %c0_7] : memref<32x256xf32, #tpu.memory_space<vmem>>, vector<32x256xf32>
    tpu.vector_store %arg8[%c0_6, %c0_7], %7 {strides = array<i32>} : memref<32x256xf32, #tpu.memory_space<vmem>>, vector<32x256xf32>,
    %c0_i32_8 = arith.constant 0 : i32
    %9 = arith.cmpi eq, %arg2, %c0_i32_8 : i32
    %10 = arith.extui %9 : i1 to i32
    %c0_i32_9 = arith.constant 0 : i32
    %11 = arith.cmpi ne, %10, %c0_i32_9 : i32
    scf.if %11 {
      %c0_10 = arith.constant 0 : index
      %c0_11 = arith.constant 0 : index
      %12 = vector.load %arg8[%c0_10, %c0_11] : memref<32x256xf32, #tpu.memory_space<vmem>>, vector<32x256xf32>
      %c0_12 = arith.constant 0 : index
      %c0_13 = arith.constant 0 : index
      %13 = vector.load %arg5[%c0_12, %c0_13] : memref<1x256xf32, #tpu.memory_space<vmem>>, vector<1x256xf32>
      %14 = vector.broadcast %13 : vector<1x256xf32> to vector<32x256xf32>
      %15 = arith.addf %12, %14 : vector<32x256xf32>
      %c0_14 = arith.constant 0 : index
      %c0_15 = arith.constant 0 : index
      %16 = vector.load %arg6[%c0_14, %c0_15] : memref<32x256xbf16, #tpu.memory_space<vmem>>, vector<32x256xbf16>
      %17 = arith.extf %16 : vector<32x256xbf16> to vector<32x256xf32>
      %18 = arith.addf %15, %17 : vector<32x256xf32>
      %19 = arith.truncf %18 : vector<32x256xf32> to vector<32x256xbf16>
      %c0_16 = arith.constant 0 : index
      %c0_17 = arith.constant 0 : index
      %20 = vector.load %arg7[%c0_16, %c0_17] : memref<32x256xbf16, #tpu.memory_space<vmem>>, vector<32x256xbf16>
      tpu.vector_store %arg7[%c0_16, %c0_17], %19 {strides = array<i32>} : memref<32x256xbf16, #tpu.memory_space<vmem>>, vector<32x256xbf16>,
    } else {
    }
    return
  }
  func.func @transform_0(%arg0: i32, %arg1: i32, %arg2: i32) -> (i32, i32) {
    %c0_i32 = arith.constant 0 : i32
    return %arg0, %arg2 : i32, i32
  }
  func.func @transform_1(%arg0: i32, %arg1: i32, %arg2: i32) -> (i32, i32) {
    %c0_i32 = arith.constant 0 : i32
    return %arg2, %arg1 : i32, i32
  }
  func.func @transform_2(%arg0: i32, %arg1: i32, %arg2: i32) -> (i32, i32) {
    %c0_i32 = arith.constant 0 : i32
    %c0_i32_0 = arith.constant 0 : i32
    return %c0_i32, %arg1 : i32, i32
  }
  func.func @transform_3(%arg0: i32, %arg1: i32, %arg2: i32) -> (i32, i32) {
    %c0_i32 = arith.constant 0 : i32
    return %arg0, %arg1 : i32, i32
  }
  func.func @transform_4(%arg0: i32, %arg1: i32, %arg2: i32) -> (i32, i32) {
    %c0_i32 = arith.constant 0 : i32
    return %arg0, %arg1 : i32, i32
  }
}

module attributes {stable_mosaic.version = 11 : i64} {
  func.func @_mm_bias_res_kernel(%arg0: i32, %arg1: i32, %arg2: i32, %arg3: memref<32x1152xbf16, #tpu.memory_space<vmem>>, %arg4: memref<1152x256xbf16, #tpu.memory_space<vmem>>, %arg5: memref<1x256xf32, #tpu.memory_space<vmem>>, %arg6: memref<32x256xbf16, #tpu.memory_space<vmem>>, %arg7: memref<32x256xbf16, #tpu.memory_space<vmem>>, %arg8: memref<32x256xf32, #tpu.memory_space<vmem>>) attributes {dimension_semantics = [#tpu.dimension_semantics<parallel>, #tpu.dimension_semantics<parallel>, #tpu.dimension_semantics<arbitrary>], iteration_bounds = array<i64: 1, 1, 2>, scalar_prefetch = 0 : i64, scratch_operands = 1 : i64, tpu.core_type = #tpu.core_type<tc>, window_params = [{transform_indices = @transform_0, window_bounds = array<i64: 32, 1152>}, {transform_indices = @transform_1, window_bounds = array<i64: 1152, 256>}, {transform_indices = @transform_2, window_bounds = array<i64: 1, 256>}, {transform_indices = @transform_3, window_bounds = array<i64: 32, 256>}, {transform_indices = @transform_4, window_bounds = array<i64: 32, 256>}]} {
    %c0_i32 = arith.constant 0 : i32
    %0 = arith.cmpi eq, %arg2, %c0_i32 : i32
    %1 = arith.extui %0 : i1 to i32
    %c0_i32_0 = arith.constant 0 : i32
    %2 = arith.cmpi ne, %1, %c0_i32_0 : i32
    scf.if %2 {
      %cst_9 = arith.constant 0.000000e+00 : f32
      %12 = vector.broadcast %cst_9 : f32 to vector<32x256xf32>
      %c0_10 = arith.constant 0 : index
      %c0_11 = arith.constant 0 : index
      %13 = vector.load %arg8[%c0_10, %c0_11] : memref<32x256xf32, #tpu.memory_space<vmem>>, vector<32x256xf32>
      tpu.vector_store %arg8[%c0_10, %c0_11], %12 {strides = array<i32>} : memref<32x256xf32, #tpu.memory_space<vmem>>, vector<32x256xf32>,
    } else {
    }
    %c0 = arith.constant 0 : index
    %c0_1 = arith.constant 0 : index
    %3 = vector.load %arg8[%c0, %c0_1] : memref<32x256xf32, #tpu.memory_space<vmem>>, vector<32x256xf32>
    %c0_2 = arith.constant 0 : index
    %c0_3 = arith.constant 0 : index
    %4 = vector.load %arg3[%c0_2, %c0_3] : memref<32x1152xbf16, #tpu.memory_space<vmem>>, vector<32x1152xbf16>
    %c0_4 = arith.constant 0 : index
    %c0_5 = arith.constant 0 : index
    %5 = vector.load %arg4[%c0_4, %c0_5] : memref<1152x256xbf16, #tpu.memory_space<vmem>>, vector<1152x256xbf16>
    %cst = arith.constant dense<0.000000e+00> : vector<32x256xf32>
    %6 = tpu.matmul %4, %5, %cst {dimension_numbers = #tpu.dot_dimension_numbers<[1], [0], [0], [1], [0, 0, 1, 1], [], []>} : vector<32x1152xbf16>, vector<1152x256xbf16>, vector<32x256xf32> -> vector<32x256xf32>
    %7 = arith.addf %3, %6 : vector<32x256xf32>
    %c0_6 = arith.constant 0 : index
    %c0_7 = arith.constant 0 : index
    %8 = vector.load %arg8[%c0_6, %c0_7] : memref<32x256xf32, #tpu.memory_space<vmem>>, vector<32x256xf32>
    tpu.vector_store %arg8[%c0_6, %c0_7], %7 {strides = array<i32>} : memref<32x256xf32, #tpu.memory_space<vmem>>, vector<32x256xf32>,
    %c1_i32 = arith.constant 1 : i32
    %9 = arith.cmpi eq, %arg2, %c1_i32 : i32
    %10 = arith.extui %9 : i1 to i32
    %c0_i32_8 = arith.constant 0 : i32
    %11 = arith.cmpi ne, %10, %c0_i32_8 : i32
    scf.if %11 {
      %c0_9 = arith.constant 0 : index
      %c0_10 = arith.constant 0 : index
      %12 = vector.load %arg8[%c0_9, %c0_10] : memref<32x256xf32, #tpu.memory_space<vmem>>, vector<32x256xf32>
      %c0_11 = arith.constant 0 : index
      %c0_12 = arith.constant 0 : index
      %13 = vector.load %arg5[%c0_11, %c0_12] : memref<1x256xf32, #tpu.memory_space<vmem>>, vector<1x256xf32>
      %14 = vector.broadcast %13 : vector<1x256xf32> to vector<32x256xf32>
      %15 = arith.addf %12, %14 : vector<32x256xf32>
      %c0_13 = arith.constant 0 : index
      %c0_14 = arith.constant 0 : index
      %16 = vector.load %arg6[%c0_13, %c0_14] : memref<32x256xbf16, #tpu.memory_space<vmem>>, vector<32x256xbf16>
      %17 = arith.extf %16 : vector<32x256xbf16> to vector<32x256xf32>
      %18 = arith.addf %15, %17 : vector<32x256xf32>
      %19 = arith.truncf %18 : vector<32x256xf32> to vector<32x256xbf16>
      %c0_15 = arith.constant 0 : index
      %c0_16 = arith.constant 0 : index
      %20 = vector.load %arg7[%c0_15, %c0_16] : memref<32x256xbf16, #tpu.memory_space<vmem>>, vector<32x256xbf16>
      tpu.vector_store %arg7[%c0_15, %c0_16], %19 {strides = array<i32>} : memref<32x256xbf16, #tpu.memory_space<vmem>>, vector<32x256xbf16>,
    } else {
    }
    return
  }
  func.func @transform_0(%arg0: i32, %arg1: i32, %arg2: i32) -> (i32, i32) {
    %c0_i32 = arith.constant 0 : i32
    return %arg0, %arg2 : i32, i32
  }
  func.func @transform_1(%arg0: i32, %arg1: i32, %arg2: i32) -> (i32, i32) {
    %c0_i32 = arith.constant 0 : i32
    return %arg2, %arg1 : i32, i32
  }
  func.func @transform_2(%arg0: i32, %arg1: i32, %arg2: i32) -> (i32, i32) {
    %c0_i32 = arith.constant 0 : i32
    %c0_i32_0 = arith.constant 0 : i32
    return %c0_i32, %arg1 : i32, i32
  }
  func.func @transform_3(%arg0: i32, %arg1: i32, %arg2: i32) -> (i32, i32) {
    %c0_i32 = arith.constant 0 : i32
    return %arg0, %arg1 : i32, i32
  }
  func.func @transform_4(%arg0: i32, %arg1: i32, %arg2: i32) -> (i32, i32) {
    %c0_i32 = arith.constant 0 : i32
    return %arg0, %arg1 : i32, i32
  }
}

module attributes {stable_mosaic.version = 11 : i64} {
  func.func @_mm_bias_res_kernel(%arg0: i32, %arg1: i32, %arg2: i32, %arg3: memref<8x1152xbf16, #tpu.memory_space<vmem>>, %arg4: memref<1152x256xbf16, #tpu.memory_space<vmem>>, %arg5: memref<1x256xf32, #tpu.memory_space<vmem>>, %arg6: memref<8x256xbf16, #tpu.memory_space<vmem>>, %arg7: memref<8x256xbf16, #tpu.memory_space<vmem>>, %arg8: memref<8x256xf32, #tpu.memory_space<vmem>>) attributes {dimension_semantics = [#tpu.dimension_semantics<parallel>, #tpu.dimension_semantics<parallel>, #tpu.dimension_semantics<arbitrary>], iteration_bounds = array<i64: 1, 2, 2>, scalar_prefetch = 0 : i64, scratch_operands = 1 : i64, tpu.core_type = #tpu.core_type<tc>, window_params = [{transform_indices = @transform_0, window_bounds = array<i64: 8, 1152>}, {transform_indices = @transform_1, window_bounds = array<i64: 1152, 256>}, {transform_indices = @transform_2, window_bounds = array<i64: 1, 256>}, {transform_indices = @transform_3, window_bounds = array<i64: 8, 256>}, {transform_indices = @transform_4, window_bounds = array<i64: 8, 256>}]} {
    %c0_i32 = arith.constant 0 : i32
    %0 = arith.cmpi eq, %arg2, %c0_i32 : i32
    %1 = arith.extui %0 : i1 to i32
    %c0_i32_0 = arith.constant 0 : i32
    %2 = arith.cmpi ne, %1, %c0_i32_0 : i32
    scf.if %2 {
      %cst_9 = arith.constant 0.000000e+00 : f32
      %12 = vector.broadcast %cst_9 : f32 to vector<8x256xf32>
      %c0_10 = arith.constant 0 : index
      %c0_11 = arith.constant 0 : index
      %13 = vector.load %arg8[%c0_10, %c0_11] : memref<8x256xf32, #tpu.memory_space<vmem>>, vector<8x256xf32>
      tpu.vector_store %arg8[%c0_10, %c0_11], %12 {strides = array<i32>} : memref<8x256xf32, #tpu.memory_space<vmem>>, vector<8x256xf32>,
    } else {
    }
    %c0 = arith.constant 0 : index
    %c0_1 = arith.constant 0 : index
    %3 = vector.load %arg8[%c0, %c0_1] : memref<8x256xf32, #tpu.memory_space<vmem>>, vector<8x256xf32>
    %c0_2 = arith.constant 0 : index
    %c0_3 = arith.constant 0 : index
    %4 = vector.load %arg3[%c0_2, %c0_3] : memref<8x1152xbf16, #tpu.memory_space<vmem>>, vector<8x1152xbf16>
    %c0_4 = arith.constant 0 : index
    %c0_5 = arith.constant 0 : index
    %5 = vector.load %arg4[%c0_4, %c0_5] : memref<1152x256xbf16, #tpu.memory_space<vmem>>, vector<1152x256xbf16>
    %cst = arith.constant dense<0.000000e+00> : vector<8x256xf32>
    %6 = tpu.matmul %4, %5, %cst {dimension_numbers = #tpu.dot_dimension_numbers<[1], [0], [0], [1], [0, 0, 1, 1], [], []>} : vector<8x1152xbf16>, vector<1152x256xbf16>, vector<8x256xf32> -> vector<8x256xf32>
    %7 = arith.addf %3, %6 : vector<8x256xf32>
    %c0_6 = arith.constant 0 : index
    %c0_7 = arith.constant 0 : index
    %8 = vector.load %arg8[%c0_6, %c0_7] : memref<8x256xf32, #tpu.memory_space<vmem>>, vector<8x256xf32>
    tpu.vector_store %arg8[%c0_6, %c0_7], %7 {strides = array<i32>} : memref<8x256xf32, #tpu.memory_space<vmem>>, vector<8x256xf32>,
    %c1_i32 = arith.constant 1 : i32
    %9 = arith.cmpi eq, %arg2, %c1_i32 : i32
    %10 = arith.extui %9 : i1 to i32
    %c0_i32_8 = arith.constant 0 : i32
    %11 = arith.cmpi ne, %10, %c0_i32_8 : i32
    scf.if %11 {
      %c0_9 = arith.constant 0 : index
      %c0_10 = arith.constant 0 : index
      %12 = vector.load %arg8[%c0_9, %c0_10] : memref<8x256xf32, #tpu.memory_space<vmem>>, vector<8x256xf32>
      %c0_11 = arith.constant 0 : index
      %c0_12 = arith.constant 0 : index
      %13 = vector.load %arg5[%c0_11, %c0_12] : memref<1x256xf32, #tpu.memory_space<vmem>>, vector<1x256xf32>
      %14 = vector.broadcast %13 : vector<1x256xf32> to vector<8x256xf32>
      %15 = arith.addf %12, %14 : vector<8x256xf32>
      %c0_13 = arith.constant 0 : index
      %c0_14 = arith.constant 0 : index
      %16 = vector.load %arg6[%c0_13, %c0_14] : memref<8x256xbf16, #tpu.memory_space<vmem>>, vector<8x256xbf16>
      %17 = arith.extf %16 : vector<8x256xbf16> to vector<8x256xf32>
      %18 = arith.addf %15, %17 : vector<8x256xf32>
      %19 = arith.truncf %18 : vector<8x256xf32> to vector<8x256xbf16>
      %c0_15 = arith.constant 0 : index
      %c0_16 = arith.constant 0 : index
      %20 = vector.load %arg7[%c0_15, %c0_16] : memref<8x256xbf16, #tpu.memory_space<vmem>>, vector<8x256xbf16>
      tpu.vector_store %arg7[%c0_15, %c0_16], %19 {strides = array<i32>} : memref<8x256xbf16, #tpu.memory_space<vmem>>, vector<8x256xbf16>,
    } else {
    }
    return
  }
  func.func @transform_0(%arg0: i32, %arg1: i32, %arg2: i32) -> (i32, i32) {
    %c0_i32 = arith.constant 0 : i32
    return %arg0, %arg2 : i32, i32
  }
  func.func @transform_1(%arg0: i32, %arg1: i32, %arg2: i32) -> (i32, i32) {
    %c0_i32 = arith.constant 0 : i32
    return %arg2, %arg1 : i32, i32
  }
  func.func @transform_2(%arg0: i32, %arg1: i32, %arg2: i32) -> (i32, i32) {
    %c0_i32 = arith.constant 0 : i32
    %c0_i32_0 = arith.constant 0 : i32
    return %c0_i32, %arg1 : i32, i32
  }
  func.func @transform_3(%arg0: i32, %arg1: i32, %arg2: i32) -> (i32, i32) {
    %c0_i32 = arith.constant 0 : i32
    return %arg0, %arg1 : i32, i32
  }
  func.func @transform_4(%arg0: i32, %arg1: i32, %arg2: i32) -> (i32, i32) {
    %c0_i32 = arith.constant 0 : i32
    return %arg0, %arg1 : i32, i32
  }
}

module attributes {stable_mosaic.version = 11 : i64} {
  func.func @_mm_bias_res_kernel(%arg0: i32, %arg1: i32, %arg2: i32, %arg3: memref<8x1536xbf16, #tpu.memory_space<vmem>>, %arg4: memref<1536x256xbf16, #tpu.memory_space<vmem>>, %arg5: memref<1x256xf32, #tpu.memory_space<vmem>>, %arg6: memref<8x256xbf16, #tpu.memory_space<vmem>>, %arg7: memref<8x256xbf16, #tpu.memory_space<vmem>>, %arg8: memref<8x256xf32, #tpu.memory_space<vmem>>) attributes {dimension_semantics = [#tpu.dimension_semantics<parallel>, #tpu.dimension_semantics<parallel>, #tpu.dimension_semantics<arbitrary>], iteration_bounds = array<i64: 1, 2, 3>, scalar_prefetch = 0 : i64, scratch_operands = 1 : i64, tpu.core_type = #tpu.core_type<tc>, window_params = [{transform_indices = @transform_0, window_bounds = array<i64: 8, 1536>}, {transform_indices = @transform_1, window_bounds = array<i64: 1536, 256>}, {transform_indices = @transform_2, window_bounds = array<i64: 1, 256>}, {transform_indices = @transform_3, window_bounds = array<i64: 8, 256>}, {transform_indices = @transform_4, window_bounds = array<i64: 8, 256>}]} {
    %c0_i32 = arith.constant 0 : i32
    %0 = arith.cmpi eq, %arg2, %c0_i32 : i32
    %1 = arith.extui %0 : i1 to i32
    %c0_i32_0 = arith.constant 0 : i32
    %2 = arith.cmpi ne, %1, %c0_i32_0 : i32
    scf.if %2 {
      %cst_9 = arith.constant 0.000000e+00 : f32
      %12 = vector.broadcast %cst_9 : f32 to vector<8x256xf32>
      %c0_10 = arith.constant 0 : index
      %c0_11 = arith.constant 0 : index
      %13 = vector.load %arg8[%c0_10, %c0_11] : memref<8x256xf32, #tpu.memory_space<vmem>>, vector<8x256xf32>
      tpu.vector_store %arg8[%c0_10, %c0_11], %12 {strides = array<i32>} : memref<8x256xf32, #tpu.memory_space<vmem>>, vector<8x256xf32>,
    } else {
    }
    %c0 = arith.constant 0 : index
    %c0_1 = arith.constant 0 : index
    %3 = vector.load %arg8[%c0, %c0_1] : memref<8x256xf32, #tpu.memory_space<vmem>>, vector<8x256xf32>
    %c0_2 = arith.constant 0 : index
    %c0_3 = arith.constant 0 : index
    %4 = vector.load %arg3[%c0_2, %c0_3] : memref<8x1536xbf16, #tpu.memory_space<vmem>>, vector<8x1536xbf16>
    %c0_4 = arith.constant 0 : index
    %c0_5 = arith.constant 0 : index
    %5 = vector.load %arg4[%c0_4, %c0_5] : memref<1536x256xbf16, #tpu.memory_space<vmem>>, vector<1536x256xbf16>
    %cst = arith.constant dense<0.000000e+00> : vector<8x256xf32>
    %6 = tpu.matmul %4, %5, %cst {dimension_numbers = #tpu.dot_dimension_numbers<[1], [0], [0], [1], [0, 0, 1, 1], [], []>} : vector<8x1536xbf16>, vector<1536x256xbf16>, vector<8x256xf32> -> vector<8x256xf32>
    %7 = arith.addf %3, %6 : vector<8x256xf32>
    %c0_6 = arith.constant 0 : index
    %c0_7 = arith.constant 0 : index
    %8 = vector.load %arg8[%c0_6, %c0_7] : memref<8x256xf32, #tpu.memory_space<vmem>>, vector<8x256xf32>
    tpu.vector_store %arg8[%c0_6, %c0_7], %7 {strides = array<i32>} : memref<8x256xf32, #tpu.memory_space<vmem>>, vector<8x256xf32>,
    %c2_i32 = arith.constant 2 : i32
    %9 = arith.cmpi eq, %arg2, %c2_i32 : i32
    %10 = arith.extui %9 : i1 to i32
    %c0_i32_8 = arith.constant 0 : i32
    %11 = arith.cmpi ne, %10, %c0_i32_8 : i32
    scf.if %11 {
      %c0_9 = arith.constant 0 : index
      %c0_10 = arith.constant 0 : index
      %12 = vector.load %arg8[%c0_9, %c0_10] : memref<8x256xf32, #tpu.memory_space<vmem>>, vector<8x256xf32>
      %c0_11 = arith.constant 0 : index
      %c0_12 = arith.constant 0 : index
      %13 = vector.load %arg5[%c0_11, %c0_12] : memref<1x256xf32, #tpu.memory_space<vmem>>, vector<1x256xf32>
      %14 = vector.broadcast %13 : vector<1x256xf32> to vector<8x256xf32>
      %15 = arith.addf %12, %14 : vector<8x256xf32>
      %c0_13 = arith.constant 0 : index
      %c0_14 = arith.constant 0 : index
      %16 = vector.load %arg6[%c0_13, %c0_14] : memref<8x256xbf16, #tpu.memory_space<vmem>>, vector<8x256xbf16>
      %17 = arith.extf %16 : vector<8x256xbf16> to vector<8x256xf32>
      %18 = arith.addf %15, %17 : vector<8x256xf32>
      %19 = arith.truncf %18 : vector<8x256xf32> to vector<8x256xbf16>
      %c0_15 = arith.constant 0 : index
      %c0_16 = arith.constant 0 : index
      %20 = vector.load %arg7[%c0_15, %c0_16] : memref<8x256xbf16, #tpu.memory_space<vmem>>, vector<8x256xbf16>
      tpu.vector_store %arg7[%c0_15, %c0_16], %19 {strides = array<i32>} : memref<8x256xbf16, #tpu.memory_space<vmem>>, vector<8x256xbf16>,
    } else {
    }
    return
  }
  func.func @transform_0(%arg0: i32, %arg1: i32, %arg2: i32) -> (i32, i32) {
    %c0_i32 = arith.constant 0 : i32
    return %arg0, %arg2 : i32, i32
  }
  func.func @transform_1(%arg0: i32, %arg1: i32, %arg2: i32) -> (i32, i32) {
    %c0_i32 = arith.constant 0 : i32
    return %arg2, %arg1 : i32, i32
  }
  func.func @transform_2(%arg0: i32, %arg1: i32, %arg2: i32) -> (i32, i32) {
    %c0_i32 = arith.constant 0 : i32
    %c0_i32_0 = arith.constant 0 : i32
    return %c0_i32, %arg1 : i32, i32
  }
  func.func @transform_3(%arg0: i32, %arg1: i32, %arg2: i32) -> (i32, i32) {
    %c0_i32 = arith.constant 0 : i32
    return %arg0, %arg1 : i32, i32
  }
  func.func @transform_4(%arg0: i32, %arg1: i32, %arg2: i32) -> (i32, i32) {
    %c0_i32 = arith.constant 0 : i32
    return %arg0, %arg1 : i32, i32
  }
}

module attributes {stable_mosaic.version = 11 : i64} {
  func.func @_pool_fc_kernel(%arg0: i32, %arg1: memref<2x4x512xbf16, #tpu.memory_space<vmem>>, %arg2: memref<512x128xbf16, #tpu.memory_space<vmem>>, %arg3: memref<1x128xf32, #tpu.memory_space<vmem>>, %arg4: memref<2x128xf32, #tpu.memory_space<vmem>>) attributes {dimension_semantics = [#tpu.dimension_semantics<arbitrary>], iteration_bounds = array<i64: 1>, scalar_prefetch = 0 : i64, scratch_operands = 0 : i64, tpu.core_type = #tpu.core_type<tc>, window_params = [{pipeline_mode = #tpu.pipeline_mode<synchronous>, transform_indices = @transform_0, window_bounds = array<i64: 2, 4, 512>}, {pipeline_mode = #tpu.pipeline_mode<synchronous>, transform_indices = @transform_1, window_bounds = array<i64: 512, 128>}, {pipeline_mode = #tpu.pipeline_mode<synchronous>, transform_indices = @transform_2, window_bounds = array<i64: 1, 128>}, {pipeline_mode = #tpu.pipeline_mode<synchronous>, transform_indices = @transform_3, window_bounds = array<i64: 2, 128>}]} {
    %c0 = arith.constant 0 : index
    %c0_0 = arith.constant 0 : index
    %c0_1 = arith.constant 0 : index
    %0 = vector.load %arg1[%c0, %c0_0, %c0_1] : memref<2x4x512xbf16, #tpu.memory_space<vmem>>, vector<2x4x512xbf16>
    %1 = arith.extf %0 : vector<2x4x512xbf16> to vector<2x4x512xf32>
    %cst = arith.constant dense<0.000000e+00> : vector<2x512xf32>
    %2 = vector.multi_reduction <add>, %1, %cst [1] : vector<2x4x512xf32> to vector<2x512xf32>
    %cst_2 = arith.constant 4.000000e+00 : f32
    %3 = vector.broadcast %cst_2 : f32 to vector<2x512xf32>
    %4 = arith.divf %2, %3 : vector<2x512xf32>
    %5 = arith.truncf %4 : vector<2x512xf32> to vector<2x512xbf16>
    %c0_3 = arith.constant 0 : index
    %c0_4 = arith.constant 0 : index
    %6 = vector.load %arg2[%c0_3, %c0_4] : memref<512x128xbf16, #tpu.memory_space<vmem>>, vector<512x128xbf16>
    %cst_5 = arith.constant dense<0.000000e+00> : vector<2x128xf32>
    %7 = tpu.matmul %5, %6, %cst_5 {dimension_numbers = #tpu.dot_dimension_numbers<[1], [0], [0], [1], [0, 0, 1, 1], [], []>} : vector<2x512xbf16>, vector<512x128xbf16>, vector<2x128xf32> -> vector<2x128xf32>
    %c0_6 = arith.constant 0 : index
    %c0_7 = arith.constant 0 : index
    %8 = vector.load %arg3[%c0_6, %c0_7] : memref<1x128xf32, #tpu.memory_space<vmem>>, vector<1x128xf32>
    %9 = vector.broadcast %8 : vector<1x128xf32> to vector<2x128xf32>
    %10 = arith.addf %7, %9 : vector<2x128xf32>
    %c0_8 = arith.constant 0 : index
    %c0_9 = arith.constant 0 : index
    %11 = vector.load %arg4[%c0_8, %c0_9] : memref<2x128xf32, #tpu.memory_space<vmem>>, vector<2x128xf32>
    tpu.vector_store %arg4[%c0_8, %c0_9], %10 {strides = array<i32>} : memref<2x128xf32, #tpu.memory_space<vmem>>, vector<2x128xf32>,
    return
  }
  func.func @transform_0(%arg0: i32) -> (i32, i32, i32) {
    %c0_i32 = arith.constant 0 : i32
    %c0_i32_0 = arith.constant 0 : i32
    %c0_i32_1 = arith.constant 0 : i32
    %c0_i32_2 = arith.constant 0 : i32
    return %c0_i32, %c0_i32_0, %c0_i32_1 : i32, i32, i32
  }
  func.func @transform_1(%arg0: i32) -> (i32, i32) {
    %c0_i32 = arith.constant 0 : i32
    %c0_i32_0 = arith.constant 0 : i32
    %c0_i32_1 = arith.constant 0 : i32
    return %c0_i32, %c0_i32_0 : i32, i32
  }
  func.func @transform_2(%arg0: i32) -> (i32, i32) {
    %c0_i32 = arith.constant 0 : i32
    %c0_i32_0 = arith.constant 0 : i32
    %c0_i32_1 = arith.constant 0 : i32
    return %c0_i32, %c0_i32_0 : i32, i32
  }
  func.func @transform_3(%arg0: i32) -> (i32, i32) {
    %c0_i32 = arith.constant 0 : i32
    %c0_i32_0 = arith.constant 0 : i32
    %c0_i32_1 = arith.constant 0 : i32
    return %c0_i32, %c0_i32_0 : i32, i32
  }
}

</mosaic_0001>

<bundles_post_ra>
// kernel: custom_react_forward.8
= control target key start
LH: loop header
LB: loop body
LE: loop exit
PB: predicated region body
PF: predicated region fallthrough
CT: control target
= control target key end

     0   :  { %8 = vsyncpa [#allocation4], 0  ;;  %s1712_s0 = inlined_call_operand.vmem [shape: bf16[512,128], index: 0, kind: input, shape index: {}]   ;;  %s1713_s1 = inlined_call_operand.hbm [shape: bf16[128,128], index: 1, kind: input, shape index: {}]   ;;  %s1714_s2 = inlined_call_operand.hbm [shape: f32[1,128], index: 2, kind: input, shape index: {}]   ;;  %s1715_s3 = inlined_call_operand.vmem [shape: bf16[512,128], index: 3, kind: output, shape index: {}]  }
   0x1   :  { %9 = vsyncpa [#allocation6], 0  ;;  %s1554_s12 = smov 0   ;;  %s1556_s13 = smov 0  }
   0x2   :  { %s1558_s14 = smov 0  }
   0x3 LB: > { %s1088_s15 = sadd.s32 4294967295, %s1528_s14   ;;  %s34_s16 = sadd.s32 1, %s1524_s13  ;;  %s1528_s14 = sphi %s1558_s14, %s15_s14   ;;  %s1524_s13 = sphi %s1556_s13, %s1720_s13   ;;  %s1520_s12 = sphi %s1554_s12, %s1719_s12  }
   0x4   : > { %p36_p0 = scmp.ge.s32.totalorder %s34_s16, 2  ;;  %p1090_p1 = scmp.ge.s32.totalorder %s1528_s14, 1 }
   0x5   : > { %p149_p2 = scmp.lt.s32.totalorder %s1528_s14, 3  ;;  %p1579_p4 = scmp.eq.s32.totalorder %s1088_s15, 0 }
   0x6   : > { %s1722_s16 = smov (%p36_p0, %s34_s16), 0  ;;  %s1530_s19 = smov [#allocation3]  }
   0x7   : > { %p1575_p3 = pnand %p1090_p1, %p149_p2  ;;  %s165_s20 = sshll.u32 %s1530_s19, 4  ;;  %s166_s20 = int_to_ptr.vmem [resolvable:$true] %s165_s20 }
   0x8   : > { %s1531_s22 = smov [#allocation5]   ;;  %s1457_s24 = scalar_lea.vmem %s166_s20, 1024 }
   0x9   : > { %p1383_p5 = pneg %p1575_p3  ;;  %s181_s23 = sshll.u32 %s1531_s22, 4  ;;  %s182_s23 = int_to_ptr.vmem [resolvable:$true] %s181_s23 }
   0xa   : > { %p1458_p8 = scmp.ne.s32.totalorder %s166_s20, %s1457_s24  ;;  %p1465_p11 = scmp.lt.s32.totalorder %s166_s20, %s166_s20 }
   0xb   : > { %p1587_p6 = pnand %p1579_p4, %p1383_p5  ;;  %p1466_p12 = scmp.lt.s32.totalorder %s1457_s24, %s1457_s24 }
   0xd   : > { %p1448_p7 = pneg %p1587_p6  ;;  %p1467_p13 = por %p1466_p12, %p1465_p11 }
   0xf   : > { %p1460_p9 = pnand %p1458_p8, %p1448_p7 }
  0x11   : > { %p1461_p10 = pneg %p1460_p9 }
  0x13   : > { %p1468_p0 = pnand %p1467_p13, %p1461_p10 }
  0x15   : > { %1471 = shalt.err (!%p1468_p0)
}
  0x16   : > { %s1532_s25 = smov 64   ;;  %s1533_s26 = smov 4  }
  0x17   : > { %1386 = dma.hbm_to_vmem [thread:$0]  (!%p1587_p6), %s1713_s1, 1024, %s166_s20, [#allocation4], %s1532_s25, %s1532_s25, %s1533_s26  }
  0x18   : > { %s1483_s29 = scalar_lea.vmem %s182_s23, 16  ;;  %s1490_s30 = scalar_lea.vmem %s182_s23, 32 }
  0x19   : > { %p1484_p1 = scmp.ne.s32.totalorder %s182_s23, %s1483_s29  ;;  %p1491_p8 = scmp.lt.s32.totalorder %s182_s23, %s182_s23 }
  0x1a   : > { %p1492_p9 = scmp.lt.s32.totalorder %s1490_s30, %s1483_s29 }
  0x1b   : > { %p1486_p2 = pnand %p1484_p1, %p1448_p7 }
  0x1c   : > { %p1493_p10 = por %p1492_p9, %p1491_p8 }
  0x1d   : > { %p1487_p5 = pneg %p1486_p2 }
  0x1f   : > { %p1494_p11 = pnand %p1493_p10, %p1487_p5 }
  0x21   : > { %1497 = shalt.err (!%p1494_p11)
}
  0x22   : > { %1389 = dma.hbm_to_vmem [thread:$0]  (!%p1587_p6), %s1714_s2, 16, %s182_s23, [#allocation6]  }
  0x23   : > { %206 = sbr.rel (%p1575_p3) target bundleno = 304 (0x130), region = 32 }
  0x28   : > { %1511 = dma.done.wait (%p1579_p4), [#allocation4], 1024  }
  0x29   : > { %1513 = vsyncadd (%p1579_p4), [#allocation4], 4294966272 }
  0x2a   : > { %1515 = dma.done.wait (%p1579_p4), [#allocation6], 16  }
  0x2b   : > { %1517 = vsyncadd (%p1579_p4), [#allocation6], 4294967280  ;;  %s1097_s6 = sshll.u32 %s1520_s12, 5  ;;  %v1422_v0 = vld [vmem:[#allocation3 + $0x38] sm:$0xff]   ;;  %v1423_v1 = vld [vmem:[#allocation3 + $0x30] sm:$0xff]  }
  0x2c   : > { %p241_p7 = scmp.lt.s32.totalorder %s1097_s6, 63  ;;  %1311 = vmatprep.subr.bf16.mxu0 %v1422_v0  ;;  %1359 = vmatprep.subr.bf16.mxu1 %v1422_v0  ;;  %v1424_v2 = vld [vmem:[#allocation3 + $0x28] sm:$0xff]   ;;  %v1425_v3 = vld [vmem:[#allocation3 + $0x20] sm:$0xff]   ;;  %v1426_v6 = vld [vmem:[#allocation3 + $0x18] sm:$0xff]  }
  0x2d   : > { %1312 = vmatpush3.bf16.msra.mxu0 %v1422_v0  ;;  %1367 = vmatpush3.bf16.msra.mxu1 %v1422_v0  ;;  %v1427_v7 = vld [vmem:[#allocation3 + $0x10] sm:$0xff]   ;;  %v1428_v8 = vld [vmem:[#allocation3 + $0x8] sm:$0xff]   ;;  %v1429_v9 = vld [vmem:[#allocation3] sm:$0xff]  }
  0x2e   : > { %s1724_s6 = smov (!%p241_p7, %s1097_s6), 63  ;;  %1313 = vmatprep.subr.bf16.mxu0 %v1423_v1  ;;  %1360 = vmatprep.subr.bf16.mxu1 %v1423_v1  ;;  %v1646_v26 = vld [vmem:[#allocation5] ss:$0 sm:$0xff] }
  0x2f   : > { %s1098_s7 = sshll.u32 %s1724_s6, 2 }
  0x30   : > { %s1628_s10 = scalar_lea.vmem %s1712_s0, %s1098_s7  ;;  %s1659_s15 = scalar_lea.vmem %s1715_s3, %s1098_s7 }
  0x31   : > { %1314 = vmatpush3.bf16.msra.mxu0 %v1423_v1  ;;  %1368 = vmatpush3.bf16.msra.mxu1 %v1423_v1  ;;  %v1430_v4 = vld [vmem:[%s1628_s10] sm:$0xff]   ;;  %v1432_v10 = vld [vmem:[%s1628_s10 + $0x8] sm:$0xff]   ;;  %v1434_v12 = vld [vmem:[%s1628_s10 + $0x10] sm:$0xff]  }
  0x32   : > { %1315 = vmatprep.subr.bf16.mxu0 %v1424_v2  ;;  %1361 = vmatprep.subr.bf16.mxu1 %v1424_v2  ;;  %v1431_v5 = vld [vmem:[%s1628_s10 + $0x40] sm:$0xff]   ;;  %v1433_v11 = vld [vmem:[%s1628_s10 + $0x48] sm:$0xff]   ;;  %v1435_v13 = vld [vmem:[%s1628_s10 + $0x50] sm:$0xff]  }
  0x33   : > { %1327 = vmatprep.mubr.bf16.mxu0 %v1430_v4  ;;  %1343 = vmatprep.mubr.bf16.mxu1 %v1431_v5  ;;  %v1436_v14 = vld [vmem:[%s1628_s10 + $0x18] sm:$0xff]   ;;  %v1438_v16 = vld [vmem:[%s1628_s10 + $0x20] sm:$0xff]   ;;  %v1440_v18 = vld [vmem:[%s1628_s10 + $0x28] sm:$0xff]  }
  0x34   : > { %v1437_v15 = vld [vmem:[%s1628_s10 + $0x58] sm:$0xff]   ;;  %v1439_v17 = vld [vmem:[%s1628_s10 + $0x60] sm:$0xff]   ;;  %v1441_v19 = vld [vmem:[%s1628_s10 + $0x68] sm:$0xff]  }
  0x35   : > { %1316 = vmatpush3.bf16.msra.mxu0 %v1424_v2  ;;  %1369 = vmatpush3.bf16.msra.mxu1 %v1424_v2  ;;  %v1442_v20 = vld [vmem:[%s1628_s10 + $0x30] sm:$0xff]   ;;  %v1444_v22 = vld [vmem:[%s1628_s10 + $0x38] sm:$0xff]  }
  0x36   : > { %1317 = vmatprep.subr.bf16.mxu0 %v1425_v3  ;;  %1362 = vmatprep.subr.bf16.mxu1 %v1425_v3  ;;  %v1443_v21 = vld [vmem:[%s1628_s10 + $0x70] sm:$0xff]   ;;  %v1445_v23 = vld [vmem:[%s1628_s10 + $0x78] sm:$0xff]  }
  0x39   : > { %1318 = vmatpush3.bf16.msra.mxu0 %v1425_v3  ;;  %1370 = vmatpush3.bf16.msra.mxu1 %v1425_v3 }
  0x3a   : > { %1319 = vmatprep.subr.bf16.mxu0 %v1426_v6  ;;  %1363 = vmatprep.subr.bf16.mxu1 %v1426_v6 }
  0x3d   : > { %1320 = vmatpush3.bf16.msra.mxu0 %v1426_v6  ;;  %1371 = vmatpush3.bf16.msra.mxu1 %v1426_v6 }
  0x3e   : > { %1321 = vmatprep.subr.bf16.mxu0 %v1427_v7  ;;  %1364 = vmatprep.subr.bf16.mxu1 %v1427_v7 }
  0x41   : > { %1322 = vmatpush3.bf16.msra.mxu0 %v1427_v7  ;;  %1372 = vmatpush3.bf16.msra.mxu1 %v1427_v7 }
  0x42   : > { %1323 = vmatprep.subr.bf16.mxu0 %v1428_v8  ;;  %1365 = vmatprep.subr.bf16.mxu1 %v1428_v8 }
  0x45   : > { %1324 = vmatpush3.bf16.msra.mxu0 %v1428_v8  ;;  %1373 = vmatpush3.bf16.msra.mxu1 %v1428_v8 }
  0x46   : > { %1325 = vmatprep.subr.bf16.mxu0 %v1429_v9  ;;  %1366 = vmatprep.subr.bf16.mxu1 %v1429_v9 }
  0x49   : > { %1326 = vmatpush3.bf16.msra.mxu0 %v1429_v9  ;;  %1374 = vmatpush3.bf16.msra.mxu1 %v1429_v9 }
  0x4c   : > { %1328 = vmatmul.mubr.bf16.vlgmr.msra.gmra.mxu0 %v1432_v10  ;;  %1344 = vmatmul.mubr.bf16.vlgmr.msra.gmra.mxu1 %v1433_v11 }
  0x4d   : > { %1331 = vmatprep.mubr.bf16.mxu0 %v1434_v12  ;;  %1347 = vmatprep.mubr.bf16.mxu1 %v1435_v13 }
  0x54   : > { %1332 = vmatmul.mubr.bf16.gmra.mxu0 %v1436_v14  ;;  %1348 = vmatmul.mubr.bf16.gmra.mxu1 %v1437_v15 }
  0x55   : > { %1335 = vmatprep.mubr.bf16.mxu0 %v1438_v16  ;;  %1351 = vmatprep.mubr.bf16.mxu1 %v1439_v17 }
  0x5c   : > { %1336 = vmatmul.mubr.bf16.gmra.mxu0 %v1440_v18  ;;  %1352 = vmatmul.mubr.bf16.gmra.mxu1 %v1441_v19 }
  0x5d   : > { %1339 = vmatprep.mubr.bf16.mxu0 %v1442_v20  ;;  %1355 = vmatprep.mubr.bf16.mxu1 %v1443_v21 }
  0x64   : > { %1340 = vmatmul.mubr.bf16.gmra.mxu0 %v1444_v22  ;;  %1356 = vmatmul.mubr.bf16.gmra.mxu1 %v1445_v23 }
 0x10c   : > { %v1329_v24 = vpop.f32.mrf.mxu0  ;;  %v1345_v25 = vpop.f32.mrf.mxu1 }
 0x10d   : > { %v789_v31 = vadd.f32 %v1329_v24, %v1646_v26  ;;  %v805_v32 = vadd.f32 %v1345_v25, %v1646_v26 }
 0x10e   : > { %v554_v27 = vpop.f32.mrf.mxu0  ;;  %v618_v28 = vpop.f32.mrf.mxu1 }
 0x10f   : > { %v787_v35 = vadd.f32 %v1646_v26, %v554_v27  ;;  %v803_v36 = vadd.f32 %v1646_v26, %v618_v28 }
 0x110   : > { %v1330_v29 = vpop.f32.mrf.mxu0  ;;  %v1346_v30 = vpop.f32.mrf.mxu1 }
 0x111   : > { %v790_v33 = vadd.f32 %v1330_v29, %v1646_v26  ;;  %v806_v34 = vadd.f32 %v1346_v30, %v1646_v26 }
 0x112   : > { %v557_v37 = vpop.f32.mrf.mxu0  ;;  %v621_v38 = vpop.f32.mrf.mxu1 }
 0x113   : > { %v1200_v39 = vpack.c.bf16 %v790_v33, %v789_v31  ;;  %v1240_v40 = vpack.c.bf16 %v806_v34, %v805_v32  ;;  %v788_v41 = vadd.f32 %v1646_v26, %v557_v37  ;;  %v804_v42 = vadd.f32 %v1646_v26, %v621_v38 }
 0x114   : > { %v1333_v43 = vpop.f32.mrf.mxu0  ;;  %v1349_v44 = vpop.f32.mrf.mxu1 }
 0x115   : > { %1272 = vst [vmem:[%s1659_s15 + $0x8] sm:$0xff] %v1200_v39   ;;  %1280 = vst [vmem:[%s1659_s15 + $0x48] sm:$0xff] %v1240_v40   ;;  %v1195_v45 = vpack.c.bf16 %v788_v41, %v787_v35  ;;  %v1235_v46 = vpack.c.bf16 %v804_v42, %v803_v36  ;;  %v793_v51 = vadd.f32 %v1333_v43, %v1646_v26 }
 0x116   : > { %v570_v47 = vpop.f32.mrf.mxu0  ;;  %v634_v48 = vpop.f32.mrf.mxu1  ;;  %v809_v52 = vadd.f32 %v1349_v44, %v1646_v26 }
 0x117   : > { %1196 = vst [vmem:[%s1659_s15] sm:$0xff] %v1195_v45   ;;  %1279 = vst [vmem:[%s1659_s15 + $0x40] sm:$0xff] %v1235_v46   ;;  %v791_v55 = vadd.f32 %v1646_v26, %v570_v47  ;;  %v807_v56 = vadd.f32 %v1646_v26, %v634_v48 }
 0x118   : > { %v1334_v49 = vpop.f32.mrf.mxu0  ;;  %v1350_v50 = vpop.f32.mrf.mxu1 }
 0x119   : > { %v794_v53 = vadd.f32 %v1334_v49, %v1646_v26  ;;  %v810_v54 = vadd.f32 %v1350_v50, %v1646_v26 }
 0x11a   : > { %v573_v57 = vpop.f32.mrf.mxu0  ;;  %v637_v58 = vpop.f32.mrf.mxu1 }
 0x11b   : > { %v1210_v59 = vpack.c.bf16 %v794_v53, %v793_v51  ;;  %v1250_v60 = vpack.c.bf16 %v810_v54, %v809_v52  ;;  %v792_v61 = vadd.f32 %v1646_v26, %v573_v57  ;;  %v808_v62 = vadd.f32 %v1646_v26, %v637_v58 }
 0x11c   : > { %v1337_v63 = vpop.f32.mrf.mxu0  ;;  %v1353_v0 = vpop.f32.mrf.mxu1 }
 0x11d   : > { %1274 = vst [vmem:[%s1659_s15 + $0x18] sm:$0xff] %v1210_v59   ;;  %1282 = vst [vmem:[%s1659_s15 + $0x58] sm:$0xff] %v1250_v60   ;;  %v1205_v1 = vpack.c.bf16 %v792_v61, %v791_v55  ;;  %v1245_v2 = vpack.c.bf16 %v808_v62, %v807_v56  ;;  %v797_v7 = vadd.f32 %v1337_v63, %v1646_v26 }
 0x11e   : > { %v586_v3 = vpop.f32.mrf.mxu0  ;;  %v650_v4 = vpop.f32.mrf.mxu1  ;;  %v813_v8 = vadd.f32 %v1353_v0, %v1646_v26 }
 0x11f   : > { %1273 = vst [vmem:[%s1659_s15 + $0x10] sm:$0xff] %v1205_v1   ;;  %1281 = vst [vmem:[%s1659_s15 + $0x50] sm:$0xff] %v1245_v2   ;;  %v795_v11 = vadd.f32 %v1646_v26, %v586_v3  ;;  %v811_v12 = vadd.f32 %v1646_v26, %v650_v4 }
 0x120   : > { %v1338_v5 = vpop.f32.mrf.mxu0  ;;  %v1354_v6 = vpop.f32.mrf.mxu1 }
 0x121   : > { %v798_v9 = vadd.f32 %v1338_v5, %v1646_v26  ;;  %v814_v10 = vadd.f32 %v1354_v6, %v1646_v26 }
 0x122   : > { %v589_v13 = vpop.f32.mrf.mxu0  ;;  %v653_v14 = vpop.f32.mrf.mxu1 }
 0x123   : > { %v1220_v15 = vpack.c.bf16 %v798_v9, %v797_v7  ;;  %v1260_v16 = vpack.c.bf16 %v814_v10, %v813_v8  ;;  %v796_v17 = vadd.f32 %v1646_v26, %v589_v13  ;;  %v812_v18 = vadd.f32 %v1646_v26, %v653_v14 }
 0x124   : > { %v1341_v19 = vpop.f32.mrf.mxu0  ;;  %v1357_v20 = vpop.f32.mrf.mxu1 }
 0x125   : > { %1276 = vst [vmem:[%s1659_s15 + $0x28] sm:$0xff] %v1220_v15   ;;  %1284 = vst [vmem:[%s1659_s15 + $0x68] sm:$0xff] %v1260_v16   ;;  %v1215_v21 = vpack.c.bf16 %v796_v17, %v795_v11  ;;  %v1255_v22 = vpack.c.bf16 %v812_v18, %v811_v12  ;;  %v801_v28 = vadd.f32 %v1341_v19, %v1646_v26 }
 0x126   : > { %v602_v23 = vpop.f32.mrf.mxu0  ;;  %v666_v24 = vpop.f32.mrf.mxu1  ;;  %v817_v29 = vadd.f32 %v1357_v20, %v1646_v26 }
 0x127   : > { %1275 = vst [vmem:[%s1659_s15 + $0x20] sm:$0xff] %v1215_v21   ;;  %1283 = vst [vmem:[%s1659_s15 + $0x60] sm:$0xff] %v1255_v22   ;;  %v799_v32 = vadd.f32 %v1646_v26, %v602_v23  ;;  %v815_v33 = vadd.f32 %v1646_v26, %v666_v24 }
 0x128   : > { %v1342_v25 = vpop.f32.mrf.mxu0  ;;  %v1358_v27 = vpop.f32.mrf.mxu1 }
 0x129   : > { %v802_v30 = vadd.f32 %v1342_v25, %v1646_v26  ;;  %v818_v31 = vadd.f32 %v1358_v27, %v1646_v26 }
 0x12a   : > { %v605_v34 = vpop.f32.mrf.mxu0  ;;  %v669_v35 = vpop.f32.mrf.mxu1 }
 0x12b   : > { %v1230_v36 = vpack.c.bf16 %v802_v30, %v801_v28  ;;  %v1270_v37 = vpack.c.bf16 %v818_v31, %v817_v29  ;;  %v800_v38 = vadd.f32 %v1646_v26, %v605_v34  ;;  %v816_v39 = vadd.f32 %v1646_v26, %v669_v35 }
 0x12d   : > { %1278 = vst [vmem:[%s1659_s15 + $0x38] sm:$0xff] %v1230_v36   ;;  %1286 = vst [vmem:[%s1659_s15 + $0x78] sm:$0xff] %v1270_v37   ;;  %v1225_v40 = vpack.c.bf16 %v800_v38, %v799_v32  ;;  %v1265_v41 = vpack.c.bf16 %v816_v39, %v815_v33 }
 0x12f   : > { %1277 = vst [vmem:[%s1659_s15 + $0x30] sm:$0xff] %v1225_v40   ;;  %1285 = vst [vmem:[%s1659_s15 + $0x70] sm:$0xff] %v1265_v41  }
 0x130 PF: > { %s15_s14 = sadd.s32 1, %s1528_s14   ;;  %s1719_s12 = smov %s1524_s13 }
 0x131   : > { %p12_p3 = scmp.ge.s32.totalorder %s15_s14, 4   ;;  %s1720_s13 = smov %s1722_s16 }
 0x133   :  { %14 = sbr.rel (!%p12_p3) target bundleno = 3 (0x3), region = 81 }
 0x138   :  { %1007 = vsyncpa [#allocation4], 1 }
 0x139   :  { %1009 = vsyncpa [#allocation4 + $0x1], 1 }
 0x13a   :  { %1010 = vsyncpa [#allocation6], 1 }

// kernel: custom_react_forward.9
= control target key start
LH: loop header
LB: loop body
LE: loop exit
PB: predicated region body
PF: predicated region fallthrough
CT: control target
= control target key end

     0   :  { %s2128_s1 = inlined_call_operand.vmem [shape: bf16[640,128], index: 1, kind: input, shape index: {}]   ;;  %s2129_s0 = inlined_call_operand.vmem [shape: bf16[128,640], index: 0, kind: input, shape index: {}]   ;;  %s2130_s3 = inlined_call_operand.vmem [shape: bf16[128,128], index: 3, kind: input, shape index: {}]   ;;  %s2131_s2 = inlined_call_operand.vmem [shape: f32[1,128], index: 2, kind: input, shape index: {}]   ;;  %s2132_s4 = inlined_call_operand.vmem [shape: bf16[128,128], index: 4, kind: output, shape index: {}]  }
   0x1   :  { %v1518_v0 = vld [vmem:[%s2128_s1 + $0x78] sm:$0xff]   ;;  %v1522_v4 = vld [vmem:[%s2128_s1 + $0x70] sm:$0xff]   ;;  %v1526_v8 = vld [vmem:[%s2128_s1 + $0x68] sm:$0xff]  }
   0x2   :  { %v1519_v1 = vld [vmem:[%s2128_s1 + $0xf8] sm:$0xff]   ;;  %1326 = vmatprep.subr.bf16.mxu0 %v1518_v0  ;;  %v1523_v5 = vld [vmem:[%s2128_s1 + $0xf0] sm:$0xff]   ;;  %v1527_v9 = vld [vmem:[%s2128_s1 + $0xe8] sm:$0xff]  }
   0x3   :  { %v1520_v2 = vld [vmem:[%s2128_s1 + $0x38] sm:$0xff]   ;;  %1390 = vmatprep.subr.bf16.mxu1 %v1519_v1  ;;  %v1524_v6 = vld [vmem:[%s2128_s1 + $0x30] sm:$0xff]   ;;  %v1528_v10 = vld [vmem:[%s2128_s1 + $0x28] sm:$0xff]  }
   0x4   :  { %v1521_v3 = vld [vmem:[%s2128_s1 + $0xb8] sm:$0xff]   ;;  %1327 = vmatpush3.bf16.msra.mxu0 %v1520_v2  ;;  %v1525_v7 = vld [vmem:[%s2128_s1 + $0xb0] sm:$0xff]   ;;  %v1529_v11 = vld [vmem:[%s2128_s1 + $0xa8] sm:$0xff]  }
   0x5   :  { %1391 = vmatpush3.bf16.msra.mxu1 %v1521_v3  ;;  %1328 = vmatprep.subr.bf16.mxu0 %v1522_v4  ;;  %v1530_v12 = vld [vmem:[%s2128_s1 + $0x60] sm:$0xff]   ;;  %v1534_v16 = vld [vmem:[%s2128_s1 + $0x58] sm:$0xff]   ;;  %v1538_v20 = vld [vmem:[%s2128_s1 + $0x50] sm:$0xff]  }
   0x6   :  { %1392 = vmatprep.subr.bf16.mxu1 %v1523_v5  ;;  %v1531_v13 = vld [vmem:[%s2128_s1 + $0xe0] sm:$0xff]   ;;  %v1535_v17 = vld [vmem:[%s2128_s1 + $0xd8] sm:$0xff]   ;;  %v1539_v21 = vld [vmem:[%s2128_s1 + $0xd0] sm:$0xff]  }
   0x7   :  { %v1532_v14 = vld [vmem:[%s2128_s1 + $0x20] sm:$0xff]   ;;  %v1536_v18 = vld [vmem:[%s2128_s1 + $0x18] sm:$0xff]   ;;  %v1540_v22 = vld [vmem:[%s2128_s1 + $0x10] sm:$0xff]  }
   0x8   :  { %1329 = vmatpush3.bf16.msra.mxu0 %v1524_v6  ;;  %v1533_v15 = vld [vmem:[%s2128_s1 + $0xa0] sm:$0xff]   ;;  %v1537_v19 = vld [vmem:[%s2128_s1 + $0x98] sm:$0xff]   ;;  %v1541_v23 = vld [vmem:[%s2128_s1 + $0x90] sm:$0xff]  }
   0x9   :  { %1393 = vmatpush3.bf16.msra.mxu1 %v1525_v7  ;;  %1330 = vmatprep.subr.bf16.mxu0 %v1526_v8  ;;  %v1542_v24 = vld [vmem:[%s2128_s1 + $0x48] sm:$0xff]   ;;  %v1546_v28 = vld [vmem:[%s2128_s1 + $0x40] sm:$0xff]   ;;  %v1556_v36 = vld [vmem:[%s2128_s1 + $0x138] sm:$0xff]  }
   0xa   :  { %1394 = vmatprep.subr.bf16.mxu1 %v1527_v9  ;;  %v1543_v25 = vld [vmem:[%s2128_s1 + $0xc8] sm:$0xff]   ;;  %v1547_v29 = vld [vmem:[%s2128_s1 + $0xc0] sm:$0xff]   ;;  %v1563_v39 = vld [vmem:[%s2128_s1 + $0x130] sm:$0xff]  }
   0xb   :  { %v1544_v26 = vld [vmem:[%s2128_s1 + $0x8] sm:$0xff]   ;;  %v1548_v30 = vld [vmem:[%s2128_s1] sm:$0xff]   ;;  %v1566_v43 = vld [vmem:[%s2129_s0 + $0x5c] ss:$20 sps:$4 sm:$0xff]  }
   0xc   :  { %1331 = vmatpush3.bf16.msra.mxu0 %v1528_v10  ;;  %v1545_v27 = vld [vmem:[%s2128_s1 + $0x88] sm:$0xff]   ;;  %v1549_v31 = vld [vmem:[%s2128_s1 + $0x80] sm:$0xff]   ;;  %v1571_v48 = vld [vmem:[%s2129_s0 + $0x7c] ss:$20 sps:$4 sm:$0xff]  }
   0xd   :  { %1395 = vmatpush3.bf16.msra.mxu1 %v1529_v11  ;;  %1332 = vmatprep.subr.bf16.mxu0 %v1530_v12  ;;  %v1550_v32 = vld [vmem:[%s2129_s0] ss:$20 sps:$4 sm:$0xff]   ;;  %v1552_v33 = vld [vmem:[%s2129_s0 + $0x4] ss:$20 sps:$4 sm:$0xff]   ;;  %v1553_v34 = vld [vmem:[%s2129_s0 + $0x8] ss:$20 sps:$4 sm:$0xff]  }
   0xe   :  { %1396 = vmatprep.subr.bf16.mxu1 %v1531_v13  ;;  %v1555_v35 = vld [vmem:[%s2129_s0 + $0xc] ss:$20 sps:$4 sm:$0xff]   ;;  %662 = vmatprep.mubr.bf16.mxu0 %v1552_v33  ;;  %v1559_v38 = vld [vmem:[%s2129_s0 + $0x34] ss:$20 sps:$4 sm:$0xff]   ;;  %v1562_v41 = vld [vmem:[%s2129_s0 + $0x30] ss:$20 sps:$4 sm:$0xff]  }
   0xf   :  { %759 = vmatprep.mubr.bf16.mxu1 %v1555_v35  ;;  %v1557_v37 = vld [vmem:[%s2129_s0 + $0x2c] ss:$20 sps:$4 sm:$0xff]   ;;  %v1561_v40 = vld [vmem:[%s2129_s0 + $0x28] ss:$20 sps:$4 sm:$0xff]   ;;  %v1568_v46 = vld [vmem:[%s2129_s0 + $0x50] ss:$20 sps:$4 sm:$0xff]  }
  0x10   :  { %1333 = vmatpush3.bf16.msra.mxu0 %v1532_v14  ;;  %v1564_v42 = vld [vmem:[%s2129_s0 + $0x54] ss:$20 sps:$4 sm:$0xff]   ;;  %v1577_v45 = vld [vmem:[%s2128_s1 + $0x120] sm:$0xff]   ;;  %v1569_v47 = vld [vmem:[%s2129_s0 + $0x58] ss:$20 sps:$4 sm:$0xff]  }
  0x11   :  { %1397 = vmatpush3.bf16.msra.mxu1 %v1533_v15  ;;  %1334 = vmatprep.subr.bf16.mxu0 %v1534_v16  ;;  %v1570_v44 = vld [vmem:[%s2128_s1 + $0x128] sm:$0xff]   ;;  %v1573_v49 = vld [vmem:[%s2129_s0 + $0x84] ss:$20 sps:$4 sm:$0xff]   ;;  %v1591_v51 = vld [vmem:[%s2128_s1 + $0x110] sm:$0xff]  }
  0x12   :  { %1398 = vmatprep.subr.bf16.mxu1 %v1535_v17  ;;  %v1584_v50 = vld [vmem:[%s2128_s1 + $0x118] sm:$0xff]   ;;  %v1576_v53 = vld [vmem:[%s2129_s0 + $0x80] ss:$20 sps:$4 sm:$0xff]   ;;  %v1598_v55 = vld [vmem:[%s2128_s1 + $0x108] sm:$0xff]  }
  0x13   :  { %v1575_v52 = vld [vmem:[%s2129_s0 + $0x78] ss:$20 sps:$4 sm:$0xff]   ;;  %v1605_v57 = vld [vmem:[%s2128_s1 + $0x100] sm:$0xff]   ;;  %v1583_v59 = vld [vmem:[%s2129_s0 + $0xa8] ss:$20 sps:$4 sm:$0xff]  }
  0x14   :  { %1335 = vmatpush3.bf16.msra.mxu0 %v1536_v18  ;;  %v1578_v54 = vld [vmem:[%s2129_s0 + $0xa4] ss:$20 sps:$4 sm:$0xff]   ;;  %v1580_v56 = vld [vmem:[%s2129_s0 + $0xac] ss:$20 sps:$4 sm:$0xff]   ;;  %v1587_v61 = vld [vmem:[%s2129_s0 + $0xd4] ss:$20 sps:$4 sm:$0xff]  }
  0x15   :  { %1399 = vmatpush3.bf16.msra.mxu1 %v1537_v19  ;;  %1336 = vmatprep.subr.bf16.mxu0 %v1538_v20  ;;  %v1582_v58 = vld [vmem:[%s2129_s0 + $0xa0] ss:$20 sps:$4 sm:$0xff]   ;;  %v1589_v62 = vld [vmem:[%s2129_s0 + $0xc8] ss:$20 sps:$4 sm:$0xff]   ;;  %v1590_v63 = vld [vmem:[%s2129_s0 + $0xd0] ss:$20 sps:$4 sm:$0xff]  }
  0x16   :  { %1400 = vmatprep.subr.bf16.mxu1 %v1539_v21  ;;  %v1585_v60 = vld [vmem:[%s2129_s0 + $0xcc] ss:$20 sps:$4 sm:$0xff]   ;;  %v1592_v0 = vld [vmem:[%s2129_s0 + $0xf4] ss:$20 sps:$4 sm:$0xff]   ;;  %v1594_v1 = vld [vmem:[%s2129_s0 + $0xfc] ss:$20 sps:$4 sm:$0xff]  }
  0x17   :  { %v1596_v2 = vld [vmem:[%s2129_s0 + $0xf0] ss:$20 sps:$4 sm:$0xff]   ;;  %v1597_v3 = vld [vmem:[%s2129_s0 + $0xf8] ss:$20 sps:$4 sm:$0xff]   ;;  %v1604_v7 = vld [vmem:[%s2129_s0 + $0x120] ss:$20 sps:$4 sm:$0xff]  }
  0x18   :  { %1337 = vmatpush3.bf16.msra.mxu0 %v1540_v22  ;;  %v1599_v4 = vld [vmem:[%s2129_s0 + $0x11c] ss:$20 sps:$4 sm:$0xff]   ;;  %v1601_v5 = vld [vmem:[%s2129_s0 + $0x124] ss:$20 sps:$4 sm:$0xff]   ;;  %v1610_v12 = vld [vmem:[%s2129_s0 + $0x60] ss:$20 sps:$4 sm:$0xff]  }
  0x19   :  { %1401 = vmatpush3.bf16.msra.mxu1 %v1541_v23  ;;  %1338 = vmatprep.subr.bf16.mxu0 %v1542_v24  ;;  %v1603_v6 = vld [vmem:[%s2129_s0 + $0x118] ss:$20 sps:$4 sm:$0xff]   ;;  %v1606_v8 = vld [vmem:[%s2129_s0 + $0x10] ss:$20 sps:$4 sm:$0xff]   ;;  %v1611_v13 = vld [vmem:[%s2129_s0 + $0x100] ss:$20 sps:$4 sm:$0xff]  }
  0x1a   :  { %1402 = vmatprep.subr.bf16.mxu1 %v1543_v25  ;;  %v1607_v9 = vld [vmem:[%s2129_s0 + $0xb0] ss:$20 sps:$4 sm:$0xff]   ;;  %v1608_v10 = vld [vmem:[%s2129_s0 + $0x38] ss:$20 sps:$4 sm:$0xff]   ;;  %v1612_v14 = vld [vmem:[%s2129_s0 + $0x88] ss:$20 sps:$4 sm:$0xff]  }
  0x1b   :  { %v1609_v11 = vld [vmem:[%s2129_s0 + $0xd8] ss:$20 sps:$4 sm:$0xff]   ;;  %v1613_v15 = vld [vmem:[%s2129_s0 + $0x128] ss:$20 sps:$4 sm:$0xff]  }
  0x1c   :  { %1339 = vmatpush3.bf16.msra.mxu0 %v1544_v26 }
  0x1d   :  { %1403 = vmatpush3.bf16.msra.mxu1 %v1545_v27  ;;  %1340 = vmatprep.subr.bf16.mxu0 %v1546_v28 }
  0x1e   :  { %1404 = vmatprep.subr.bf16.mxu1 %v1547_v29 }
  0x20   :  { %1341 = vmatpush3.bf16.msra.mxu0 %v1548_v30 }
  0x21   :  { %1405 = vmatpush3.bf16.msra.mxu1 %v1549_v31  ;;  %1470 = vmatprep.subr.bf16.mxu0 %v1556_v36 }
  0x22   :  { %1502 = vmatprep.subr.bf16.mxu1 %v1556_v36 }
  0x23   :  { %663 = vmatmul.mubr.bf16.vlgmr.msra.gmra.mxu0 %v1550_v32 }
  0x24   :  { %760 = vmatmul.mubr.bf16.vlgmr.msra.gmra.mxu1 %v1553_v34  ;;  %1471 = vmatpush3.bf16.msra.mxu0 %v1556_v36 }
  0x25   :  { %1510 = vmatpush3.bf16.msra.mxu1 %v1556_v36  ;;  %670 = vmatprep.mubr.bf16.mxu0 %v1557_v37 }
  0x26   :  { %767 = vmatprep.mubr.bf16.mxu1 %v1559_v38  ;;  %1472 = vmatprep.subr.bf16.mxu0 %v1563_v39 }
  0x27   :  { %1503 = vmatprep.subr.bf16.mxu1 %v1563_v39 }
  0x28   :  { %1473 = vmatpush3.bf16.msra.mxu0 %v1563_v39 }
  0x29   :  { %1511 = vmatpush3.bf16.msra.mxu1 %v1563_v39  ;;  %1474 = vmatprep.subr.bf16.mxu0 %v1570_v44 }
  0x2a   :  { %1504 = vmatprep.subr.bf16.mxu1 %v1570_v44 }
  0x2b   :  { %671 = vmatmul.mubr.bf16.gmra.mxu0 %v1561_v40 }
  0x2c   :  { %768 = vmatmul.mubr.bf16.gmra.mxu1 %v1562_v41  ;;  %678 = vmatprep.mubr.bf16.mxu0 %v1564_v42 }
  0x2d   :  { %775 = vmatprep.mubr.bf16.mxu1 %v1566_v43  ;;  %1475 = vmatpush3.bf16.msra.mxu0 %v1570_v44 }
  0x2e   :  { %1512 = vmatpush3.bf16.msra.mxu1 %v1570_v44  ;;  %1476 = vmatprep.subr.bf16.mxu0 %v1577_v45 }
  0x2f   :  { %1505 = vmatprep.subr.bf16.mxu1 %v1577_v45 }
  0x31   :  { %1477 = vmatpush3.bf16.msra.mxu0 %v1577_v45 }
  0x32   :  { %1513 = vmatpush3.bf16.msra.mxu1 %v1577_v45  ;;  %1478 = vmatprep.subr.bf16.mxu0 %v1584_v50 }
  0x33   :  { %679 = vmatmul.mubr.bf16.gmra.mxu0 %v1568_v46  ;;  %1506 = vmatprep.subr.bf16.mxu1 %v1584_v50 }
  0x34   :  { %776 = vmatmul.mubr.bf16.gmra.mxu1 %v1569_v47  ;;  %686 = vmatprep.mubr.bf16.mxu0 %v1571_v48 }
  0x35   :  { %783 = vmatprep.mubr.bf16.mxu1 %v1573_v49  ;;  %1479 = vmatpush3.bf16.msra.mxu0 %v1584_v50 }
  0x36   :  { %1514 = vmatpush3.bf16.msra.mxu1 %v1584_v50  ;;  %1480 = vmatprep.subr.bf16.mxu0 %v1591_v51 }
  0x37   :  { %1507 = vmatprep.subr.bf16.mxu1 %v1591_v51 }
  0x39   :  { %1481 = vmatpush3.bf16.msra.mxu0 %v1591_v51 }
  0x3a   :  { %1515 = vmatpush3.bf16.msra.mxu1 %v1591_v51  ;;  %1482 = vmatprep.subr.bf16.mxu0 %v1598_v55 }
  0x3b   :  { %687 = vmatmul.mubr.bf16.gmra.mxu0 %v1575_v52  ;;  %1508 = vmatprep.subr.bf16.mxu1 %v1598_v55 }
  0x3c   :  { %784 = vmatmul.mubr.bf16.gmra.mxu1 %v1576_v53  ;;  %694 = vmatprep.mubr.bf16.mxu0 %v1578_v54 }
  0x3d   :  { %791 = vmatprep.mubr.bf16.mxu1 %v1580_v56  ;;  %1483 = vmatpush3.bf16.msra.mxu0 %v1598_v55 }
  0x3e   :  { %1516 = vmatpush3.bf16.msra.mxu1 %v1598_v55  ;;  %1484 = vmatprep.subr.bf16.mxu0 %v1605_v57 }
  0x3f   :  { %1509 = vmatprep.subr.bf16.mxu1 %v1605_v57 }
  0x41   :  { %1485 = vmatpush3.bf16.msra.mxu0 %v1605_v57 }
  0x42   :  { %1517 = vmatpush3.bf16.msra.mxu1 %v1605_v57 }
  0x43   :  { %695 = vmatmul.mubr.bf16.gmra.mxu0 %v1582_v58 }
  0x44   :  { %792 = vmatmul.mubr.bf16.gmra.mxu1 %v1583_v59  ;;  %702 = vmatprep.mubr.bf16.mxu0 %v1585_v60 }
  0x45   :  { %799 = vmatprep.mubr.bf16.mxu1 %v1587_v61 }
  0x4b   :  { %703 = vmatmul.mubr.bf16.gmra.mxu0 %v1589_v62 }
  0x4c   :  { %800 = vmatmul.mubr.bf16.gmra.mxu1 %v1590_v63  ;;  %710 = vmatprep.mubr.bf16.mxu0 %v1592_v0 }
  0x4d   :  { %807 = vmatprep.mubr.bf16.mxu1 %v1594_v1 }
  0x53   :  { %711 = vmatmul.mubr.bf16.gmra.mxu0 %v1596_v2 }
  0x54   :  { %808 = vmatmul.mubr.bf16.gmra.mxu1 %v1597_v3  ;;  %718 = vmatprep.mubr.bf16.mxu0 %v1599_v4 }
  0x55   :  { %815 = vmatprep.mubr.bf16.mxu1 %v1601_v5 }
  0x5b   :  { %719 = vmatmul.mubr.bf16.gmra.mxu0 %v1603_v6 }
  0x5c   :  { %816 = vmatmul.mubr.bf16.gmra.mxu1 %v1604_v7  ;;  %1486 = vmatprep.mubr.bf16.mxu0 %v1606_v8  ;;  %v1954_v8 = vld [vmem:[%s2130_s3 + $0x8] sm:$0xff]  }
  0x5d   :  { %1494 = vmatprep.mubr.bf16.mxu1 %v1607_v9  ;;  %2141 = vst [vmem:[#allocation5_spill] sm:$0xff] %v1954_v8  ;;  %v1959_v9 = vld [vmem:[%s2130_s3 + $0x28] sm:$0xff]  }
  0x63   :  { %1487 = vmatmul.mubr.bf16.vlgmr.msra.gmra.mxu0 %v1608_v10  ;;  %v1964_v10 = vld [vmem:[%s2130_s3] sm:$0xff]  }
  0x64   :  { %1495 = vmatmul.mubr.bf16.vlgmr.msra.gmra.mxu1 %v1609_v11  ;;  %1490 = vmatprep.mubr.bf16.mxu0 %v1610_v12  ;;  %2142 = vst [vmem:[#allocation6_spill] sm:$0xff] %v1964_v10  ;;  %v1971_v12 = vld [vmem:[%s2130_s3 + $0x20] sm:$0xff]  }
  0x65   :  { %1498 = vmatprep.mubr.bf16.mxu1 %v1611_v13  ;;  %2144 = vst [vmem:[#allocation8_spill] sm:$0xff] %v1971_v12 }
  0x6b   :  { %1491 = vmatmul.mubr.bf16.gmra.mxu0 %v1612_v14 }
  0x6c   :  { %1499 = vmatmul.mubr.bf16.gmra.mxu1 %v1613_v15  ;;  %v1990_v15 = vld [vmem:[%s2130_s3 + $0x38] sm:$0xff]  }
  0xe3   :  { %v1342_v16 = vpop.f32.mrf.mxu0 }
  0xe4   :  { %v1406_v17 = vpop.f32.mrf.mxu1 }
  0xe5   :  { %v1343_v18 = vpop.f32.mrf.mxu0 }
  0xe6   :  { %v1344_v19 = vadd.f32 %v1343_v18, %v1342_v16  ;;  %v1407_v20 = vpop.f32.mrf.mxu1  ;;  %v1983_v18 = vld [vmem:[%s2130_s3 + $0x18] sm:$0xff]  }
  0xe7   :  { %v1408_v21 = vadd.f32 %v1407_v20, %v1406_v17  ;;  %v1345_v22 = vpop.f32.mrf.mxu0  ;;  %v1995_v17 = vld [vmem:[%s2130_s3 + $0x10] sm:$0xff]  }
  0xe8   :  { %v1409_v23 = vpop.f32.mrf.mxu1 }
  0xe9   :  { %v1346_v24 = vpop.f32.mrf.mxu0  ;;  %v1879_v25 = vadd.f32 %v1408_v21, %v1344_v19 }
  0xea   :  { %v1410_v26 = vpop.f32.mrf.mxu1  ;;  %v1347_v19 = vadd.f32 %v1346_v24, %v1345_v22 }
  0xeb   :  { %2139 = vst [vmem:[#allocation3_spill] sm:$0xff] %v1879_v25  ;;  %v1881_v27 = vpop.f32.mrf.mxu0  ;;  %v1411_v20 = vadd.f32 %v1410_v26, %v1409_v23 }
  0xec   :  { %v1883_v28 = vpop.f32.mrf.mxu1 }
  0xed   :  { %v1349_v29 = vpop.f32.mrf.mxu0  ;;  %v765_v10 = vadd.f32 %v1411_v20, %v1347_v19 }
  0xee   :  { %v1413_v30 = vpop.f32.mrf.mxu1  ;;  %v1350_v16 = vadd.f32 %v1349_v29, %v1881_v27 }
  0xef   :  { %v1351_v31 = vpop.f32.mrf.mxu0  ;;  %v1414_v22 = vadd.f32 %v1413_v30, %v1883_v28  ;;  %v1270_v30 = vunpack.c.l.bf16 %v1990_v15 }
  0xf0   :  { %v1415_v32 = vpop.f32.mrf.mxu1 }
  0xf1   :  { %v1352_v33 = vpop.f32.mrf.mxu0  ;;  %v770_v25 = vadd.f32 %v1414_v22, %v1350_v16 }
  0xf2   :  { %v1416_v34 = vpop.f32.mrf.mxu1  ;;  %v1353_v23 = vadd.f32 %v1352_v33, %v1351_v31  ;;  %v1250_v31 = vunpack.c.l.bf16 %v1995_v17 }
  0xf3   :  { %v1885_v35 = vpop.f32.mrf.mxu0  ;;  %v1417_v24 = vadd.f32 %v1416_v34, %v1415_v32 }
  0xf4   :  { %v1887_v36 = vpop.f32.mrf.mxu1 }
  0xf5   :  { %v1889_v37 = vpop.f32.mrf.mxu0  ;;  %v773_v12 = vadd.f32 %v1417_v24, %v1353_v23 }
  0xf6   :  { %v1891_v38 = vpop.f32.mrf.mxu1  ;;  %v1356_v27 = vadd.f32 %v1889_v37, %v1885_v35  ;;  %v1271_v35 = vunpack.c.h.bf16 %v1990_v15 }
  0xf7   :  { %v1893_v39 = vpop.f32.mrf.mxu0  ;;  %v1420_v28 = vadd.f32 %v1891_v38, %v1887_v36 }
  0xf8   :  { %v1895_v40 = vpop.f32.mrf.mxu1 }
  0xf9   :  { %v1897_v41 = vpop.f32.mrf.mxu0  ;;  %v778_v16 = vadd.f32 %v1420_v28, %v1356_v27 }
  0xfa   :  { %v1899_v42 = vpop.f32.mrf.mxu1 }
  0xfb   :  { %v1901_v43 = vpop.f32.mrf.mxu0 }
  0xfc   :  { %v1903_v44 = vpop.f32.mrf.mxu1 }
  0xfd   :  { %v1905_v45 = vpop.f32.mrf.mxu0 }
  0xfe   :  { %v1907_v46 = vpop.f32.mrf.mxu1  ;;  %v1362_v36 = vadd.f32 %v1905_v45, %v1901_v43 }
  0xff   :  { %v1909_v47 = vpop.f32.mrf.mxu0  ;;  %v1426_v37 = vadd.f32 %v1907_v46, %v1903_v44 }
 0x100   :  { %v1911_v48 = vpop.f32.mrf.mxu1 }
 0x101   :  { %v1913_v49 = vpop.f32.mrf.mxu0 }
 0x102   :  { %v1915_v50 = vpop.f32.mrf.mxu1 }
 0x103   :  { %v1917_v51 = vpop.f32.mrf.mxu0  ;;  %v1429_v43 = vadd.f32 %v1915_v50, %v1911_v48 }
 0x104   :  { %v1919_v52 = vpop.f32.mrf.mxu1 }
 0x105   :  { %v1921_v53 = vpop.f32.mrf.mxu0 }
 0x106   :  { %v1923_v54 = vpop.f32.mrf.mxu1  ;;  %v1368_v38 = vadd.f32 %v1921_v53, %v1917_v51  ;;  %v1423_v53 = vadd.f32 %v1899_v42, %v1895_v40 }
 0x107   :  { %v1925_v55 = vpop.f32.mrf.mxu0 }
 0x108   :  { %v1927_v56 = vpop.f32.mrf.mxu1 }
 0x109   :  { %v1929_v57 = vpop.f32.mrf.mxu0 }
 0x10a   :  { %v1931_v58 = vpop.f32.mrf.mxu1  ;;  %v1371_v44 = vadd.f32 %v1929_v57, %v1925_v55 }
 0x10b   :  { %v1372_v59 = vpop.f32.mrf.mxu0 }
 0x10c   :  { %v1436_v60 = vpop.f32.mrf.mxu1 }
 0x10d   :  { %v1373_v61 = vpop.f32.mrf.mxu0 }
 0x10e   :  { %v1437_v62 = vpop.f32.mrf.mxu1  ;;  %v1374_v32 = vadd.f32 %v1373_v61, %v1372_v59  ;;  %v1432_v59 = vadd.f32 %v1923_v54, %v1919_v52  ;;  %v2027_v61 = vadd.f32 %v1897_v41, %v1893_v39  ;;  %v1435_v41 = vadd.f32 %v1931_v58, %v1927_v56  ;;  %v2050_v54 = vld [vmem:[%s2131_s2] ss:$0 sm:$0xff] }
 0x10f   :  { %v1933_v63 = vpop.f32.mrf.mxu0  ;;  %v1438_v33 = vadd.f32 %v1437_v62, %v1436_v60  ;;  %v1365_v62 = vadd.f32 %v1913_v49, %v1909_v47  ;;  %v786_v56 = vadd.f32 %v1426_v37, %v1362_v36 }
 0x110   :  { %v1935_v0 = vpop.f32.mrf.mxu1  ;;  %v797_v23 = vadd.f32 %v1435_v41, %v1371_v44  ;;  %v2152_v44 = vld [vmem:[#allocation5_spill] sm:$0xff] }
 0x111   :  { %v1937_v1 = vpop.f32.mrf.mxu0  ;;  %v802_v39 = vadd.f32 %v1438_v33, %v1374_v32 }
 0x112   :  { %v1939_v2 = vpop.f32.mrf.mxu1  ;;  %v1377_v46 = vadd.f32 %v1937_v1, %v1933_v63  ;;  %v794_v63 = vadd.f32 %v1432_v59, %v1368_v38  ;;  %v2147_v1 = vld [vmem:[#allocation3_spill] sm:$0xff] }
 0x113   :  { %v1941_v3 = vpop.f32.mrf.mxu0  ;;  %v1441_v51 = vadd.f32 %v1939_v2, %v1935_v0 }
 0x114   :  { %v1943_v4 = vpop.f32.mrf.mxu1 }
 0x115   :  { %v1945_v5 = vpop.f32.mrf.mxu0  ;;  %v805_v40 = vadd.f32 %v1441_v51, %v1377_v46  ;;  %v2153_v46 = vunpack.c.l.bf16 %v2152_v44 }
 0x116   :  { %v1947_v6 = vpop.f32.mrf.mxu1  ;;  %v1380_v47 = vadd.f32 %v1945_v5, %v1941_v3 }
 0x117   :  { %v1949_v7 = vpop.f32.mrf.mxu0  ;;  %v1444_v48 = vadd.f32 %v1947_v6, %v1943_v4  ;;  %v789_v4 = vadd.f32 %v1429_v43, %v1365_v62 }
 0x118   :  { %2140 = vst [vmem:[#allocation4_spill] sm:$0xff] %v1949_v7  ;;  %v1966_v11 = vpop.f32.mrf.mxu1  ;;  %v1255_v7 = vunpack.c.h.bf16 %v1983_v18 }
 0x119   :  { %2143 = vst [vmem:[#allocation7_spill] sm:$0xff] %v1966_v11  ;;  %v1973_v13 = vpop.f32.mrf.mxu0  ;;  %v2002_v11 = vld [vmem:[%s2130_s3 + $0x30] sm:$0xff]   ;;  %v810_v24 = vadd.f32 %v1444_v48, %v1380_v47 }
 0x11a   :  { %2145 = vst [vmem:[#allocation9_spill] sm:$0xff] %v1973_v13  ;;  %v1975_v14 = vpop.f32.mrf.mxu1 }
 0x11b   :  { %2146 = vst [vmem:[#allocation10_spill] sm:$0xff] %v1975_v14  ;;  %v1384_v21 = vpop.f32.mrf.mxu0  ;;  %v1266_v14 = vunpack.c.l.bf16 %v2002_v11 }
 0x11c   :  { %v1448_v26 = vpop.f32.mrf.mxu1 }
 0x11d   :  { %v1385_v13 = vpop.f32.mrf.mxu0 }
 0x11e   :  { %v1449_v29 = vpop.f32.mrf.mxu1  ;;  %v1386_v58 = vadd.f32 %v1385_v13, %v1384_v21 }
 0x11f   :  { %v1387_v34 = vpop.f32.mrf.mxu0  ;;  %v1450_v0 = vadd.f32 %v1449_v29, %v1448_v26  ;;  %v2148_v27 = vld [vmem:[#allocation4_spill] sm:$0xff] }
 0x120   :  { %v1451_v8 = vpop.f32.mrf.mxu1  ;;  %v2150_v13 = vld [vmem:[#allocation7_spill] sm:$0xff] }
 0x121   :  { %v1388_v60 = vpop.f32.mrf.mxu0  ;;  %v2149_v28 = vld [vmem:[#allocation9_spill] sm:$0xff] }
 0x122   :  { %v1452_v45 = vpop.f32.mrf.mxu1  ;;  %v1383_v32 = vadd.f32 %v2149_v28, %v2148_v27  ;;  %v2151_v21 = vld [vmem:[#allocation10_spill] sm:$0xff] }
 0x123   :  { %v1488_v52 = vpop.f32.mrf.mxu0  ;;  %v1453_v5 = vadd.f32 %v1452_v45, %v1451_v8  ;;  %v1447_v26 = vadd.f32 %v2151_v21, %v2150_v13 }
 0x124   :  { %v867_v49 = vadd.f32 %v1488_v52, %v770_v25  ;;  %v1496_v50 = vpop.f32.mrf.mxu1  ;;  %v1389_v25 = vadd.f32 %v1388_v60, %v1387_v34  ;;  %v2154_v52 = vunpack.c.h.bf16 %v2152_v44 }
 0x125   :  { %v899_v55 = vadd.f32 %v1496_v50, %v802_v39  ;;  %v858_v57 = vpop.f32.mrf.mxu0  ;;  %v2156_v50 = vunpack.c.h.bf16 %v1959_v9 }
 0x126   :  { %v859_v2 = vadd.f32 %v858_v57, %v2147_v1  ;;  %v890_v3 = vpop.f32.mrf.mxu1  ;;  %v981_v42 = vadd.f32 %v2050_v54, %v867_v49  ;;  %v821_v45 = vadd.f32 %v1453_v5, %v1389_v25 }
 0x127   :  { %v891_v6 = vadd.f32 %v890_v3, %v794_v63  ;;  %v1489_v19 = vpop.f32.mrf.mxu0  ;;  %v989_v29 = vadd.f32 %v2050_v54, %v899_v55 }
 0x128   :  { %v870_v20 = vadd.f32 %v1489_v19, %v773_v12  ;;  %v1497_v22 = vpop.f32.mrf.mxu1  ;;  %v979_v8 = vadd.f32 %v2050_v54, %v859_v2  ;;  %v818_v12 = vadd.f32 %v1450_v0, %v1386_v58  ;;  %v1029_v51 = vadd.f32 %v2153_v46, %v981_v42  ;;  %v2157_v0 = vld [vmem:[#allocation6_spill] sm:$0xff]  ;;  %v2160_v19 = vld [vmem:[#allocation8_spill] sm:$0xff] }
 0x129   :  { %v902_v33 = vadd.f32 %v1497_v22, %v805_v40  ;;  %v861_v34 = vpop.f32.mrf.mxu0  ;;  %v987_v59 = vadd.f32 %v2050_v54, %v891_v6  ;;  %v2158_v1 = vunpack.c.l.bf16 %v2157_v0  ;;  %v2159_v25 = vunpack.c.h.bf16 %v2157_v0 }
 0x12a   :  { %v982_v36 = vadd.f32 %v2050_v54, %v870_v20  ;;  %v862_v37 = vadd.f32 %v861_v34, %v765_v10  ;;  %v893_v38 = vpop.f32.mrf.mxu1  ;;  %v2155_v10 = vunpack.c.l.bf16 %v1959_v9  ;;  %v2161_v40 = vunpack.c.l.bf16 %v2160_v19 }
 0x12b   :  { %v990_v60 = vadd.f32 %v2050_v54, %v902_v33  ;;  %v894_v62 = vadd.f32 %v893_v38, %v797_v23  ;;  %v1492_v43 = vpop.f32.mrf.mxu0  ;;  %v1027_v2 = vadd.f32 %v2158_v1, %v979_v8  ;;  %v2162_v9 = vunpack.c.h.bf16 %v2160_v19 }
 0x12c   :  { %v1030_v39 = vadd.f32 %v2154_v52, %v982_v36  ;;  %v980_v41 = vadd.f32 %v2050_v54, %v862_v37  ;;  %v883_v47 = vadd.f32 %v1492_v43, %v786_v56  ;;  %v1500_v48 = vpop.f32.mrf.mxu1  ;;  %v1037_v49 = vadd.f32 %v2155_v10, %v989_v29 }
 0x12d   :  { %v1038_v55 = vadd.f32 %v2156_v50, %v990_v60  ;;  %v988_v57 = vadd.f32 %v2050_v54, %v894_v62  ;;  %v915_v63 = vadd.f32 %v1500_v48, %v818_v12  ;;  %v874_v58 = vpop.f32.mrf.mxu0  ;;  %v1035_v42 = vadd.f32 %v2161_v40, %v987_v59 }
 0x12e   :  { %v1280_v3 = vpack.c.bf16 %v1030_v39, %v1029_v51  ;;  %v1028_v5 = vadd.f32 %v2159_v25, %v980_v41  ;;  %v875_v6 = vadd.f32 %v874_v58, %v778_v16  ;;  %v906_v56 = vpop.f32.mrf.mxu1  ;;  %v985_v13 = vadd.f32 %v2050_v54, %v883_v47 }
 0x12f   :  { %v1300_v20 = vpack.c.bf16 %v1038_v55, %v1037_v49  ;;  %v1036_v22 = vadd.f32 %v2162_v9, %v988_v57  ;;  %v907_v23 = vadd.f32 %v906_v56, %v810_v24  ;;  %v1493_v27 = vpop.f32.mrf.mxu0  ;;  %v781_v16 = vadd.f32 %v1423_v53, %v2027_v61 }
 0x130   :  { %1319 = vst [vmem:[%s2132_s4 + $0x8] sm:$0xff] %v1280_v3   ;;  %v1275_v28 = vpack.c.bf16 %v1028_v5, %v1027_v2  ;;  %v886_v21 = vadd.f32 %v1493_v27, %v789_v4  ;;  %v1501_v29 = vpop.f32.mrf.mxu1  ;;  %v993_v34 = vadd.f32 %v2050_v54, %v915_v63  ;;  %v813_v36 = vadd.f32 %v1447_v26, %v1383_v32 }
 0x131   :  { %1323 = vst [vmem:[%s2132_s4 + $0x28] sm:$0xff] %v1300_v20   ;;  %v1295_v33 = vpack.c.bf16 %v1036_v22, %v1035_v42  ;;  %v918_v24 = vadd.f32 %v1501_v29, %v821_v45  ;;  %v877_v8 = vpop.f32.mrf.mxu0  ;;  %v983_v37 = vadd.f32 %v2050_v54, %v875_v6  ;;  %v1251_v61 = vunpack.c.h.bf16 %v1995_v17 }
 0x132   :  { %1276 = vst [vmem:[%s2132_s4] sm:$0xff] %v1275_v28   ;;  %v986_v4 = vadd.f32 %v2050_v54, %v886_v21  ;;  %v878_v38 = vadd.f32 %v877_v8, %v781_v16  ;;  %v909_v53 = vpop.f32.mrf.mxu1  ;;  %v991_v12 = vadd.f32 %v2050_v54, %v907_v23  ;;  %v1267_v59 = vunpack.c.h.bf16 %v2002_v11 }
 0x133   :  { %1322 = vst [vmem:[%s2132_s4 + $0x20] sm:$0xff] %v1295_v33   ;;  %v994_v32 = vadd.f32 %v2050_v54, %v918_v24  ;;  %v910_v26 = vadd.f32 %v909_v53, %v813_v36  ;;  %v2163_v60 = vunpack.c.l.bf16 %v1983_v18  ;;  %v1041_v44 = vadd.f32 %v1270_v30, %v993_v34 }
 0x134   :  { %v1034_v43 = vadd.f32 %v1255_v7, %v986_v4  ;;  %v984_v45 = vadd.f32 %v2050_v54, %v878_v38  ;;  %v1031_v52 = vadd.f32 %v1250_v31, %v983_v37  ;;  %v1039_v47 = vadd.f32 %v1266_v14, %v991_v12 }
 0x135   :  { %v1033_v62 = vadd.f32 %v2163_v60, %v985_v13  ;;  %v1042_v46 = vadd.f32 %v1271_v35, %v994_v32  ;;  %v992_v51 = vadd.f32 %v2050_v54, %v910_v26 }
 0x136   :  { %v1032_v41 = vadd.f32 %v1251_v61, %v984_v45 }
 0x137   :  { %v1290_v39 = vpack.c.bf16 %v1034_v43, %v1033_v62  ;;  %v1310_v18 = vpack.c.bf16 %v1042_v46, %v1041_v44  ;;  %v1040_v7 = vadd.f32 %v1267_v59, %v992_v51 }
 0x138   :  { %v1285_v30 = vpack.c.bf16 %v1032_v41, %v1031_v52 }
 0x139   :  { %1321 = vst [vmem:[%s2132_s4 + $0x18] sm:$0xff] %v1290_v39   ;;  %1325 = vst [vmem:[%s2132_s4 + $0x38] sm:$0xff] %v1310_v18   ;;  %v1305_v15 = vpack.c.bf16 %v1040_v7, %v1039_v47 }
 0x13a   :  { %1320 = vst [vmem:[%s2132_s4 + $0x10] sm:$0xff] %v1285_v30  }
 0x13b   :  { %1324 = vst [vmem:[%s2132_s4 + $0x30] sm:$0xff] %v1305_v15  }

// kernel: custom_react_forward.10
= control target key start
LH: loop header
LB: loop body
LE: loop exit
PB: predicated region body
PF: predicated region fallthrough
CT: control target
= control target key end

     0   :  { %s3276_s1 = inlined_call_operand.vmem [shape: bf16[1152,128], index: 1, kind: input, shape index: {}]   ;;  %s3277_s0 = inlined_call_operand.vmem [shape: bf16[128,1152], index: 0, kind: input, shape index: {}]   ;;  %s3278_s3 = inlined_call_operand.vmem [shape: bf16[128,128], index: 3, kind: input, shape index: {}]   ;;  %s3279_s2 = inlined_call_operand.vmem [shape: f32[1,128], index: 2, kind: input, shape index: {}]   ;;  %s3280_s4 = inlined_call_operand.vmem [shape: bf16[128,128], index: 4, kind: output, shape index: {}]  }
   0x1   :  { %v2352_v0 = vld [vmem:[%s3276_s1 + $0x78] sm:$0xff]   ;;  %v2356_v4 = vld [vmem:[%s3276_s1 + $0x70] sm:$0xff]   ;;  %v2360_v8 = vld [vmem:[%s3276_s1 + $0x68] sm:$0xff]  }
   0x2   :  { %v2353_v1 = vld [vmem:[%s3276_s1 + $0xf8] sm:$0xff]   ;;  %2032 = vmatprep.subr.bf16.mxu0 %v2352_v0  ;;  %v2357_v5 = vld [vmem:[%s3276_s1 + $0xf0] sm:$0xff]   ;;  %v2361_v9 = vld [vmem:[%s3276_s1 + $0xe8] sm:$0xff]  }
   0x3   :  { %v2354_v2 = vld [vmem:[%s3276_s1 + $0x38] sm:$0xff]   ;;  %2096 = vmatprep.subr.bf16.mxu1 %v2353_v1  ;;  %v2358_v6 = vld [vmem:[%s3276_s1 + $0x30] sm:$0xff]   ;;  %v2362_v10 = vld [vmem:[%s3276_s1 + $0x28] sm:$0xff]  }
   0x4   :  { %v2355_v3 = vld [vmem:[%s3276_s1 + $0xb8] sm:$0xff]   ;;  %2033 = vmatpush3.bf16.msra.mxu0 %v2354_v2  ;;  %v2359_v7 = vld [vmem:[%s3276_s1 + $0xb0] sm:$0xff]   ;;  %v2363_v11 = vld [vmem:[%s3276_s1 + $0xa8] sm:$0xff]  }
   0x5   :  { %2097 = vmatpush3.bf16.msra.mxu1 %v2355_v3  ;;  %2034 = vmatprep.subr.bf16.mxu0 %v2356_v4  ;;  %v2364_v12 = vld [vmem:[%s3276_s1 + $0x60] sm:$0xff]   ;;  %v2368_v16 = vld [vmem:[%s3276_s1 + $0x58] sm:$0xff]   ;;  %v2372_v20 = vld [vmem:[%s3276_s1 + $0x50] sm:$0xff]  }
   0x6   :  { %2098 = vmatprep.subr.bf16.mxu1 %v2357_v5  ;;  %v2365_v13 = vld [vmem:[%s3276_s1 + $0xe0] sm:$0xff]   ;;  %v2369_v17 = vld [vmem:[%s3276_s1 + $0xd8] sm:$0xff]   ;;  %v2373_v21 = vld [vmem:[%s3276_s1 + $0xd0] sm:$0xff]  }
   0x7   :  { %v2366_v14 = vld [vmem:[%s3276_s1 + $0x20] sm:$0xff]   ;;  %v2370_v18 = vld [vmem:[%s3276_s1 + $0x18] sm:$0xff]   ;;  %v2374_v22 = vld [vmem:[%s3276_s1 + $0x10] sm:$0xff]  }
   0x8   :  { %2035 = vmatpush3.bf16.msra.mxu0 %v2358_v6  ;;  %v2367_v15 = vld [vmem:[%s3276_s1 + $0xa0] sm:$0xff]   ;;  %v2371_v19 = vld [vmem:[%s3276_s1 + $0x98] sm:$0xff]   ;;  %v2375_v23 = vld [vmem:[%s3276_s1 + $0x90] sm:$0xff]  }
   0x9   :  { %2099 = vmatpush3.bf16.msra.mxu1 %v2359_v7  ;;  %2036 = vmatprep.subr.bf16.mxu0 %v2360_v8  ;;  %v2376_v24 = vld [vmem:[%s3276_s1 + $0x48] sm:$0xff]   ;;  %v2380_v28 = vld [vmem:[%s3276_s1 + $0x40] sm:$0xff]   ;;  %v2390_v36 = vld [vmem:[%s3276_s1 + $0x178] sm:$0xff]  }
   0xa   :  { %2100 = vmatprep.subr.bf16.mxu1 %v2361_v9  ;;  %v2377_v25 = vld [vmem:[%s3276_s1 + $0xc8] sm:$0xff]   ;;  %v2381_v29 = vld [vmem:[%s3276_s1 + $0xc0] sm:$0xff]   ;;  %v2391_v37 = vld [vmem:[%s3276_s1 + $0x1f8] sm:$0xff]  }
   0xb   :  { %v2378_v26 = vld [vmem:[%s3276_s1 + $0x8] sm:$0xff]   ;;  %v2382_v30 = vld [vmem:[%s3276_s1] sm:$0xff]   ;;  %v2392_v38 = vld [vmem:[%s3276_s1 + $0x138] sm:$0xff]  }
   0xc   :  { %2037 = vmatpush3.bf16.msra.mxu0 %v2362_v10  ;;  %v2379_v27 = vld [vmem:[%s3276_s1 + $0x88] sm:$0xff]   ;;  %v2383_v31 = vld [vmem:[%s3276_s1 + $0x80] sm:$0xff]   ;;  %v2393_v39 = vld [vmem:[%s3276_s1 + $0x1b8] sm:$0xff]  }
   0xd   :  { %2101 = vmatpush3.bf16.msra.mxu1 %v2363_v11  ;;  %2038 = vmatprep.subr.bf16.mxu0 %v2364_v12  ;;  %v2384_v32 = vld [vmem:[%s3277_s0] ss:$36 sps:$4 sm:$0xff]   ;;  %v2387_v34 = vld [vmem:[%s3277_s0 + $0x8] ss:$36 sps:$4 sm:$0xff]   ;;  %v2396_v41 = vld [vmem:[%s3277_s0 + $0x54] ss:$36 sps:$4 sm:$0xff]  }
   0xe   :  { %2102 = vmatprep.subr.bf16.mxu1 %v2365_v13  ;;  %v2386_v33 = vld [vmem:[%s3277_s0 + $0x4] ss:$36 sps:$4 sm:$0xff]   ;;  %v2389_v35 = vld [vmem:[%s3277_s0 + $0xc] ss:$36 sps:$4 sm:$0xff]   ;;  %v2404_v48 = vld [vmem:[%s3277_s0 + $0x94] ss:$36 sps:$4 sm:$0xff]  }
   0xf   :  { %1110 = vmatprep.mubr.bf16.mxu0 %v2386_v33  ;;  %1207 = vmatprep.mubr.bf16.mxu1 %v2389_v35  ;;  %v2394_v40 = vld [vmem:[%s3277_s0 + $0x4c] ss:$36 sps:$4 sm:$0xff]   ;;  %v2406_v49 = vld [vmem:[%s3277_s0 + $0x9c] ss:$36 sps:$4 sm:$0xff]   ;;  %v2416_v57 = vld [vmem:[%s3277_s0 + $0xe4] ss:$36 sps:$4 sm:$0xff]  }
  0x10   :  { %2039 = vmatpush3.bf16.msra.mxu0 %v2366_v14  ;;  %v2398_v42 = vld [vmem:[%s3277_s0 + $0x48] ss:$36 sps:$4 sm:$0xff]   ;;  %v2399_v43 = vld [vmem:[%s3277_s0 + $0x50] ss:$36 sps:$4 sm:$0xff]   ;;  %v2409_v51 = vld [vmem:[%s3277_s0 + $0x98] ss:$36 sps:$4 sm:$0xff]  }
  0x11   :  { %2103 = vmatpush3.bf16.msra.mxu1 %v2367_v15  ;;  %2040 = vmatprep.subr.bf16.mxu0 %v2368_v16  ;;  %v2400_v44 = vld [vmem:[%s3276_s1 + $0x170] sm:$0xff]   ;;  %v2410_v52 = vld [vmem:[%s3276_s1 + $0x168] sm:$0xff]   ;;  %v2414_v56 = vld [vmem:[%s3277_s0 + $0xdc] ss:$36 sps:$4 sm:$0xff]  }
  0x12   :  { %2104 = vmatprep.subr.bf16.mxu1 %v2369_v17  ;;  %v2401_v45 = vld [vmem:[%s3276_s1 + $0x1f0] sm:$0xff]   ;;  %v2411_v53 = vld [vmem:[%s3276_s1 + $0x1e8] sm:$0xff]   ;;  %v2418_v58 = vld [vmem:[%s3277_s0 + $0xd8] ss:$36 sps:$4 sm:$0xff]  }
  0x13   :  { %v2402_v46 = vld [vmem:[%s3276_s1 + $0x130] sm:$0xff]   ;;  %v2412_v54 = vld [vmem:[%s3276_s1 + $0x128] sm:$0xff]   ;;  %v2419_v59 = vld [vmem:[%s3277_s0 + $0xe0] ss:$36 sps:$4 sm:$0xff]  }
  0x14   :  { %2041 = vmatpush3.bf16.msra.mxu0 %v2370_v18  ;;  %v2403_v47 = vld [vmem:[%s3276_s1 + $0x1b0] sm:$0xff]   ;;  %v2413_v55 = vld [vmem:[%s3276_s1 + $0x1a8] sm:$0xff]   ;;  %v2420_v60 = vld [vmem:[%s3276_s1 + $0x160] sm:$0xff]  }
  0x15   :  { %2105 = vmatpush3.bf16.msra.mxu1 %v2371_v19  ;;  %2042 = vmatprep.subr.bf16.mxu0 %v2372_v20  ;;  %v2408_v50 = vld [vmem:[%s3277_s0 + $0x90] ss:$36 sps:$4 sm:$0xff]   ;;  %v2421_v61 = vld [vmem:[%s3276_s1 + $0x1e0] sm:$0xff]   ;;  %v2430_v3 = vld [vmem:[%s3276_s1 + $0x158] sm:$0xff]  }
  0x16   :  { %2106 = vmatprep.subr.bf16.mxu1 %v2373_v21  ;;  %v2422_v62 = vld [vmem:[%s3276_s1 + $0x120] sm:$0xff]   ;;  %v2426_v1 = vld [vmem:[%s3277_s0 + $0x12c] ss:$36 sps:$4 sm:$0xff]   ;;  %v2431_v5 = vld [vmem:[%s3276_s1 + $0x1d8] sm:$0xff]  }
  0x17   :  { %v2423_v63 = vld [vmem:[%s3276_s1 + $0x1a0] sm:$0xff]   ;;  %v2429_v4 = vld [vmem:[%s3277_s0 + $0x128] ss:$36 sps:$4 sm:$0xff]   ;;  %v2432_v6 = vld [vmem:[%s3276_s1 + $0x118] sm:$0xff]  }
  0x18   :  { %2043 = vmatpush3.bf16.msra.mxu0 %v2374_v22  ;;  %v2424_v0 = vld [vmem:[%s3277_s0 + $0x124] ss:$36 sps:$4 sm:$0xff]   ;;  %v2433_v7 = vld [vmem:[%s3276_s1 + $0x198] sm:$0xff]   ;;  %v2434_v8 = vld [vmem:[%s3277_s0 + $0x16c] ss:$36 sps:$4 sm:$0xff]  }
  0x19   :  { %2107 = vmatpush3.bf16.msra.mxu1 %v2375_v23  ;;  %2044 = vmatprep.subr.bf16.mxu0 %v2376_v24  ;;  %v2428_v2 = vld [vmem:[%s3277_s0 + $0x120] ss:$36 sps:$4 sm:$0xff]   ;;  %v2436_v9 = vld [vmem:[%s3277_s0 + $0x174] ss:$36 sps:$4 sm:$0xff]   ;;  %v2438_v12 = vld [vmem:[%s3277_s0 + $0x168] ss:$36 sps:$4 sm:$0xff]  }
  0x1a   :  { %2108 = vmatprep.subr.bf16.mxu1 %v2377_v25  ;;  %v2440_v10 = vld [vmem:[%s3276_s1 + $0x150] sm:$0xff]   ;;  %v2446_v17 = vld [vmem:[%s3277_s0 + $0x1bc] ss:$36 sps:$4 sm:$0xff]   ;;  %v2450_v18 = vld [vmem:[%s3276_s1 + $0x148] sm:$0xff]  }
  0x1b   :  { %v2441_v11 = vld [vmem:[%s3276_s1 + $0x1d0] sm:$0xff]   ;;  %v2451_v19 = vld [vmem:[%s3276_s1 + $0x1c8] sm:$0xff]   ;;  %v2449_v23 = vld [vmem:[%s3277_s0 + $0x1b8] ss:$36 sps:$4 sm:$0xff]  }
  0x1c   :  { %2045 = vmatpush3.bf16.msra.mxu0 %v2378_v26  ;;  %v2442_v13 = vld [vmem:[%s3276_s1 + $0x110] sm:$0xff]   ;;  %v2452_v20 = vld [vmem:[%s3276_s1 + $0x108] sm:$0xff]   ;;  %v2454_v24 = vld [vmem:[%s3277_s0 + $0x1fc] ss:$36 sps:$4 sm:$0xff]  }
  0x1d   :  { %2109 = vmatpush3.bf16.msra.mxu1 %v2379_v27  ;;  %2046 = vmatprep.subr.bf16.mxu0 %v2380_v28  ;;  %v2443_v14 = vld [vmem:[%s3276_s1 + $0x190] sm:$0xff]   ;;  %v2453_v21 = vld [vmem:[%s3276_s1 + $0x188] sm:$0xff]   ;;  %v2460_v26 = vld [vmem:[%s3276_s1 + $0x140] sm:$0xff]  }
  0x1e   :  { %2110 = vmatprep.subr.bf16.mxu1 %v2381_v29  ;;  %v2439_v15 = vld [vmem:[%s3277_s0 + $0x170] ss:$36 sps:$4 sm:$0xff]   ;;  %v2456_v25 = vld [vmem:[%s3277_s0 + $0x204] ss:$36 sps:$4 sm:$0xff]  }
  0x1f   :  { %v2444_v16 = vld [vmem:[%s3277_s0 + $0x1b4] ss:$36 sps:$4 sm:$0xff]   ;;  %v2461_v27 = vld [vmem:[%s3276_s1 + $0x1c0] sm:$0xff]  }
  0x20   :  { %2047 = vmatpush3.bf16.msra.mxu0 %v2382_v30  ;;  %v2448_v22 = vld [vmem:[%s3277_s0 + $0x1b0] ss:$36 sps:$4 sm:$0xff]   ;;  %v2462_v28 = vld [vmem:[%s3276_s1 + $0x100] sm:$0xff]   ;;  %v2458_v30 = vld [vmem:[%s3277_s0 + $0x1f8] ss:$36 sps:$4 sm:$0xff]  }
  0x21   :  { %2111 = vmatpush3.bf16.msra.mxu1 %v2383_v31  ;;  %2160 = vmatprep.subr.bf16.mxu0 %v2390_v36  ;;  %v2463_v29 = vld [vmem:[%s3276_s1 + $0x180] sm:$0xff]   ;;  %v2466_v33 = vld [vmem:[%s3277_s0 + $0x14] ss:$36 sps:$4 sm:$0xff]  }
  0x22   :  { %2224 = vmatprep.subr.bf16.mxu1 %v2391_v37  ;;  %v2459_v31 = vld [vmem:[%s3277_s0 + $0x200] ss:$36 sps:$4 sm:$0xff]   ;;  %v2464_v35 = vld [vmem:[%s3277_s0 + $0x10] ss:$36 sps:$4 sm:$0xff]   ;;  %v2467_v36 = vld [vmem:[%s3277_s0 + $0x18] ss:$36 sps:$4 sm:$0xff]  }
  0x23   :  { %1111 = vmatmul.mubr.bf16.vlgmr.msra.gmra.mxu0 %v2384_v32  ;;  %v2470_v32 = vld [vmem:[%s3276_s1 + $0x238] sm:$0xff]  }
  0x24   :  { %1208 = vmatmul.mubr.bf16.vlgmr.msra.gmra.mxu1 %v2387_v34  ;;  %2161 = vmatpush3.bf16.msra.mxu0 %v2392_v38  ;;  %v2469_v34 = vld [vmem:[%s3277_s0 + $0x1c] ss:$36 sps:$4 sm:$0xff]   ;;  %v2473_v38 = vld [vmem:[%s3277_s0 + $0x64] ss:$36 sps:$4 sm:$0xff]  }
  0x25   :  { %2225 = vmatpush3.bf16.msra.mxu1 %v2393_v39  ;;  %1118 = vmatprep.mubr.bf16.mxu0 %v2394_v40  ;;  %v2471_v37 = vld [vmem:[%s3277_s0 + $0x5c] ss:$36 sps:$4 sm:$0xff]   ;;  %v2477_v39 = vld [vmem:[%s3276_s1 + $0x230] sm:$0xff]   ;;  %v2484_v40 = vld [vmem:[%s3276_s1 + $0x228] sm:$0xff]  }
  0x26   :  { %1215 = vmatprep.mubr.bf16.mxu1 %v2396_v41  ;;  %2162 = vmatprep.subr.bf16.mxu0 %v2400_v44  ;;  %v2475_v41 = vld [vmem:[%s3277_s0 + $0x58] ss:$36 sps:$4 sm:$0xff]   ;;  %v2480_v44 = vld [vmem:[%s3277_s0 + $0xac] ss:$36 sps:$4 sm:$0xff]  }
  0x27   :  { %2226 = vmatprep.subr.bf16.mxu1 %v2401_v45  ;;  %v2491_v45 = vld [vmem:[%s3276_s1 + $0x220] sm:$0xff]  }
  0x28   :  { %2163 = vmatpush3.bf16.msra.mxu0 %v2402_v46  ;;  %v2498_v46 = vld [vmem:[%s3276_s1 + $0x218] sm:$0xff]  }
  0x29   :  { %2227 = vmatpush3.bf16.msra.mxu1 %v2403_v47  ;;  %2164 = vmatprep.subr.bf16.mxu0 %v2410_v52  ;;  %v2482_v47 = vld [vmem:[%s3277_s0 + $0xa0] ss:$36 sps:$4 sm:$0xff]   ;;  %v2489_v52 = vld [vmem:[%s3277_s0 + $0xe8] ss:$36 sps:$4 sm:$0xff]  }
  0x2a   :  { %2228 = vmatprep.subr.bf16.mxu1 %v2411_v53  ;;  %v2512_v53 = vld [vmem:[%s3276_s1 + $0x208] sm:$0xff]  }
  0x2b   :  { %1119 = vmatmul.mubr.bf16.gmra.mxu0 %v2398_v42  ;;  %v2476_v42 = vld [vmem:[%s3277_s0 + $0x60] ss:$36 sps:$4 sm:$0xff]  }
  0x2c   :  { %1216 = vmatmul.mubr.bf16.gmra.mxu1 %v2399_v43  ;;  %1126 = vmatprep.mubr.bf16.mxu0 %v2404_v48  ;;  %v2478_v43 = vld [vmem:[%s3277_s0 + $0xa4] ss:$36 sps:$4 sm:$0xff]  }
  0x2d   :  { %1223 = vmatprep.mubr.bf16.mxu1 %v2406_v49  ;;  %2165 = vmatpush3.bf16.msra.mxu0 %v2412_v54  ;;  %v2483_v48 = vld [vmem:[%s3277_s0 + $0xa8] ss:$36 sps:$4 sm:$0xff]   ;;  %v2490_v54 = vld [vmem:[%s3277_s0 + $0xf0] ss:$36 sps:$4 sm:$0xff]  }
  0x2e   :  { %2229 = vmatpush3.bf16.msra.mxu1 %v2413_v55  ;;  %2166 = vmatprep.subr.bf16.mxu0 %v2420_v60  ;;  %v2485_v49 = vld [vmem:[%s3277_s0 + $0xec] ss:$36 sps:$4 sm:$0xff]   ;;  %v2492_v55 = vld [vmem:[%s3277_s0 + $0x134] ss:$36 sps:$4 sm:$0xff]   ;;  %v2499_v60 = vld [vmem:[%s3277_s0 + $0x17c] ss:$36 sps:$4 sm:$0xff]  }
  0x2f   :  { %2230 = vmatprep.subr.bf16.mxu1 %v2421_v61  ;;  %v2501_v61 = vld [vmem:[%s3277_s0 + $0x184] ss:$36 sps:$4 sm:$0xff]  }
  0x31   :  { %2167 = vmatpush3.bf16.msra.mxu0 %v2422_v62  ;;  %v2503_v62 = vld [vmem:[%s3277_s0 + $0x178] ss:$36 sps:$4 sm:$0xff]  }
  0x32   :  { %2231 = vmatpush3.bf16.msra.mxu1 %v2423_v63  ;;  %2168 = vmatprep.subr.bf16.mxu0 %v2430_v3  ;;  %v2504_v63 = vld [vmem:[%s3277_s0 + $0x180] ss:$36 sps:$4 sm:$0xff]   ;;  %v2511_v3 = vld [vmem:[%s3277_s0 + $0x1c8] ss:$36 sps:$4 sm:$0xff]  }
  0x33   :  { %1127 = vmatmul.mubr.bf16.gmra.mxu0 %v2408_v50  ;;  %2232 = vmatprep.subr.bf16.mxu1 %v2431_v5  ;;  %v2487_v50 = vld [vmem:[%s3277_s0 + $0xf4] ss:$36 sps:$4 sm:$0xff]  }
  0x34   :  { %1224 = vmatmul.mubr.bf16.gmra.mxu1 %v2409_v51  ;;  %1134 = vmatprep.mubr.bf16.mxu0 %v2414_v56  ;;  %v2505_v51 = vld [vmem:[%s3276_s1 + $0x210] sm:$0xff]   ;;  %v2494_v56 = vld [vmem:[%s3277_s0 + $0x13c] ss:$36 sps:$4 sm:$0xff]  }
  0x35   :  { %1231 = vmatprep.mubr.bf16.mxu1 %v2416_v57  ;;  %2169 = vmatpush3.bf16.msra.mxu0 %v2432_v6  ;;  %v2519_v57 = vld [vmem:[%s3276_s1 + $0x200] sm:$0xff]   ;;  %v2515_v5 = vld [vmem:[%s3277_s0 + $0x214] ss:$36 sps:$4 sm:$0xff]   ;;  %v2517_v6 = vld [vmem:[%s3277_s0 + $0x208] ss:$36 sps:$4 sm:$0xff]  }
  0x36   :  { %2233 = vmatpush3.bf16.msra.mxu1 %v2433_v7  ;;  %2170 = vmatprep.subr.bf16.mxu0 %v2440_v10  ;;  %v2518_v7 = vld [vmem:[%s3277_s0 + $0x210] ss:$36 sps:$4 sm:$0xff]   ;;  %v2522_v10 = vld [vmem:[%s3277_s0 + $0x68] ss:$36 sps:$4 sm:$0xff]  }
  0x37   :  { %2234 = vmatprep.subr.bf16.mxu1 %v2441_v11  ;;  %v2523_v11 = vld [vmem:[%s3277_s0 + $0x188] ss:$36 sps:$4 sm:$0xff]  }
  0x39   :  { %2171 = vmatpush3.bf16.msra.mxu0 %v2442_v13  ;;  %v2525_v13 = vld [vmem:[%s3277_s0 + $0x1d0] ss:$36 sps:$4 sm:$0xff]  }
  0x3a   :  { %2235 = vmatpush3.bf16.msra.mxu1 %v2443_v14  ;;  %2172 = vmatprep.subr.bf16.mxu0 %v2450_v18  ;;  %v2526_v14 = vld [vmem:[%s3277_s0 + $0xf8] ss:$36 sps:$4 sm:$0xff]  }
  0x3b   :  { %1135 = vmatmul.mubr.bf16.gmra.mxu0 %v2418_v58  ;;  %2236 = vmatprep.subr.bf16.mxu1 %v2451_v19  ;;  %v2496_v58 = vld [vmem:[%s3277_s0 + $0x130] ss:$36 sps:$4 sm:$0xff]  }
  0x3c   :  { %1232 = vmatmul.mubr.bf16.gmra.mxu1 %v2419_v59  ;;  %1142 = vmatprep.mubr.bf16.mxu0 %v2424_v0  ;;  %v2497_v59 = vld [vmem:[%s3277_s0 + $0x138] ss:$36 sps:$4 sm:$0xff]   ;;  %v2506_v0 = vld [vmem:[%s3277_s0 + $0x1c4] ss:$36 sps:$4 sm:$0xff]  }
  0x3d   :  { %1239 = vmatprep.mubr.bf16.mxu1 %v2426_v1  ;;  %2173 = vmatpush3.bf16.msra.mxu0 %v2452_v20  ;;  %v2508_v1 = vld [vmem:[%s3277_s0 + $0x1cc] ss:$36 sps:$4 sm:$0xff]  }
  0x3e   :  { %2237 = vmatpush3.bf16.msra.mxu1 %v2453_v21  ;;  %2174 = vmatprep.subr.bf16.mxu0 %v2460_v26 }
  0x3f   :  { %2238 = vmatprep.subr.bf16.mxu1 %v2461_v27 }
  0x41   :  { %2175 = vmatpush3.bf16.msra.mxu0 %v2462_v28 }
  0x42   :  { %2239 = vmatpush3.bf16.msra.mxu1 %v2463_v29  ;;  %2304 = vmatprep.subr.bf16.mxu0 %v2470_v32 }
  0x43   :  { %1143 = vmatmul.mubr.bf16.gmra.mxu0 %v2428_v2  ;;  %2336 = vmatprep.subr.bf16.mxu1 %v2470_v32  ;;  %v2510_v2 = vld [vmem:[%s3277_s0 + $0x1c0] ss:$36 sps:$4 sm:$0xff]  }
  0x44   :  { %1240 = vmatmul.mubr.bf16.gmra.mxu1 %v2429_v4  ;;  %1150 = vmatprep.mubr.bf16.mxu0 %v2434_v8  ;;  %v2513_v4 = vld [vmem:[%s3277_s0 + $0x20c] ss:$36 sps:$4 sm:$0xff]   ;;  %v2520_v8 = vld [vmem:[%s3277_s0 + $0x20] ss:$36 sps:$4 sm:$0xff]  }
  0x45   :  { %1247 = vmatprep.mubr.bf16.mxu1 %v2436_v9  ;;  %v2521_v9 = vld [vmem:[%s3277_s0 + $0x140] ss:$36 sps:$4 sm:$0xff]  }
  0x4b   :  { %1151 = vmatmul.mubr.bf16.gmra.mxu0 %v2438_v12  ;;  %v2524_v12 = vld [vmem:[%s3277_s0 + $0xb0] ss:$36 sps:$4 sm:$0xff]  }
  0x4c   :  { %1248 = vmatmul.mubr.bf16.gmra.mxu1 %v2439_v15  ;;  %1158 = vmatprep.mubr.bf16.mxu0 %v2444_v16  ;;  %v2527_v15 = vld [vmem:[%s3277_s0 + $0x218] ss:$36 sps:$4 sm:$0xff]  }
  0x4d   :  { %1255 = vmatprep.mubr.bf16.mxu1 %v2446_v17 }
  0x53   :  { %1159 = vmatmul.mubr.bf16.gmra.mxu0 %v2448_v22 }
  0x54   :  { %1256 = vmatmul.mubr.bf16.gmra.mxu1 %v2449_v23  ;;  %1166 = vmatprep.mubr.bf16.mxu0 %v2454_v24 }
  0x55   :  { %1263 = vmatprep.mubr.bf16.mxu1 %v2456_v25 }
  0x5b   :  { %1167 = vmatmul.mubr.bf16.gmra.mxu0 %v2458_v30 }
  0x5c   :  { %1264 = vmatmul.mubr.bf16.gmra.mxu1 %v2459_v31  ;;  %1304 = vmatprep.mubr.bf16.mxu0 %v2466_v33 }
  0x5d   :  { %1401 = vmatprep.mubr.bf16.mxu1 %v2469_v34 }
  0x63   :  { %1305 = vmatmul.mubr.bf16.vlgmr.msra.gmra.mxu0 %v2464_v35 }
  0x64   :  { %1402 = vmatmul.mubr.bf16.vlgmr.msra.gmra.mxu1 %v2467_v36  ;;  %2305 = vmatpush3.bf16.msra.mxu0 %v2470_v32 }
  0x65   :  { %2344 = vmatpush3.bf16.msra.mxu1 %v2470_v32  ;;  %1312 = vmatprep.mubr.bf16.mxu0 %v2471_v37 }
  0x66   :  { %1409 = vmatprep.mubr.bf16.mxu1 %v2473_v38  ;;  %2306 = vmatprep.subr.bf16.mxu0 %v2477_v39 }
  0x67   :  { %2337 = vmatprep.subr.bf16.mxu1 %v2477_v39 }
  0x68   :  { %2307 = vmatpush3.bf16.msra.mxu0 %v2477_v39 }
  0x69   :  { %2345 = vmatpush3.bf16.msra.mxu1 %v2477_v39  ;;  %2308 = vmatprep.subr.bf16.mxu0 %v2484_v40 }
  0x6a   :  { %2338 = vmatprep.subr.bf16.mxu1 %v2484_v40 }
  0x6b   :  { %1313 = vmatmul.mubr.bf16.gmra.mxu0 %v2475_v41 }
  0x6c   :  { %1410 = vmatmul.mubr.bf16.gmra.mxu1 %v2476_v42  ;;  %1320 = vmatprep.mubr.bf16.mxu0 %v2478_v43 }
  0x6d   :  { %1417 = vmatprep.mubr.bf16.mxu1 %v2480_v44  ;;  %2309 = vmatpush3.bf16.msra.mxu0 %v2484_v40 }
  0x6e   :  { %2346 = vmatpush3.bf16.msra.mxu1 %v2484_v40  ;;  %2310 = vmatprep.subr.bf16.mxu0 %v2491_v45 }
  0x6f   :  { %2339 = vmatprep.subr.bf16.mxu1 %v2491_v45 }
  0x71   :  { %2311 = vmatpush3.bf16.msra.mxu0 %v2491_v45 }
  0x72   :  { %2347 = vmatpush3.bf16.msra.mxu1 %v2491_v45  ;;  %2312 = vmatprep.subr.bf16.mxu0 %v2498_v46 }
  0x73   :  { %1321 = vmatmul.mubr.bf16.gmra.mxu0 %v2482_v47  ;;  %2340 = vmatprep.subr.bf16.mxu1 %v2498_v46 }
  0x74   :  { %1418 = vmatmul.mubr.bf16.gmra.mxu1 %v2483_v48  ;;  %1328 = vmatprep.mubr.bf16.mxu0 %v2485_v49 }
  0x75   :  { %1425 = vmatprep.mubr.bf16.mxu1 %v2487_v50  ;;  %2313 = vmatpush3.bf16.msra.mxu0 %v2498_v46 }
  0x76   :  { %2348 = vmatpush3.bf16.msra.mxu1 %v2498_v46  ;;  %2314 = vmatprep.subr.bf16.mxu0 %v2505_v51 }
  0x77   :  { %2341 = vmatprep.subr.bf16.mxu1 %v2505_v51 }
  0x79   :  { %2315 = vmatpush3.bf16.msra.mxu0 %v2505_v51 }
  0x7a   :  { %2349 = vmatpush3.bf16.msra.mxu1 %v2505_v51  ;;  %2316 = vmatprep.subr.bf16.mxu0 %v2512_v53 }
  0x7b   :  { %1329 = vmatmul.mubr.bf16.gmra.mxu0 %v2489_v52  ;;  %2342 = vmatprep.subr.bf16.mxu1 %v2512_v53 }
  0x7c   :  { %1426 = vmatmul.mubr.bf16.gmra.mxu1 %v2490_v54  ;;  %1336 = vmatprep.mubr.bf16.mxu0 %v2492_v55 }
  0x7d   :  { %1433 = vmatprep.mubr.bf16.mxu1 %v2494_v56  ;;  %2317 = vmatpush3.bf16.msra.mxu0 %v2512_v53 }
  0x7e   :  { %2350 = vmatpush3.bf16.msra.mxu1 %v2512_v53  ;;  %2318 = vmatprep.subr.bf16.mxu0 %v2519_v57 }
  0x7f   :  { %2343 = vmatprep.subr.bf16.mxu1 %v2519_v57 }
  0x81   :  { %2319 = vmatpush3.bf16.msra.mxu0 %v2519_v57 }
  0x82   :  { %2351 = vmatpush3.bf16.msra.mxu1 %v2519_v57 }
  0x83   :  { %1337 = vmatmul.mubr.bf16.gmra.mxu0 %v2496_v58 }
  0x84   :  { %1434 = vmatmul.mubr.bf16.gmra.mxu1 %v2497_v59  ;;  %1344 = vmatprep.mubr.bf16.mxu0 %v2499_v60 }
  0x85   :  { %1441 = vmatprep.mubr.bf16.mxu1 %v2501_v61 }
  0x8b   :  { %1345 = vmatmul.mubr.bf16.gmra.mxu0 %v2503_v62 }
  0x8c   :  { %1442 = vmatmul.mubr.bf16.gmra.mxu1 %v2504_v63  ;;  %1352 = vmatprep.mubr.bf16.mxu0 %v2506_v0 }
  0x8d   :  { %1449 = vmatprep.mubr.bf16.mxu1 %v2508_v1 }
  0x93   :  { %1353 = vmatmul.mubr.bf16.gmra.mxu0 %v2510_v2 }
  0x94   :  { %1450 = vmatmul.mubr.bf16.gmra.mxu1 %v2511_v3  ;;  %1360 = vmatprep.mubr.bf16.mxu0 %v2513_v4 }
  0x95   :  { %1457 = vmatprep.mubr.bf16.mxu1 %v2515_v5 }
  0x9b   :  { %1361 = vmatmul.mubr.bf16.gmra.mxu0 %v2517_v6 }
  0x9c   :  { %1458 = vmatmul.mubr.bf16.gmra.mxu1 %v2518_v7  ;;  %2320 = vmatprep.mubr.bf16.mxu0 %v2520_v8 }
  0x9d   :  { %2328 = vmatprep.mubr.bf16.mxu1 %v2521_v9 }
  0xa3   :  { %2321 = vmatmul.mubr.bf16.vlgmr.msra.gmra.mxu0 %v2522_v10 }
  0xa4   :  { %2329 = vmatmul.mubr.bf16.vlgmr.msra.gmra.mxu1 %v2523_v11  ;;  %2324 = vmatprep.mubr.bf16.mxu0 %v2524_v12 }
  0xa5   :  { %2332 = vmatprep.mubr.bf16.mxu1 %v2525_v13 }
  0xab   :  { %2325 = vmatmul.mubr.bf16.gmra.mxu0 %v2526_v14 }
  0xac   :  { %2333 = vmatmul.mubr.bf16.gmra.mxu1 %v2527_v15 }
  0xe3   :  { %v2048_v16 = vpop.f32.mrf.mxu0 }
  0xe4   :  { %v2112_v17 = vpop.f32.mrf.mxu1 }
  0xe5   :  { %v2049_v18 = vpop.f32.mrf.mxu0 }
  0xe6   :  { %v2050_v19 = vadd.f32 %v2049_v18, %v2048_v16  ;;  %v2113_v20 = vpop.f32.mrf.mxu1 }
  0xe7   :  { %v2114_v21 = vadd.f32 %v2113_v20, %v2112_v17  ;;  %v2051_v22 = vpop.f32.mrf.mxu0 }
  0xe8   :  { %v2115_v23 = vpop.f32.mrf.mxu1 }
  0xe9   :  { %v2985_v24 = vadd.f32 %v2114_v21, %v2050_v19  ;;  %v2052_v25 = vpop.f32.mrf.mxu0 }
  0xea   :  { %v2053_v26 = vadd.f32 %v2052_v25, %v2051_v22  ;;  %v2116_v27 = vpop.f32.mrf.mxu1 }
  0xeb   :  { %v2117_v28 = vadd.f32 %v2116_v27, %v2115_v23  ;;  %v2054_v29 = vpop.f32.mrf.mxu0 }
  0xec   :  { %v2118_v30 = vpop.f32.mrf.mxu1 }
  0xed   :  { %v2987_v31 = vadd.f32 %v2117_v28, %v2053_v26  ;;  %v2055_v32 = vpop.f32.mrf.mxu0 }
  0xee   :  { %v2056_v33 = vadd.f32 %v2055_v32, %v2054_v29  ;;  %v2119_v34 = vpop.f32.mrf.mxu1 }
  0xef   :  { %v2120_v35 = vadd.f32 %v2119_v34, %v2118_v30  ;;  %v2057_v36 = vpop.f32.mrf.mxu0 }
  0xf0   :  { %v2121_v37 = vpop.f32.mrf.mxu1 }
  0xf1   :  { %v2989_v38 = vadd.f32 %v2120_v35, %v2056_v33  ;;  %v2058_v39 = vpop.f32.mrf.mxu0 }
  0xf2   :  { %v2059_v40 = vadd.f32 %v2058_v39, %v2057_v36  ;;  %v2122_v41 = vpop.f32.mrf.mxu1 }
  0xf3   :  { %v2123_v42 = vadd.f32 %v2122_v41, %v2121_v37  ;;  %v2060_v43 = vpop.f32.mrf.mxu0 }
  0xf4   :  { %v2124_v44 = vpop.f32.mrf.mxu1 }
  0xf5   :  { %v2991_v45 = vadd.f32 %v2123_v42, %v2059_v40  ;;  %v2061_v46 = vpop.f32.mrf.mxu0 }
  0xf6   :  { %v2062_v47 = vadd.f32 %v2061_v46, %v2060_v43  ;;  %v2125_v48 = vpop.f32.mrf.mxu1 }
  0xf7   :  { %v2126_v49 = vadd.f32 %v2125_v48, %v2124_v44  ;;  %v2063_v50 = vpop.f32.mrf.mxu0 }
  0xf8   :  { %v2127_v51 = vpop.f32.mrf.mxu1 }
  0xf9   :  { %v2993_v52 = vadd.f32 %v2126_v49, %v2062_v47  ;;  %v2064_v53 = vpop.f32.mrf.mxu0 }
  0xfa   :  { %v2065_v54 = vadd.f32 %v2064_v53, %v2063_v50  ;;  %v2128_v55 = vpop.f32.mrf.mxu1 }
  0xfb   :  { %v2129_v56 = vadd.f32 %v2128_v55, %v2127_v51  ;;  %v2066_v57 = vpop.f32.mrf.mxu0 }
  0xfc   :  { %v2130_v58 = vpop.f32.mrf.mxu1 }
  0xfd   :  { %v2995_v59 = vadd.f32 %v2129_v56, %v2065_v54  ;;  %v2067_v60 = vpop.f32.mrf.mxu0 }
  0xfe   :  { %v2068_v61 = vadd.f32 %v2067_v60, %v2066_v57  ;;  %v2131_v62 = vpop.f32.mrf.mxu1 }
  0xff   :  { %v2132_v63 = vadd.f32 %v2131_v62, %v2130_v58  ;;  %v2069_v0 = vpop.f32.mrf.mxu0 }
 0x100   :  { %v2133_v1 = vpop.f32.mrf.mxu1 }
 0x101   :  { %v2997_v2 = vadd.f32 %v2132_v63, %v2068_v61  ;;  %v2070_v3 = vpop.f32.mrf.mxu0 }
 0x102   :  { %v2071_v4 = vadd.f32 %v2070_v3, %v2069_v0  ;;  %v2134_v5 = vpop.f32.mrf.mxu1 }
 0x103   :  { %v2135_v6 = vadd.f32 %v2134_v5, %v2133_v1  ;;  %v2072_v7 = vpop.f32.mrf.mxu0 }
 0x104   :  { %v2136_v8 = vpop.f32.mrf.mxu1 }
 0x105   :  { %v2999_v9 = vadd.f32 %v2135_v6, %v2071_v4  ;;  %v2073_v10 = vpop.f32.mrf.mxu0 }
 0x106   :  { %v2074_v11 = vadd.f32 %v2073_v10, %v2072_v7  ;;  %v2137_v12 = vpop.f32.mrf.mxu1 }
 0x107   :  { %3283 = vst [vmem:[#allocation3_spill] sm:$0xff] %v2999_v9  ;;  %v2138_v13 = vadd.f32 %v2137_v12, %v2136_v8  ;;  %v2075_v14 = vpop.f32.mrf.mxu0 }
 0x108   :  { %v2139_v15 = vpop.f32.mrf.mxu1 }
 0x109   :  { %v3001_v16 = vadd.f32 %v2138_v13, %v2074_v11  ;;  %v2076_v17 = vpop.f32.mrf.mxu0 }
 0x10a   :  { %v2077_v18 = vadd.f32 %v2076_v17, %v2075_v14  ;;  %v2140_v19 = vpop.f32.mrf.mxu1 }
 0x10b   :  { %v2141_v20 = vadd.f32 %v2140_v19, %v2139_v15  ;;  %v2078_v21 = vpop.f32.mrf.mxu0 }
 0x10c   :  { %v2142_v22 = vpop.f32.mrf.mxu1 }
 0x10d   :  { %v3003_v23 = vadd.f32 %v2141_v20, %v2077_v18  ;;  %v2079_v25 = vpop.f32.mrf.mxu0 }
 0x10e   :  { %v2080_v26 = vadd.f32 %v2079_v25, %v2078_v21  ;;  %v2143_v27 = vpop.f32.mrf.mxu1 }
 0x10f   :  { %3284 = vst [vmem:[#allocation4_spill] sm:$0xff] %v3003_v23  ;;  %v2144_v28 = vadd.f32 %v2143_v27, %v2142_v22  ;;  %v2081_v29 = vpop.f32.mrf.mxu0 }
 0x110   :  { %v2145_v30 = vpop.f32.mrf.mxu1 }
 0x111   :  { %v3005_v32 = vadd.f32 %v2144_v28, %v2080_v26  ;;  %v2082_v33 = vpop.f32.mrf.mxu0 }
 0x112   :  { %v2083_v34 = vadd.f32 %v2082_v33, %v2081_v29  ;;  %v2146_v35 = vpop.f32.mrf.mxu1 }
 0x113   :  { %v2147_v36 = vadd.f32 %v2146_v35, %v2145_v30  ;;  %v2084_v37 = vpop.f32.mrf.mxu0 }
 0x114   :  { %v2148_v39 = vpop.f32.mrf.mxu1 }
 0x115   :  { %v3007_v40 = vadd.f32 %v2147_v36, %v2083_v34  ;;  %v2085_v41 = vpop.f32.mrf.mxu0 }
 0x116   :  { %v2086_v42 = vadd.f32 %v2085_v41, %v2084_v37  ;;  %v2149_v43 = vpop.f32.mrf.mxu1 }
 0x117   :  { %3285 = vst [vmem:[#allocation5_spill] sm:$0xff] %v3007_v40  ;;  %v2150_v44 = vadd.f32 %v2149_v43, %v2148_v39  ;;  %v2087_v46 = vpop.f32.mrf.mxu0 }
 0x118   :  { %v2151_v47 = vpop.f32.mrf.mxu1 }
 0x119   :  { %v3009_v48 = vadd.f32 %v2150_v44, %v2086_v42  ;;  %v2088_v49 = vpop.f32.mrf.mxu0 }
 0x11a   :  { %v2089_v50 = vadd.f32 %v2088_v49, %v2087_v46  ;;  %v2152_v51 = vpop.f32.mrf.mxu1 }
 0x11b   :  { %3286 = vst [vmem:[#allocation6_spill] sm:$0xff] %v3009_v48  ;;  %v2153_v53 = vadd.f32 %v2152_v51, %v2151_v47  ;;  %v2090_v54 = vpop.f32.mrf.mxu0 }
 0x11c   :  { %v2154_v55 = vpop.f32.mrf.mxu1 }
 0x11d   :  { %v3011_v56 = vadd.f32 %v2153_v53, %v2089_v50  ;;  %v2091_v57 = vpop.f32.mrf.mxu0 }
 0x11e   :  { %v2092_v58 = vadd.f32 %v2091_v57, %v2090_v54  ;;  %v2155_v60 = vpop.f32.mrf.mxu1 }
 0x11f   :  { %3287 = vst [vmem:[#allocation7_spill] sm:$0xff] %v3011_v56  ;;  %v2156_v61 = vadd.f32 %v2155_v60, %v2154_v55  ;;  %v2093_v62 = vpop.f32.mrf.mxu0  ;;  %v3091_v56 = vld [vmem:[%s3278_s3] sm:$0xff]  }
 0x120   :  { %v2157_v63 = vpop.f32.mrf.mxu1  ;;  %v1949_v23 = vunpack.c.h.bf16 %v3091_v56 }
 0x121   :  { %v3013_v0 = vadd.f32 %v2156_v61, %v2092_v58  ;;  %v2094_v1 = vpop.f32.mrf.mxu0 }
 0x122   :  { %v2095_v3 = vadd.f32 %v2094_v1, %v2093_v62  ;;  %v2158_v4 = vpop.f32.mrf.mxu1 }
 0x123   :  { %3288 = vst [vmem:[#allocation8_spill] sm:$0xff] %v3013_v0  ;;  %v2159_v5 = vadd.f32 %v2158_v4, %v2157_v63  ;;  %v2176_v6 = vpop.f32.mrf.mxu0 }
 0x124   :  { %v2240_v7 = vpop.f32.mrf.mxu1 }
 0x125   :  { %v3015_v8 = vadd.f32 %v2159_v5, %v2095_v3  ;;  %v2177_v10 = vpop.f32.mrf.mxu0 }
 0x126   :  { %v2178_v11 = vadd.f32 %v2177_v10, %v2176_v6  ;;  %v2241_v12 = vpop.f32.mrf.mxu1 }
 0x127   :  { %3289 = vst [vmem:[#allocation9_spill] sm:$0xff] %v3015_v8  ;;  %v2179_v13 = vpop.f32.mrf.mxu0  ;;  %v2242_v15 = vadd.f32 %v2241_v12, %v2240_v7  ;;  %v3079_v12 = vld [vmem:[%s3278_s3 + $0x8] sm:$0xff]   ;;  %v3096_v8 = vld [vmem:[%s3278_s3 + $0x20] sm:$0xff]  }
 0x128   :  { %v1307_v14 = vadd.f32 %v2178_v11, %v2985_v24  ;;  %v3018_v17 = vpop.f32.mrf.mxu1  ;;  %3299 = vst [vmem:[#allocation19_spill] sm:$0xff] %v3079_v12 }
 0x129   :  { %v2180_v18 = vpop.f32.mrf.mxu0 }
 0x12a   :  { %v3020_v19 = vpop.f32.mrf.mxu1  ;;  %v3022_v20 = vadd.f32 %v2242_v15, %v1307_v14  ;;  %v3086_v15 = vld [vmem:[%s3278_s3 + $0x28] sm:$0xff]  }
 0x12b   :  { %v2182_v21 = vpop.f32.mrf.mxu0 }
 0x12c   :  { %3290 = vst [vmem:[#allocation10_spill] sm:$0xff] %v3022_v20  ;;  %v3024_v22 = vpop.f32.mrf.mxu1  ;;  %v2181_v20 = vadd.f32 %v2180_v18, %v2179_v13  ;;  %v3115_v18 = vld [vmem:[%s3278_s3 + $0x38] sm:$0xff]   ;;  %v1969_v13 = vunpack.c.h.bf16 %v3086_v15 }
 0x12d   :  { %v2183_v25 = vpop.f32.mrf.mxu0 }
 0x12e   :  { %v3026_v26 = vpop.f32.mrf.mxu1  ;;  %v1310_v12 = vadd.f32 %v2181_v20, %v2987_v31 }
 0x12f   :  { %v2185_v27 = vpop.f32.mrf.mxu0 }
 0x130   :  { %v3028_v28 = vpop.f32.mrf.mxu1 }
 0x131   :  { %v2186_v29 = vpop.f32.mrf.mxu0 }
 0x132   :  { %v3030_v30 = vpop.f32.mrf.mxu1 }
 0x133   :  { %v2188_v24 = vpop.f32.mrf.mxu0 }
 0x134   :  { %v3032_v33 = vpop.f32.mrf.mxu1 }
 0x135   :  { %v2189_v34 = vpop.f32.mrf.mxu0 }
 0x136   :  { %v3034_v35 = vpop.f32.mrf.mxu1 }
 0x137   :  { %v3036_v36 = vpop.f32.mrf.mxu0 }
 0x138   :  { %v3038_v37 = vpop.f32.mrf.mxu1 }
 0x139   :  { %v3040_v39 = vpop.f32.mrf.mxu0 }
 0x13a   :  { %v3042_v41 = vpop.f32.mrf.mxu1 }
 0x13b   :  { %v2194_v42 = vpop.f32.mrf.mxu0 }
 0x13c   :  { %v3044_v43 = vpop.f32.mrf.mxu1 }
 0x13d   :  { %v2195_v44 = vpop.f32.mrf.mxu0 }
 0x13e   :  { %v3046_v46 = vpop.f32.mrf.mxu1  ;;  %v2196_v48 = vadd.f32 %v2195_v44, %v2194_v42 }
 0x13f   :  { %v3048_v47 = vpop.f32.mrf.mxu0 }
 0x140   :  { %v3050_v49 = vpop.f32.mrf.mxu1 }
 0x141   :  { %3291 = vst [vmem:[#allocation11_spill] sm:$0xff] %v3050_v49  ;;  %v3052_v50 = vpop.f32.mrf.mxu0  ;;  %v2190_v49 = vadd.f32 %v2189_v34, %v2188_v24  ;;  %v1977_v34 = vunpack.c.h.bf16 %v3115_v18 }
 0x142   :  { %v3054_v51 = vpop.f32.mrf.mxu1 }
 0x143   :  { %3292 = vst [vmem:[#allocation12_spill] sm:$0xff] %v3054_v51  ;;  %v2200_v53 = vpop.f32.mrf.mxu0  ;;  %v2184_v51 = vadd.f32 %v2183_v25, %v2182_v21  ;;  %v1323_v9 = vadd.f32 %v2190_v49, %v2993_v52  ;;  %v2199_v52 = vadd.f32 %v3052_v50, %v3048_v47  ;;  %v3172_v50 = vadd.f32 %v3042_v41, %v3038_v37 }
 0x144   :  { %v3056_v54 = vpop.f32.mrf.mxu1 }
 0x145   :  { %3293 = vst [vmem:[#allocation13_spill] sm:$0xff] %v3056_v54  ;;  %v2201_v55 = vpop.f32.mrf.mxu0  ;;  %v1315_v42 = vadd.f32 %v2184_v51, %v2989_v38  ;;  %v2251_v38 = vadd.f32 %v3030_v30, %v3028_v28 }
 0x146   :  { %v3058_v57 = vpop.f32.mrf.mxu1  ;;  %v2202_v21 = vadd.f32 %v2201_v55, %v2200_v53 }
 0x147   :  { %3294 = vst [vmem:[#allocation14_spill] sm:$0xff] %v3058_v57  ;;  %v3060_v58 = vpop.f32.mrf.mxu0 }
 0x148   :  { %v3062_v60 = vpop.f32.mrf.mxu1  ;;  %v1339_v28 = vadd.f32 %v2202_v21, %v3001_v16 }
 0x149   :  { %3295 = vst [vmem:[#allocation15_spill] sm:$0xff] %v3062_v60  ;;  %v3064_v61 = vpop.f32.mrf.mxu0  ;;  %v3125_v60 = vld [vmem:[%s3278_s3 + $0x30] sm:$0xff]  }
 0x14a   :  { %v3066_v62 = vpop.f32.mrf.mxu1 }
 0x14b   :  { %3296 = vst [vmem:[#allocation16_spill] sm:$0xff] %v3066_v62  ;;  %v2206_v63 = vpop.f32.mrf.mxu0 }
 0x14c   :  { %v3068_v1 = vpop.f32.mrf.mxu1  ;;  %v3304_v16 = vld [vmem:[#allocation13_spill] sm:$0xff] }
 0x14d   :  { %v2207_v3 = vpop.f32.mrf.mxu0 }
 0x14e   :  { %v3070_v4 = vpop.f32.mrf.mxu1  ;;  %v2208_v31 = vadd.f32 %v2207_v3, %v2206_v63  ;;  %v3305_v55 = vld [vmem:[#allocation14_spill] sm:$0xff] }
 0x14f   :  { %v2209_v5 = vpop.f32.mrf.mxu0 }
 0x150   :  { %v3072_v6 = vpop.f32.mrf.mxu1 }
 0x151   :  { %3297 = vst [vmem:[#allocation17_spill] sm:$0xff] %v3072_v6  ;;  %v2210_v7 = vpop.f32.mrf.mxu0  ;;  %v3104_v6 = vld [vmem:[%s3278_s3 + $0x18] sm:$0xff]  }
 0x152   :  { %v3074_v10 = vpop.f32.mrf.mxu1  ;;  %v1961_v24 = vunpack.c.h.bf16 %v3104_v6 }
 0x153   :  { %3298 = vst [vmem:[#allocation18_spill] sm:$0xff] %v3074_v10  ;;  %v2212_v11 = vpop.f32.mrf.mxu0 }
 0x154   :  { %v3081_v14 = vpop.f32.mrf.mxu1 }
 0x155   :  { %3300 = vst [vmem:[#allocation20_spill] sm:$0xff] %v3081_v14  ;;  %v2213_v0 = vpop.f32.mrf.mxu0  ;;  %v3120_v14 = vld [vmem:[%s3278_s3 + $0x10] sm:$0xff]  }
 0x156   :  { %v3098_v10 = vpop.f32.mrf.mxu1  ;;  %v1956_v25 = vunpack.c.l.bf16 %v3120_v14 }
 0x157   :  { %3301 = vst [vmem:[#allocation21_spill] sm:$0xff] %v3098_v10  ;;  %v3106_v62 = vpop.f32.mrf.mxu0 }
 0x158   :  { %3302 = vst [vmem:[#allocation22_spill] sm:$0xff] %v3106_v62  ;;  %v2187_v62 = vadd.f32 %v2186_v29, %v2185_v27  ;;  %v3127_v10 = vpop.f32.mrf.mxu1  ;;  %v2245_v29 = vadd.f32 %v3020_v19, %v3018_v17  ;;  %v2248_v27 = vadd.f32 %v3026_v26, %v3024_v22  ;;  %v2193_v17 = vadd.f32 %v3040_v39, %v3036_v36 }
 0x159   :  { %v2216_v40 = vpop.f32.mrf.mxu0  ;;  %v1331_v19 = vadd.f32 %v2196_v48, %v2997_v2  ;;  %v2205_v22 = vadd.f32 %v3064_v61, %v3060_v58  ;;  %v2260_v36 = vadd.f32 %v3046_v46, %v3044_v43  ;;  %v1347_v2 = vadd.f32 %v2208_v31, %v3005_v32  ;;  %v3303_v46 = vld [vmem:[#allocation3_spill] sm:$0xff]  ;;  %v3306_v61 = vld [vmem:[#allocation4_spill] sm:$0xff] }
 0x15a   :  { %v3133_v54 = vpop.f32.mrf.mxu1  ;;  %v1318_v44 = vadd.f32 %v2187_v62, %v2991_v45  ;;  %v3151_v3 = vadd.f32 %v2245_v29, %v1310_v12  ;;  %v2254_v45 = vadd.f32 %v3034_v35, %v3032_v33  ;;  %v2211_v48 = vadd.f32 %v2210_v7, %v2209_v5  ;;  %v3311_v29 = vld [vmem:[#allocation15_spill] sm:$0xff]  ;;  %v3312_v31 = vld [vmem:[#allocation16_spill] sm:$0xff] }
 0x15b   :  { %v2218_v20 = vpop.f32.mrf.mxu0  ;;  %v2214_v39 = vadd.f32 %v2213_v0, %v2212_v11  ;;  %v1412_v51 = vadd.f32 %v2248_v27, %v1315_v42  ;;  %v3168_v47 = vadd.f32 %v2193_v17, %v2995_v59  ;;  %v2272_v32 = vadd.f32 %v3070_v4, %v3068_v1  ;;  %v3307_v59 = vld [vmem:[#allocation5_spill] sm:$0xff]  ;;  %v3308_v11 = vld [vmem:[#allocation6_spill] sm:$0xff]  ;;  %v3309_v27 = vld [vmem:[#allocation11_spill] sm:$0xff] }
 0x15c   :  { %v2282_v57 = vpop.f32.mrf.mxu1  ;;  %v1415_v33 = vadd.f32 %v2251_v38, %v1318_v44  ;;  %v3165_v35 = vadd.f32 %v2254_v45, %v1323_v9  ;;  %v1428_v0 = vadd.f32 %v2260_v36, %v1331_v19  ;;  %v1334_v53 = vadd.f32 %v2199_v52, %v3303_v46  ;;  %v3310_v1 = vld [vmem:[#allocation12_spill] sm:$0xff]  ;;  %v3313_v38 = vld [vmem:[#allocation17_spill] sm:$0xff]  ;;  %v3314_v45 = vld [vmem:[#allocation18_spill] sm:$0xff] }
 0x15d   :  { %v2219_v63 = vpop.f32.mrf.mxu0  ;;  %v2266_v58 = vadd.f32 %v3305_v55, %v3304_v16  ;;  %v1342_v9 = vadd.f32 %v2205_v22, %v3306_v61  ;;  %v1350_v7 = vadd.f32 %v2211_v48, %v3307_v59  ;;  %v1355_v12 = vadd.f32 %v2214_v39, %v3308_v11 }
 0x15e   :  { %v2283_v26 = vpop.f32.mrf.mxu1  ;;  %v2220_v62 = vadd.f32 %v2219_v63, %v2218_v20  ;;  %v1444_v21 = vadd.f32 %v2272_v32, %v1347_v2  ;;  %v2263_v4 = vadd.f32 %v3310_v1, %v3309_v27  ;;  %v2269_v42 = vadd.f32 %v3312_v31, %v3311_v29  ;;  %v3315_v63 = vld [vmem:[#allocation20_spill] sm:$0xff]  ;;  %v3316_v52 = vld [vmem:[#allocation21_spill] sm:$0xff]  ;;  %v3194_v2 = vld [vmem:[%s3279_s2] ss:$0 sm:$0xff] }
 0x15f   :  { %v2221_v49 = vpop.f32.mrf.mxu0  ;;  %v1436_v19 = vadd.f32 %v2266_v58, %v1339_v28  ;;  %v2275_v20 = vadd.f32 %v3314_v45, %v3313_v38  ;;  %v2278_v22 = vadd.f32 %v3316_v52, %v3315_v63  ;;  %v3317_v36 = vld [vmem:[#allocation22_spill] sm:$0xff]  ;;  %v3318_v32 = vld [vmem:[#allocation8_spill] sm:$0xff]  ;;  %v3320_v58 = vld [vmem:[#allocation9_spill] sm:$0xff]  ;;  %v2281_v27 = vadd.f32 %v3133_v54, %v3127_v10 }
 0x160   :  { %v2285_v30 = vpop.f32.mrf.mxu1  ;;  %v2217_v48 = vadd.f32 %v2216_v40, %v3317_v36  ;;  %v1439_v16 = vadd.f32 %v2269_v42, %v1342_v9  ;;  %v1431_v55 = vadd.f32 %v2263_v4, %v1334_v53  ;;  %v2284_v1 = vadd.f32 %v2283_v26, %v2282_v57 }
 0x161   :  { %v2222_v43 = vpop.f32.mrf.mxu0  ;;  %v1452_v40 = vadd.f32 %v2278_v22, %v1355_v12 }
 0x162   :  { %v2286_v5 = vpop.f32.mrf.mxu1  ;;  %v2223_v37 = vadd.f32 %v2222_v43, %v2221_v49  ;;  %v1363_v43 = vadd.f32 %v2220_v62, %v3318_v32  ;;  %v3321_v62 = vld [vmem:[#allocation7_spill] sm:$0xff] }
 0x163   :  { %v2322_v41 = vpop.f32.mrf.mxu0  ;;  %v2287_v38 = vadd.f32 %v2286_v5, %v2285_v30  ;;  %v3322_v30 = vld [vmem:[#allocation19_spill] sm:$0xff] }
 0x164   :  { %v1509_v44 = vadd.f32 %v2322_v41, %v1412_v51  ;;  %v2330_v17 = vpop.f32.mrf.mxu1  ;;  %v3319_v51 = vld [vmem:[#allocation10_spill] sm:$0xff]  ;;  %v1366_v61 = vadd.f32 %v2223_v37, %v3320_v58  ;;  %v1447_v41 = vadd.f32 %v2275_v20, %v1350_v7  ;;  %v1460_v54 = vadd.f32 %v2284_v1, %v1363_v43 }
 0x165   :  { %v1541_v39 = vadd.f32 %v2330_v17, %v1444_v21  ;;  %v1500_v49 = vpop.f32.mrf.mxu0  ;;  %v1358_v17 = vadd.f32 %v2217_v48, %v3321_v62  ;;  %v3323_v5 = vunpack.c.l.bf16 %v3322_v30  ;;  %v3324_v45 = vunpack.c.h.bf16 %v3322_v30 }
 0x166   :  { %v1501_v46 = vadd.f32 %v1500_v49, %v3319_v51  ;;  %v1532_v28 = vpop.f32.mrf.mxu1  ;;  %v1623_v21 = vadd.f32 %v3194_v2, %v1509_v44  ;;  %v1463_v44 = vadd.f32 %v2287_v38, %v1366_v61  ;;  %v3326_v43 = vunpack.c.l.bf16 %v3091_v56 }
 0x167   :  { %v1533_v59 = vadd.f32 %v1532_v28, %v1436_v19  ;;  %v2323_v11 = vpop.f32.mrf.mxu0  ;;  %v1631_v9 = vadd.f32 %v3194_v2, %v1541_v39  ;;  %v3327_v58 = vunpack.c.l.bf16 %v3096_v8  ;;  %v1455_v62 = vadd.f32 %v2281_v27, %v1358_v17 }
 0x168   :  { %v1512_v29 = vadd.f32 %v2323_v11, %v1415_v33  ;;  %v2331_v31 = vpop.f32.mrf.mxu1  ;;  %v1621_v37 = vadd.f32 %v3194_v2, %v1501_v46  ;;  %v1671_v19 = vadd.f32 %v3323_v5, %v1623_v21  ;;  %v3331_v5 = vunpack.c.l.bf16 %v3125_v60 }
 0x169   :  { %v1544_v53 = vadd.f32 %v2331_v31, %v1447_v41  ;;  %v1503_v4 = vpop.f32.mrf.mxu0  ;;  %v1629_v57 = vadd.f32 %v3194_v2, %v1533_v59 }
 0x16a   :  { %v1624_v7 = vadd.f32 %v3194_v2, %v1512_v29  ;;  %v1504_v12 = vadd.f32 %v1503_v4, %v3151_v3  ;;  %v1535_v42 = vpop.f32.mrf.mxu1  ;;  %v3325_v3 = vunpack.c.l.bf16 %v3086_v15  ;;  %v1669_v51 = vadd.f32 %v3326_v43, %v1621_v37 }
 0x16b   :  { %v1632_v10 = vadd.f32 %v3194_v2, %v1544_v53  ;;  %v1536_v26 = vadd.f32 %v1535_v42, %v1439_v16  ;;  %v2326_v33 = vpop.f32.mrf.mxu0  ;;  %v1677_v61 = vadd.f32 %v3327_v58, %v1629_v57  ;;  %v3328_v15 = vunpack.c.h.bf16 %v3096_v8 }
 0x16c   :  { %v1672_v20 = vadd.f32 %v3324_v45, %v1624_v7  ;;  %v1622_v63 = vadd.f32 %v3194_v2, %v1504_v12  ;;  %v1525_v52 = vadd.f32 %v2326_v33, %v1428_v0  ;;  %v2334_v22 = vpop.f32.mrf.mxu1  ;;  %v1679_v36 = vadd.f32 %v3325_v3, %v1631_v9 }
 0x16d   :  { %v1680_v48 = vadd.f32 %v1969_v13, %v1632_v10  ;;  %v1630_v39 = vadd.f32 %v3194_v2, %v1536_v26  ;;  %v1557_v49 = vadd.f32 %v2334_v22, %v1460_v54  ;;  %v1516_v32 = vpop.f32.mrf.mxu0  ;;  %v1973_v4 = vunpack.c.h.bf16 %v3125_v60 }
 0x16e   :  { %v1986_v46 = vpack.c.bf16 %v1672_v20, %v1671_v19  ;;  %v1670_v28 = vadd.f32 %v1949_v23, %v1622_v63  ;;  %v1517_v0 = vadd.f32 %v1516_v32, %v3165_v35  ;;  %v1548_v16 = vpop.f32.mrf.mxu1  ;;  %v1627_v56 = vadd.f32 %v3194_v2, %v1525_v52 }
 0x16f   :  { %v2006_v59 = vpack.c.bf16 %v1680_v48, %v1679_v36  ;;  %v1678_v13 = vadd.f32 %v3328_v15, %v1630_v39  ;;  %v1549_v11 = vadd.f32 %v1548_v16, %v1452_v40  ;;  %v2327_v41 = vpop.f32.mrf.mxu0  ;;  %v1423_v35 = vadd.f32 %v3172_v50, %v3168_v47 }
 0x170   :  { %2025 = vst [vmem:[%s3280_s4 + $0x8] sm:$0xff] %v1986_v46   ;;  %v1981_v1 = vpack.c.bf16 %v1670_v28, %v1669_v51  ;;  %v1528_v23 = vadd.f32 %v2327_v41, %v1431_v55  ;;  %v2335_v21 = vpop.f32.mrf.mxu1  ;;  %v1635_v40 = vadd.f32 %v3194_v2, %v1557_v49  ;;  %v1625_v55 = vadd.f32 %v3194_v2, %v1517_v0 }
 0x171   :  { %2029 = vst [vmem:[%s3280_s4 + $0x28] sm:$0xff] %v2006_v59   ;;  %v2001_v8 = vpack.c.bf16 %v1678_v13, %v1677_v61  ;;  %v1560_v29 = vadd.f32 %v2335_v21, %v1463_v44  ;;  %v1519_v31 = vpop.f32.mrf.mxu0  ;;  %v1957_v47 = vunpack.c.h.bf16 %v3120_v14  ;;  %v1633_v53 = vadd.f32 %v3194_v2, %v1549_v11 }
 0x172   :  { %1982 = vst [vmem:[%s3280_s4] sm:$0xff] %v1981_v1   ;;  %v1628_v38 = vadd.f32 %v3194_v2, %v1528_v23  ;;  %v1520_v9 = vadd.f32 %v1519_v31, %v1423_v35  ;;  %v1551_v50 = vpop.f32.mrf.mxu1  ;;  %v3329_v37 = vunpack.c.l.bf16 %v3104_v6  ;;  %v3330_v54 = vunpack.c.l.bf16 %v3115_v18 }
 0x173   :  { %2028 = vst [vmem:[%s3280_s4 + $0x20] sm:$0xff] %v2001_v8   ;;  %v1636_v27 = vadd.f32 %v3194_v2, %v1560_v29  ;;  %v1552_v17 = vadd.f32 %v1551_v50, %v1455_v62  ;;  %v1673_v33 = vadd.f32 %v1956_v25, %v1625_v55  ;;  %v1681_v19 = vadd.f32 %v3331_v5, %v1633_v53 }
 0x174   :  { %v1675_v7 = vadd.f32 %v3329_v37, %v1627_v56  ;;  %v1676_v12 = vadd.f32 %v1961_v24, %v1628_v38  ;;  %v1626_v42 = vadd.f32 %v3194_v2, %v1520_v9  ;;  %v1683_v57 = vadd.f32 %v3330_v54, %v1635_v40 }
 0x175   :  { %v1684_v10 = vadd.f32 %v1977_v34, %v1636_v27  ;;  %v1634_v26 = vadd.f32 %v3194_v2, %v1552_v17 }
 0x176   :  { %v1996_v44 = vpack.c.bf16 %v1676_v12, %v1675_v7  ;;  %v1674_v30 = vadd.f32 %v1957_v47, %v1626_v42 }
 0x177   :  { %v2016_v6 = vpack.c.bf16 %v1684_v10, %v1683_v57  ;;  %v1682_v24 = vadd.f32 %v1973_v4, %v1634_v26 }
 0x178   :  { %2027 = vst [vmem:[%s3280_s4 + $0x18] sm:$0xff] %v1996_v44   ;;  %v1991_v45 = vpack.c.bf16 %v1674_v30, %v1673_v33 }
 0x179   :  { %2031 = vst [vmem:[%s3280_s4 + $0x38] sm:$0xff] %v2016_v6   ;;  %v2011_v18 = vpack.c.bf16 %v1682_v24, %v1681_v19 }
 0x17a   :  { %2026 = vst [vmem:[%s3280_s4 + $0x10] sm:$0xff] %v1991_v45  }
 0x17b   :  { %2030 = vst [vmem:[%s3280_s4 + $0x30] sm:$0xff] %v2011_v18  }

// kernel: custom_react_forward.11
= control target key start
LH: loop header
LB: loop body
LE: loop exit
PB: predicated region body
PF: predicated region fallthrough
CT: control target
= control target key end

     0   :  { %s2349_s1 = inlined_call_operand.vmem [shape: bf16[1152,256], index: 1, kind: input, shape index: {}]   ;;  %s2350_s0 = inlined_call_operand.vmem [shape: bf16[32,1152], index: 0, kind: input, shape index: {}]   ;;  %s2351_s2 = inlined_call_operand.vmem [shape: f32[1,256], index: 2, kind: input, shape index: {}]   ;;  %s2352_s3 = inlined_call_operand.vmem [shape: bf16[32,256], index: 3, kind: input, shape index: {}]   ;;  %s2353_s4 = inlined_call_operand.vmem [shape: bf16[32,256], index: 4, kind: output, shape index: {}]  }
   0x1   :  { %v1565_v0 = vld [vmem:[%s2349_s1 + $0x74] ss:$8 sps:$4 sm:$0xff]   ;;  %v1569_v2 = vld [vmem:[%s2349_s1 + $0x70] ss:$8 sps:$4 sm:$0xff]   ;;  %v1571_v4 = vld [vmem:[%s2349_s1 + $0x64] ss:$8 sps:$4 sm:$0xff]  }
   0x2   :  { %v1567_v1 = vld [vmem:[%s2349_s1 + $0x174] ss:$8 sps:$4 sm:$0xff]   ;;  %1014 = vmatprep.subr.bf16.mxu0 %v1565_v0  ;;  %v1570_v3 = vld [vmem:[%s2349_s1 + $0x170] ss:$8 sps:$4 sm:$0xff]   ;;  %v1573_v5 = vld [vmem:[%s2349_s1 + $0x164] ss:$8 sps:$4 sm:$0xff]  }
   0x3   :  { %1067 = vmatprep.subr.bf16.mxu1 %v1567_v1  ;;  %1015 = vmatpush1.bf16.msra.mxu0 %v1569_v2  ;;  %v1575_v6 = vld [vmem:[%s2349_s1 + $0x60] ss:$8 sps:$4 sm:$0xff]   ;;  %v1577_v8 = vld [vmem:[%s2349_s1 + $0x54] ss:$8 sps:$4 sm:$0xff]   ;;  %v1581_v10 = vld [vmem:[%s2349_s1 + $0x50] ss:$8 sps:$4 sm:$0xff]  }
   0x4   :  { %1068 = vmatpush1.bf16.msra.mxu1 %v1570_v3  ;;  %1016 = vmatprep.subr.bf16.mxu0 %v1571_v4  ;;  %v1576_v7 = vld [vmem:[%s2349_s1 + $0x160] ss:$8 sps:$4 sm:$0xff]   ;;  %v1579_v9 = vld [vmem:[%s2349_s1 + $0x154] ss:$8 sps:$4 sm:$0xff]   ;;  %v1582_v11 = vld [vmem:[%s2349_s1 + $0x150] ss:$8 sps:$4 sm:$0xff]  }
   0x5   :  { %1069 = vmatprep.subr.bf16.mxu1 %v1573_v5  ;;  %v1583_v12 = vld [vmem:[%s2349_s1 + $0x44] ss:$8 sps:$4 sm:$0xff]   ;;  %v1587_v14 = vld [vmem:[%s2349_s1 + $0x40] ss:$8 sps:$4 sm:$0xff]   ;;  %v1589_v16 = vld [vmem:[%s2349_s1 + $0x34] ss:$8 sps:$4 sm:$0xff]  }
   0x6   :  { %v1585_v13 = vld [vmem:[%s2349_s1 + $0x144] ss:$8 sps:$4 sm:$0xff]   ;;  %v1588_v15 = vld [vmem:[%s2349_s1 + $0x140] ss:$8 sps:$4 sm:$0xff]   ;;  %v1591_v17 = vld [vmem:[%s2349_s1 + $0x134] ss:$8 sps:$4 sm:$0xff]  }
   0x7   :  { %1017 = vmatpush1.bf16.msra.mxu0 %v1575_v6  ;;  %v1593_v18 = vld [vmem:[%s2349_s1 + $0x30] ss:$8 sps:$4 sm:$0xff]   ;;  %v1595_v20 = vld [vmem:[%s2349_s1 + $0x24] ss:$8 sps:$4 sm:$0xff]   ;;  %v1599_v22 = vld [vmem:[%s2349_s1 + $0x20] ss:$8 sps:$4 sm:$0xff]  }
   0x8   :  { %1070 = vmatpush1.bf16.msra.mxu1 %v1576_v7  ;;  %1018 = vmatprep.subr.bf16.mxu0 %v1577_v8  ;;  %v1594_v19 = vld [vmem:[%s2349_s1 + $0x130] ss:$8 sps:$4 sm:$0xff]   ;;  %v1597_v21 = vld [vmem:[%s2349_s1 + $0x124] ss:$8 sps:$4 sm:$0xff]   ;;  %v1600_v23 = vld [vmem:[%s2349_s1 + $0x120] ss:$8 sps:$4 sm:$0xff]  }
   0x9   :  { %1071 = vmatprep.subr.bf16.mxu1 %v1579_v9  ;;  %v1601_v24 = vld [vmem:[%s2349_s1 + $0x14] ss:$8 sps:$4 sm:$0xff]   ;;  %v1605_v26 = vld [vmem:[%s2349_s1 + $0x10] ss:$8 sps:$4 sm:$0xff]   ;;  %v1607_v28 = vld [vmem:[%s2349_s1 + $0x4] ss:$8 sps:$4 sm:$0xff]  }
   0xa   :  { %v1603_v25 = vld [vmem:[%s2349_s1 + $0x114] ss:$8 sps:$4 sm:$0xff]   ;;  %v1606_v27 = vld [vmem:[%s2349_s1 + $0x110] ss:$8 sps:$4 sm:$0xff]   ;;  %v1609_v29 = vld [vmem:[%s2349_s1 + $0x104] ss:$8 sps:$4 sm:$0xff]  }
   0xb   :  { %1019 = vmatpush1.bf16.msra.mxu0 %v1581_v10  ;;  %v1611_v30 = vld [vmem:[%s2349_s1] ss:$8 sps:$4 sm:$0xff]   ;;  %v1613_v32 = vld [vmem:[%s2349_s1 + $0xf4] ss:$8 sps:$4 sm:$0xff]   ;;  %v1617_v34 = vld [vmem:[%s2349_s1 + $0xf0] ss:$8 sps:$4 sm:$0xff]  }
   0xc   :  { %1072 = vmatpush1.bf16.msra.mxu1 %v1582_v11  ;;  %1020 = vmatprep.subr.bf16.mxu0 %v1583_v12  ;;  %v1612_v31 = vld [vmem:[%s2349_s1 + $0x100] ss:$8 sps:$4 sm:$0xff]   ;;  %v1615_v33 = vld [vmem:[%s2349_s1 + $0x1f4] ss:$8 sps:$4 sm:$0xff]   ;;  %v1618_v35 = vld [vmem:[%s2349_s1 + $0x1f0] ss:$8 sps:$4 sm:$0xff]  }
   0xd   :  { %1073 = vmatprep.subr.bf16.mxu1 %v1585_v13  ;;  %v1619_v36 = vld [vmem:[%s2349_s1 + $0xe4] ss:$8 sps:$4 sm:$0xff]   ;;  %v1623_v38 = vld [vmem:[%s2349_s1 + $0xe0] ss:$8 sps:$4 sm:$0xff]   ;;  %v1625_v40 = vld [vmem:[%s2349_s1 + $0xd4] ss:$8 sps:$4 sm:$0xff]  }
   0xe   :  { %v1621_v37 = vld [vmem:[%s2349_s1 + $0x1e4] ss:$8 sps:$4 sm:$0xff]   ;;  %v1624_v39 = vld [vmem:[%s2349_s1 + $0x1e0] ss:$8 sps:$4 sm:$0xff]   ;;  %v1627_v41 = vld [vmem:[%s2349_s1 + $0x1d4] ss:$8 sps:$4 sm:$0xff]  }
   0xf   :  { %1021 = vmatpush1.bf16.msra.mxu0 %v1587_v14  ;;  %v1629_v42 = vld [vmem:[%s2349_s1 + $0xd0] ss:$8 sps:$4 sm:$0xff]   ;;  %v1631_v44 = vld [vmem:[%s2349_s1 + $0xc4] ss:$8 sps:$4 sm:$0xff]   ;;  %v1635_v46 = vld [vmem:[%s2349_s1 + $0xc0] ss:$8 sps:$4 sm:$0xff]  }
  0x10   :  { %1074 = vmatpush1.bf16.msra.mxu1 %v1588_v15  ;;  %1022 = vmatprep.subr.bf16.mxu0 %v1589_v16  ;;  %v1630_v43 = vld [vmem:[%s2349_s1 + $0x1d0] ss:$8 sps:$4 sm:$0xff]   ;;  %v1633_v45 = vld [vmem:[%s2349_s1 + $0x1c4] ss:$8 sps:$4 sm:$0xff]   ;;  %v1636_v47 = vld [vmem:[%s2349_s1 + $0x1c0] ss:$8 sps:$4 sm:$0xff]  }
  0x11   :  { %1075 = vmatprep.subr.bf16.mxu1 %v1591_v17  ;;  %v1637_v48 = vld [vmem:[%s2349_s1 + $0xb4] ss:$8 sps:$4 sm:$0xff]   ;;  %v1663_v49 = vld [vmem:[%s2350_s0 + $0x4] ss:$36 sps:$4 sm:$0xff]   ;;  %v1666_v51 = vld [vmem:[%s2350_s0 + $0xc] ss:$36 sps:$4 sm:$0xff]  }
  0x12   :  { %v1639_v50 = vld [vmem:[%s2349_s1 + $0x1b4] ss:$8 sps:$4 sm:$0xff]   ;;  %1046 = vmatprep.mubr.bf16.mxu0 %v1663_v49  ;;  %v1641_v52 = vld [vmem:[%s2349_s1 + $0xb0] ss:$8 sps:$4 sm:$0xff]   ;;  %1099 = vmatprep.mubr.bf16.mxu1 %v1666_v51  ;;  %v1643_v54 = vld [vmem:[%s2349_s1 + $0xa4] ss:$8 sps:$4 sm:$0xff]  }
  0x13   :  { %1023 = vmatpush1.bf16.msra.mxu0 %v1593_v18  ;;  %v1642_v53 = vld [vmem:[%s2349_s1 + $0x1b0] ss:$8 sps:$4 sm:$0xff]   ;;  %v1645_v55 = vld [vmem:[%s2349_s1 + $0x1a4] ss:$8 sps:$4 sm:$0xff]   ;;  %v1647_v56 = vld [vmem:[%s2349_s1 + $0xa0] ss:$8 sps:$4 sm:$0xff]  }
  0x14   :  { %1076 = vmatpush1.bf16.msra.mxu1 %v1594_v19  ;;  %1024 = vmatprep.subr.bf16.mxu0 %v1595_v20  ;;  %v1648_v57 = vld [vmem:[%s2349_s1 + $0x1a0] ss:$8 sps:$4 sm:$0xff]   ;;  %v1649_v58 = vld [vmem:[%s2349_s1 + $0x94] ss:$8 sps:$4 sm:$0xff]   ;;  %v1653_v60 = vld [vmem:[%s2349_s1 + $0x90] ss:$8 sps:$4 sm:$0xff]  }
  0x15   :  { %1077 = vmatprep.subr.bf16.mxu1 %v1597_v21  ;;  %v1651_v59 = vld [vmem:[%s2349_s1 + $0x194] ss:$8 sps:$4 sm:$0xff]   ;;  %v1654_v61 = vld [vmem:[%s2349_s1 + $0x190] ss:$8 sps:$4 sm:$0xff]   ;;  %v1655_v62 = vld [vmem:[%s2349_s1 + $0x84] ss:$8 sps:$4 sm:$0xff]  }
  0x16   :  { %v1657_v63 = vld [vmem:[%s2349_s1 + $0x184] ss:$8 sps:$4 sm:$0xff]   ;;  %v1659_v0 = vld [vmem:[%s2349_s1 + $0x80] ss:$8 sps:$4 sm:$0xff]   ;;  %v1669_v2 = vld [vmem:[%s2349_s1 + $0x274] ss:$8 sps:$4 sm:$0xff]  }
  0x17   :  { %1025 = vmatpush1.bf16.msra.mxu0 %v1599_v22  ;;  %v1660_v1 = vld [vmem:[%s2349_s1 + $0x180] ss:$8 sps:$4 sm:$0xff]   ;;  %v1672_v3 = vld [vmem:[%s2349_s1 + $0x374] ss:$8 sps:$4 sm:$0xff]   ;;  %v1667_v6 = vld [vmem:[%s2349_s1 + $0x270] ss:$8 sps:$4 sm:$0xff]  }
  0x18   :  { %1078 = vmatpush1.bf16.msra.mxu1 %v1600_v23  ;;  %1026 = vmatprep.subr.bf16.mxu0 %v1601_v24  ;;  %v1661_v4 = vld [vmem:[%s2350_s0] ss:$36 sps:$4 sm:$0xff]   ;;  %v1664_v5 = vld [vmem:[%s2350_s0 + $0x8] ss:$36 sps:$4 sm:$0xff]   ;;  %v1670_v7 = vld [vmem:[%s2349_s1 + $0x370] ss:$8 sps:$4 sm:$0xff]  }
  0x19   :  { %1079 = vmatprep.subr.bf16.mxu1 %v1603_v25  ;;  %v1675_v8 = vld [vmem:[%s2349_s1 + $0x264] ss:$8 sps:$4 sm:$0xff]   ;;  %v1673_v10 = vld [vmem:[%s2349_s1 + $0x260] ss:$8 sps:$4 sm:$0xff]   ;;  %v1681_v12 = vld [vmem:[%s2349_s1 + $0x254] ss:$8 sps:$4 sm:$0xff]  }
  0x1a   :  { %v1678_v9 = vld [vmem:[%s2349_s1 + $0x364] ss:$8 sps:$4 sm:$0xff]   ;;  %v1676_v11 = vld [vmem:[%s2349_s1 + $0x360] ss:$8 sps:$4 sm:$0xff]   ;;  %v1684_v13 = vld [vmem:[%s2349_s1 + $0x354] ss:$8 sps:$4 sm:$0xff]  }
  0x1b   :  { %1027 = vmatpush1.bf16.msra.mxu0 %v1605_v26  ;;  %v1679_v14 = vld [vmem:[%s2349_s1 + $0x250] ss:$8 sps:$4 sm:$0xff]   ;;  %v1687_v16 = vld [vmem:[%s2349_s1 + $0x244] ss:$8 sps:$4 sm:$0xff]   ;;  %v1685_v18 = vld [vmem:[%s2349_s1 + $0x240] ss:$8 sps:$4 sm:$0xff]  }
  0x1c   :  { %1080 = vmatpush1.bf16.msra.mxu1 %v1606_v27  ;;  %1028 = vmatprep.subr.bf16.mxu0 %v1607_v28  ;;  %v1682_v15 = vld [vmem:[%s2349_s1 + $0x350] ss:$8 sps:$4 sm:$0xff]   ;;  %v1690_v17 = vld [vmem:[%s2349_s1 + $0x344] ss:$8 sps:$4 sm:$0xff]   ;;  %v1688_v19 = vld [vmem:[%s2349_s1 + $0x340] ss:$8 sps:$4 sm:$0xff]  }
  0x1d   :  { %1081 = vmatprep.subr.bf16.mxu1 %v1609_v29  ;;  %v1693_v20 = vld [vmem:[%s2349_s1 + $0x234] ss:$8 sps:$4 sm:$0xff]   ;;  %v1691_v22 = vld [vmem:[%s2349_s1 + $0x230] ss:$8 sps:$4 sm:$0xff]   ;;  %v1699_v24 = vld [vmem:[%s2349_s1 + $0x224] ss:$8 sps:$4 sm:$0xff]  }
  0x1e   :  { %v1696_v21 = vld [vmem:[%s2349_s1 + $0x334] ss:$8 sps:$4 sm:$0xff]   ;;  %v1694_v23 = vld [vmem:[%s2349_s1 + $0x330] ss:$8 sps:$4 sm:$0xff]   ;;  %v1702_v25 = vld [vmem:[%s2349_s1 + $0x324] ss:$8 sps:$4 sm:$0xff]  }
  0x1f   :  { %1029 = vmatpush1.bf16.msra.mxu0 %v1611_v30  ;;  %v1745_v26 = vld [vmem:[%s2350_s0 + $0x4c] ss:$36 sps:$4 sm:$0xff]   ;;  %v1747_v27 = vld [vmem:[%s2350_s0 + $0x54] ss:$36 sps:$4 sm:$0xff]   ;;  %v1697_v30 = vld [vmem:[%s2349_s1 + $0x220] ss:$8 sps:$4 sm:$0xff]  }
  0x20   :  { %1082 = vmatpush1.bf16.msra.mxu1 %v1612_v31  ;;  %1030 = vmatprep.subr.bf16.mxu0 %v1613_v32  ;;  %v1749_v28 = vld [vmem:[%s2350_s0 + $0x48] ss:$36 sps:$4 sm:$0xff]   ;;  %v1750_v29 = vld [vmem:[%s2350_s0 + $0x50] ss:$36 sps:$4 sm:$0xff]  }
  0x21   :  { %1083 = vmatprep.subr.bf16.mxu1 %v1615_v33  ;;  %v1700_v31 = vld [vmem:[%s2349_s1 + $0x320] ss:$8 sps:$4 sm:$0xff]   ;;  %v1705_v32 = vld [vmem:[%s2349_s1 + $0x214] ss:$8 sps:$4 sm:$0xff]  }
  0x22   :  { %v1708_v33 = vld [vmem:[%s2349_s1 + $0x314] ss:$8 sps:$4 sm:$0xff]   ;;  %v1724_v49 = vld [vmem:[%s2349_s1 + $0x3e0] ss:$8 sps:$4 sm:$0xff]  }
  0x23   :  { %1031 = vmatpush2.bf16.msra.mxu0 %v1617_v34  ;;  %v1703_v34 = vld [vmem:[%s2349_s1 + $0x210] ss:$8 sps:$4 sm:$0xff]   ;;  %v1732_v51 = vld [vmem:[%s2349_s1 + $0x3d4] ss:$8 sps:$4 sm:$0xff]  }
  0x24   :  { %1084 = vmatpush2.bf16.msra.mxu1 %v1618_v35  ;;  %1032 = vmatprep.subr.bf16.mxu0 %v1619_v36  ;;  %v1706_v35 = vld [vmem:[%s2349_s1 + $0x310] ss:$8 sps:$4 sm:$0xff]   ;;  %v1711_v36 = vld [vmem:[%s2349_s1 + $0x204] ss:$8 sps:$4 sm:$0xff]  }
  0x25   :  { %1085 = vmatprep.subr.bf16.mxu1 %v1621_v37  ;;  %v1714_v37 = vld [vmem:[%s2349_s1 + $0x304] ss:$8 sps:$4 sm:$0xff]  }
  0x27   :  { %1033 = vmatpush2.bf16.msra.mxu0 %v1623_v38  ;;  %v1709_v38 = vld [vmem:[%s2349_s1 + $0x200] ss:$8 sps:$4 sm:$0xff]  }
  0x28   :  { %1086 = vmatpush2.bf16.msra.mxu1 %v1624_v39  ;;  %1034 = vmatprep.subr.bf16.mxu0 %v1625_v40  ;;  %v1712_v39 = vld [vmem:[%s2349_s1 + $0x300] ss:$8 sps:$4 sm:$0xff]   ;;  %v1717_v40 = vld [vmem:[%s2349_s1 + $0x2f4] ss:$8 sps:$4 sm:$0xff]  }
  0x29   :  { %1087 = vmatprep.subr.bf16.mxu1 %v1627_v41  ;;  %v1771_v41 = vld [vmem:[%s2350_s0 + $0x14] ss:$36 sps:$4 sm:$0xff]  }
  0x2b   :  { %1035 = vmatpush2.bf16.msra.mxu0 %v1629_v42  ;;  %v1720_v42 = vld [vmem:[%s2349_s1 + $0x3f4] ss:$8 sps:$4 sm:$0xff]  }
  0x2c   :  { %1088 = vmatpush2.bf16.msra.mxu1 %v1630_v43  ;;  %1036 = vmatprep.subr.bf16.mxu0 %v1631_v44  ;;  %v1774_v43 = vld [vmem:[%s2350_s0 + $0x1c] ss:$36 sps:$4 sm:$0xff]   ;;  %v1715_v44 = vld [vmem:[%s2349_s1 + $0x2f0] ss:$8 sps:$4 sm:$0xff]  }
  0x2d   :  { %1089 = vmatprep.subr.bf16.mxu1 %v1633_v45  ;;  %v1718_v45 = vld [vmem:[%s2349_s1 + $0x3f0] ss:$8 sps:$4 sm:$0xff]  }
  0x2f   :  { %1037 = vmatpush2.bf16.msra.mxu0 %v1635_v46  ;;  %v1723_v46 = vld [vmem:[%s2349_s1 + $0x2e4] ss:$8 sps:$4 sm:$0xff]  }
  0x30   :  { %1090 = vmatpush2.bf16.msra.mxu1 %v1636_v47  ;;  %1038 = vmatprep.subr.bf16.mxu0 %v1637_v48  ;;  %v1726_v47 = vld [vmem:[%s2349_s1 + $0x3e4] ss:$8 sps:$4 sm:$0xff]   ;;  %v1721_v48 = vld [vmem:[%s2349_s1 + $0x2e0] ss:$8 sps:$4 sm:$0xff]  }
  0x31   :  { %1091 = vmatprep.subr.bf16.mxu1 %v1639_v50  ;;  %v1729_v50 = vld [vmem:[%s2349_s1 + $0x2d4] ss:$8 sps:$4 sm:$0xff]  }
  0x33   :  { %1039 = vmatpush2.bf16.msra.mxu0 %v1641_v52  ;;  %v1727_v52 = vld [vmem:[%s2349_s1 + $0x2d0] ss:$8 sps:$4 sm:$0xff]  }
  0x34   :  { %1092 = vmatpush2.bf16.msra.mxu1 %v1642_v53  ;;  %1040 = vmatprep.subr.bf16.mxu0 %v1643_v54  ;;  %v1730_v53 = vld [vmem:[%s2349_s1 + $0x3d0] ss:$8 sps:$4 sm:$0xff]   ;;  %v1735_v54 = vld [vmem:[%s2349_s1 + $0x2c4] ss:$8 sps:$4 sm:$0xff]  }
  0x35   :  { %1093 = vmatprep.subr.bf16.mxu1 %v1645_v55  ;;  %v1738_v55 = vld [vmem:[%s2349_s1 + $0x3c4] ss:$8 sps:$4 sm:$0xff]  }
  0x37   :  { %1041 = vmatpush2.bf16.msra.mxu0 %v1647_v56  ;;  %v1733_v56 = vld [vmem:[%s2349_s1 + $0x2c0] ss:$8 sps:$4 sm:$0xff]  }
  0x38   :  { %1094 = vmatpush2.bf16.msra.mxu1 %v1648_v57  ;;  %1042 = vmatprep.subr.bf16.mxu0 %v1649_v58  ;;  %v1736_v57 = vld [vmem:[%s2349_s1 + $0x3c0] ss:$8 sps:$4 sm:$0xff]   ;;  %v1741_v58 = vld [vmem:[%s2349_s1 + $0x2b4] ss:$8 sps:$4 sm:$0xff]  }
  0x39   :  { %1095 = vmatprep.subr.bf16.mxu1 %v1651_v59  ;;  %v1744_v59 = vld [vmem:[%s2349_s1 + $0x3b4] ss:$8 sps:$4 sm:$0xff]  }
  0x3b   :  { %1043 = vmatpush2.bf16.msra.mxu0 %v1653_v60  ;;  %v1739_v60 = vld [vmem:[%s2349_s1 + $0x2b0] ss:$8 sps:$4 sm:$0xff]  }
  0x3c   :  { %1096 = vmatpush2.bf16.msra.mxu1 %v1654_v61  ;;  %1044 = vmatprep.subr.bf16.mxu0 %v1655_v62  ;;  %v1742_v61 = vld [vmem:[%s2349_s1 + $0x3b0] ss:$8 sps:$4 sm:$0xff]   ;;  %v1753_v62 = vld [vmem:[%s2349_s1 + $0x2a4] ss:$8 sps:$4 sm:$0xff]  }
  0x3d   :  { %1097 = vmatprep.subr.bf16.mxu1 %v1657_v63  ;;  %v1756_v63 = vld [vmem:[%s2349_s1 + $0x3a4] ss:$8 sps:$4 sm:$0xff]  }
  0x3f   :  { %1045 = vmatpush2.bf16.msra.mxu0 %v1659_v0  ;;  %v1751_v0 = vld [vmem:[%s2349_s1 + $0x2a0] ss:$8 sps:$4 sm:$0xff]  }
  0x40   :  { %1098 = vmatpush2.bf16.msra.mxu1 %v1660_v1  ;;  %1120 = vmatprep.subr.bf16.mxu0 %v1669_v2  ;;  %v1754_v1 = vld [vmem:[%s2349_s1 + $0x3a0] ss:$8 sps:$4 sm:$0xff]   ;;  %v1759_v2 = vld [vmem:[%s2349_s1 + $0x294] ss:$8 sps:$4 sm:$0xff]  }
  0x41   :  { %1173 = vmatprep.subr.bf16.mxu1 %v1672_v3  ;;  %v1762_v3 = vld [vmem:[%s2349_s1 + $0x394] ss:$8 sps:$4 sm:$0xff]  }
  0x42   :  { %1047 = vmatmul.mubr.bf16.vlgmr.msra.gmra.mxu0 %v1661_v4  ;;  %v1757_v4 = vld [vmem:[%s2349_s1 + $0x290] ss:$8 sps:$4 sm:$0xff]  }
  0x43   :  { %1100 = vmatmul.mubr.bf16.vlgmr.msra.gmra.mxu1 %v1664_v5  ;;  %1121 = vmatpush1.bf16.msra.mxu0 %v1667_v6  ;;  %v1760_v5 = vld [vmem:[%s2349_s1 + $0x390] ss:$8 sps:$4 sm:$0xff]   ;;  %v1765_v6 = vld [vmem:[%s2349_s1 + $0x284] ss:$8 sps:$4 sm:$0xff]  }
  0x44   :  { %1174 = vmatpush1.bf16.msra.mxu1 %v1670_v7  ;;  %1122 = vmatprep.subr.bf16.mxu0 %v1675_v8  ;;  %v1768_v7 = vld [vmem:[%s2349_s1 + $0x384] ss:$8 sps:$4 sm:$0xff]   ;;  %v1763_v8 = vld [vmem:[%s2349_s1 + $0x280] ss:$8 sps:$4 sm:$0xff]  }
  0x45   :  { %1175 = vmatprep.subr.bf16.mxu1 %v1678_v9  ;;  %1056 = vmatprep.mubr.bf16.mxu0 %v1745_v26  ;;  %v1766_v9 = vld [vmem:[%s2349_s1 + $0x380] ss:$8 sps:$4 sm:$0xff]   ;;  %v1793_v26 = vld [vmem:[%s2349_s1 + $0x430] ss:$8 sps:$4 sm:$0xff]  }
  0x46   :  { %1109 = vmatprep.mubr.bf16.mxu1 %v1747_v27  ;;  %v1798_v27 = vld [vmem:[%s2349_s1 + $0x424] ss:$8 sps:$4 sm:$0xff]  }
  0x47   :  { %1123 = vmatpush1.bf16.msra.mxu0 %v1673_v10  ;;  %v1777_v10 = vld [vmem:[%s2349_s1 + $0x474] ss:$8 sps:$4 sm:$0xff]  }
  0x48   :  { %1176 = vmatpush1.bf16.msra.mxu1 %v1676_v11  ;;  %1124 = vmatprep.subr.bf16.mxu0 %v1681_v12  ;;  %v1769_v11 = vld [vmem:[%s2350_s0 + $0x10] ss:$36 sps:$4 sm:$0xff]   ;;  %v1772_v12 = vld [vmem:[%s2350_s0 + $0x18] ss:$36 sps:$4 sm:$0xff]  }
  0x49   :  { %1177 = vmatprep.subr.bf16.mxu1 %v1684_v13  ;;  %v1775_v13 = vld [vmem:[%s2349_s1 + $0x470] ss:$8 sps:$4 sm:$0xff]  }
  0x4a   :  { %1057 = vmatmul.mubr.bf16.gmra.mxu0 %v1749_v28  ;;  %v1796_v28 = vld [vmem:[%s2349_s1 + $0x420] ss:$8 sps:$4 sm:$0xff]  }
  0x4b   :  { %1125 = vmatpush1.bf16.msra.mxu0 %v1679_v14  ;;  %1110 = vmatmul.mubr.bf16.gmra.mxu1 %v1750_v29  ;;  %v1780_v14 = vld [vmem:[%s2349_s1 + $0x464] ss:$8 sps:$4 sm:$0xff]   ;;  %v1801_v29 = vld [vmem:[%s2349_s1 + $0x414] ss:$8 sps:$4 sm:$0xff]  }
  0x4c   :  { %1178 = vmatpush1.bf16.msra.mxu1 %v1682_v15  ;;  %1126 = vmatprep.subr.bf16.mxu0 %v1687_v16  ;;  %v1781_v15 = vld [vmem:[%s2350_s0 + $0x5c] ss:$36 sps:$4 sm:$0xff]   ;;  %v1787_v16 = vld [vmem:[%s2350_s0 + $0x64] ss:$36 sps:$4 sm:$0xff]  }
  0x4d   :  { %1179 = vmatprep.subr.bf16.mxu1 %v1690_v17  ;;  %1152 = vmatprep.mubr.bf16.mxu0 %v1771_v41  ;;  %v1778_v17 = vld [vmem:[%s2349_s1 + $0x460] ss:$8 sps:$4 sm:$0xff]  }
  0x4e   :  { %1205 = vmatprep.mubr.bf16.mxu1 %v1774_v43 }
  0x4f   :  { %1127 = vmatpush1.bf16.msra.mxu0 %v1685_v18  ;;  %v1786_v18 = vld [vmem:[%s2349_s1 + $0x454] ss:$8 sps:$4 sm:$0xff]  }
  0x50   :  { %1180 = vmatpush1.bf16.msra.mxu1 %v1688_v19  ;;  %1128 = vmatprep.subr.bf16.mxu0 %v1693_v20  ;;  %v1783_v19 = vld [vmem:[%s2350_s0 + $0x58] ss:$36 sps:$4 sm:$0xff]   ;;  %v1789_v20 = vld [vmem:[%s2350_s0 + $0x60] ss:$36 sps:$4 sm:$0xff]  }
  0x51   :  { %1181 = vmatprep.subr.bf16.mxu1 %v1696_v21  ;;  %v1784_v21 = vld [vmem:[%s2349_s1 + $0x450] ss:$8 sps:$4 sm:$0xff]  }
  0x53   :  { %1129 = vmatpush1.bf16.msra.mxu0 %v1691_v22  ;;  %v1792_v22 = vld [vmem:[%s2349_s1 + $0x444] ss:$8 sps:$4 sm:$0xff]  }
  0x54   :  { %1182 = vmatpush1.bf16.msra.mxu1 %v1694_v23  ;;  %1130 = vmatprep.subr.bf16.mxu0 %v1699_v24  ;;  %v1790_v23 = vld [vmem:[%s2349_s1 + $0x440] ss:$8 sps:$4 sm:$0xff]   ;;  %v1795_v24 = vld [vmem:[%s2349_s1 + $0x434] ss:$8 sps:$4 sm:$0xff]  }
  0x55   :  { %1183 = vmatprep.subr.bf16.mxu1 %v1702_v25  ;;  %v1807_v25 = vmov 0  }
  0x57   :  { %1131 = vmatpush1.bf16.msra.mxu0 %v1697_v30  ;;  %v1799_v30 = vld [vmem:[%s2349_s1 + $0x410] ss:$8 sps:$4 sm:$0xff]  }
  0x58   :  { %1184 = vmatpush1.bf16.msra.mxu1 %v1700_v31  ;;  %1132 = vmatprep.subr.bf16.mxu0 %v1705_v32  ;;  %v1804_v31 = vld [vmem:[%s2349_s1 + $0x404] ss:$8 sps:$4 sm:$0xff]   ;;  %v1802_v32 = vld [vmem:[%s2349_s1 + $0x400] ss:$8 sps:$4 sm:$0xff]  }
  0x59   :  { %1185 = vmatprep.subr.bf16.mxu1 %v1708_v33  ;;  %v1805_v33 = vld [vmem:[%s2350_s0 + $0x20] ss:$36 sps:$4 sm:$0xff]  }
  0x5b   :  { %1133 = vmatpush1.bf16.msra.mxu0 %v1703_v34  ;;  %v1806_v34 = vld [vmem:[%s2350_s0 + $0x68] ss:$36 sps:$4 sm:$0xff]  }
  0x5c   :  { %1186 = vmatpush1.bf16.msra.mxu1 %v1706_v35  ;;  %1134 = vmatprep.subr.bf16.mxu0 %v1711_v36 }
  0x5d   :  { %1187 = vmatprep.subr.bf16.mxu1 %v1714_v37 }
  0x5f   :  { %1135 = vmatpush1.bf16.msra.mxu0 %v1709_v38 }
  0x60   :  { %1188 = vmatpush1.bf16.msra.mxu1 %v1712_v39  ;;  %1136 = vmatprep.subr.bf16.mxu0 %v1717_v40 }
  0x61   :  { %1189 = vmatprep.subr.bf16.mxu1 %v1720_v42 }
  0x63   :  { %1137 = vmatpush2.bf16.msra.mxu0 %v1715_v44 }
  0x64   :  { %1190 = vmatpush2.bf16.msra.mxu1 %v1718_v45  ;;  %1138 = vmatprep.subr.bf16.mxu0 %v1723_v46 }
  0x65   :  { %1191 = vmatprep.subr.bf16.mxu1 %v1726_v47 }
  0x67   :  { %1139 = vmatpush2.bf16.msra.mxu0 %v1721_v48 }
  0x68   :  { %1192 = vmatpush2.bf16.msra.mxu1 %v1724_v49  ;;  %1140 = vmatprep.subr.bf16.mxu0 %v1729_v50 }
  0x69   :  { %1193 = vmatprep.subr.bf16.mxu1 %v1732_v51 }
  0x6b   :  { %1141 = vmatpush2.bf16.msra.mxu0 %v1727_v52 }
  0x6c   :  { %1194 = vmatpush2.bf16.msra.mxu1 %v1730_v53  ;;  %1142 = vmatprep.subr.bf16.mxu0 %v1735_v54 }
  0x6d   :  { %1195 = vmatprep.subr.bf16.mxu1 %v1738_v55 }
  0x6f   :  { %1143 = vmatpush2.bf16.msra.mxu0 %v1733_v56 }
  0x70   :  { %1196 = vmatpush2.bf16.msra.mxu1 %v1736_v57  ;;  %1144 = vmatprep.subr.bf16.mxu0 %v1741_v58 }
  0x71   :  { %1197 = vmatprep.subr.bf16.mxu1 %v1744_v59  ;;  %v1308_v59 = vlaneseq }
  0x73   :  { %1145 = vmatpush2.bf16.msra.mxu0 %v1739_v60 }
  0x74   :  { %1198 = vmatpush2.bf16.msra.mxu1 %v1742_v61  ;;  %1146 = vmatprep.subr.bf16.mxu0 %v1753_v62  ;;  %v1309_v62 = vshrl.u32 %v1308_v59, 7 }
  0x75   :  { %1199 = vmatprep.subr.bf16.mxu1 %v1756_v63 }
  0x77   :  { %1147 = vmatpush2.bf16.msra.mxu0 %v1751_v0 }
  0x78   :  { %1200 = vmatpush2.bf16.msra.mxu1 %v1754_v1  ;;  %1148 = vmatprep.subr.bf16.mxu0 %v1759_v2 }
  0x79   :  { %1201 = vmatprep.subr.bf16.mxu1 %v1762_v3  ;;  %v1310_v3 = vsub.s32 0, %v1309_v62 }
  0x7b   :  { %1149 = vmatpush2.bf16.msra.mxu0 %v1757_v4 }
  0x7c   :  { %1202 = vmatpush2.bf16.msra.mxu1 %v1760_v5  ;;  %1150 = vmatprep.subr.bf16.mxu0 %v1765_v6 }
  0x7d   :  { %1203 = vmatprep.subr.bf16.mxu1 %v1768_v7  ;;  %v1306_v7 = vld [vmem:[%s2351_s2] sm:$0x3] }
  0x7f   :  { %1151 = vmatpush2.bf16.msra.mxu0 %v1763_v8  ;;  %v1326_v8 = vld [vmem:[%s2352_s3] sm:$0xff] }
  0x80   :  { %1204 = vmatpush2.bf16.msra.mxu1 %v1766_v9  ;;  %1226 = vmatprep.subr.bf16.mxu0 %v1777_v10 }
  0x81   :  { %1548 = vmatprep.subr.bf16.mxu1 %v1777_v10 }
  0x82   :  { %1153 = vmatmul.mubr.bf16.vlgmr.msra.gmra.mxu0 %v1769_v11 }
  0x83   :  { %1206 = vmatmul.mubr.bf16.vlgmr.msra.gmra.mxu1 %v1772_v12  ;;  %1227 = vmatpush1.bf16.msra.mxu0 %v1775_v13  ;;  %v1328_v12 = vld [vmem:[%s2352_s3 + $0x10] sm:$0xff] }
  0x84   :  { %1556 = vmatpush1.bf16.msra.mxu1 %v1775_v13  ;;  %1228 = vmatprep.subr.bf16.mxu0 %v1780_v14  ;;  %v1314_v13 = vsub.s32 1, %v1309_v62 }
  0x85   :  { %1549 = vmatprep.subr.bf16.mxu1 %v1780_v14  ;;  %1162 = vmatprep.mubr.bf16.mxu0 %v1781_v15 }
  0x86   :  { %1215 = vmatprep.mubr.bf16.mxu1 %v1787_v16  ;;  %v1311_v16 = vrot.slane %v1306_v7, %v1310_v3 }
  0x87   :  { %1229 = vmatpush1.bf16.msra.mxu0 %v1778_v17 }
  0x88   :  { %1557 = vmatpush1.bf16.msra.mxu1 %v1778_v17  ;;  %1230 = vmatprep.subr.bf16.mxu0 %v1786_v18  ;;  %v1330_v17 = vunpack.c.l.bf16 %v1326_v8 }
  0x89   :  { %1550 = vmatprep.subr.bf16.mxu1 %v1786_v18 }
  0x8a   :  { %1163 = vmatmul.mubr.bf16.gmra.mxu0 %v1783_v19 }
  0x8b   :  { %1216 = vmatmul.mubr.bf16.gmra.mxu1 %v1789_v20  ;;  %1231 = vmatpush1.bf16.msra.mxu0 %v1784_v21 }
  0x8c   :  { %1558 = vmatpush1.bf16.msra.mxu1 %v1784_v21  ;;  %1232 = vmatprep.subr.bf16.mxu0 %v1792_v22 }
  0x8d   :  { %1551 = vmatprep.subr.bf16.mxu1 %v1792_v22  ;;  %1258 = vmatprep.mubr.bf16.mxu0 %v1807_v25 }
  0x8e   :  { %1268 = vmatprep.mubr.bf16.mxu1 %v1807_v25 }
  0x8f   :  { %1233 = vmatpush1.bf16.msra.mxu0 %v1790_v23 }
  0x90   :  { %1559 = vmatpush1.bf16.msra.mxu1 %v1790_v23  ;;  %1234 = vmatprep.subr.bf16.mxu0 %v1795_v24  ;;  %v1334_v23 = vunpack.c.l.bf16 %v1328_v12 }
  0x91   :  { %1552 = vmatprep.subr.bf16.mxu1 %v1795_v24 }
  0x93   :  { %1235 = vmatpush1.bf16.msra.mxu0 %v1793_v26 }
  0x94   :  { %1560 = vmatpush1.bf16.msra.mxu1 %v1793_v26  ;;  %1236 = vmatprep.subr.bf16.mxu0 %v1798_v27 }
  0x95   :  { %1553 = vmatprep.subr.bf16.mxu1 %v1798_v27  ;;  %v1315_v27 = vrot.slane %v1306_v7, %v1314_v13 }
  0x97   :  { %1237 = vmatpush1.bf16.msra.mxu0 %v1796_v28 }
  0x98   :  { %1561 = vmatpush1.bf16.msra.mxu1 %v1796_v28  ;;  %1238 = vmatprep.subr.bf16.mxu0 %v1801_v29  ;;  %v1327_v28 = vld [vmem:[%s2352_s3 + $0x8] sm:$0xff] }
  0x99   :  { %1554 = vmatprep.subr.bf16.mxu1 %v1801_v29  ;;  %v1329_v29 = vld [vmem:[%s2352_s3 + $0x18] sm:$0xff] }
  0x9b   :  { %1239 = vmatpush1.bf16.msra.mxu0 %v1799_v30 }
  0x9c   :  { %1562 = vmatpush1.bf16.msra.mxu1 %v1799_v30  ;;  %1240 = vmatprep.subr.bf16.mxu0 %v1804_v31 }
  0x9d   :  { %1555 = vmatprep.subr.bf16.mxu1 %v1804_v31 }
  0x9f   :  { %1241 = vmatpush1.bf16.msra.mxu0 %v1802_v32 }
  0xa0   :  { %1563 = vmatpush1.bf16.msra.mxu1 %v1802_v32 }
  0xa2   :  { %1259 = vmatmul.mubr.bf16.vlgmr.msra.gmra.mxu0 %v1805_v33 }
  0xa3   :  { %1269 = vmatmul.mubr.bf16.vlgmr.msra.gmra.mxu1 %v1806_v34 }
 0x102   :  { %v1048_v35 = vpop.f32.mrf.mxu0 }
 0x103   :  { %v1101_v36 = vpop.f32.mrf.mxu1 }
 0x104   :  { %v1050_v37 = vpop.f32.mrf.mxu0  ;;  %v1102_v1 = vadd.f32 %v1101_v36, %v1048_v35 }
 0x105   :  { %v1103_v38 = vpop.f32.mrf.mxu1 }
 0x106   :  { %v1052_v39 = vpop.f32.mrf.mxu0  ;;  %v1104_v4 = vadd.f32 %v1103_v38, %v1050_v37 }
 0x107   :  { %v1105_v40 = vpop.f32.mrf.mxu1 }
 0x108   :  { %v1054_v41 = vpop.f32.mrf.mxu0  ;;  %v1106_v18 = vadd.f32 %v1105_v40, %v1052_v39 }
 0x109   :  { %v1107_v42 = vpop.f32.mrf.mxu1 }
 0x10a   :  { %v1058_v43 = vpop.f32.mrf.mxu0  ;;  %v1108_v19 = vadd.f32 %v1107_v42, %v1054_v41  ;;  %v1331_v41 = vunpack.c.h.bf16 %v1326_v8 }
 0x10b   :  { %v1111_v44 = vpop.f32.mrf.mxu1 }
 0x10c   :  { %v1060_v45 = vpop.f32.mrf.mxu0  ;;  %v1112_v2 = vadd.f32 %v1111_v44, %v1058_v43  ;;  %v1335_v43 = vunpack.c.h.bf16 %v1328_v12  ;;  %v1332_v44 = vunpack.c.l.bf16 %v1327_v28 }
 0x10d   :  { %v1113_v46 = vpop.f32.mrf.mxu1 }
 0x10e   :  { %v1062_v47 = vpop.f32.mrf.mxu0  ;;  %v1114_v9 = vadd.f32 %v1113_v46, %v1060_v45  ;;  %v1336_v45 = vunpack.c.l.bf16 %v1329_v29 }
 0x10f   :  { %v1115_v48 = vpop.f32.mrf.mxu1 }
 0x110   :  { %v1064_v49 = vpop.f32.mrf.mxu0  ;;  %v1116_v20 = vadd.f32 %v1115_v48, %v1062_v47 }
 0x111   :  { %v1117_v50 = vpop.f32.mrf.mxu1 }
 0x112   :  { %v1118_v24 = vadd.f32 %v1117_v50, %v1064_v49 }
 0x142   :  { %v1154_v51 = vpop.f32.mrf.mxu0 }
 0x143   :  { %v1207_v52 = vpop.f32.mrf.mxu1  ;;  %v1155_v10 = vadd.f32 %v1154_v51, %v1102_v1 }
 0x144   :  { %v1156_v53 = vpop.f32.mrf.mxu0 }
 0x145   :  { %v1209_v54 = vpop.f32.mrf.mxu1  ;;  %v1157_v14 = vadd.f32 %v1156_v53, %v1104_v4  ;;  %v1208_v25 = vadd.f32 %v1207_v52, %v1155_v10 }
 0x146   :  { %v1158_v55 = vpop.f32.mrf.mxu0 }
 0x147   :  { %v1211_v56 = vpop.f32.mrf.mxu1  ;;  %v1210_v30 = vadd.f32 %v1209_v54, %v1157_v14  ;;  %v1159_v31 = vadd.f32 %v1158_v55, %v1106_v18  ;;  %v1333_v54 = vunpack.c.h.bf16 %v1327_v28  ;;  %v1337_v55 = vunpack.c.h.bf16 %v1329_v29 }
 0x148   :  { %v1160_v57 = vpop.f32.mrf.mxu0 }
 0x149   :  { %v2319_v58 = vpop.f32.mrf.mxu1  ;;  %v1161_v32 = vadd.f32 %v1160_v57, %v1108_v19  ;;  %v1212_v50 = vadd.f32 %v1211_v56, %v1159_v31 }
 0x14a   :  { %v1164_v60 = vpop.f32.mrf.mxu0 }
 0x14b   :  { %v1217_v61 = vpop.f32.mrf.mxu1  ;;  %v1165_v11 = vadd.f32 %v1164_v60, %v1112_v2  ;;  %v1214_v57 = vadd.f32 %v2319_v58, %v1161_v32 }
 0x14c   :  { %v1166_v63 = vpop.f32.mrf.mxu0 }
 0x14d   :  { %v1219_v0 = vpop.f32.mrf.mxu1  ;;  %v1167_v15 = vadd.f32 %v1166_v63, %v1114_v9  ;;  %v1218_v26 = vadd.f32 %v1217_v61, %v1165_v11 }
 0x14e   :  { %v1168_v5 = vpop.f32.mrf.mxu0 }
 0x14f   :  { %v1221_v6 = vpop.f32.mrf.mxu1  ;;  %v1169_v33 = vadd.f32 %v1168_v5, %v1116_v20  ;;  %v1220_v36 = vadd.f32 %v1219_v0, %v1167_v15 }
 0x150   :  { %v1170_v21 = vpop.f32.mrf.mxu0 }
 0x151   :  { %v1223_v22 = vpop.f32.mrf.mxu1  ;;  %v1171_v37 = vadd.f32 %v1170_v21, %v1118_v24  ;;  %v1222_v51 = vadd.f32 %v1221_v6, %v1169_v33 }
 0x153   :  { %v1224_v59 = vadd.f32 %v1223_v22, %v1171_v37 }
 0x162   :  { %v1260_v34 = vpop.f32.mrf.mxu0 }
 0x163   :  { %v1270_v35 = vpop.f32.mrf.mxu1  ;;  %v1261_v38 = vadd.f32 %v1260_v34, %v1208_v25 }
 0x164   :  { %v1271_v39 = vadd.f32 %v1270_v35, %v1218_v26  ;;  %v1262_v40 = vpop.f32.mrf.mxu0 }
 0x165   :  { %v1272_v42 = vpop.f32.mrf.mxu1  ;;  %v1318_v46 = vadd.f32 %v1311_v16, %v1261_v38  ;;  %v1263_v48 = vadd.f32 %v1262_v40, %v1210_v30 }
 0x166   :  { %v1322_v47 = vadd.f32 %v1311_v16, %v1271_v39  ;;  %v1273_v49 = vadd.f32 %v1272_v42, %v1220_v36  ;;  %v1264_v52 = vpop.f32.mrf.mxu0 }
 0x167   :  { %v1274_v53 = vpop.f32.mrf.mxu1  ;;  %v1319_v60 = vadd.f32 %v1315_v27, %v1263_v48  ;;  %v1338_v62 = vadd.f32 %v1330_v17, %v1318_v46  ;;  %v1265_v0 = vadd.f32 %v1264_v52, %v1212_v50 }
 0x168   :  { %v1323_v61 = vadd.f32 %v1315_v27, %v1273_v49  ;;  %v1342_v63 = vadd.f32 %v1334_v23, %v1322_v47  ;;  %v1275_v1 = vadd.f32 %v1274_v53, %v1222_v51  ;;  %v1266_v2 = vpop.f32.mrf.mxu0 }
 0x169   :  { %v1276_v3 = vpop.f32.mrf.mxu1  ;;  %v1339_v4 = vadd.f32 %v1331_v41, %v1319_v60  ;;  %v1267_v7 = vadd.f32 %v1266_v2, %v1214_v57  ;;  %v1320_v6 = vadd.f32 %v1311_v16, %v1265_v0 }
 0x16a   :  { %v1343_v5 = vadd.f32 %v1335_v43, %v1323_v61  ;;  %v1277_v56 = vadd.f32 %v1276_v3, %v1224_v59  ;;  %v1324_v8 = vadd.f32 %v1311_v16, %v1275_v1 }
 0x16b   :  { %v1544_v9 = vpack.c.bf16 %v1339_v4, %v1338_v62  ;;  %v1321_v11 = vadd.f32 %v1315_v27, %v1267_v7  ;;  %v1340_v58 = vadd.f32 %v1332_v44, %v1320_v6 }
 0x16c   :  { %v1546_v10 = vpack.c.bf16 %v1343_v5, %v1342_v63  ;;  %v1325_v12 = vadd.f32 %v1315_v27, %v1277_v56  ;;  %v1344_v13 = vadd.f32 %v1336_v45, %v1324_v8 }
 0x16d   :  { %1370 = vst [vmem:[%s2353_s4] sm:$0xff] %v1544_v9  ;;  %v1341_v14 = vadd.f32 %v1333_v54, %v1321_v11 }
 0x16e   :  { %1372 = vst [vmem:[%s2353_s4 + $0x10] sm:$0xff] %v1546_v10  ;;  %v1345_v15 = vadd.f32 %v1337_v55, %v1325_v12 }
 0x16f   :  { %v1545_v17 = vpack.c.bf16 %v1341_v14, %v1340_v58 }
 0x170   :  { %v1547_v18 = vpack.c.bf16 %v1345_v15, %v1344_v13 }
 0x171   :  { %1371 = vst [vmem:[%s2353_s4 + $0x8] sm:$0xff] %v1545_v17 }
 0x172   :  { %1373 = vst [vmem:[%s2353_s4 + $0x18] sm:$0xff] %v1547_v18 }

// kernel: custom_react_forward.12
= control target key start
LH: loop header
LB: loop body
LE: loop exit
PB: predicated region body
PF: predicated region fallthrough
CT: control target
= control target key end

     0   :  { %s2477_s15 = smov 0   ;;  %s2479_s16 = smov 0   ;;  %s2781_s0 = inlined_call_operand.vmem [shape: bf16[32,2304], index: 0, kind: input, shape index: {}]   ;;  %s2782_s1 = inlined_call_operand.vmem [shape: bf16[2304,256], index: 1, kind: input, shape index: {}]   ;;  %s2783_s2 = inlined_call_operand.vmem [shape: f32[1,256], index: 2, kind: input, shape index: {}]   ;;  %s2784_s3 = inlined_call_operand.vmem [shape: bf16[32,256], index: 3, kind: input, shape index: {}]   ;;  %s2785_s4 = inlined_call_operand.vmem [shape: bf16[32,256], index: 4, kind: output, shape index: {}]  }
   0x1   :  { %s2481_s17 = smov 0   ;;  %s2483_s18 = smov 0  }
   0x2   :  { %s2485_s19 = smov 0  }
   0x3 LB: > { %s26_s20 = sadd.s32 1, %s2444_s18  ;;  %p49_p1 = scmp.ne.s32.totalorder %s2436_s16, %s2432_s15  ;;  %s2448_s19 = sphi %s2485_s19, %s14_s19   ;;  %s2444_s18 = sphi %s2483_s18, %s2789_s18   ;;  %s2440_s17 = sphi %s2481_s17, %s2788_s17   ;;  %s2436_s16 = sphi %s2479_s16, %s2787_s16   ;;  %s2432_s15 = sphi %s2477_s15, %s2786_s15  }
   0x4   : > { %p27_p0 = scmp.ge.s32.totalorder %s26_s20, 2  ;;  %p50_p2 = scmp.eq.s32.totalorder %s2448_s19, 0 }
   0x5   : > { %s42_s22 = sadd.s32 1, %s2436_s16  ;;  %p1917_p5 = scmp.ge.s32.totalorder %s2448_s19, 2 }
   0x6   : > { %s2791_s20 = smov (%p27_p0, %s26_s20), 0  ;;  %p51_p3 = por %p50_p2, %p49_p1 }
   0x7   : > { %s38_s21 = ssub.s32 %s2444_s18, %s2791_s20  ;;  %208 = sbr.rel (%p1917_p5) target bundleno = 27 (0x1b), region = 24 }
   0x8   : > { %p40_p4 = scmp.eq.s32.totalorder %s38_s21, 0 }
   0xa   : > { %s2512_s23 = scalar_select %p40_p4, %s2436_s16, %s42_s22  }
   0xc   : > { %211 = sbr.rel (!%p51_p3) target bundleno = 27 (0x1b), region = 28  ;;  %s213_s24 = sand.u32 (%p51_p3), 1, %s2436_s16  }
   0xd   : > { %s2102_s25 = smul.u32 (%p51_p3), 36, %s2444_s18 }
   0xe   : > { %s2124_s26 = smul.u32 (%p51_p3), 144, %s213_s24 }
   0xf   : > { %s2520_s29 = scalar_lea.vmem (%p51_p3), %s2781_s0, %s2102_s25 }
  0x10   : > { %v236_v0 = vld [vmem:[%s2520_s29] sm:$0xff] (%p51_p3)  ;;  %v238_v1 = vld [vmem:[%s2520_s29 + $0x8] sm:$0xff] (%p51_p3)  ;;  %v240_v2 = vld [vmem:[%s2520_s29 + $0x10] sm:$0xff] (%p51_p3)  ;;  %s2525_s30 = scalar_lea.vmem (%p51_p3), [#allocation3], %s2124_s26 }
  0x11   : > { %237 = vst [vmem:[%s2525_s30] sm:$0xff] %v236_v0  ;;  %239 = vst [vmem:[%s2525_s30 + $0x8] sm:$0xff] %v238_v1  ;;  %v242_v3 = vld [vmem:[%s2520_s29 + $0x18] sm:$0xff]  ;;  %v244_v4 = vld [vmem:[%s2520_s29 + $0x48] sm:$0xff] }
  0x12   : > { %241 = vst [vmem:[%s2525_s30 + $0x10] sm:$0xff] %v240_v2  ;;  %v246_v5 = vld [vmem:[%s2520_s29 + $0x50] sm:$0xff]  ;;  %243 = vst [vmem:[%s2525_s30 + $0x18] sm:$0xff] %v242_v3  ;;  %v248_v6 = vld [vmem:[%s2520_s29 + $0x58] sm:$0xff] }
  0x13   : > { %245 = vst [vmem:[%s2525_s30 + $0x24] sm:$0xff] %v244_v4  ;;  %247 = vst [vmem:[%s2525_s30 + $0x2c] sm:$0xff] %v246_v5  ;;  %v250_v7 = vld [vmem:[%s2520_s29 + $0x60] sm:$0xff]  ;;  %v252_v8 = vld [vmem:[%s2520_s29 + $0x90] sm:$0xff] }
  0x14   : > { %249 = vst [vmem:[%s2525_s30 + $0x34] sm:$0xff] %v248_v6  ;;  %251 = vst [vmem:[%s2525_s30 + $0x3c] sm:$0xff] %v250_v7  ;;  %v254_v9 = vld [vmem:[%s2520_s29 + $0x98] sm:$0xff]  ;;  %v256_v10 = vld [vmem:[%s2520_s29 + $0xa0] sm:$0xff] }
  0x15   : > { %253 = vst [vmem:[%s2525_s30 + $0x48] sm:$0xff] %v252_v8  ;;  %v258_v11 = vld [vmem:[%s2520_s29 + $0xa8] sm:$0xff]  ;;  %255 = vst [vmem:[%s2525_s30 + $0x50] sm:$0xff] %v254_v9  ;;  %v260_v12 = vld [vmem:[%s2520_s29 + $0xd8] sm:$0xff] }
  0x16   : > { %257 = vst [vmem:[%s2525_s30 + $0x58] sm:$0xff] %v256_v10  ;;  %259 = vst [vmem:[%s2525_s30 + $0x60] sm:$0xff] %v258_v11  ;;  %v262_v13 = vld [vmem:[%s2520_s29 + $0xe0] sm:$0xff]  ;;  %v264_v14 = vld [vmem:[%s2520_s29 + $0xe8] sm:$0xff] }
  0x17   : > { %261 = vst [vmem:[%s2525_s30 + $0x6c] sm:$0xff] %v260_v12  ;;  %263 = vst [vmem:[%s2525_s30 + $0x74] sm:$0xff] %v262_v13  ;;  %v266_v15 = vld [vmem:[%s2520_s29 + $0xf0] sm:$0xff]  ;;  %v1919_v16 = vld [vmem:[%s2520_s29 + $0x20] sm:$0xf] }
  0x18   : > { %265 = vst [vmem:[%s2525_s30 + $0x7c] sm:$0xff] %v264_v14  ;;  %v1921_v17 = vld [vmem:[%s2520_s29 + $0x68] sm:$0xf]  ;;  %267 = vst [vmem:[%s2525_s30 + $0x84] sm:$0xff] %v266_v15  ;;  %v1923_v18 = vld [vmem:[%s2520_s29 + $0xb0] sm:$0xf] }
  0x19   : > { %1920 = vst [vmem:[%s2525_s30 + $0x20] sm:$0xf] %v1919_v16  ;;  %1922 = vst [vmem:[%s2525_s30 + $0x44] sm:$0xf] %v1921_v17  ;;  %v1925_v19 = vld [vmem:[%s2520_s29 + $0xf8] sm:$0xf] }
  0x1a   : > { %1924 = vst [vmem:[%s2525_s30 + $0x68] sm:$0xf] %v1923_v18  ;;  %1926 = vst [vmem:[%s2525_s30 + $0x8c] sm:$0xf] %v1925_v19 }
  0x1b PF: > { %p1927_p6 = scmp.ge.s32.totalorder %s2448_s19, 1  ;;  %p303_p7 = scmp.lt.s32.totalorder %s2448_s19, 3 }
  0x1d   : > { %p304_p8 = pnand %p1927_p6, %p303_p7 }
  0x1e   : > { %s310_s5 = sand.u32 (!%p304_p8), 1, %s2432_s15   ;;  %s366_s6 = smul.u32 (!%p304_p8), 144, %s2440_s17 }
  0x1f   : > { %307 = sbr.rel (%p304_p8) target bundleno = 428 (0x1ac), region = 58  ;;  %p1930_p10 = scmp.ne.s32.totalorder (!%p304_p8), %s2440_s17, 0 }
  0x20   : > { %s2125_s7 = smul.u32 (!%p304_p8), 144, %s310_s5  ;;  %p368_p9 = scmp.lt.s32.totalorder (!%p304_p8), %s366_s6, 287 }
  0x22   : > { %s2573_s12 = scalar_lea.vmem (!%p304_p8), [#allocation3], %s2125_s7 }
  0x24   : > { %s2793_s6 = smov (!%p368_p9, %s366_s6), 287  ;;  %411 = sbr.rel (%p1930_p10) target bundleno = 46 (0x2e), region = 66 }
  0x25   : > { %s2103_s8 = sshll.u32 %s2793_s6, 3 }
  0x26   : > { %s2571_s11 = scalar_lea.vmem %s2782_s1, %s2103_s8 }
  0x29   : > { %v2450_v20 = vmov 0.0  }
  0x2a   : > { %412 = vst [vmem:[#allocation2 + $0x30] sm:$0xff] %v2450_v20  ;;  %413 = vst [vmem:[#allocation2] sm:$0xff] %v2450_v20 }
  0x2b   : > { %414 = vst [vmem:[#allocation2 + $0x18] sm:$0xff] %v2450_v20  ;;  %415 = vst [vmem:[#allocation2 + $0x10] sm:$0xff] %v2450_v20 }
  0x2c   : > { %416 = vst [vmem:[#allocation2 + $0x8] sm:$0xff] %v2450_v20  ;;  %417 = vst [vmem:[#allocation2 + $0x20] sm:$0xff] %v2450_v20 }
  0x2d   : > { %418 = vst [vmem:[#allocation2 + $0x28] sm:$0xff] %v2450_v20  ;;  %419 = vst [vmem:[#allocation2 + $0x38] sm:$0xff] %v2450_v20 }
  0x2e PF: > { %v2168_v21 = vld [vmem:[%s2571_s11 + $0x74] ss:$8 sps:$4 sm:$0xff]   ;;  %v2172_v23 = vld [vmem:[%s2571_s11 + $0x70] ss:$8 sps:$4 sm:$0xff]   ;;  %v2174_v25 = vld [vmem:[%s2571_s11 + $0x64] ss:$8 sps:$4 sm:$0xff]  }
  0x2f   : > { %v2170_v22 = vld [vmem:[%s2571_s11 + $0x174] ss:$8 sps:$4 sm:$0xff]   ;;  %1404 = vmatprep.subr.bf16.mxu0 %v2168_v21  ;;  %v2173_v24 = vld [vmem:[%s2571_s11 + $0x170] ss:$8 sps:$4 sm:$0xff]   ;;  %v2176_v26 = vld [vmem:[%s2571_s11 + $0x164] ss:$8 sps:$4 sm:$0xff]  }
  0x30   : > { %1457 = vmatprep.subr.bf16.mxu1 %v2170_v22  ;;  %1405 = vmatpush1.bf16.msra.mxu0 %v2172_v23  ;;  %v2178_v27 = vld [vmem:[%s2571_s11 + $0x60] ss:$8 sps:$4 sm:$0xff]   ;;  %v2180_v29 = vld [vmem:[%s2571_s11 + $0x54] ss:$8 sps:$4 sm:$0xff]   ;;  %v2184_v31 = vld [vmem:[%s2571_s11 + $0x50] ss:$8 sps:$4 sm:$0xff]  }
  0x31   : > { %1458 = vmatpush1.bf16.msra.mxu1 %v2173_v24  ;;  %1406 = vmatprep.subr.bf16.mxu0 %v2174_v25  ;;  %v2179_v28 = vld [vmem:[%s2571_s11 + $0x160] ss:$8 sps:$4 sm:$0xff]   ;;  %v2182_v30 = vld [vmem:[%s2571_s11 + $0x154] ss:$8 sps:$4 sm:$0xff]   ;;  %v2185_v32 = vld [vmem:[%s2571_s11 + $0x150] ss:$8 sps:$4 sm:$0xff]  }
  0x32   : > { %1459 = vmatprep.subr.bf16.mxu1 %v2176_v26  ;;  %v2186_v33 = vld [vmem:[%s2571_s11 + $0x44] ss:$8 sps:$4 sm:$0xff]   ;;  %v2190_v35 = vld [vmem:[%s2571_s11 + $0x40] ss:$8 sps:$4 sm:$0xff]   ;;  %v2192_v37 = vld [vmem:[%s2571_s11 + $0x34] ss:$8 sps:$4 sm:$0xff]  }
  0x33   : > { %v2188_v34 = vld [vmem:[%s2571_s11 + $0x144] ss:$8 sps:$4 sm:$0xff]   ;;  %v2191_v36 = vld [vmem:[%s2571_s11 + $0x140] ss:$8 sps:$4 sm:$0xff]   ;;  %v2194_v38 = vld [vmem:[%s2571_s11 + $0x134] ss:$8 sps:$4 sm:$0xff]  }
  0x34   : > { %1407 = vmatpush1.bf16.msra.mxu0 %v2178_v27  ;;  %v2196_v39 = vld [vmem:[%s2571_s11 + $0x30] ss:$8 sps:$4 sm:$0xff]   ;;  %v2198_v41 = vld [vmem:[%s2571_s11 + $0x24] ss:$8 sps:$4 sm:$0xff]   ;;  %v2202_v43 = vld [vmem:[%s2571_s11 + $0x20] ss:$8 sps:$4 sm:$0xff]  }
  0x35   : > { %1460 = vmatpush1.bf16.msra.mxu1 %v2179_v28  ;;  %1408 = vmatprep.subr.bf16.mxu0 %v2180_v29  ;;  %v2197_v40 = vld [vmem:[%s2571_s11 + $0x130] ss:$8 sps:$4 sm:$0xff]   ;;  %v2200_v42 = vld [vmem:[%s2571_s11 + $0x124] ss:$8 sps:$4 sm:$0xff]   ;;  %v2203_v44 = vld [vmem:[%s2571_s11 + $0x120] ss:$8 sps:$4 sm:$0xff]  }
  0x36   : > { %1461 = vmatprep.subr.bf16.mxu1 %v2182_v30  ;;  %v2204_v45 = vld [vmem:[%s2571_s11 + $0x14] ss:$8 sps:$4 sm:$0xff]   ;;  %v2208_v47 = vld [vmem:[%s2571_s11 + $0x10] ss:$8 sps:$4 sm:$0xff]   ;;  %v2210_v49 = vld [vmem:[%s2571_s11 + $0x4] ss:$8 sps:$4 sm:$0xff]  }
  0x37   : > { %v2206_v46 = vld [vmem:[%s2571_s11 + $0x114] ss:$8 sps:$4 sm:$0xff]   ;;  %v2209_v48 = vld [vmem:[%s2571_s11 + $0x110] ss:$8 sps:$4 sm:$0xff]   ;;  %v2212_v50 = vld [vmem:[%s2571_s11 + $0x104] ss:$8 sps:$4 sm:$0xff]  }
  0x38   : > { %1409 = vmatpush1.bf16.msra.mxu0 %v2184_v31  ;;  %v2214_v51 = vld [vmem:[%s2571_s11] ss:$8 sps:$4 sm:$0xff]   ;;  %v2216_v53 = vld [vmem:[%s2571_s11 + $0xf4] ss:$8 sps:$4 sm:$0xff]   ;;  %v2220_v55 = vld [vmem:[%s2571_s11 + $0xf0] ss:$8 sps:$4 sm:$0xff]  }
  0x39   : > { %1462 = vmatpush1.bf16.msra.mxu1 %v2185_v32  ;;  %1410 = vmatprep.subr.bf16.mxu0 %v2186_v33  ;;  %v2215_v52 = vld [vmem:[%s2571_s11 + $0x100] ss:$8 sps:$4 sm:$0xff]   ;;  %v2218_v54 = vld [vmem:[%s2571_s11 + $0x1f4] ss:$8 sps:$4 sm:$0xff]   ;;  %v2221_v56 = vld [vmem:[%s2571_s11 + $0x1f0] ss:$8 sps:$4 sm:$0xff]  }
  0x3a   : > { %1463 = vmatprep.subr.bf16.mxu1 %v2188_v34  ;;  %v2222_v57 = vld [vmem:[%s2571_s11 + $0xe4] ss:$8 sps:$4 sm:$0xff]   ;;  %v2226_v59 = vld [vmem:[%s2571_s11 + $0xe0] ss:$8 sps:$4 sm:$0xff]   ;;  %v2228_v61 = vld [vmem:[%s2571_s11 + $0xd4] ss:$8 sps:$4 sm:$0xff]  }
  0x3b   : > { %v2224_v58 = vld [vmem:[%s2571_s11 + $0x1e4] ss:$8 sps:$4 sm:$0xff]   ;;  %v2227_v60 = vld [vmem:[%s2571_s11 + $0x1e0] ss:$8 sps:$4 sm:$0xff]   ;;  %v2230_v62 = vld [vmem:[%s2571_s11 + $0x1d4] ss:$8 sps:$4 sm:$0xff]  }
  0x3c   : > { %1411 = vmatpush1.bf16.msra.mxu0 %v2190_v35  ;;  %v2232_v63 = vld [vmem:[%s2571_s11 + $0xd0] ss:$8 sps:$4 sm:$0xff]   ;;  %v2234_v1 = vld [vmem:[%s2571_s11 + $0xc4] ss:$8 sps:$4 sm:$0xff]   ;;  %v2238_v3 = vld [vmem:[%s2571_s11 + $0xc0] ss:$8 sps:$4 sm:$0xff]  }
  0x3d   : > { %1464 = vmatpush1.bf16.msra.mxu1 %v2191_v36  ;;  %1412 = vmatprep.subr.bf16.mxu0 %v2192_v37  ;;  %v2233_v0 = vld [vmem:[%s2571_s11 + $0x1d0] ss:$8 sps:$4 sm:$0xff]   ;;  %v2236_v2 = vld [vmem:[%s2571_s11 + $0x1c4] ss:$8 sps:$4 sm:$0xff]   ;;  %v2239_v4 = vld [vmem:[%s2571_s11 + $0x1c0] ss:$8 sps:$4 sm:$0xff]  }
  0x3e   : > { %1465 = vmatprep.subr.bf16.mxu1 %v2194_v38  ;;  %v2240_v5 = vld [vmem:[%s2571_s11 + $0xb4] ss:$8 sps:$4 sm:$0xff]   ;;  %v2244_v9 = vld [vmem:[%s2571_s11 + $0xb0] ss:$8 sps:$4 sm:$0xff]   ;;  %v2246_v11 = vld [vmem:[%s2571_s11 + $0xa4] ss:$8 sps:$4 sm:$0xff]  }
  0x3f   : > { %v2266_v6 = vld [vmem:[%s2573_s12 + $0x4] ss:$36 sps:$4 sm:$0xff]   ;;  %v2269_v8 = vld [vmem:[%s2573_s12 + $0xc] ss:$36 sps:$4 sm:$0xff]   ;;  %p2093_p11 = scmp.ne.s32.totalorder %s2440_s17, 1 }
  0x40   : > { %1413 = vmatpush1.bf16.msra.mxu0 %v2196_v39  ;;  %v2242_v7 = vld [vmem:[%s2571_s11 + $0x1b4] ss:$8 sps:$4 sm:$0xff]   ;;  %1436 = vmatprep.mubr.bf16.mxu0 %v2266_v6  ;;  %v2245_v10 = vld [vmem:[%s2571_s11 + $0x1b0] ss:$8 sps:$4 sm:$0xff]   ;;  %v2248_v12 = vld [vmem:[%s2571_s11 + $0x1a4] ss:$8 sps:$4 sm:$0xff]  }
  0x41   : > { %1466 = vmatpush1.bf16.msra.mxu1 %v2197_v40  ;;  %1414 = vmatprep.subr.bf16.mxu0 %v2198_v41  ;;  %v2250_v13 = vld [vmem:[%s2571_s11 + $0xa0] ss:$8 sps:$4 sm:$0xff]   ;;  %v2252_v15 = vld [vmem:[%s2571_s11 + $0x94] ss:$8 sps:$4 sm:$0xff]   ;;  %v2256_v17 = vld [vmem:[%s2571_s11 + $0x90] ss:$8 sps:$4 sm:$0xff]  }
  0x42   : > { %1467 = vmatprep.subr.bf16.mxu1 %v2200_v42  ;;  %1489 = vmatprep.mubr.bf16.mxu1 %v2269_v8  ;;  %v2251_v14 = vld [vmem:[%s2571_s11 + $0x1a0] ss:$8 sps:$4 sm:$0xff]   ;;  %v2254_v16 = vld [vmem:[%s2571_s11 + $0x194] ss:$8 sps:$4 sm:$0xff]   ;;  %v2257_v18 = vld [vmem:[%s2571_s11 + $0x190] ss:$8 sps:$4 sm:$0xff]  }
  0x43   : > { %v2258_v19 = vld [vmem:[%s2571_s11 + $0x84] ss:$8 sps:$4 sm:$0xff]   ;;  %v2262_v21 = vld [vmem:[%s2571_s11 + $0x80] ss:$8 sps:$4 sm:$0xff]   ;;  %v2272_v23 = vld [vmem:[%s2571_s11 + $0x274] ss:$8 sps:$4 sm:$0xff]  }
  0x44   : > { %1415 = vmatpush1.bf16.msra.mxu0 %v2202_v43  ;;  %v2260_v20 = vld [vmem:[%s2571_s11 + $0x184] ss:$8 sps:$4 sm:$0xff]   ;;  %v2263_v22 = vld [vmem:[%s2571_s11 + $0x180] ss:$8 sps:$4 sm:$0xff]   ;;  %v2275_v24 = vld [vmem:[%s2571_s11 + $0x374] ss:$8 sps:$4 sm:$0xff]  }
  0x45   : > { %1468 = vmatpush1.bf16.msra.mxu1 %v2203_v44  ;;  %1416 = vmatprep.subr.bf16.mxu0 %v2204_v45  ;;  %v2264_v25 = vld [vmem:[%s2573_s12] ss:$36 sps:$4 sm:$0xff]   ;;  %v2267_v26 = vld [vmem:[%s2573_s12 + $0x8] ss:$36 sps:$4 sm:$0xff]  }
  0x46   : > { %1469 = vmatprep.subr.bf16.mxu1 %v2206_v46  ;;  %v2270_v27 = vld [vmem:[%s2571_s11 + $0x270] ss:$8 sps:$4 sm:$0xff]   ;;  %v2278_v29 = vld [vmem:[%s2571_s11 + $0x264] ss:$8 sps:$4 sm:$0xff]   ;;  %v2276_v31 = vld [vmem:[%s2571_s11 + $0x260] ss:$8 sps:$4 sm:$0xff]  }
  0x47   : > { %v2273_v28 = vld [vmem:[%s2571_s11 + $0x370] ss:$8 sps:$4 sm:$0xff]   ;;  %v2281_v30 = vld [vmem:[%s2571_s11 + $0x364] ss:$8 sps:$4 sm:$0xff]   ;;  %v2279_v32 = vld [vmem:[%s2571_s11 + $0x360] ss:$8 sps:$4 sm:$0xff]  }
  0x48   : > { %1417 = vmatpush1.bf16.msra.mxu0 %v2208_v47  ;;  %v2284_v33 = vld [vmem:[%s2571_s11 + $0x254] ss:$8 sps:$4 sm:$0xff]   ;;  %v2282_v35 = vld [vmem:[%s2571_s11 + $0x250] ss:$8 sps:$4 sm:$0xff]   ;;  %v2290_v37 = vld [vmem:[%s2571_s11 + $0x244] ss:$8 sps:$4 sm:$0xff]  }
  0x49   : > { %1470 = vmatpush1.bf16.msra.mxu1 %v2209_v48  ;;  %1418 = vmatprep.subr.bf16.mxu0 %v2210_v49  ;;  %v2287_v34 = vld [vmem:[%s2571_s11 + $0x354] ss:$8 sps:$4 sm:$0xff]   ;;  %v2285_v36 = vld [vmem:[%s2571_s11 + $0x350] ss:$8 sps:$4 sm:$0xff]   ;;  %v2293_v38 = vld [vmem:[%s2571_s11 + $0x344] ss:$8 sps:$4 sm:$0xff]  }
  0x4a   : > { %1471 = vmatprep.subr.bf16.mxu1 %v2212_v50  ;;  %v2288_v39 = vld [vmem:[%s2571_s11 + $0x240] ss:$8 sps:$4 sm:$0xff]   ;;  %v2296_v41 = vld [vmem:[%s2571_s11 + $0x234] ss:$8 sps:$4 sm:$0xff]   ;;  %v2294_v43 = vld [vmem:[%s2571_s11 + $0x230] ss:$8 sps:$4 sm:$0xff]  }
  0x4b   : > { %v2291_v40 = vld [vmem:[%s2571_s11 + $0x340] ss:$8 sps:$4 sm:$0xff]   ;;  %v2299_v42 = vld [vmem:[%s2571_s11 + $0x334] ss:$8 sps:$4 sm:$0xff]   ;;  %v2297_v44 = vld [vmem:[%s2571_s11 + $0x330] ss:$8 sps:$4 sm:$0xff]  }
  0x4c   : > { %1419 = vmatpush1.bf16.msra.mxu0 %v2214_v51  ;;  %v2302_v45 = vld [vmem:[%s2571_s11 + $0x224] ss:$8 sps:$4 sm:$0xff]   ;;  %v2300_v51 = vld [vmem:[%s2571_s11 + $0x220] ss:$8 sps:$4 sm:$0xff]   ;;  %v2335_v8 = vld [vmem:[%s2571_s11 + $0x3d4] ss:$8 sps:$4 sm:$0xff]  }
  0x4d   : > { %1472 = vmatpush1.bf16.msra.mxu1 %v2215_v52  ;;  %1420 = vmatprep.subr.bf16.mxu0 %v2216_v53  ;;  %v2305_v46 = vld [vmem:[%s2571_s11 + $0x324] ss:$8 sps:$4 sm:$0xff]   ;;  %v2303_v52 = vld [vmem:[%s2571_s11 + $0x320] ss:$8 sps:$4 sm:$0xff]   ;;  %v2308_v53 = vld [vmem:[%s2571_s11 + $0x214] ss:$8 sps:$4 sm:$0xff]  }
  0x4e   : > { %1473 = vmatprep.subr.bf16.mxu1 %v2218_v54  ;;  %v2348_v47 = vld [vmem:[%s2573_s12 + $0x4c] ss:$36 sps:$4 sm:$0xff]   ;;  %v2350_v48 = vld [vmem:[%s2573_s12 + $0x54] ss:$36 sps:$4 sm:$0xff]  }
  0x4f   : > { %v2352_v49 = vld [vmem:[%s2573_s12 + $0x48] ss:$36 sps:$4 sm:$0xff]   ;;  %v2353_v50 = vld [vmem:[%s2573_s12 + $0x50] ss:$36 sps:$4 sm:$0xff]  }
  0x50   : > { %1421 = vmatpush2.bf16.msra.mxu0 %v2220_v55  ;;  %v2311_v54 = vld [vmem:[%s2571_s11 + $0x314] ss:$8 sps:$4 sm:$0xff]   ;;  %v2306_v55 = vld [vmem:[%s2571_s11 + $0x210] ss:$8 sps:$4 sm:$0xff]   ;;  %v2327_v6 = vld [vmem:[%s2571_s11 + $0x3e0] ss:$8 sps:$4 sm:$0xff]  }
  0x51   : > { %1474 = vmatpush2.bf16.msra.mxu1 %v2221_v56  ;;  %1422 = vmatprep.subr.bf16.mxu0 %v2222_v57  ;;  %v2309_v56 = vld [vmem:[%s2571_s11 + $0x310] ss:$8 sps:$4 sm:$0xff]   ;;  %v2314_v57 = vld [vmem:[%s2571_s11 + $0x204] ss:$8 sps:$4 sm:$0xff]  }
  0x52   : > { %1475 = vmatprep.subr.bf16.mxu1 %v2224_v58  ;;  %v2317_v58 = vld [vmem:[%s2571_s11 + $0x304] ss:$8 sps:$4 sm:$0xff]  }
  0x54   : > { %1423 = vmatpush2.bf16.msra.mxu0 %v2226_v59  ;;  %v2312_v59 = vld [vmem:[%s2571_s11 + $0x200] ss:$8 sps:$4 sm:$0xff]  }
  0x55   : > { %1476 = vmatpush2.bf16.msra.mxu1 %v2227_v60  ;;  %1424 = vmatprep.subr.bf16.mxu0 %v2228_v61  ;;  %v2315_v60 = vld [vmem:[%s2571_s11 + $0x300] ss:$8 sps:$4 sm:$0xff]   ;;  %v2320_v61 = vld [vmem:[%s2571_s11 + $0x2f4] ss:$8 sps:$4 sm:$0xff]  }
  0x56   : > { %1477 = vmatprep.subr.bf16.mxu1 %v2230_v62  ;;  %v2374_v62 = vld [vmem:[%s2573_s12 + $0x14] ss:$36 sps:$4 sm:$0xff]  }
  0x58   : > { %1425 = vmatpush2.bf16.msra.mxu0 %v2232_v63  ;;  %v2323_v63 = vld [vmem:[%s2571_s11 + $0x3f4] ss:$8 sps:$4 sm:$0xff]  }
  0x59   : > { %1478 = vmatpush2.bf16.msra.mxu1 %v2233_v0  ;;  %1426 = vmatprep.subr.bf16.mxu0 %v2234_v1  ;;  %v2377_v0 = vld [vmem:[%s2573_s12 + $0x1c] ss:$36 sps:$4 sm:$0xff]  }
  0x5a   : > { %1479 = vmatprep.subr.bf16.mxu1 %v2236_v2  ;;  %v2318_v1 = vld [vmem:[%s2571_s11 + $0x2f0] ss:$8 sps:$4 sm:$0xff]  }
  0x5b   : > { %v2321_v2 = vld [vmem:[%s2571_s11 + $0x3f0] ss:$8 sps:$4 sm:$0xff]  }
  0x5c   : > { %1427 = vmatpush2.bf16.msra.mxu0 %v2238_v3  ;;  %v2326_v3 = vld [vmem:[%s2571_s11 + $0x2e4] ss:$8 sps:$4 sm:$0xff]  }
  0x5d   : > { %1480 = vmatpush2.bf16.msra.mxu1 %v2239_v4  ;;  %1428 = vmatprep.subr.bf16.mxu0 %v2240_v5  ;;  %v2329_v4 = vld [vmem:[%s2571_s11 + $0x3e4] ss:$8 sps:$4 sm:$0xff]   ;;  %v2324_v5 = vld [vmem:[%s2571_s11 + $0x2e0] ss:$8 sps:$4 sm:$0xff]  }
  0x5e   : > { %1481 = vmatprep.subr.bf16.mxu1 %v2242_v7  ;;  %v2332_v7 = vld [vmem:[%s2571_s11 + $0x2d4] ss:$8 sps:$4 sm:$0xff]  }
  0x60   : > { %1429 = vmatpush2.bf16.msra.mxu0 %v2244_v9  ;;  %v2330_v9 = vld [vmem:[%s2571_s11 + $0x2d0] ss:$8 sps:$4 sm:$0xff]  }
  0x61   : > { %1482 = vmatpush2.bf16.msra.mxu1 %v2245_v10  ;;  %1430 = vmatprep.subr.bf16.mxu0 %v2246_v11  ;;  %v2333_v10 = vld [vmem:[%s2571_s11 + $0x3d0] ss:$8 sps:$4 sm:$0xff]   ;;  %v2338_v11 = vld [vmem:[%s2571_s11 + $0x2c4] ss:$8 sps:$4 sm:$0xff]  }
  0x62   : > { %1483 = vmatprep.subr.bf16.mxu1 %v2248_v12  ;;  %v2341_v12 = vld [vmem:[%s2571_s11 + $0x3c4] ss:$8 sps:$4 sm:$0xff]  }
  0x64   : > { %1431 = vmatpush2.bf16.msra.mxu0 %v2250_v13  ;;  %v2336_v13 = vld [vmem:[%s2571_s11 + $0x2c0] ss:$8 sps:$4 sm:$0xff]  }
  0x65   : > { %1484 = vmatpush2.bf16.msra.mxu1 %v2251_v14  ;;  %1432 = vmatprep.subr.bf16.mxu0 %v2252_v15  ;;  %v2339_v14 = vld [vmem:[%s2571_s11 + $0x3c0] ss:$8 sps:$4 sm:$0xff]   ;;  %v2344_v15 = vld [vmem:[%s2571_s11 + $0x2b4] ss:$8 sps:$4 sm:$0xff]  }
  0x66   : > { %1485 = vmatprep.subr.bf16.mxu1 %v2254_v16  ;;  %v2347_v16 = vld [vmem:[%s2571_s11 + $0x3b4] ss:$8 sps:$4 sm:$0xff]  }
  0x68   : > { %1433 = vmatpush2.bf16.msra.mxu0 %v2256_v17  ;;  %v2342_v17 = vld [vmem:[%s2571_s11 + $0x2b0] ss:$8 sps:$4 sm:$0xff]  }
  0x69   : > { %1486 = vmatpush2.bf16.msra.mxu1 %v2257_v18  ;;  %1434 = vmatprep.subr.bf16.mxu0 %v2258_v19  ;;  %v2345_v18 = vld [vmem:[%s2571_s11 + $0x3b0] ss:$8 sps:$4 sm:$0xff]   ;;  %v2356_v19 = vld [vmem:[%s2571_s11 + $0x2a4] ss:$8 sps:$4 sm:$0xff]  }
  0x6a   : > { %1487 = vmatprep.subr.bf16.mxu1 %v2260_v20  ;;  %v2359_v20 = vld [vmem:[%s2571_s11 + $0x3a4] ss:$8 sps:$4 sm:$0xff]  }
  0x6c   : > { %1435 = vmatpush2.bf16.msra.mxu0 %v2262_v21  ;;  %v2354_v21 = vld [vmem:[%s2571_s11 + $0x2a0] ss:$8 sps:$4 sm:$0xff]  }
  0x6d   : > { %1488 = vmatpush2.bf16.msra.mxu1 %v2263_v22  ;;  %1510 = vmatprep.subr.bf16.mxu0 %v2272_v23  ;;  %v2357_v22 = vld [vmem:[%s2571_s11 + $0x3a0] ss:$8 sps:$4 sm:$0xff]   ;;  %v2362_v23 = vld [vmem:[%s2571_s11 + $0x294] ss:$8 sps:$4 sm:$0xff]  }
  0x6e   : > { %1563 = vmatprep.subr.bf16.mxu1 %v2275_v24  ;;  %v2365_v24 = vld [vmem:[%s2571_s11 + $0x394] ss:$8 sps:$4 sm:$0xff]  }
  0x6f   : > { %1437 = vmatmul.mubr.bf16.vlgmr.msra.gmra.mxu0 %v2264_v25  ;;  %v2360_v25 = vld [vmem:[%s2571_s11 + $0x290] ss:$8 sps:$4 sm:$0xff]  }
  0x70   : > { %1490 = vmatmul.mubr.bf16.vlgmr.msra.gmra.mxu1 %v2267_v26  ;;  %1511 = vmatpush1.bf16.msra.mxu0 %v2270_v27  ;;  %v2363_v26 = vld [vmem:[%s2571_s11 + $0x390] ss:$8 sps:$4 sm:$0xff]   ;;  %v2368_v27 = vld [vmem:[%s2571_s11 + $0x284] ss:$8 sps:$4 sm:$0xff]  }
  0x71   : > { %1564 = vmatpush1.bf16.msra.mxu1 %v2273_v28  ;;  %1512 = vmatprep.subr.bf16.mxu0 %v2278_v29  ;;  %v2371_v28 = vld [vmem:[%s2571_s11 + $0x384] ss:$8 sps:$4 sm:$0xff]   ;;  %v2366_v29 = vld [vmem:[%s2571_s11 + $0x280] ss:$8 sps:$4 sm:$0xff]  }
  0x72   : > { %1565 = vmatprep.subr.bf16.mxu1 %v2281_v30  ;;  %1446 = vmatprep.mubr.bf16.mxu0 %v2348_v47  ;;  %v2369_v30 = vld [vmem:[%s2571_s11 + $0x380] ss:$8 sps:$4 sm:$0xff]   ;;  %v2396_v47 = vld [vmem:[%s2571_s11 + $0x430] ss:$8 sps:$4 sm:$0xff]  }
  0x73   : > { %1499 = vmatprep.mubr.bf16.mxu1 %v2350_v48  ;;  %v2401_v48 = vld [vmem:[%s2571_s11 + $0x424] ss:$8 sps:$4 sm:$0xff]  }
  0x74   : > { %1513 = vmatpush1.bf16.msra.mxu0 %v2276_v31  ;;  %v2380_v31 = vld [vmem:[%s2571_s11 + $0x474] ss:$8 sps:$4 sm:$0xff]  }
  0x75   : > { %1566 = vmatpush1.bf16.msra.mxu1 %v2279_v32  ;;  %1514 = vmatprep.subr.bf16.mxu0 %v2284_v33  ;;  %v2372_v32 = vld [vmem:[%s2573_s12 + $0x10] ss:$36 sps:$4 sm:$0xff]   ;;  %v2375_v33 = vld [vmem:[%s2573_s12 + $0x18] ss:$36 sps:$4 sm:$0xff]  }
  0x76   : > { %1567 = vmatprep.subr.bf16.mxu1 %v2287_v34  ;;  %v2378_v34 = vld [vmem:[%s2571_s11 + $0x470] ss:$8 sps:$4 sm:$0xff]  }
  0x77   : > { %1447 = vmatmul.mubr.bf16.gmra.mxu0 %v2352_v49  ;;  %v2399_v49 = vld [vmem:[%s2571_s11 + $0x420] ss:$8 sps:$4 sm:$0xff]  }
  0x78   : > { %1515 = vmatpush1.bf16.msra.mxu0 %v2282_v35  ;;  %1500 = vmatmul.mubr.bf16.gmra.mxu1 %v2353_v50  ;;  %v2383_v35 = vld [vmem:[%s2571_s11 + $0x464] ss:$8 sps:$4 sm:$0xff]   ;;  %v2404_v50 = vld [vmem:[%s2571_s11 + $0x414] ss:$8 sps:$4 sm:$0xff]  }
  0x79   : > { %1568 = vmatpush1.bf16.msra.mxu1 %v2285_v36  ;;  %1516 = vmatprep.subr.bf16.mxu0 %v2290_v37  ;;  %v2384_v36 = vld [vmem:[%s2573_s12 + $0x5c] ss:$36 sps:$4 sm:$0xff]   ;;  %v2390_v37 = vld [vmem:[%s2573_s12 + $0x64] ss:$36 sps:$4 sm:$0xff]  }
  0x7a   : > { %1569 = vmatprep.subr.bf16.mxu1 %v2293_v38  ;;  %1542 = vmatprep.mubr.bf16.mxu0 %v2374_v62  ;;  %v2381_v38 = vld [vmem:[%s2571_s11 + $0x460] ss:$8 sps:$4 sm:$0xff]  }
  0x7b   : > { %1595 = vmatprep.mubr.bf16.mxu1 %v2377_v0 }
  0x7c   : > { %1517 = vmatpush1.bf16.msra.mxu0 %v2288_v39  ;;  %v2389_v39 = vld [vmem:[%s2571_s11 + $0x454] ss:$8 sps:$4 sm:$0xff]  }
  0x7d   : > { %1570 = vmatpush1.bf16.msra.mxu1 %v2291_v40  ;;  %1518 = vmatprep.subr.bf16.mxu0 %v2296_v41  ;;  %v2386_v40 = vld [vmem:[%s2573_s12 + $0x58] ss:$36 sps:$4 sm:$0xff]   ;;  %v2392_v41 = vld [vmem:[%s2573_s12 + $0x60] ss:$36 sps:$4 sm:$0xff]  }
  0x7e   : > { %1571 = vmatprep.subr.bf16.mxu1 %v2299_v42  ;;  %v2387_v42 = vld [vmem:[%s2571_s11 + $0x450] ss:$8 sps:$4 sm:$0xff]  }
  0x80   : > { %1519 = vmatpush1.bf16.msra.mxu0 %v2294_v43  ;;  %v2395_v43 = vld [vmem:[%s2571_s11 + $0x444] ss:$8 sps:$4 sm:$0xff]  }
  0x81   : > { %1572 = vmatpush1.bf16.msra.mxu1 %v2297_v44  ;;  %1520 = vmatprep.subr.bf16.mxu0 %v2302_v45  ;;  %v2393_v44 = vld [vmem:[%s2571_s11 + $0x440] ss:$8 sps:$4 sm:$0xff]   ;;  %v2398_v45 = vld [vmem:[%s2571_s11 + $0x434] ss:$8 sps:$4 sm:$0xff]  }
  0x82   : > { %1573 = vmatprep.subr.bf16.mxu1 %v2305_v46  ;;  %v2451_v46 = vmov 0  }
  0x84   : > { %1521 = vmatpush1.bf16.msra.mxu0 %v2300_v51  ;;  %v2402_v51 = vld [vmem:[%s2571_s11 + $0x410] ss:$8 sps:$4 sm:$0xff]  }
  0x85   : > { %1574 = vmatpush1.bf16.msra.mxu1 %v2303_v52  ;;  %1522 = vmatprep.subr.bf16.mxu0 %v2308_v53  ;;  %v2407_v52 = vld [vmem:[%s2571_s11 + $0x404] ss:$8 sps:$4 sm:$0xff]   ;;  %v2405_v53 = vld [vmem:[%s2571_s11 + $0x400] ss:$8 sps:$4 sm:$0xff]  }
  0x86   : > { %1575 = vmatprep.subr.bf16.mxu1 %v2311_v54  ;;  %v2408_v54 = vld [vmem:[%s2573_s12 + $0x20] ss:$36 sps:$4 sm:$0xff]  }
  0x88   : > { %1523 = vmatpush1.bf16.msra.mxu0 %v2306_v55  ;;  %v2409_v55 = vld [vmem:[%s2573_s12 + $0x68] ss:$36 sps:$4 sm:$0xff]  }
  0x89   : > { %1576 = vmatpush1.bf16.msra.mxu1 %v2309_v56  ;;  %1524 = vmatprep.subr.bf16.mxu0 %v2314_v57 }
  0x8a   : > { %1577 = vmatprep.subr.bf16.mxu1 %v2317_v58 }
  0x8c   : > { %1525 = vmatpush1.bf16.msra.mxu0 %v2312_v59 }
  0x8d   : > { %1578 = vmatpush1.bf16.msra.mxu1 %v2315_v60  ;;  %1526 = vmatprep.subr.bf16.mxu0 %v2320_v61 }
  0x8e   : > { %1579 = vmatprep.subr.bf16.mxu1 %v2323_v63 }
  0x90   : > { %1527 = vmatpush2.bf16.msra.mxu0 %v2318_v1 }
  0x91   : > { %1580 = vmatpush2.bf16.msra.mxu1 %v2321_v2  ;;  %1528 = vmatprep.subr.bf16.mxu0 %v2326_v3 }
  0x92   : > { %1581 = vmatprep.subr.bf16.mxu1 %v2329_v4 }
  0x94   : > { %1529 = vmatpush2.bf16.msra.mxu0 %v2324_v5 }
  0x95   : > { %1582 = vmatpush2.bf16.msra.mxu1 %v2327_v6  ;;  %1530 = vmatprep.subr.bf16.mxu0 %v2332_v7 }
  0x96   : > { %1583 = vmatprep.subr.bf16.mxu1 %v2335_v8 }
  0x98   : > { %1531 = vmatpush2.bf16.msra.mxu0 %v2330_v9 }
  0x99   : > { %1584 = vmatpush2.bf16.msra.mxu1 %v2333_v10  ;;  %1532 = vmatprep.subr.bf16.mxu0 %v2338_v11 }
  0x9a   : > { %1585 = vmatprep.subr.bf16.mxu1 %v2341_v12 }
  0x9c   : > { %1533 = vmatpush2.bf16.msra.mxu0 %v2336_v13 }
  0x9d   : > { %1586 = vmatpush2.bf16.msra.mxu1 %v2339_v14  ;;  %1534 = vmatprep.subr.bf16.mxu0 %v2344_v15 }
  0x9e   : > { %1587 = vmatprep.subr.bf16.mxu1 %v2347_v16 }
  0xa0   : > { %1535 = vmatpush2.bf16.msra.mxu0 %v2342_v17 }
  0xa1   : > { %1588 = vmatpush2.bf16.msra.mxu1 %v2345_v18  ;;  %1536 = vmatprep.subr.bf16.mxu0 %v2356_v19 }
  0xa2   : > { %1589 = vmatprep.subr.bf16.mxu1 %v2359_v20 }
  0xa4   : > { %1537 = vmatpush2.bf16.msra.mxu0 %v2354_v21 }
  0xa5   : > { %1590 = vmatpush2.bf16.msra.mxu1 %v2357_v22  ;;  %1538 = vmatprep.subr.bf16.mxu0 %v2362_v23 }
  0xa6   : > { %1591 = vmatprep.subr.bf16.mxu1 %v2365_v24 }
  0xa8   : > { %1539 = vmatpush2.bf16.msra.mxu0 %v2360_v25 }
  0xa9   : > { %1592 = vmatpush2.bf16.msra.mxu1 %v2363_v26  ;;  %1540 = vmatprep.subr.bf16.mxu0 %v2368_v27 }
  0xaa   : > { %1593 = vmatprep.subr.bf16.mxu1 %v2371_v28 }
  0xac   : > { %1541 = vmatpush2.bf16.msra.mxu0 %v2366_v29 }
  0xad   : > { %1594 = vmatpush2.bf16.msra.mxu1 %v2369_v30  ;;  %1616 = vmatprep.subr.bf16.mxu0 %v2380_v31 }
  0xae   : > { %2108 = vmatprep.subr.bf16.mxu1 %v2380_v31 }
  0xaf   : > { %1543 = vmatmul.mubr.bf16.vlgmr.msra.gmra.mxu0 %v2372_v32 }
  0xb0   : > { %1596 = vmatmul.mubr.bf16.vlgmr.msra.gmra.mxu1 %v2375_v33  ;;  %1617 = vmatpush1.bf16.msra.mxu0 %v2378_v34 }
  0xb1   : > { %2116 = vmatpush1.bf16.msra.mxu1 %v2378_v34  ;;  %1618 = vmatprep.subr.bf16.mxu0 %v2383_v35 }
  0xb2   : > { %2109 = vmatprep.subr.bf16.mxu1 %v2383_v35  ;;  %1552 = vmatprep.mubr.bf16.mxu0 %v2384_v36 }
  0xb3   : > { %1605 = vmatprep.mubr.bf16.mxu1 %v2390_v37 }
  0xb4   : > { %1619 = vmatpush1.bf16.msra.mxu0 %v2381_v38 }
  0xb5   : > { %2117 = vmatpush1.bf16.msra.mxu1 %v2381_v38  ;;  %1620 = vmatprep.subr.bf16.mxu0 %v2389_v39 }
  0xb6   : > { %2110 = vmatprep.subr.bf16.mxu1 %v2389_v39 }
  0xb7   : > { %1553 = vmatmul.mubr.bf16.gmra.mxu0 %v2386_v40 }
  0xb8   : > { %1606 = vmatmul.mubr.bf16.gmra.mxu1 %v2392_v41  ;;  %1621 = vmatpush1.bf16.msra.mxu0 %v2387_v42 }
  0xb9   : > { %2118 = vmatpush1.bf16.msra.mxu1 %v2387_v42  ;;  %1622 = vmatprep.subr.bf16.mxu0 %v2395_v43  ;;  %v420_v42 = vld [vmem:[#allocation2 + $0x30] sm:$0xff] }
  0xba   : > { %2111 = vmatprep.subr.bf16.mxu1 %v2395_v43  ;;  %1648 = vmatprep.mubr.bf16.mxu0 %v2451_v46 }
  0xbb   : > { %1658 = vmatprep.mubr.bf16.mxu1 %v2451_v46 }
  0xbc   : > { %1623 = vmatpush1.bf16.msra.mxu0 %v2393_v44 }
  0xbd   : > { %2119 = vmatpush1.bf16.msra.mxu1 %v2393_v44  ;;  %1624 = vmatprep.subr.bf16.mxu0 %v2398_v45  ;;  %v424_v44 = vld [vmem:[#allocation2 + $0x8] sm:$0xff] }
  0xbe   : > { %2112 = vmatprep.subr.bf16.mxu1 %v2398_v45 }
  0xc0   : > { %1625 = vmatpush1.bf16.msra.mxu0 %v2396_v47 }
  0xc1   : > { %2120 = vmatpush1.bf16.msra.mxu1 %v2396_v47  ;;  %1626 = vmatprep.subr.bf16.mxu0 %v2401_v48 }
  0xc2   : > { %2113 = vmatprep.subr.bf16.mxu1 %v2401_v48 }
  0xc4   : > { %1627 = vmatpush1.bf16.msra.mxu0 %v2399_v49 }
  0xc5   : > { %2121 = vmatpush1.bf16.msra.mxu1 %v2399_v49  ;;  %1628 = vmatprep.subr.bf16.mxu0 %v2404_v50 }
  0xc6   : > { %2114 = vmatprep.subr.bf16.mxu1 %v2404_v50 }
  0xc8   : > { %1629 = vmatpush1.bf16.msra.mxu0 %v2402_v51 }
  0xc9   : > { %2122 = vmatpush1.bf16.msra.mxu1 %v2402_v51  ;;  %1630 = vmatprep.subr.bf16.mxu0 %v2407_v52 }
  0xca   : > { %2115 = vmatprep.subr.bf16.mxu1 %v2407_v52  ;;  %v421_v52 = vld [vmem:[#allocation2] sm:$0xff] }
  0xcc   : > { %1631 = vmatpush1.bf16.msra.mxu0 %v2405_v53 }
  0xcd   : > { %2123 = vmatpush1.bf16.msra.mxu1 %v2405_v53 }
  0xcf   : > { %1649 = vmatmul.mubr.bf16.vlgmr.msra.gmra.mxu0 %v2408_v54  ;;  %v425_v54 = vld [vmem:[#allocation2 + $0x20] sm:$0xff] }
  0xd0   : > { %1659 = vmatmul.mubr.bf16.vlgmr.msra.gmra.mxu1 %v2409_v55 }
 0x12f   : > { %v1438_v56 = vpop.f32.mrf.mxu0 }
 0x130   : > { %v1491_v57 = vpop.f32.mrf.mxu1 }
 0x131   : > { %v1440_v58 = vpop.f32.mrf.mxu0  ;;  %v1492_v20 = vadd.f32 %v1491_v57, %v1438_v56 }
 0x132   : > { %v1493_v59 = vpop.f32.mrf.mxu1 }
 0x133   : > { %v1442_v60 = vpop.f32.mrf.mxu0  ;;  %v1494_v24 = vadd.f32 %v1493_v59, %v1440_v58 }
 0x134   : > { %v1495_v61 = vpop.f32.mrf.mxu1 }
 0x135   : > { %v1444_v62 = vpop.f32.mrf.mxu0  ;;  %v1496_v28 = vadd.f32 %v1495_v61, %v1442_v60 }
 0x136   : > { %v1497_v0 = vpop.f32.mrf.mxu1 }
 0x137   : > { %v1448_v63 = vpop.f32.mrf.mxu0  ;;  %v1498_v33 = vadd.f32 %v1497_v0, %v1444_v62  ;;  %v422_v62 = vld [vmem:[#allocation2 + $0x18] sm:$0xff]  ;;  %v426_v0 = vld [vmem:[#allocation2 + $0x28] sm:$0xff] }
 0x138   : > { %v1501_v1 = vpop.f32.mrf.mxu1 }
 0x139   : > { %v1450_v2 = vpop.f32.mrf.mxu0  ;;  %v1502_v21 = vadd.f32 %v1501_v1, %v1448_v63 }
 0x13a   : > { %v1503_v3 = vpop.f32.mrf.mxu1 }
 0x13b   : > { %v1452_v4 = vpop.f32.mrf.mxu0  ;;  %v1504_v25 = vadd.f32 %v1503_v3, %v1450_v2 }
 0x13c   : > { %v1505_v5 = vpop.f32.mrf.mxu1 }
 0x13d   : > { %v1454_v6 = vpop.f32.mrf.mxu0  ;;  %v1506_v29 = vadd.f32 %v1505_v5, %v1452_v4 }
 0x13e   : > { %v1507_v8 = vpop.f32.mrf.mxu1 }
 0x13f   : > { %v1508_v34 = vadd.f32 %v1507_v8, %v1454_v6  ;;  %v423_v6 = vld [vmem:[#allocation2 + $0x10] sm:$0xff]  ;;  %v427_v8 = vld [vmem:[#allocation2 + $0x38] sm:$0xff] }
 0x16f   : > { %v1544_v7 = vpop.f32.mrf.mxu0 }
 0x170   : > { %v1597_v9 = vpop.f32.mrf.mxu1  ;;  %v1545_v26 = vadd.f32 %v1544_v7, %v1492_v20 }
 0x171   : > { %v1546_v10 = vpop.f32.mrf.mxu0 }
 0x172   : > { %v1599_v11 = vpop.f32.mrf.mxu1  ;;  %v1547_v30 = vadd.f32 %v1546_v10, %v1494_v24  ;;  %v1598_v38 = vadd.f32 %v1597_v9, %v1545_v26 }
 0x173   : > { %v1548_v12 = vpop.f32.mrf.mxu0 }
 0x174   : > { %v1601_v13 = vpop.f32.mrf.mxu1  ;;  %v1549_v35 = vadd.f32 %v1548_v12, %v1496_v28  ;;  %v1600_v46 = vadd.f32 %v1599_v11, %v1547_v30 }
 0x175   : > { %v1550_v14 = vpop.f32.mrf.mxu0 }
 0x176   : > { %v1603_v15 = vpop.f32.mrf.mxu1  ;;  %v1551_v40 = vadd.f32 %v1550_v14, %v1498_v33  ;;  %v1602_v50 = vadd.f32 %v1601_v13, %v1549_v35 }
 0x177   : > { %v1554_v16 = vpop.f32.mrf.mxu0 }
 0x178   : > { %v1607_v17 = vpop.f32.mrf.mxu1  ;;  %v1555_v27 = vadd.f32 %v1554_v16, %v1502_v21  ;;  %v1604_v60 = vadd.f32 %v1603_v15, %v1551_v40 }
 0x179   : > { %v1556_v18 = vpop.f32.mrf.mxu0 }
 0x17a   : > { %v1609_v19 = vpop.f32.mrf.mxu1  ;;  %v1557_v31 = vadd.f32 %v1556_v18, %v1504_v25  ;;  %v1608_v39 = vadd.f32 %v1607_v17, %v1555_v27 }
 0x17b   : > { %v1558_v22 = vpop.f32.mrf.mxu0 }
 0x17c   : > { %v1611_v23 = vpop.f32.mrf.mxu1  ;;  %v1559_v36 = vadd.f32 %v1558_v22, %v1506_v29  ;;  %v1610_v47 = vadd.f32 %v1609_v19, %v1557_v31 }
 0x17d   : > { %v1560_v32 = vpop.f32.mrf.mxu0 }
 0x17e   : > { %v1613_v37 = vpop.f32.mrf.mxu1  ;;  %v1561_v41 = vadd.f32 %v1560_v32, %v1508_v34  ;;  %v1612_v51 = vadd.f32 %v1611_v23, %v1559_v36 }
 0x180   : > { %v1614_v61 = vadd.f32 %v1613_v37, %v1561_v41 }
 0x18f   : > { %v1650_v43 = vpop.f32.mrf.mxu0 }
 0x190   : > { %v1660_v45 = vpop.f32.mrf.mxu1  ;;  %v1651_v48 = vadd.f32 %v1650_v43, %v1598_v38 }
 0x191   : > { %v1661_v49 = vadd.f32 %v1660_v45, %v1608_v39  ;;  %v1652_v53 = vpop.f32.mrf.mxu0 }
 0x192   : > { %v1662_v55 = vpop.f32.mrf.mxu1  ;;  %v1669_v56 = vadd.f32 %v1651_v48, %v420_v42  ;;  %v1653_v58 = vadd.f32 %v1652_v53, %v1600_v46 }
 0x193   : > { %v1673_v57 = vadd.f32 %v1661_v49, %v424_v44  ;;  %v1663_v59 = vadd.f32 %v1662_v55, %v1610_v47  ;;  %v1654_v63 = vpop.f32.mrf.mxu0 }
 0x194   : > { %v1664_v1 = vpop.f32.mrf.mxu1  ;;  %1677 = vst [vmem:[#allocation2 + $0x30] sm:$0xff] %v1669_v56  ;;  %v1670_v2 = vadd.f32 %v1653_v58, %v421_v52  ;;  %v1655_v4 = vadd.f32 %v1654_v63, %v1602_v50 }
 0x195   : > { %1681 = vst [vmem:[#allocation2 + $0x8] sm:$0xff] %v1673_v57  ;;  %v1674_v3 = vadd.f32 %v1663_v59, %v425_v54  ;;  %v1665_v5 = vadd.f32 %v1664_v1, %v1612_v51  ;;  %v1656_v7 = vpop.f32.mrf.mxu0 }
 0x196   : > { %v1666_v9 = vpop.f32.mrf.mxu1  ;;  %1678 = vst [vmem:[#allocation2] sm:$0xff] %v1670_v2  ;;  %v1671_v10 = vadd.f32 %v1655_v4, %v422_v62  ;;  %v1657_v12 = vadd.f32 %v1656_v7, %v1604_v60 }
 0x197   : > { %1682 = vst [vmem:[#allocation2 + $0x20] sm:$0xff] %v1674_v3  ;;  %v1675_v11 = vadd.f32 %v1665_v5, %v426_v0  ;;  %v1667_v13 = vadd.f32 %v1666_v9, %v1614_v61  ;;  %1688 = sbr.rel (%p2093_p11) target bundleno = 428 (0x1ac), region = 70 }
 0x198   : > { %1679 = vst [vmem:[#allocation2 + $0x18] sm:$0xff] %v1671_v10  ;;  %v1672_v14 = vadd.f32 %v1657_v12, %v423_v6 }
 0x199   : > { %1683 = vst [vmem:[#allocation2 + $0x28] sm:$0xff] %v1675_v11  ;;  %v1676_v15 = vadd.f32 %v1667_v13, %v427_v8 }
 0x19a   : > { %1680 = vst [vmem:[#allocation2 + $0x10] sm:$0xff] %v1672_v14 }
 0x19b   : > { %1684 = vst [vmem:[#allocation2 + $0x38] sm:$0xff] %v1676_v15 }
 0x19c   : > { %v1699_v16 = vlaneseq  ;;  %v1717_v18 = vld [vmem:[%s2784_s3] sm:$0xff]  ;;  %v1689_v19 = vld [vmem:[#allocation2 + $0x30] sm:$0xff]  ;;  %v1718_v21 = vld [vmem:[%s2784_s3 + $0x8] sm:$0xff] }
 0x19d   : > { %v1697_v20 = vld [vmem:[%s2783_s2] sm:$0x3]  ;;  %v1719_v25 = vld [vmem:[%s2784_s3 + $0x10] sm:$0xff]  ;;  %v1720_v26 = vld [vmem:[%s2784_s3 + $0x18] sm:$0xff]  ;;  %v1721_v27 = vunpack.c.l.bf16 %v1717_v18  ;;  %v1722_v28 = vunpack.c.h.bf16 %v1717_v18  ;;  %v1723_v34 = vunpack.c.l.bf16 %v1718_v21  ;;  %v1724_v35 = vunpack.c.h.bf16 %v1718_v21 }
 0x19e   : > { %v1700_v17 = vshrl.u32 %v1699_v16, 7  ;;  %v1690_v22 = vld [vmem:[#allocation2] sm:$0xff]  ;;  %v1693_v31 = vld [vmem:[#allocation2 + $0x8] sm:$0xff]  ;;  %v1725_v39 = vunpack.c.l.bf16 %v1719_v25  ;;  %v1726_v40 = vunpack.c.h.bf16 %v1719_v25  ;;  %v1727_v41 = vunpack.c.l.bf16 %v1720_v26 }
 0x19f   : > { %v1691_v29 = vld [vmem:[#allocation2 + $0x18] sm:$0xff]  ;;  %v1694_v36 = vld [vmem:[#allocation2 + $0x20] sm:$0xff]  ;;  %v1728_v42 = vunpack.c.h.bf16 %v1720_v26 }
 0x1a0   : > { %v1701_v23 = vsub.s32 0, %v1700_v17  ;;  %v1705_v24 = vsub.s32 1, %v1700_v17  ;;  %v1695_v37 = vld [vmem:[#allocation2 + $0x28] sm:$0xff] }
 0x1a1   : > { %v1692_v30 = vld [vmem:[#allocation2 + $0x10] sm:$0xff] }
 0x1a2   : > { %v1702_v32 = vrot.slane %v1697_v20, %v1701_v23  ;;  %v1706_v33 = vrot.slane %v1697_v20, %v1705_v24  ;;  %v1696_v38 = vld [vmem:[#allocation2 + $0x38] sm:$0xff] }
 0x1a4   : > { %v1709_v43 = vadd.f32 %v1702_v32, %v1689_v19  ;;  %v1710_v44 = vadd.f32 %v1706_v33, %v1690_v22  ;;  %v1711_v45 = vadd.f32 %v1702_v32, %v1691_v29  ;;  %v1712_v46 = vadd.f32 %v1706_v33, %v1692_v30 }
 0x1a5   : > { %v1713_v47 = vadd.f32 %v1702_v32, %v1693_v31  ;;  %v1714_v48 = vadd.f32 %v1706_v33, %v1694_v36  ;;  %v1715_v49 = vadd.f32 %v1702_v32, %v1695_v37  ;;  %v1716_v50 = vadd.f32 %v1706_v33, %v1696_v38 }
 0x1a6   : > { %v1729_v51 = vadd.f32 %v1721_v27, %v1709_v43  ;;  %v1730_v52 = vadd.f32 %v1722_v28, %v1710_v44  ;;  %v1731_v53 = vadd.f32 %v1723_v34, %v1711_v45  ;;  %v1732_v54 = vadd.f32 %v1724_v35, %v1712_v46 }
 0x1a7   : > { %v1733_v55 = vadd.f32 %v1725_v39, %v1713_v47  ;;  %v1734_v56 = vadd.f32 %v1726_v40, %v1714_v48  ;;  %v1735_v57 = vadd.f32 %v1727_v41, %v1715_v49  ;;  %v1736_v58 = vadd.f32 %v1728_v42, %v1716_v50 }
 0x1a8   : > { %v2104_v59 = vpack.c.bf16 %v1730_v52, %v1729_v51  ;;  %v2105_v60 = vpack.c.bf16 %v1732_v54, %v1731_v53 }
 0x1a9   : > { %v2106_v61 = vpack.c.bf16 %v1734_v56, %v1733_v55  ;;  %v2107_v62 = vpack.c.bf16 %v1736_v58, %v1735_v57 }
 0x1aa   : > { %1761 = vst [vmem:[%s2785_s4] sm:$0xff] %v2104_v59  ;;  %1762 = vst [vmem:[%s2785_s4 + $0x8] sm:$0xff] %v2105_v60 }
 0x1ab   : > { %1763 = vst [vmem:[%s2785_s4 + $0x10] sm:$0xff] %v2106_v61  ;;  %1764 = vst [vmem:[%s2785_s4 + $0x18] sm:$0xff] %v2107_v62 }
 0x1ac PF: > { %s14_s19 = sadd.s32 1, %s2448_s19   ;;  %s2786_s15 = smov %s2436_s16 }
 0x1ad   : > { %p11_p12 = scmp.ge.s32.totalorder %s14_s19, 4   ;;  %s2787_s16 = smov %s2512_s23 }
 0x1ae   : > { %s2788_s17 = smov %s2444_s18  ;;  %s2789_s18 = smov %s2791_s20 }
 0x1af   :  { %13 = sbr.rel (!%p11_p12) target bundleno = 3 (0x3), region = 120 }

// kernel: custom_react_forward.13
= control target key start
LH: loop header
LB: loop body
LE: loop exit
PB: predicated region body
PF: predicated region fallthrough
CT: control target
= control target key end

     0   :  { %s2770_s15 = smov 0   ;;  %s2772_s16 = smov 0   ;;  %s3342_s0 = inlined_call_operand.vmem [shape: bf16[8,2304], index: 0, kind: input, shape index: {}]   ;;  %s3343_s1 = inlined_call_operand.vmem [shape: bf16[2304,512], index: 1, kind: input, shape index: {}]   ;;  %s3344_s2 = inlined_call_operand.vmem [shape: f32[1,512], index: 2, kind: input, shape index: {}]   ;;  %s3345_s3 = inlined_call_operand.vmem [shape: bf16[8,512], index: 3, kind: input, shape index: {}]   ;;  %s3346_s4 = inlined_call_operand.vmem [shape: bf16[8,512], index: 4, kind: output, shape index: {}]  }
   0x1   :  { %s2774_s17 = smov 0   ;;  %s2776_s18 = smov 0  }
   0x2   :  { %s2778_s19 = smov 0   ;;  %s2780_s20 = smov 0  }
   0x3   :  { %s2782_s21 = smov 0  }
   0x4 LB: > { %s26_s22 = sadd.s32 1, %s2733_s19  ;;  %s29_s23 = sadd.s32 1, %s2737_s20  ;;  %s2741_s21 = sphi %s2782_s21, %s14_s21   ;;  %s2737_s20 = sphi %s2780_s20, %s3352_s20   ;;  %s2733_s19 = sphi %s2778_s19, %s3351_s19   ;;  %s2729_s18 = sphi %s2776_s18, %s3350_s18   ;;  %s2725_s17 = sphi %s2774_s17, %s3349_s17   ;;  %s2721_s16 = sphi %s2772_s16, %s3348_s16   ;;  %s2717_s15 = sphi %s2770_s15, %s3347_s15  }
   0x5   : > { %p27_p0 = scmp.ge.s32.totalorder %s26_s22, 2  ;;  %p77_p1 = scmp.ne.s32.totalorder %s2721_s16, %s2717_s15 }
   0x6   : > { %p78_p2 = scmp.eq.s32.totalorder %s2741_s21, 0  ;;  %s70_s27 = sadd.s32 1, %s2721_s16 }
   0x7   : > { %s3354_s22 = smov (%p27_p0, %s26_s22), 0  ;;  %s3356_s23 = smov (!%p27_p0, %s29_s23), %s2737_s20 }
   0x8   : > { %p79_p3 = por %p78_p2, %p77_p1  ;;  %p31_p4 = scmp.ge.s32.totalorder %s3356_s23, 2 }
   0x9   : > { %s65_s24 = ssub.s32 %s2733_s19, %s3354_s22  ;;  %p2231_p6 = scmp.ge.s32.totalorder %s2741_s21, 4 }
   0xa   : > { %s3358_s23 = smov (%p31_p4, %s3356_s23), 0 }
   0xb   : > { %s66_s25 = ssub.s32 %s2737_s20, %s3358_s23  ;;  %185 = sbr.rel (%p2231_p6) target bundleno = 96 (0x60), region = 16 }
   0xc   : > { %s67_s26 = sor.u32 %s66_s25, %s65_s24 }
   0xd   : > { %p68_p5 = scmp.eq.s32.totalorder %s67_s26, 0 }
   0xf   : > { %s2821_s28 = scalar_select %p68_p5, %s2721_s16, %s70_s27  }
  0x10   : > { %201 = sbr.rel (!%p79_p3) target bundleno = 96 (0x60), region = 24  ;;  %s203_s29 = sand.u32 (%p79_p3), 1, %s2721_s16  }
  0x11   : > { %s2402_s30 = smul.u32 (%p79_p3), 1152, %s203_s29  ;;  %s2232_s5 = sshll.u32 (%p79_p3), %s2737_s20, 1 }
  0x12   : > { %s2400_s6 = smul.u32 (%p79_p3), 576, %s2733_s19 }
  0x13   : > { %s2835_s12 = scalar_lea.vmem (%p79_p3), [#allocation3], %s2402_s30 }
  0x14   : > { %s209_s7 = sadd.s32 (%p79_p3), %s2400_s6, %s2232_s5 }
  0x15   : > { %s2234_s8 = sshll.u32 %s209_s7, 2 }
  0x16   : > { %s2830_s11 = scalar_lea.vmem %s3343_s1, %s2234_s8 }
  0x17   : > { %v526_v0 = vld [vmem:[%s2830_s11] sm:$0xff]  ;;  %v528_v1 = vld [vmem:[%s2830_s11 + $0x10] sm:$0xff] }
  0x18   : > { %v530_v2 = vld [vmem:[%s2830_s11 + $0x20] sm:$0xff]  ;;  %527 = vst [vmem:[%s2835_s12] sm:$0xff] %v526_v0  ;;  %529 = vst [vmem:[%s2835_s12 + $0x8] sm:$0xff] %v528_v1  ;;  %v532_v3 = vld [vmem:[%s2830_s11 + $0x30] sm:$0xff] }
  0x19   : > { %531 = vst [vmem:[%s2835_s12 + $0x10] sm:$0xff] %v530_v2  ;;  %v534_v4 = vld [vmem:[%s2830_s11 + $0x40] sm:$0xff]  ;;  %v536_v5 = vld [vmem:[%s2830_s11 + $0x50] sm:$0xff]  ;;  %533 = vst [vmem:[%s2835_s12 + $0x18] sm:$0xff] %v532_v3 }
  0x1a   : > { %535 = vst [vmem:[%s2835_s12 + $0x20] sm:$0xff] %v534_v4  ;;  %537 = vst [vmem:[%s2835_s12 + $0x28] sm:$0xff] %v536_v5  ;;  %v538_v6 = vld [vmem:[%s2830_s11 + $0x60] sm:$0xff]  ;;  %v540_v7 = vld [vmem:[%s2830_s11 + $0x70] sm:$0xff] }
  0x1b   : > { %v542_v8 = vld [vmem:[%s2830_s11 + $0x80] sm:$0xff]  ;;  %539 = vst [vmem:[%s2835_s12 + $0x30] sm:$0xff] %v538_v6  ;;  %541 = vst [vmem:[%s2835_s12 + $0x38] sm:$0xff] %v540_v7  ;;  %v544_v9 = vld [vmem:[%s2830_s11 + $0x90] sm:$0xff] }
  0x1c   : > { %543 = vst [vmem:[%s2835_s12 + $0x40] sm:$0xff] %v542_v8  ;;  %v546_v10 = vld [vmem:[%s2830_s11 + $0xa0] sm:$0xff]  ;;  %v548_v11 = vld [vmem:[%s2830_s11 + $0xb0] sm:$0xff]  ;;  %545 = vst [vmem:[%s2835_s12 + $0x48] sm:$0xff] %v544_v9 }
  0x1d   : > { %547 = vst [vmem:[%s2835_s12 + $0x50] sm:$0xff] %v546_v10  ;;  %549 = vst [vmem:[%s2835_s12 + $0x58] sm:$0xff] %v548_v11  ;;  %v550_v12 = vld [vmem:[%s2830_s11 + $0xc0] sm:$0xff]  ;;  %v552_v13 = vld [vmem:[%s2830_s11 + $0xd0] sm:$0xff] }
  0x1e   : > { %v554_v14 = vld [vmem:[%s2830_s11 + $0xe0] sm:$0xff]  ;;  %551 = vst [vmem:[%s2835_s12 + $0x60] sm:$0xff] %v550_v12  ;;  %553 = vst [vmem:[%s2835_s12 + $0x68] sm:$0xff] %v552_v13  ;;  %v556_v15 = vld [vmem:[%s2830_s11 + $0xf0] sm:$0xff] }
  0x1f   : > { %555 = vst [vmem:[%s2835_s12 + $0x70] sm:$0xff] %v554_v14  ;;  %v558_v16 = vld [vmem:[%s2830_s11 + $0x100] sm:$0xff]  ;;  %v560_v17 = vld [vmem:[%s2830_s11 + $0x110] sm:$0xff]  ;;  %557 = vst [vmem:[%s2835_s12 + $0x78] sm:$0xff] %v556_v15 }
  0x20   : > { %559 = vst [vmem:[%s2835_s12 + $0x80] sm:$0xff] %v558_v16  ;;  %561 = vst [vmem:[%s2835_s12 + $0x88] sm:$0xff] %v560_v17  ;;  %v562_v18 = vld [vmem:[%s2830_s11 + $0x120] sm:$0xff]  ;;  %v564_v19 = vld [vmem:[%s2830_s11 + $0x130] sm:$0xff] }
  0x21   : > { %v566_v20 = vld [vmem:[%s2830_s11 + $0x140] sm:$0xff]  ;;  %563 = vst [vmem:[%s2835_s12 + $0x90] sm:$0xff] %v562_v18  ;;  %565 = vst [vmem:[%s2835_s12 + $0x98] sm:$0xff] %v564_v19  ;;  %v568_v21 = vld [vmem:[%s2830_s11 + $0x150] sm:$0xff] }
  0x22   : > { %567 = vst [vmem:[%s2835_s12 + $0xa0] sm:$0xff] %v566_v20  ;;  %v570_v22 = vld [vmem:[%s2830_s11 + $0x160] sm:$0xff]  ;;  %v572_v23 = vld [vmem:[%s2830_s11 + $0x170] sm:$0xff]  ;;  %569 = vst [vmem:[%s2835_s12 + $0xa8] sm:$0xff] %v568_v21 }
  0x23   : > { %571 = vst [vmem:[%s2835_s12 + $0xb0] sm:$0xff] %v570_v22  ;;  %573 = vst [vmem:[%s2835_s12 + $0xb8] sm:$0xff] %v572_v23  ;;  %v574_v24 = vld [vmem:[%s2830_s11 + $0x180] sm:$0xff]  ;;  %v576_v25 = vld [vmem:[%s2830_s11 + $0x190] sm:$0xff] }
  0x24   : > { %v578_v26 = vld [vmem:[%s2830_s11 + $0x1a0] sm:$0xff]  ;;  %575 = vst [vmem:[%s2835_s12 + $0xc0] sm:$0xff] %v574_v24  ;;  %577 = vst [vmem:[%s2835_s12 + $0xc8] sm:$0xff] %v576_v25  ;;  %v580_v27 = vld [vmem:[%s2830_s11 + $0x1b0] sm:$0xff] }
  0x25   : > { %579 = vst [vmem:[%s2835_s12 + $0xd0] sm:$0xff] %v578_v26  ;;  %v582_v28 = vld [vmem:[%s2830_s11 + $0x1c0] sm:$0xff]  ;;  %v584_v29 = vld [vmem:[%s2830_s11 + $0x1d0] sm:$0xff]  ;;  %581 = vst [vmem:[%s2835_s12 + $0xd8] sm:$0xff] %v580_v27 }
  0x26   : > { %583 = vst [vmem:[%s2835_s12 + $0xe0] sm:$0xff] %v582_v28  ;;  %585 = vst [vmem:[%s2835_s12 + $0xe8] sm:$0xff] %v584_v29  ;;  %v586_v30 = vld [vmem:[%s2830_s11 + $0x1e0] sm:$0xff]  ;;  %v588_v31 = vld [vmem:[%s2830_s11 + $0x1f0] sm:$0xff] }
  0x27   : > { %v590_v32 = vld [vmem:[%s2830_s11 + $0x200] sm:$0xff]  ;;  %587 = vst [vmem:[%s2835_s12 + $0xf0] sm:$0xff] %v586_v30  ;;  %589 = vst [vmem:[%s2835_s12 + $0xf8] sm:$0xff] %v588_v31  ;;  %v592_v33 = vld [vmem:[%s2830_s11 + $0x210] sm:$0xff] }
  0x28   : > { %591 = vst [vmem:[%s2835_s12 + $0x100] sm:$0xff] %v590_v32  ;;  %v594_v34 = vld [vmem:[%s2830_s11 + $0x220] sm:$0xff]  ;;  %v596_v35 = vld [vmem:[%s2830_s11 + $0x230] sm:$0xff]  ;;  %593 = vst [vmem:[%s2835_s12 + $0x108] sm:$0xff] %v592_v33 }
  0x29   : > { %595 = vst [vmem:[%s2835_s12 + $0x110] sm:$0xff] %v594_v34  ;;  %597 = vst [vmem:[%s2835_s12 + $0x118] sm:$0xff] %v596_v35  ;;  %v598_v36 = vld [vmem:[%s2830_s11 + $0x240] sm:$0xff]  ;;  %v600_v37 = vld [vmem:[%s2830_s11 + $0x250] sm:$0xff] }
  0x2a   : > { %v602_v38 = vld [vmem:[%s2830_s11 + $0x260] sm:$0xff]  ;;  %599 = vst [vmem:[%s2835_s12 + $0x120] sm:$0xff] %v598_v36  ;;  %601 = vst [vmem:[%s2835_s12 + $0x128] sm:$0xff] %v600_v37  ;;  %v604_v39 = vld [vmem:[%s2830_s11 + $0x270] sm:$0xff] }
  0x2b   : > { %603 = vst [vmem:[%s2835_s12 + $0x130] sm:$0xff] %v602_v38  ;;  %v606_v40 = vld [vmem:[%s2830_s11 + $0x280] sm:$0xff]  ;;  %v608_v41 = vld [vmem:[%s2830_s11 + $0x290] sm:$0xff]  ;;  %605 = vst [vmem:[%s2835_s12 + $0x138] sm:$0xff] %v604_v39 }
  0x2c   : > { %607 = vst [vmem:[%s2835_s12 + $0x140] sm:$0xff] %v606_v40  ;;  %609 = vst [vmem:[%s2835_s12 + $0x148] sm:$0xff] %v608_v41  ;;  %v610_v42 = vld [vmem:[%s2830_s11 + $0x2a0] sm:$0xff]  ;;  %v612_v43 = vld [vmem:[%s2830_s11 + $0x2b0] sm:$0xff] }
  0x2d   : > { %v614_v44 = vld [vmem:[%s2830_s11 + $0x2c0] sm:$0xff]  ;;  %611 = vst [vmem:[%s2835_s12 + $0x150] sm:$0xff] %v610_v42  ;;  %613 = vst [vmem:[%s2835_s12 + $0x158] sm:$0xff] %v612_v43  ;;  %v616_v45 = vld [vmem:[%s2830_s11 + $0x2d0] sm:$0xff] }
  0x2e   : > { %615 = vst [vmem:[%s2835_s12 + $0x160] sm:$0xff] %v614_v44  ;;  %v618_v46 = vld [vmem:[%s2830_s11 + $0x2e0] sm:$0xff]  ;;  %v620_v47 = vld [vmem:[%s2830_s11 + $0x2f0] sm:$0xff]  ;;  %617 = vst [vmem:[%s2835_s12 + $0x168] sm:$0xff] %v616_v45 }
  0x2f   : > { %619 = vst [vmem:[%s2835_s12 + $0x170] sm:$0xff] %v618_v46  ;;  %621 = vst [vmem:[%s2835_s12 + $0x178] sm:$0xff] %v620_v47  ;;  %v622_v48 = vld [vmem:[%s2830_s11 + $0x300] sm:$0xff]  ;;  %v624_v49 = vld [vmem:[%s2830_s11 + $0x310] sm:$0xff] }
  0x30   : > { %v626_v50 = vld [vmem:[%s2830_s11 + $0x320] sm:$0xff]  ;;  %623 = vst [vmem:[%s2835_s12 + $0x180] sm:$0xff] %v622_v48  ;;  %625 = vst [vmem:[%s2835_s12 + $0x188] sm:$0xff] %v624_v49  ;;  %v628_v51 = vld [vmem:[%s2830_s11 + $0x330] sm:$0xff] }
  0x31   : > { %627 = vst [vmem:[%s2835_s12 + $0x190] sm:$0xff] %v626_v50  ;;  %v630_v52 = vld [vmem:[%s2830_s11 + $0x340] sm:$0xff]  ;;  %v632_v53 = vld [vmem:[%s2830_s11 + $0x350] sm:$0xff]  ;;  %629 = vst [vmem:[%s2835_s12 + $0x198] sm:$0xff] %v628_v51 }
  0x32   : > { %631 = vst [vmem:[%s2835_s12 + $0x1a0] sm:$0xff] %v630_v52  ;;  %633 = vst [vmem:[%s2835_s12 + $0x1a8] sm:$0xff] %v632_v53  ;;  %v634_v54 = vld [vmem:[%s2830_s11 + $0x360] sm:$0xff]  ;;  %v636_v55 = vld [vmem:[%s2830_s11 + $0x370] sm:$0xff] }
  0x33   : > { %v638_v56 = vld [vmem:[%s2830_s11 + $0x380] sm:$0xff]  ;;  %635 = vst [vmem:[%s2835_s12 + $0x1b0] sm:$0xff] %v634_v54  ;;  %637 = vst [vmem:[%s2835_s12 + $0x1b8] sm:$0xff] %v636_v55  ;;  %v640_v57 = vld [vmem:[%s2830_s11 + $0x390] sm:$0xff] }
  0x34   : > { %639 = vst [vmem:[%s2835_s12 + $0x1c0] sm:$0xff] %v638_v56  ;;  %v642_v58 = vld [vmem:[%s2830_s11 + $0x3a0] sm:$0xff]  ;;  %v644_v59 = vld [vmem:[%s2830_s11 + $0x3b0] sm:$0xff]  ;;  %641 = vst [vmem:[%s2835_s12 + $0x1c8] sm:$0xff] %v640_v57 }
  0x35   : > { %643 = vst [vmem:[%s2835_s12 + $0x1d0] sm:$0xff] %v642_v58  ;;  %645 = vst [vmem:[%s2835_s12 + $0x1d8] sm:$0xff] %v644_v59  ;;  %v646_v60 = vld [vmem:[%s2830_s11 + $0x3c0] sm:$0xff]  ;;  %v648_v61 = vld [vmem:[%s2830_s11 + $0x3d0] sm:$0xff] }
  0x36   : > { %v650_v62 = vld [vmem:[%s2830_s11 + $0x3e0] sm:$0xff]  ;;  %647 = vst [vmem:[%s2835_s12 + $0x1e0] sm:$0xff] %v646_v60  ;;  %649 = vst [vmem:[%s2835_s12 + $0x1e8] sm:$0xff] %v648_v61  ;;  %v652_v63 = vld [vmem:[%s2830_s11 + $0x3f0] sm:$0xff] }
  0x37   : > { %651 = vst [vmem:[%s2835_s12 + $0x1f0] sm:$0xff] %v650_v62  ;;  %v654_v0 = vld [vmem:[%s2830_s11 + $0x400] sm:$0xff]  ;;  %v656_v1 = vld [vmem:[%s2830_s11 + $0x410] sm:$0xff]  ;;  %653 = vst [vmem:[%s2835_s12 + $0x1f8] sm:$0xff] %v652_v63 }
  0x38   : > { %655 = vst [vmem:[%s2835_s12 + $0x200] sm:$0xff] %v654_v0  ;;  %657 = vst [vmem:[%s2835_s12 + $0x208] sm:$0xff] %v656_v1  ;;  %v658_v2 = vld [vmem:[%s2830_s11 + $0x420] sm:$0xff]  ;;  %v660_v3 = vld [vmem:[%s2830_s11 + $0x430] sm:$0xff] }
  0x39   : > { %v662_v4 = vld [vmem:[%s2830_s11 + $0x440] sm:$0xff]  ;;  %659 = vst [vmem:[%s2835_s12 + $0x210] sm:$0xff] %v658_v2  ;;  %661 = vst [vmem:[%s2835_s12 + $0x218] sm:$0xff] %v660_v3  ;;  %v664_v5 = vld [vmem:[%s2830_s11 + $0x450] sm:$0xff] }
  0x3a   : > { %663 = vst [vmem:[%s2835_s12 + $0x220] sm:$0xff] %v662_v4  ;;  %v666_v6 = vld [vmem:[%s2830_s11 + $0x460] sm:$0xff]  ;;  %v668_v7 = vld [vmem:[%s2830_s11 + $0x470] sm:$0xff]  ;;  %665 = vst [vmem:[%s2835_s12 + $0x228] sm:$0xff] %v664_v5 }
  0x3b   : > { %667 = vst [vmem:[%s2835_s12 + $0x230] sm:$0xff] %v666_v6  ;;  %669 = vst [vmem:[%s2835_s12 + $0x238] sm:$0xff] %v668_v7  ;;  %v670_v8 = vld [vmem:[%s2830_s11 + $0x480] sm:$0xff]  ;;  %v672_v9 = vld [vmem:[%s2830_s11 + $0x490] sm:$0xff] }
  0x3c   : > { %v674_v10 = vld [vmem:[%s2830_s11 + $0x4a0] sm:$0xff]  ;;  %671 = vst [vmem:[%s2835_s12 + $0x240] sm:$0xff] %v670_v8  ;;  %673 = vst [vmem:[%s2835_s12 + $0x248] sm:$0xff] %v672_v9  ;;  %v676_v11 = vld [vmem:[%s2830_s11 + $0x4b0] sm:$0xff] }
  0x3d   : > { %675 = vst [vmem:[%s2835_s12 + $0x250] sm:$0xff] %v674_v10  ;;  %v678_v12 = vld [vmem:[%s2830_s11 + $0x4c0] sm:$0xff]  ;;  %v680_v13 = vld [vmem:[%s2830_s11 + $0x4d0] sm:$0xff]  ;;  %677 = vst [vmem:[%s2835_s12 + $0x258] sm:$0xff] %v676_v11 }
  0x3e   : > { %679 = vst [vmem:[%s2835_s12 + $0x260] sm:$0xff] %v678_v12  ;;  %681 = vst [vmem:[%s2835_s12 + $0x268] sm:$0xff] %v680_v13  ;;  %v682_v14 = vld [vmem:[%s2830_s11 + $0x4e0] sm:$0xff]  ;;  %v684_v15 = vld [vmem:[%s2830_s11 + $0x4f0] sm:$0xff] }
  0x3f   : > { %v686_v16 = vld [vmem:[%s2830_s11 + $0x500] sm:$0xff]  ;;  %683 = vst [vmem:[%s2835_s12 + $0x270] sm:$0xff] %v682_v14  ;;  %685 = vst [vmem:[%s2835_s12 + $0x278] sm:$0xff] %v684_v15  ;;  %v688_v17 = vld [vmem:[%s2830_s11 + $0x510] sm:$0xff] }
  0x40   : > { %687 = vst [vmem:[%s2835_s12 + $0x280] sm:$0xff] %v686_v16  ;;  %v690_v18 = vld [vmem:[%s2830_s11 + $0x520] sm:$0xff]  ;;  %v692_v19 = vld [vmem:[%s2830_s11 + $0x530] sm:$0xff]  ;;  %689 = vst [vmem:[%s2835_s12 + $0x288] sm:$0xff] %v688_v17 }
  0x41   : > { %691 = vst [vmem:[%s2835_s12 + $0x290] sm:$0xff] %v690_v18  ;;  %693 = vst [vmem:[%s2835_s12 + $0x298] sm:$0xff] %v692_v19  ;;  %v694_v20 = vld [vmem:[%s2830_s11 + $0x540] sm:$0xff]  ;;  %v696_v21 = vld [vmem:[%s2830_s11 + $0x550] sm:$0xff] }
  0x42   : > { %v698_v22 = vld [vmem:[%s2830_s11 + $0x560] sm:$0xff]  ;;  %695 = vst [vmem:[%s2835_s12 + $0x2a0] sm:$0xff] %v694_v20  ;;  %697 = vst [vmem:[%s2835_s12 + $0x2a8] sm:$0xff] %v696_v21  ;;  %v700_v23 = vld [vmem:[%s2830_s11 + $0x570] sm:$0xff] }
  0x43   : > { %699 = vst [vmem:[%s2835_s12 + $0x2b0] sm:$0xff] %v698_v22  ;;  %v702_v24 = vld [vmem:[%s2830_s11 + $0x580] sm:$0xff]  ;;  %v704_v25 = vld [vmem:[%s2830_s11 + $0x590] sm:$0xff]  ;;  %701 = vst [vmem:[%s2835_s12 + $0x2b8] sm:$0xff] %v700_v23 }
  0x44   : > { %703 = vst [vmem:[%s2835_s12 + $0x2c0] sm:$0xff] %v702_v24  ;;  %705 = vst [vmem:[%s2835_s12 + $0x2c8] sm:$0xff] %v704_v25  ;;  %v706_v26 = vld [vmem:[%s2830_s11 + $0x5a0] sm:$0xff]  ;;  %v708_v27 = vld [vmem:[%s2830_s11 + $0x5b0] sm:$0xff] }
  0x45   : > { %v710_v28 = vld [vmem:[%s2830_s11 + $0x5c0] sm:$0xff]  ;;  %707 = vst [vmem:[%s2835_s12 + $0x2d0] sm:$0xff] %v706_v26  ;;  %709 = vst [vmem:[%s2835_s12 + $0x2d8] sm:$0xff] %v708_v27  ;;  %v712_v29 = vld [vmem:[%s2830_s11 + $0x5d0] sm:$0xff] }
  0x46   : > { %711 = vst [vmem:[%s2835_s12 + $0x2e0] sm:$0xff] %v710_v28  ;;  %v714_v30 = vld [vmem:[%s2830_s11 + $0x5e0] sm:$0xff]  ;;  %v716_v31 = vld [vmem:[%s2830_s11 + $0x5f0] sm:$0xff]  ;;  %713 = vst [vmem:[%s2835_s12 + $0x2e8] sm:$0xff] %v712_v29 }
  0x47   : > { %715 = vst [vmem:[%s2835_s12 + $0x2f0] sm:$0xff] %v714_v30  ;;  %717 = vst [vmem:[%s2835_s12 + $0x2f8] sm:$0xff] %v716_v31  ;;  %v718_v32 = vld [vmem:[%s2830_s11 + $0x600] sm:$0xff]  ;;  %v720_v33 = vld [vmem:[%s2830_s11 + $0x610] sm:$0xff] }
  0x48   : > { %v722_v34 = vld [vmem:[%s2830_s11 + $0x620] sm:$0xff]  ;;  %719 = vst [vmem:[%s2835_s12 + $0x300] sm:$0xff] %v718_v32  ;;  %721 = vst [vmem:[%s2835_s12 + $0x308] sm:$0xff] %v720_v33  ;;  %v724_v35 = vld [vmem:[%s2830_s11 + $0x630] sm:$0xff] }
  0x49   : > { %723 = vst [vmem:[%s2835_s12 + $0x310] sm:$0xff] %v722_v34  ;;  %v726_v36 = vld [vmem:[%s2830_s11 + $0x640] sm:$0xff]  ;;  %v728_v37 = vld [vmem:[%s2830_s11 + $0x650] sm:$0xff]  ;;  %725 = vst [vmem:[%s2835_s12 + $0x318] sm:$0xff] %v724_v35 }
  0x4a   : > { %727 = vst [vmem:[%s2835_s12 + $0x320] sm:$0xff] %v726_v36  ;;  %729 = vst [vmem:[%s2835_s12 + $0x328] sm:$0xff] %v728_v37  ;;  %v730_v38 = vld [vmem:[%s2830_s11 + $0x660] sm:$0xff]  ;;  %v732_v39 = vld [vmem:[%s2830_s11 + $0x670] sm:$0xff] }
  0x4b   : > { %v734_v40 = vld [vmem:[%s2830_s11 + $0x680] sm:$0xff]  ;;  %731 = vst [vmem:[%s2835_s12 + $0x330] sm:$0xff] %v730_v38  ;;  %733 = vst [vmem:[%s2835_s12 + $0x338] sm:$0xff] %v732_v39  ;;  %v736_v41 = vld [vmem:[%s2830_s11 + $0x690] sm:$0xff] }
  0x4c   : > { %735 = vst [vmem:[%s2835_s12 + $0x340] sm:$0xff] %v734_v40  ;;  %v738_v42 = vld [vmem:[%s2830_s11 + $0x6a0] sm:$0xff]  ;;  %v740_v43 = vld [vmem:[%s2830_s11 + $0x6b0] sm:$0xff]  ;;  %737 = vst [vmem:[%s2835_s12 + $0x348] sm:$0xff] %v736_v41 }
  0x4d   : > { %739 = vst [vmem:[%s2835_s12 + $0x350] sm:$0xff] %v738_v42  ;;  %741 = vst [vmem:[%s2835_s12 + $0x358] sm:$0xff] %v740_v43  ;;  %v742_v44 = vld [vmem:[%s2830_s11 + $0x6c0] sm:$0xff]  ;;  %v744_v45 = vld [vmem:[%s2830_s11 + $0x6d0] sm:$0xff] }
  0x4e   : > { %v746_v46 = vld [vmem:[%s2830_s11 + $0x6e0] sm:$0xff]  ;;  %743 = vst [vmem:[%s2835_s12 + $0x360] sm:$0xff] %v742_v44  ;;  %745 = vst [vmem:[%s2835_s12 + $0x368] sm:$0xff] %v744_v45  ;;  %v748_v47 = vld [vmem:[%s2830_s11 + $0x6f0] sm:$0xff] }
  0x4f   : > { %747 = vst [vmem:[%s2835_s12 + $0x370] sm:$0xff] %v746_v46  ;;  %v750_v48 = vld [vmem:[%s2830_s11 + $0x700] sm:$0xff]  ;;  %v752_v49 = vld [vmem:[%s2830_s11 + $0x710] sm:$0xff]  ;;  %749 = vst [vmem:[%s2835_s12 + $0x378] sm:$0xff] %v748_v47 }
  0x50   : > { %751 = vst [vmem:[%s2835_s12 + $0x380] sm:$0xff] %v750_v48  ;;  %753 = vst [vmem:[%s2835_s12 + $0x388] sm:$0xff] %v752_v49  ;;  %v754_v50 = vld [vmem:[%s2830_s11 + $0x720] sm:$0xff]  ;;  %v756_v51 = vld [vmem:[%s2830_s11 + $0x730] sm:$0xff] }
  0x51   : > { %v758_v52 = vld [vmem:[%s2830_s11 + $0x740] sm:$0xff]  ;;  %755 = vst [vmem:[%s2835_s12 + $0x390] sm:$0xff] %v754_v50  ;;  %757 = vst [vmem:[%s2835_s12 + $0x398] sm:$0xff] %v756_v51  ;;  %v760_v53 = vld [vmem:[%s2830_s11 + $0x750] sm:$0xff] }
  0x52   : > { %759 = vst [vmem:[%s2835_s12 + $0x3a0] sm:$0xff] %v758_v52  ;;  %v762_v54 = vld [vmem:[%s2830_s11 + $0x760] sm:$0xff]  ;;  %v764_v55 = vld [vmem:[%s2830_s11 + $0x770] sm:$0xff]  ;;  %761 = vst [vmem:[%s2835_s12 + $0x3a8] sm:$0xff] %v760_v53 }
  0x53   : > { %763 = vst [vmem:[%s2835_s12 + $0x3b0] sm:$0xff] %v762_v54  ;;  %765 = vst [vmem:[%s2835_s12 + $0x3b8] sm:$0xff] %v764_v55  ;;  %v766_v56 = vld [vmem:[%s2830_s11 + $0x780] sm:$0xff]  ;;  %v768_v57 = vld [vmem:[%s2830_s11 + $0x790] sm:$0xff] }
  0x54   : > { %v770_v58 = vld [vmem:[%s2830_s11 + $0x7a0] sm:$0xff]  ;;  %767 = vst [vmem:[%s2835_s12 + $0x3c0] sm:$0xff] %v766_v56  ;;  %769 = vst [vmem:[%s2835_s12 + $0x3c8] sm:$0xff] %v768_v57  ;;  %v772_v59 = vld [vmem:[%s2830_s11 + $0x7b0] sm:$0xff] }
  0x55   : > { %771 = vst [vmem:[%s2835_s12 + $0x3d0] sm:$0xff] %v770_v58  ;;  %v774_v60 = vld [vmem:[%s2830_s11 + $0x7c0] sm:$0xff]  ;;  %v776_v61 = vld [vmem:[%s2830_s11 + $0x7d0] sm:$0xff]  ;;  %773 = vst [vmem:[%s2835_s12 + $0x3d8] sm:$0xff] %v772_v59 }
  0x56   : > { %775 = vst [vmem:[%s2835_s12 + $0x3e0] sm:$0xff] %v774_v60  ;;  %777 = vst [vmem:[%s2835_s12 + $0x3e8] sm:$0xff] %v776_v61  ;;  %v778_v62 = vld [vmem:[%s2830_s11 + $0x7e0] sm:$0xff]  ;;  %v780_v63 = vld [vmem:[%s2830_s11 + $0x7f0] sm:$0xff] }
  0x57   : > { %v782_v0 = vld [vmem:[%s2830_s11 + $0x800] sm:$0xff]  ;;  %779 = vst [vmem:[%s2835_s12 + $0x3f0] sm:$0xff] %v778_v62  ;;  %781 = vst [vmem:[%s2835_s12 + $0x3f8] sm:$0xff] %v780_v63  ;;  %v784_v1 = vld [vmem:[%s2830_s11 + $0x810] sm:$0xff] }
  0x58   : > { %783 = vst [vmem:[%s2835_s12 + $0x400] sm:$0xff] %v782_v0  ;;  %v786_v2 = vld [vmem:[%s2830_s11 + $0x820] sm:$0xff]  ;;  %v788_v3 = vld [vmem:[%s2830_s11 + $0x830] sm:$0xff]  ;;  %785 = vst [vmem:[%s2835_s12 + $0x408] sm:$0xff] %v784_v1 }
  0x59   : > { %787 = vst [vmem:[%s2835_s12 + $0x410] sm:$0xff] %v786_v2  ;;  %789 = vst [vmem:[%s2835_s12 + $0x418] sm:$0xff] %v788_v3  ;;  %v790_v4 = vld [vmem:[%s2830_s11 + $0x840] sm:$0xff]  ;;  %v792_v5 = vld [vmem:[%s2830_s11 + $0x850] sm:$0xff] }
  0x5a   : > { %v794_v6 = vld [vmem:[%s2830_s11 + $0x860] sm:$0xff]  ;;  %791 = vst [vmem:[%s2835_s12 + $0x420] sm:$0xff] %v790_v4  ;;  %793 = vst [vmem:[%s2835_s12 + $0x428] sm:$0xff] %v792_v5  ;;  %v796_v7 = vld [vmem:[%s2830_s11 + $0x870] sm:$0xff] }
  0x5b   : > { %795 = vst [vmem:[%s2835_s12 + $0x430] sm:$0xff] %v794_v6  ;;  %v798_v8 = vld [vmem:[%s2830_s11 + $0x880] sm:$0xff]  ;;  %v800_v9 = vld [vmem:[%s2830_s11 + $0x890] sm:$0xff]  ;;  %797 = vst [vmem:[%s2835_s12 + $0x438] sm:$0xff] %v796_v7 }
  0x5c   : > { %799 = vst [vmem:[%s2835_s12 + $0x440] sm:$0xff] %v798_v8  ;;  %801 = vst [vmem:[%s2835_s12 + $0x448] sm:$0xff] %v800_v9  ;;  %v802_v10 = vld [vmem:[%s2830_s11 + $0x8a0] sm:$0xff]  ;;  %v804_v11 = vld [vmem:[%s2830_s11 + $0x8b0] sm:$0xff] }
  0x5d   : > { %v806_v12 = vld [vmem:[%s2830_s11 + $0x8c0] sm:$0xff]  ;;  %803 = vst [vmem:[%s2835_s12 + $0x450] sm:$0xff] %v802_v10  ;;  %805 = vst [vmem:[%s2835_s12 + $0x458] sm:$0xff] %v804_v11  ;;  %v808_v13 = vld [vmem:[%s2830_s11 + $0x8d0] sm:$0xff] }
  0x5e   : > { %807 = vst [vmem:[%s2835_s12 + $0x460] sm:$0xff] %v806_v12  ;;  %v810_v14 = vld [vmem:[%s2830_s11 + $0x8e0] sm:$0xff]  ;;  %v812_v15 = vld [vmem:[%s2830_s11 + $0x8f0] sm:$0xff]  ;;  %809 = vst [vmem:[%s2835_s12 + $0x468] sm:$0xff] %v808_v13 }
  0x5f   : > { %811 = vst [vmem:[%s2835_s12 + $0x470] sm:$0xff] %v810_v14  ;;  %813 = vst [vmem:[%s2835_s12 + $0x478] sm:$0xff] %v812_v15 }
  0x60 PF: > { %p2235_p7 = scmp.ge.s32.totalorder %s2741_s21, 1  ;;  %p839_p8 = scmp.lt.s32.totalorder %s2741_s21, 5 }
  0x62   : > { %p840_p9 = pnand %p2235_p7, %p839_p8 }
  0x63   : > { %s846_s13 = sand.u32 (!%p840_p9), 1, %s2717_s15   ;;  %s897_s14 = smul.u32 (!%p840_p9), 9, %s2725_s17 }
  0x64   : > { %843 = sbr.rel (%p840_p9) target bundleno = 492 (0x1ec), region = 70  ;;  %s2237_s25 = sshll.u32 (!%p840_p9), %s2729_s18, 1 }
  0x65   : > { %s2403_s24 = smul.u32 (!%p840_p9), 1152, %s846_s13  ;;  %p900_p10 = scmp.lt.s32.totalorder (!%p840_p9), %s897_s14, 17 }
  0x66   : > { %p910_p11 = scmp.lt.s32.totalorder (!%p840_p9), %s2237_s25, 3  ;;  %p2242_p12 = scmp.ne.s32.totalorder (!%p840_p9), %s2725_s17, 0 }
  0x67   : > { %s3149_s13 = scalar_lea.vmem (!%p840_p9), [#allocation3], %s2403_s24 }
  0x69   : > { %s3360_s14 = smov (!%p900_p10, %s897_s14), 17  ;;  %s3362_s25 = smov (!%p910_p11, %s2237_s25), 3 }
  0x6a   : > { %s2236_s26 = sshll.u32 %s3360_s14, 2  ;;  %s912_s15 = scalar_lea.vmem %s3344_s2, %s3362_s25 }
  0x6b   : > { %s3132_s30 = scalar_lea.vmem %s3342_s0, %s2236_s26  ;;  %s2239_s7 = sshll.u32 %s3362_s25, 2 }
  0x6c   : > { %s3142_s9 = scalar_lea.vmem %s3345_s3, %s2239_s7  ;;  %s3147_s12 = scalar_lea.vmem %s3346_s4, %s2239_s7 }
  0x6d   : > { %938 = sbr.rel (%p2242_p12) target bundleno = 116 (0x74), region = 78 }
  0x72   : > { %v2743_v16 = vmov 0.0  }
  0x73   : > { %939 = vst [vmem:[#allocation2] sm:$0xff] %v2743_v16  ;;  %940 = vst [vmem:[#allocation2 + $0x8] sm:$0xff] %v2743_v16 }
  0x74 PF: > { %v2462_v17 = vld [vmem:[%s3149_s13 + $0x74] ss:$8 sps:$4 sm:$0xff]   ;;  %v2466_v19 = vld [vmem:[%s3149_s13 + $0x70] ss:$8 sps:$4 sm:$0xff]   ;;  %v2468_v21 = vld [vmem:[%s3149_s13 + $0x64] ss:$8 sps:$4 sm:$0xff]  }
  0x75   : > { %v2464_v18 = vld [vmem:[%s3149_s13 + $0x174] ss:$8 sps:$4 sm:$0xff]   ;;  %1844 = vmatprep.subr.bf16.mxu0 %v2462_v17  ;;  %v2467_v20 = vld [vmem:[%s3149_s13 + $0x170] ss:$8 sps:$4 sm:$0xff]   ;;  %v2470_v22 = vld [vmem:[%s3149_s13 + $0x164] ss:$8 sps:$4 sm:$0xff]  }
  0x76   : > { %1885 = vmatprep.subr.bf16.mxu1 %v2464_v18  ;;  %1845 = vmatpush1.bf16.msra.mxu0 %v2466_v19  ;;  %v2472_v23 = vld [vmem:[%s3149_s13 + $0x60] ss:$8 sps:$4 sm:$0xff]   ;;  %v2474_v25 = vld [vmem:[%s3149_s13 + $0x54] ss:$8 sps:$4 sm:$0xff]   ;;  %v2478_v27 = vld [vmem:[%s3149_s13 + $0x50] ss:$8 sps:$4 sm:$0xff]  }
  0x77   : > { %1886 = vmatpush1.bf16.msra.mxu1 %v2467_v20  ;;  %1846 = vmatprep.subr.bf16.mxu0 %v2468_v21  ;;  %v2473_v24 = vld [vmem:[%s3149_s13 + $0x160] ss:$8 sps:$4 sm:$0xff]   ;;  %v2476_v26 = vld [vmem:[%s3149_s13 + $0x154] ss:$8 sps:$4 sm:$0xff]   ;;  %v2479_v28 = vld [vmem:[%s3149_s13 + $0x150] ss:$8 sps:$4 sm:$0xff]  }
  0x78   : > { %1887 = vmatprep.subr.bf16.mxu1 %v2470_v22  ;;  %v2480_v29 = vld [vmem:[%s3149_s13 + $0x44] ss:$8 sps:$4 sm:$0xff]   ;;  %v2484_v31 = vld [vmem:[%s3149_s13 + $0x40] ss:$8 sps:$4 sm:$0xff]   ;;  %v2486_v33 = vld [vmem:[%s3149_s13 + $0x34] ss:$8 sps:$4 sm:$0xff]  }
  0x79   : > { %v2482_v30 = vld [vmem:[%s3149_s13 + $0x144] ss:$8 sps:$4 sm:$0xff]   ;;  %v2485_v32 = vld [vmem:[%s3149_s13 + $0x140] ss:$8 sps:$4 sm:$0xff]   ;;  %v2488_v34 = vld [vmem:[%s3149_s13 + $0x134] ss:$8 sps:$4 sm:$0xff]  }
  0x7a   : > { %1847 = vmatpush1.bf16.msra.mxu0 %v2472_v23  ;;  %v2490_v35 = vld [vmem:[%s3149_s13 + $0x30] ss:$8 sps:$4 sm:$0xff]   ;;  %v2492_v37 = vld [vmem:[%s3149_s13 + $0x24] ss:$8 sps:$4 sm:$0xff]   ;;  %v2496_v39 = vld [vmem:[%s3149_s13 + $0x20] ss:$8 sps:$4 sm:$0xff]  }
  0x7b   : > { %1888 = vmatpush1.bf16.msra.mxu1 %v2473_v24  ;;  %1848 = vmatprep.subr.bf16.mxu0 %v2474_v25  ;;  %v2491_v36 = vld [vmem:[%s3149_s13 + $0x130] ss:$8 sps:$4 sm:$0xff]   ;;  %v2494_v38 = vld [vmem:[%s3149_s13 + $0x124] ss:$8 sps:$4 sm:$0xff]   ;;  %v2497_v40 = vld [vmem:[%s3149_s13 + $0x120] ss:$8 sps:$4 sm:$0xff]  }
  0x7c   : > { %1889 = vmatprep.subr.bf16.mxu1 %v2476_v26  ;;  %v2498_v41 = vld [vmem:[%s3149_s13 + $0x14] ss:$8 sps:$4 sm:$0xff]   ;;  %v2502_v43 = vld [vmem:[%s3149_s13 + $0x10] ss:$8 sps:$4 sm:$0xff]   ;;  %v2504_v45 = vld [vmem:[%s3149_s13 + $0x4] ss:$8 sps:$4 sm:$0xff]  }
  0x7d   : > { %v2500_v42 = vld [vmem:[%s3149_s13 + $0x114] ss:$8 sps:$4 sm:$0xff]   ;;  %v2503_v44 = vld [vmem:[%s3149_s13 + $0x110] ss:$8 sps:$4 sm:$0xff]   ;;  %v2506_v46 = vld [vmem:[%s3149_s13 + $0x104] ss:$8 sps:$4 sm:$0xff]  }
  0x7e   : > { %1849 = vmatpush1.bf16.msra.mxu0 %v2478_v27  ;;  %v2508_v47 = vld [vmem:[%s3149_s13] ss:$8 sps:$4 sm:$0xff]   ;;  %v2510_v49 = vld [vmem:[%s3149_s13 + $0xf4] ss:$8 sps:$4 sm:$0xff]   ;;  %v2514_v51 = vld [vmem:[%s3149_s13 + $0xf0] ss:$8 sps:$4 sm:$0xff]  }
  0x7f   : > { %1890 = vmatpush1.bf16.msra.mxu1 %v2479_v28  ;;  %1850 = vmatprep.subr.bf16.mxu0 %v2480_v29  ;;  %v2509_v48 = vld [vmem:[%s3149_s13 + $0x100] ss:$8 sps:$4 sm:$0xff]   ;;  %v2512_v50 = vld [vmem:[%s3149_s13 + $0x1f4] ss:$8 sps:$4 sm:$0xff]   ;;  %v2515_v52 = vld [vmem:[%s3149_s13 + $0x1f0] ss:$8 sps:$4 sm:$0xff]  }
  0x80   : > { %1891 = vmatprep.subr.bf16.mxu1 %v2482_v30  ;;  %v2516_v53 = vld [vmem:[%s3149_s13 + $0xe4] ss:$8 sps:$4 sm:$0xff]   ;;  %v2520_v55 = vld [vmem:[%s3149_s13 + $0xe0] ss:$8 sps:$4 sm:$0xff]   ;;  %v2522_v57 = vld [vmem:[%s3149_s13 + $0xd4] ss:$8 sps:$4 sm:$0xff]  }
  0x81   : > { %v2518_v54 = vld [vmem:[%s3149_s13 + $0x1e4] ss:$8 sps:$4 sm:$0xff]   ;;  %v2521_v56 = vld [vmem:[%s3149_s13 + $0x1e0] ss:$8 sps:$4 sm:$0xff]   ;;  %v2524_v58 = vld [vmem:[%s3149_s13 + $0x1d4] ss:$8 sps:$4 sm:$0xff]  }
  0x82   : > { %1851 = vmatpush1.bf16.msra.mxu0 %v2484_v31  ;;  %v2526_v59 = vld [vmem:[%s3149_s13 + $0xd0] ss:$8 sps:$4 sm:$0xff]   ;;  %v2528_v61 = vld [vmem:[%s3149_s13 + $0xc4] ss:$8 sps:$4 sm:$0xff]   ;;  %v2532_v2 = vld [vmem:[%s3149_s13 + $0xc0] ss:$8 sps:$4 sm:$0xff]  }
  0x83   : > { %1892 = vmatpush1.bf16.msra.mxu1 %v2485_v32  ;;  %1852 = vmatprep.subr.bf16.mxu0 %v2486_v33  ;;  %v2527_v60 = vld [vmem:[%s3149_s13 + $0x1d0] ss:$8 sps:$4 sm:$0xff]   ;;  %v2530_v62 = vld [vmem:[%s3149_s13 + $0x1c4] ss:$8 sps:$4 sm:$0xff]   ;;  %v2533_v3 = vld [vmem:[%s3149_s13 + $0x1c0] ss:$8 sps:$4 sm:$0xff]  }
  0x84   : > { %1893 = vmatprep.subr.bf16.mxu1 %v2488_v34  ;;  %v943_v63 = vld [vmem:[%s3132_s30] sm:$0xff]  ;;  %v944_v1 = vld [vmem:[%s3132_s30 + $0x8] sm:$0xff]  ;;  %v2540_v9 = vld [vmem:[%s3149_s13 + $0xa4] ss:$8 sps:$4 sm:$0xff]   ;;  %p2396_p13 = scmp.ne.s32.totalorder %s2725_s17, 1 }
  0x85   : > { %v2244_v0 = vcombine.high %v943_v63, %v943_v63  ;;  %v2246_v4 = vcombine.high %v944_v1, %v944_v1  ;;  %v2534_v5 = vld [vmem:[%s3149_s13 + $0xb4] ss:$8 sps:$4 sm:$0xff]   ;;  %v2538_v7 = vld [vmem:[%s3149_s13 + $0xb0] ss:$8 sps:$4 sm:$0xff]   ;;  %v2542_v10 = vld [vmem:[%s3149_s13 + $0x1a4] ss:$8 sps:$4 sm:$0xff]   ;;  %v2243_v23 = vcombine.low %v943_v63, %v943_v63  ;;  %v2245_v24 = vcombine.low %v944_v1, %v944_v1 }
  0x86   : > { %1853 = vmatpush1.bf16.msra.mxu0 %v2490_v35  ;;  %v2536_v6 = vld [vmem:[%s3149_s13 + $0x1b4] ss:$8 sps:$4 sm:$0xff]   ;;  %v2539_v8 = vld [vmem:[%s3149_s13 + $0x1b0] ss:$8 sps:$4 sm:$0xff]   ;;  %v2544_v11 = vld [vmem:[%s3149_s13 + $0xa0] ss:$8 sps:$4 sm:$0xff]  }
  0x87   : > { %1894 = vmatpush1.bf16.msra.mxu1 %v2491_v36  ;;  %1854 = vmatprep.subr.bf16.mxu0 %v2492_v37  ;;  %v2545_v12 = vld [vmem:[%s3149_s13 + $0x1a0] ss:$8 sps:$4 sm:$0xff]   ;;  %v2546_v13 = vld [vmem:[%s3149_s13 + $0x94] ss:$8 sps:$4 sm:$0xff]   ;;  %v2550_v15 = vld [vmem:[%s3149_s13 + $0x90] ss:$8 sps:$4 sm:$0xff]  }
  0x88   : > { %1895 = vmatprep.subr.bf16.mxu1 %v2494_v38  ;;  %1876 = vmatprep.mubr.bf16.mxu0 %v2244_v0  ;;  %v2548_v14 = vld [vmem:[%s3149_s13 + $0x194] ss:$8 sps:$4 sm:$0xff]   ;;  %v2551_v16 = vld [vmem:[%s3149_s13 + $0x190] ss:$8 sps:$4 sm:$0xff]   ;;  %v2552_v17 = vld [vmem:[%s3149_s13 + $0x84] ss:$8 sps:$4 sm:$0xff]  }
  0x89   : > { %1917 = vmatprep.mubr.bf16.mxu1 %v2246_v4  ;;  %v2554_v18 = vld [vmem:[%s3149_s13 + $0x184] ss:$8 sps:$4 sm:$0xff]   ;;  %v2556_v19 = vld [vmem:[%s3149_s13 + $0x80] ss:$8 sps:$4 sm:$0xff]   ;;  %v2564_v21 = vld [vmem:[%s3149_s13 + $0x274] ss:$8 sps:$4 sm:$0xff]  }
  0x8a   : > { %1855 = vmatpush1.bf16.msra.mxu0 %v2496_v39  ;;  %v2557_v20 = vld [vmem:[%s3149_s13 + $0x180] ss:$8 sps:$4 sm:$0xff]   ;;  %v2567_v22 = vld [vmem:[%s3149_s13 + $0x374] ss:$8 sps:$4 sm:$0xff]   ;;  %v2562_v25 = vld [vmem:[%s3149_s13 + $0x270] ss:$8 sps:$4 sm:$0xff]  }
  0x8b   : > { %1896 = vmatpush1.bf16.msra.mxu1 %v2497_v40  ;;  %1856 = vmatprep.subr.bf16.mxu0 %v2498_v41  ;;  %v2565_v26 = vld [vmem:[%s3149_s13 + $0x370] ss:$8 sps:$4 sm:$0xff]   ;;  %v2570_v27 = vld [vmem:[%s3149_s13 + $0x264] ss:$8 sps:$4 sm:$0xff]   ;;  %v2568_v29 = vld [vmem:[%s3149_s13 + $0x260] ss:$8 sps:$4 sm:$0xff]  }
  0x8c   : > { %1897 = vmatprep.subr.bf16.mxu1 %v2500_v42  ;;  %v2573_v28 = vld [vmem:[%s3149_s13 + $0x364] ss:$8 sps:$4 sm:$0xff]   ;;  %v2571_v30 = vld [vmem:[%s3149_s13 + $0x360] ss:$8 sps:$4 sm:$0xff]   ;;  %v2576_v31 = vld [vmem:[%s3149_s13 + $0x254] ss:$8 sps:$4 sm:$0xff]  }
  0x8d   : > { %v2579_v32 = vld [vmem:[%s3149_s13 + $0x354] ss:$8 sps:$4 sm:$0xff]   ;;  %v2574_v33 = vld [vmem:[%s3149_s13 + $0x250] ss:$8 sps:$4 sm:$0xff]   ;;  %v2582_v35 = vld [vmem:[%s3149_s13 + $0x244] ss:$8 sps:$4 sm:$0xff]  }
  0x8e   : > { %1857 = vmatpush1.bf16.msra.mxu0 %v2502_v43  ;;  %v2577_v34 = vld [vmem:[%s3149_s13 + $0x350] ss:$8 sps:$4 sm:$0xff]   ;;  %v2585_v36 = vld [vmem:[%s3149_s13 + $0x344] ss:$8 sps:$4 sm:$0xff]   ;;  %v2580_v37 = vld [vmem:[%s3149_s13 + $0x240] ss:$8 sps:$4 sm:$0xff]  }
  0x8f   : > { %1898 = vmatpush1.bf16.msra.mxu1 %v2503_v44  ;;  %1858 = vmatprep.subr.bf16.mxu0 %v2504_v45  ;;  %v2583_v38 = vld [vmem:[%s3149_s13 + $0x340] ss:$8 sps:$4 sm:$0xff]   ;;  %v2588_v39 = vld [vmem:[%s3149_s13 + $0x234] ss:$8 sps:$4 sm:$0xff]   ;;  %v2586_v41 = vld [vmem:[%s3149_s13 + $0x230] ss:$8 sps:$4 sm:$0xff]  }
  0x90   : > { %1899 = vmatprep.subr.bf16.mxu1 %v2506_v46  ;;  %v2591_v40 = vld [vmem:[%s3149_s13 + $0x334] ss:$8 sps:$4 sm:$0xff]   ;;  %v2589_v42 = vld [vmem:[%s3149_s13 + $0x330] ss:$8 sps:$4 sm:$0xff]   ;;  %v2594_v43 = vld [vmem:[%s3149_s13 + $0x224] ss:$8 sps:$4 sm:$0xff]  }
  0x91   : > { %v2597_v44 = vld [vmem:[%s3149_s13 + $0x324] ss:$8 sps:$4 sm:$0xff]   ;;  %v2592_v45 = vld [vmem:[%s3149_s13 + $0x220] ss:$8 sps:$4 sm:$0xff]   ;;  %v2627_v4 = vld [vmem:[%s3149_s13 + $0x3d4] ss:$8 sps:$4 sm:$0xff]  }
  0x92   : > { %1859 = vmatpush1.bf16.msra.mxu0 %v2508_v47  ;;  %v2595_v46 = vld [vmem:[%s3149_s13 + $0x320] ss:$8 sps:$4 sm:$0xff]   ;;  %v2600_v47 = vld [vmem:[%s3149_s13 + $0x214] ss:$8 sps:$4 sm:$0xff]   ;;  %v2618_v63 = vld [vmem:[%s3149_s13 + $0x2e4] ss:$8 sps:$4 sm:$0xff]  }
  0x93   : > { %1900 = vmatpush1.bf16.msra.mxu1 %v2509_v48  ;;  %1860 = vmatprep.subr.bf16.mxu0 %v2510_v49  ;;  %v2603_v48 = vld [vmem:[%s3149_s13 + $0x314] ss:$8 sps:$4 sm:$0xff]   ;;  %v3245_v49 = vld [vmem:[%s3132_s30 + $0x10] sm:$0xff] }
  0x94   : > { %1901 = vmatprep.subr.bf16.mxu1 %v2512_v50  ;;  %v2598_v50 = vld [vmem:[%s3149_s13 + $0x210] ss:$8 sps:$4 sm:$0xff]   ;;  %v2621_v0 = vld [vmem:[%s3149_s13 + $0x3e4] ss:$8 sps:$4 sm:$0xff]   ;;  %v2616_v1 = vld [vmem:[%s3149_s13 + $0x2e0] ss:$8 sps:$4 sm:$0xff]  }
  0x96   : > { %1861 = vmatpush2.bf16.msra.mxu0 %v2514_v51  ;;  %v2601_v51 = vld [vmem:[%s3149_s13 + $0x310] ss:$8 sps:$4 sm:$0xff]  }
  0x97   : > { %1902 = vmatpush2.bf16.msra.mxu1 %v2515_v52  ;;  %1862 = vmatprep.subr.bf16.mxu0 %v2516_v53  ;;  %v2248_v52 = vcombine.high %v3245_v49, %v3245_v49  ;;  %v3252_v53 = vld [vmem:[%s3132_s30 + $0x18] sm:$0xff] }
  0x98   : > { %1903 = vmatprep.subr.bf16.mxu1 %v2518_v54  ;;  %v2606_v54 = vld [vmem:[%s3149_s13 + $0x204] ss:$8 sps:$4 sm:$0xff]  }
  0x9a   : > { %1863 = vmatpush2.bf16.msra.mxu0 %v2520_v55  ;;  %v2250_v55 = vcombine.high %v3252_v53, %v3252_v53 }
  0x9b   : > { %1904 = vmatpush2.bf16.msra.mxu1 %v2521_v56  ;;  %1864 = vmatprep.subr.bf16.mxu0 %v2522_v57  ;;  %v2609_v56 = vld [vmem:[%s3149_s13 + $0x304] ss:$8 sps:$4 sm:$0xff]   ;;  %v2604_v57 = vld [vmem:[%s3149_s13 + $0x200] ss:$8 sps:$4 sm:$0xff]  }
  0x9c   : > { %1905 = vmatprep.subr.bf16.mxu1 %v2524_v58  ;;  %v2607_v58 = vld [vmem:[%s3149_s13 + $0x300] ss:$8 sps:$4 sm:$0xff]  }
  0x9e   : > { %1865 = vmatpush2.bf16.msra.mxu0 %v2526_v59  ;;  %v2612_v59 = vld [vmem:[%s3149_s13 + $0x2f4] ss:$8 sps:$4 sm:$0xff]  }
  0x9f   : > { %1906 = vmatpush2.bf16.msra.mxu1 %v2527_v60  ;;  %1866 = vmatprep.subr.bf16.mxu0 %v2528_v61  ;;  %v2615_v60 = vld [vmem:[%s3149_s13 + $0x3f4] ss:$8 sps:$4 sm:$0xff]   ;;  %v2610_v61 = vld [vmem:[%s3149_s13 + $0x2f0] ss:$8 sps:$4 sm:$0xff]  }
  0xa0   : > { %1907 = vmatprep.subr.bf16.mxu1 %v2530_v62  ;;  %v2613_v62 = vld [vmem:[%s3149_s13 + $0x3f0] ss:$8 sps:$4 sm:$0xff]  }
  0xa2   : > { %1867 = vmatpush2.bf16.msra.mxu0 %v2532_v2  ;;  %v2619_v2 = vld [vmem:[%s3149_s13 + $0x3e0] ss:$8 sps:$4 sm:$0xff]  }
  0xa3   : > { %1908 = vmatpush2.bf16.msra.mxu1 %v2533_v3  ;;  %1868 = vmatprep.subr.bf16.mxu0 %v2534_v5  ;;  %v2624_v3 = vld [vmem:[%s3149_s13 + $0x2d4] ss:$8 sps:$4 sm:$0xff]   ;;  %v2622_v5 = vld [vmem:[%s3149_s13 + $0x2d0] ss:$8 sps:$4 sm:$0xff]  }
  0xa4   : > { %1909 = vmatprep.subr.bf16.mxu1 %v2536_v6  ;;  %v2625_v6 = vld [vmem:[%s3149_s13 + $0x3d0] ss:$8 sps:$4 sm:$0xff]  }
  0xa6   : > { %1869 = vmatpush2.bf16.msra.mxu0 %v2538_v7  ;;  %v2630_v7 = vld [vmem:[%s3149_s13 + $0x2c4] ss:$8 sps:$4 sm:$0xff]  }
  0xa7   : > { %1910 = vmatpush2.bf16.msra.mxu1 %v2539_v8  ;;  %1870 = vmatprep.subr.bf16.mxu0 %v2540_v9  ;;  %v2633_v8 = vld [vmem:[%s3149_s13 + $0x3c4] ss:$8 sps:$4 sm:$0xff]   ;;  %v2628_v9 = vld [vmem:[%s3149_s13 + $0x2c0] ss:$8 sps:$4 sm:$0xff]  }
  0xa8   : > { %1911 = vmatprep.subr.bf16.mxu1 %v2542_v10  ;;  %v2631_v10 = vld [vmem:[%s3149_s13 + $0x3c0] ss:$8 sps:$4 sm:$0xff]  }
  0xaa   : > { %1871 = vmatpush2.bf16.msra.mxu0 %v2544_v11  ;;  %v2636_v11 = vld [vmem:[%s3149_s13 + $0x2b4] ss:$8 sps:$4 sm:$0xff]  }
  0xab   : > { %1912 = vmatpush2.bf16.msra.mxu1 %v2545_v12  ;;  %1872 = vmatprep.subr.bf16.mxu0 %v2546_v13  ;;  %v2639_v12 = vld [vmem:[%s3149_s13 + $0x3b4] ss:$8 sps:$4 sm:$0xff]   ;;  %v2634_v13 = vld [vmem:[%s3149_s13 + $0x2b0] ss:$8 sps:$4 sm:$0xff]  }
  0xac   : > { %1913 = vmatprep.subr.bf16.mxu1 %v2548_v14  ;;  %v2637_v14 = vld [vmem:[%s3149_s13 + $0x3b0] ss:$8 sps:$4 sm:$0xff]  }
  0xae   : > { %1873 = vmatpush2.bf16.msra.mxu0 %v2550_v15  ;;  %v2642_v15 = vld [vmem:[%s3149_s13 + $0x2a4] ss:$8 sps:$4 sm:$0xff]  }
  0xaf   : > { %1914 = vmatpush2.bf16.msra.mxu1 %v2551_v16  ;;  %1874 = vmatprep.subr.bf16.mxu0 %v2552_v17  ;;  %v2645_v16 = vld [vmem:[%s3149_s13 + $0x3a4] ss:$8 sps:$4 sm:$0xff]   ;;  %v2640_v17 = vld [vmem:[%s3149_s13 + $0x2a0] ss:$8 sps:$4 sm:$0xff]  }
  0xb0   : > { %1915 = vmatprep.subr.bf16.mxu1 %v2554_v18  ;;  %v2643_v18 = vld [vmem:[%s3149_s13 + $0x3a0] ss:$8 sps:$4 sm:$0xff]  }
  0xb2   : > { %1875 = vmatpush2.bf16.msra.mxu0 %v2556_v19  ;;  %v2648_v19 = vld [vmem:[%s3149_s13 + $0x294] ss:$8 sps:$4 sm:$0xff]  }
  0xb3   : > { %1916 = vmatpush2.bf16.msra.mxu1 %v2557_v20  ;;  %1926 = vmatprep.subr.bf16.mxu0 %v2564_v21  ;;  %v2651_v20 = vld [vmem:[%s3149_s13 + $0x394] ss:$8 sps:$4 sm:$0xff]   ;;  %v2646_v21 = vld [vmem:[%s3149_s13 + $0x290] ss:$8 sps:$4 sm:$0xff]  }
  0xb4   : > { %1967 = vmatprep.subr.bf16.mxu1 %v2567_v22  ;;  %v2649_v22 = vld [vmem:[%s3149_s13 + $0x390] ss:$8 sps:$4 sm:$0xff]  }
  0xb5   : > { %1877 = vmatmul.mubr.bf16.vlgmr.msra.gmra.mxu0 %v2243_v23  ;;  %v2654_v23 = vld [vmem:[%s3149_s13 + $0x284] ss:$8 sps:$4 sm:$0xff]  }
  0xb6   : > { %1918 = vmatmul.mubr.bf16.vlgmr.msra.gmra.mxu1 %v2245_v24  ;;  %1927 = vmatpush1.bf16.msra.mxu0 %v2562_v25  ;;  %v2657_v24 = vld [vmem:[%s3149_s13 + $0x384] ss:$8 sps:$4 sm:$0xff]   ;;  %v2652_v25 = vld [vmem:[%s3149_s13 + $0x280] ss:$8 sps:$4 sm:$0xff]  }
  0xb7   : > { %1968 = vmatpush1.bf16.msra.mxu1 %v2565_v26  ;;  %1928 = vmatprep.subr.bf16.mxu0 %v2570_v27  ;;  %v2655_v26 = vld [vmem:[%s3149_s13 + $0x380] ss:$8 sps:$4 sm:$0xff]   ;;  %v2662_v27 = vld [vmem:[%s3149_s13 + $0x474] ss:$8 sps:$4 sm:$0xff]  }
  0xb8   : > { %1969 = vmatprep.subr.bf16.mxu1 %v2573_v28  ;;  %1958 = vmatprep.mubr.bf16.mxu0 %v2248_v52  ;;  %v2247_v28 = vcombine.low %v3245_v49, %v3245_v49 }
  0xb9   : > { %1999 = vmatprep.mubr.bf16.mxu1 %v2250_v55 }
  0xba   : > { %1929 = vmatpush1.bf16.msra.mxu0 %v2568_v29  ;;  %v2249_v29 = vcombine.low %v3252_v53, %v3252_v53 }
  0xbb   : > { %1970 = vmatpush1.bf16.msra.mxu1 %v2571_v30  ;;  %1930 = vmatprep.subr.bf16.mxu0 %v2576_v31  ;;  %v2660_v30 = vld [vmem:[%s3149_s13 + $0x470] ss:$8 sps:$4 sm:$0xff]   ;;  %v2667_v31 = vld [vmem:[%s3149_s13 + $0x464] ss:$8 sps:$4 sm:$0xff]  }
  0xbc   : > { %1971 = vmatprep.subr.bf16.mxu1 %v2579_v32  ;;  %v2665_v32 = vld [vmem:[%s3149_s13 + $0x460] ss:$8 sps:$4 sm:$0xff]  }
  0xbe   : > { %1931 = vmatpush1.bf16.msra.mxu0 %v2574_v33  ;;  %v2744_v33 = vmov 0  }
  0xbf   : > { %1972 = vmatpush1.bf16.msra.mxu1 %v2577_v34  ;;  %1932 = vmatprep.subr.bf16.mxu0 %v2582_v35  ;;  %v2670_v34 = vld [vmem:[%s3149_s13 + $0x454] ss:$8 sps:$4 sm:$0xff]   ;;  %v2668_v35 = vld [vmem:[%s3149_s13 + $0x450] ss:$8 sps:$4 sm:$0xff]  }
  0xc0   : > { %1973 = vmatprep.subr.bf16.mxu1 %v2585_v36  ;;  %v2673_v36 = vld [vmem:[%s3149_s13 + $0x444] ss:$8 sps:$4 sm:$0xff]  }
  0xc2   : > { %1933 = vmatpush1.bf16.msra.mxu0 %v2580_v37  ;;  %v2671_v37 = vld [vmem:[%s3149_s13 + $0x440] ss:$8 sps:$4 sm:$0xff]  }
  0xc3   : > { %1974 = vmatpush1.bf16.msra.mxu1 %v2583_v38  ;;  %1934 = vmatprep.subr.bf16.mxu0 %v2588_v39  ;;  %v2676_v38 = vld [vmem:[%s3149_s13 + $0x434] ss:$8 sps:$4 sm:$0xff]   ;;  %v2674_v39 = vld [vmem:[%s3149_s13 + $0x430] ss:$8 sps:$4 sm:$0xff]  }
  0xc4   : > { %1975 = vmatprep.subr.bf16.mxu1 %v2591_v40  ;;  %v2679_v40 = vld [vmem:[%s3149_s13 + $0x424] ss:$8 sps:$4 sm:$0xff]  }
  0xc6   : > { %1935 = vmatpush1.bf16.msra.mxu0 %v2586_v41  ;;  %v2677_v41 = vld [vmem:[%s3149_s13 + $0x420] ss:$8 sps:$4 sm:$0xff]  }
  0xc7   : > { %1976 = vmatpush1.bf16.msra.mxu1 %v2589_v42  ;;  %1936 = vmatprep.subr.bf16.mxu0 %v2594_v43  ;;  %v2682_v42 = vld [vmem:[%s3149_s13 + $0x414] ss:$8 sps:$4 sm:$0xff]   ;;  %v2680_v43 = vld [vmem:[%s3149_s13 + $0x410] ss:$8 sps:$4 sm:$0xff]  }
  0xc8   : > { %1977 = vmatprep.subr.bf16.mxu1 %v2597_v44  ;;  %v2685_v44 = vld [vmem:[%s3149_s13 + $0x404] ss:$8 sps:$4 sm:$0xff]  }
  0xca   : > { %1937 = vmatpush1.bf16.msra.mxu0 %v2592_v45  ;;  %v2683_v45 = vld [vmem:[%s3149_s13 + $0x400] ss:$8 sps:$4 sm:$0xff]  }
  0xcb   : > { %1978 = vmatpush1.bf16.msra.mxu1 %v2595_v46  ;;  %1938 = vmatprep.subr.bf16.mxu0 %v2600_v47  ;;  %v2686_v46 = vld [vmem:[%s3132_s30 + $0x20] ss:$0 sps:$4 sm:$0xff]  }
  0xcc   : > { %1979 = vmatprep.subr.bf16.mxu1 %v2603_v48 }
  0xce   : > { %1939 = vmatpush1.bf16.msra.mxu0 %v2598_v50 }
  0xcf   : > { %1980 = vmatpush1.bf16.msra.mxu1 %v2601_v51  ;;  %1940 = vmatprep.subr.bf16.mxu0 %v2606_v54 }
  0xd0   : > { %1981 = vmatprep.subr.bf16.mxu1 %v2609_v56 }
  0xd2   : > { %1941 = vmatpush1.bf16.msra.mxu0 %v2604_v57 }
  0xd3   : > { %1982 = vmatpush1.bf16.msra.mxu1 %v2607_v58  ;;  %1942 = vmatprep.subr.bf16.mxu0 %v2612_v59 }
  0xd4   : > { %1983 = vmatprep.subr.bf16.mxu1 %v2615_v60 }
  0xd6   : > { %1943 = vmatpush2.bf16.msra.mxu0 %v2610_v61 }
  0xd7   : > { %1984 = vmatpush2.bf16.msra.mxu1 %v2613_v62  ;;  %1944 = vmatprep.subr.bf16.mxu0 %v2618_v63 }
  0xd8   : > { %1985 = vmatprep.subr.bf16.mxu1 %v2621_v0 }
  0xda   : > { %1945 = vmatpush2.bf16.msra.mxu0 %v2616_v1 }
  0xdb   : > { %1986 = vmatpush2.bf16.msra.mxu1 %v2619_v2  ;;  %1946 = vmatprep.subr.bf16.mxu0 %v2624_v3 }
  0xdc   : > { %1987 = vmatprep.subr.bf16.mxu1 %v2627_v4  ;;  %v941_v4 = vld [vmem:[#allocation2] sm:$0xff] }
  0xde   : > { %1947 = vmatpush2.bf16.msra.mxu0 %v2622_v5 }
  0xdf   : > { %1988 = vmatpush2.bf16.msra.mxu1 %v2625_v6  ;;  %1948 = vmatprep.subr.bf16.mxu0 %v2630_v7 }
  0xe0   : > { %1989 = vmatprep.subr.bf16.mxu1 %v2633_v8  ;;  %v942_v8 = vld [vmem:[#allocation2 + $0x8] sm:$0xff] }
  0xe2   : > { %1949 = vmatpush2.bf16.msra.mxu0 %v2628_v9 }
  0xe3   : > { %1990 = vmatpush2.bf16.msra.mxu1 %v2631_v10  ;;  %1950 = vmatprep.subr.bf16.mxu0 %v2636_v11 }
  0xe4   : > { %1991 = vmatprep.subr.bf16.mxu1 %v2639_v12 }
  0xe6   : > { %1951 = vmatpush2.bf16.msra.mxu0 %v2634_v13 }
  0xe7   : > { %1992 = vmatpush2.bf16.msra.mxu1 %v2637_v14  ;;  %1952 = vmatprep.subr.bf16.mxu0 %v2642_v15 }
  0xe8   : > { %1993 = vmatprep.subr.bf16.mxu1 %v2645_v16 }
  0xea   : > { %1953 = vmatpush2.bf16.msra.mxu0 %v2640_v17 }
  0xeb   : > { %1994 = vmatpush2.bf16.msra.mxu1 %v2643_v18  ;;  %1954 = vmatprep.subr.bf16.mxu0 %v2648_v19 }
  0xec   : > { %1995 = vmatprep.subr.bf16.mxu1 %v2651_v20 }
  0xee   : > { %1955 = vmatpush2.bf16.msra.mxu0 %v2646_v21 }
  0xef   : > { %1996 = vmatpush2.bf16.msra.mxu1 %v2649_v22  ;;  %1956 = vmatprep.subr.bf16.mxu0 %v2654_v23 }
  0xf0   : > { %1997 = vmatprep.subr.bf16.mxu1 %v2657_v24 }
  0xf2   : > { %1957 = vmatpush2.bf16.msra.mxu0 %v2652_v25 }
  0xf3   : > { %1998 = vmatpush2.bf16.msra.mxu1 %v2655_v26  ;;  %2008 = vmatprep.subr.bf16.mxu0 %v2662_v27 }
  0xf5   : > { %1959 = vmatmul.mubr.bf16.vlgmr.msra.gmra.mxu0 %v2247_v28 }
  0xf6   : > { %2000 = vmatmul.mubr.bf16.vlgmr.msra.gmra.mxu1 %v2249_v29  ;;  %2009 = vmatpush1.bf16.msra.mxu0 %v2660_v30 }
  0xf7   : > { %2040 = vmatprep.mubr.bf16.mxu0 %v2744_v33  ;;  %2010 = vmatprep.subr.bf16.mxu0 %v2667_v31 }
  0xfa   : > { %2011 = vmatpush1.bf16.msra.mxu0 %v2665_v32 }
  0xfb   : > { %2012 = vmatprep.subr.bf16.mxu0 %v2670_v34 }
  0xfe   : > { %2013 = vmatpush1.bf16.msra.mxu0 %v2668_v35 }
  0xff   : > { %2014 = vmatprep.subr.bf16.mxu0 %v2673_v36 }
 0x102   : > { %2015 = vmatpush1.bf16.msra.mxu0 %v2671_v37 }
 0x103   : > { %2016 = vmatprep.subr.bf16.mxu0 %v2676_v38 }
 0x106   : > { %2017 = vmatpush1.bf16.msra.mxu0 %v2674_v39 }
 0x107   : > { %2018 = vmatprep.subr.bf16.mxu0 %v2679_v40 }
 0x10a   : > { %2019 = vmatpush1.bf16.msra.mxu0 %v2677_v41 }
 0x10b   : > { %2020 = vmatprep.subr.bf16.mxu0 %v2682_v42 }
 0x10e   : > { %2021 = vmatpush1.bf16.msra.mxu0 %v2680_v43 }
 0x10f   : > { %2022 = vmatprep.subr.bf16.mxu0 %v2685_v44 }
 0x112   : > { %2023 = vmatpush1.bf16.msra.mxu0 %v2683_v45 }
 0x115   : > { %2041 = vmatmul.mubr.bf16.vlgmr.msra.gmra.mxu0 %v2686_v46 }
 0x175   : > { %v1878_v47 = vpop.f32.mrf.mxu0 }
 0x176   : > { %v1919_v48 = vpop.f32.mrf.mxu1 }
 0x177   : > { %v1920_v49 = vadd.f32 %v1919_v48, %v1878_v47  ;;  %v1880_v50 = vpop.f32.mrf.mxu0 }
 0x178   : > { %v1921_v51 = vpop.f32.mrf.mxu1 }
 0x179   : > { %v1922_v52 = vadd.f32 %v1921_v51, %v1880_v50  ;;  %v1882_v53 = vpop.f32.mrf.mxu0 }
 0x17a   : > { %v1923_v54 = vpop.f32.mrf.mxu1 }
 0x17b   : > { %v1883_v55 = vpop.f32.mrf.mxu0 }
 0x17c   : > { %v1924_v56 = vpop.f32.mrf.mxu1 }
 0x1b5   : > { %v1960_v57 = vpop.f32.mrf.mxu0 }
 0x1b6   : > { %v2001_v58 = vpop.f32.mrf.mxu1  ;;  %v1961_v1 = vadd.f32 %v1960_v57, %v1920_v49 }
 0x1b7   : > { %v1962_v59 = vpop.f32.mrf.mxu0 }
 0x1b8   : > { %v2003_v60 = vpop.f32.mrf.mxu1  ;;  %v1963_v2 = vadd.f32 %v1962_v59, %v1922_v52  ;;  %v2002_v3 = vadd.f32 %v2001_v58, %v1961_v1 }
 0x1b9   : > { %v1964_v61 = vpop.f32.mrf.mxu0 }
 0x1ba   : > { %v2005_v62 = vpop.f32.mrf.mxu1  ;;  %v2004_v6 = vadd.f32 %v2003_v60, %v1963_v2 }
 0x1bb   : > { %v1965_v63 = vpop.f32.mrf.mxu0 }
 0x1bc   : > { %v2006_v0 = vpop.f32.mrf.mxu1 }
 0x1d5   : > { %v2042_v5 = vpop.f32.mrf.mxu0 }
 0x1d6   : > { %v2043_v7 = vadd.f32 %v2042_v5, %v2002_v3 }
 0x1d7   : > { %v2044_v9 = vpop.f32.mrf.mxu0 }
 0x1d8   : > { %v2049_v10 = vadd.f32 %v2043_v7, %v941_v4  ;;  %v2045_v11 = vadd.f32 %v2044_v9, %v2004_v6  ;;  %2056 = sbr.rel (%p2396_p13) target bundleno = 492 (0x1ec), region = 82 }
 0x1d9   : > { %v2046_v12 = vpop.f32.mrf.mxu0 }
 0x1da   : > { %2051 = vst [vmem:[#allocation2] sm:$0xff] %v2049_v10  ;;  %v2050_v13 = vadd.f32 %v2045_v11, %v942_v8 }
 0x1db   : > { %v2047_v14 = vpop.f32.mrf.mxu0 }
 0x1dc   : > { %2052 = vst [vmem:[#allocation2 + $0x8] sm:$0xff] %v2050_v13 }
 0x1dd   : > { %v2061_v15 = vlaneseq  ;;  %v2059_v17 = vld [vmem:[%s912_s15] sm:$0x3] }
 0x1de   : > { %v2073_v18 = vld [vmem:[%s3142_s9] sm:$0xff] }
 0x1df   : > { %v2062_v16 = vshrl.u32 %v2061_v15, 7  ;;  %v2074_v25 = vunpack.c.l.bf16 %v2073_v18  ;;  %v2075_v26 = vunpack.c.h.bf16 %v2073_v18 }
 0x1e1   : > { %v2063_v19 = vsub.s32 0, %v2062_v16  ;;  %v2067_v20 = vsub.s32 1, %v2062_v16  ;;  %v2057_v21 = vld [vmem:[#allocation2] sm:$0xff] }
 0x1e3   : > { %v2058_v22 = vld [vmem:[#allocation2 + $0x8] sm:$0xff]  ;;  %v2064_v23 = vrot.slane %v2059_v17, %v2063_v19  ;;  %v2068_v24 = vrot.slane %v2059_v17, %v2067_v20 }
 0x1e5   : > { %v2071_v27 = vadd.f32 %v2064_v23, %v2057_v21  ;;  %v2072_v28 = vadd.f32 %v2068_v24, %v2058_v22 }
 0x1e7   : > { %v2076_v29 = vadd.f32 %v2074_v25, %v2071_v27  ;;  %v2077_v30 = vadd.f32 %v2075_v26, %v2072_v28 }
 0x1e9   : > { %v2401_v31 = vpack.c.bf16 %v2077_v30, %v2076_v29 }
 0x1eb   : > { %2086 = vst [vmem:[%s3147_s12] sm:$0xff] %v2401_v31 }
 0x1ec PF: > { %s14_s21 = sadd.s32 1, %s2741_s21   ;;  %s3347_s15 = smov %s2721_s16 }
 0x1ed   : > { %p11_p0 = scmp.ge.s32.totalorder %s14_s21, 6   ;;  %s3348_s16 = smov %s2821_s28 }
 0x1ee   : > { %s3349_s17 = smov %s2733_s19  ;;  %s3350_s18 = smov %s2737_s20 }
 0x1ef   : > { %s3351_s19 = smov %s3354_s22  ;;  %s3352_s20 = smov %s3358_s23 }
 0x1f0   :  { %13 = sbr.rel (!%p11_p0) target bundleno = 4 (0x4), region = 126 }

// kernel: custom_react_forward.15
= control target key start
LH: loop header
LB: loop body
LE: loop exit
PB: predicated region body
PF: predicated region fallthrough
CT: control target
= control target key end

     0   :  { %vm34_vm0 = vcmask 1043456   ;;  %s768_s0 = inlined_call_operand.vmem [shape: bf16[2,4,512], index: 0, kind: input, shape index: {}]   ;;  %s769_s1 = inlined_call_operand.vmem [shape: bf16[512,128], index: 1, kind: input, shape index: {}]   ;;  %s770_s2 = inlined_call_operand.vmem [shape: f32[1,128], index: 2, kind: input, shape index: {}]   ;;  %s771_s3 = inlined_call_operand.hbm [shape: f32[2,128], index: 3, kind: output, shape index: {}]  }
   0x1   :  { %v573_v0 = vld [vmem:[%s769_s1 + $0x78] sm:$0xff]   ;;  %v577_v4 = vld [vmem:[%s769_s1 + $0x70] sm:$0xff]   ;;  %v581_v8 = vld [vmem:[%s769_s1 + $0x68] sm:$0xff]  }
   0x2   :  { %v574_v1 = vld [vmem:[%s769_s1 + $0xf8] sm:$0xff]   ;;  %528 = vmatprep.subr.bf16.mxu0 %v573_v0  ;;  %v578_v5 = vld [vmem:[%s769_s1 + $0xf0] sm:$0xff]   ;;  %v582_v9 = vld [vmem:[%s769_s1 + $0xe8] sm:$0xff]  }
   0x3   :  { %v575_v2 = vld [vmem:[%s769_s1 + $0x38] sm:$0xff]   ;;  %550 = vmatprep.subr.bf16.mxu1 %v574_v1  ;;  %v579_v6 = vld [vmem:[%s769_s1 + $0x30] sm:$0xff]   ;;  %v583_v10 = vld [vmem:[%s769_s1 + $0x28] sm:$0xff]  }
   0x4   :  { %v576_v3 = vld [vmem:[%s769_s1 + $0xb8] sm:$0xff]   ;;  %529 = vmatpush3.bf16.msra.mxu0 %v575_v2  ;;  %v580_v7 = vld [vmem:[%s769_s1 + $0xb0] sm:$0xff]   ;;  %v584_v11 = vld [vmem:[%s769_s1 + $0xa8] sm:$0xff]  }
   0x5   :  { %551 = vmatpush3.bf16.msra.mxu1 %v576_v3  ;;  %530 = vmatprep.subr.bf16.mxu0 %v577_v4  ;;  %v585_v12 = vld [vmem:[%s769_s1 + $0x60] sm:$0xff]   ;;  %v589_v16 = vld [vmem:[%s769_s1 + $0x58] sm:$0xff]   ;;  %v593_v20 = vld [vmem:[%s769_s1 + $0x50] sm:$0xff]  }
   0x6   :  { %552 = vmatprep.subr.bf16.mxu1 %v578_v5  ;;  %v586_v13 = vld [vmem:[%s769_s1 + $0xe0] sm:$0xff]   ;;  %v590_v17 = vld [vmem:[%s769_s1 + $0xd8] sm:$0xff]   ;;  %v594_v21 = vld [vmem:[%s769_s1 + $0xd0] sm:$0xff]  }
   0x7   :  { %v587_v14 = vld [vmem:[%s769_s1 + $0x20] sm:$0xff]   ;;  %v591_v18 = vld [vmem:[%s769_s1 + $0x18] sm:$0xff]   ;;  %v595_v22 = vld [vmem:[%s769_s1 + $0x10] sm:$0xff]  }
   0x8   :  { %531 = vmatpush3.bf16.msra.mxu0 %v579_v6  ;;  %v588_v15 = vld [vmem:[%s769_s1 + $0xa0] sm:$0xff]   ;;  %v592_v19 = vld [vmem:[%s769_s1 + $0x98] sm:$0xff]   ;;  %v596_v23 = vld [vmem:[%s769_s1 + $0x90] sm:$0xff]  }
   0x9   :  { %553 = vmatpush3.bf16.msra.mxu1 %v580_v7  ;;  %532 = vmatprep.subr.bf16.mxu0 %v581_v8  ;;  %v597_v24 = vld [vmem:[%s769_s1 + $0x48] sm:$0xff]   ;;  %v601_v28 = vld [vmem:[%s769_s1 + $0x40] sm:$0xff]  }
   0xa   :  { %554 = vmatprep.subr.bf16.mxu1 %v582_v9  ;;  %v598_v25 = vld [vmem:[%s769_s1 + $0xc8] sm:$0xff]   ;;  %v602_v29 = vld [vmem:[%s769_s1 + $0xc0] sm:$0xff]  }
   0xb   :  { %v599_v26 = vld [vmem:[%s769_s1 + $0x8] sm:$0xff]   ;;  %v603_v30 = vld [vmem:[%s769_s1] sm:$0xff]  }
   0xc   :  { %533 = vmatpush3.bf16.msra.mxu0 %v583_v10  ;;  %v600_v27 = vld [vmem:[%s769_s1 + $0x88] sm:$0xff]   ;;  %v604_v31 = vld [vmem:[%s769_s1 + $0x80] sm:$0xff]  }
   0xd   :  { %555 = vmatpush3.bf16.msra.mxu1 %v584_v11  ;;  %534 = vmatprep.subr.bf16.mxu0 %v585_v12  ;;  %v16_v32 = vld [vmem:[%s768_s0] sm:$0xff]  ;;  %v17_v33 = vld [vmem:[%s768_s0 + $0x8] sm:$0xff] }
   0xe   :  { %556 = vmatprep.subr.bf16.mxu1 %v586_v13 }
  0x10   :  { %535 = vmatpush3.bf16.msra.mxu0 %v587_v14 }
  0x11   :  { %557 = vmatpush3.bf16.msra.mxu1 %v588_v15  ;;  %536 = vmatprep.subr.bf16.mxu0 %v589_v16 }
  0x12   :  { %558 = vmatprep.subr.bf16.mxu1 %v590_v17 }
  0x14   :  { %537 = vmatpush3.bf16.msra.mxu0 %v591_v18 }
  0x15   :  { %559 = vmatpush3.bf16.msra.mxu1 %v592_v19  ;;  %538 = vmatprep.subr.bf16.mxu0 %v593_v20 }
  0x16   :  { %560 = vmatprep.subr.bf16.mxu1 %v594_v21 }
  0x18   :  { %539 = vmatpush3.bf16.msra.mxu0 %v595_v22 }
  0x19   :  { %561 = vmatpush3.bf16.msra.mxu1 %v596_v23  ;;  %540 = vmatprep.subr.bf16.mxu0 %v597_v24 }
  0x1a   :  { %562 = vmatprep.subr.bf16.mxu1 %v598_v25 }
  0x1c   :  { %541 = vmatpush3.bf16.msra.mxu0 %v599_v26 }
  0x1d   :  { %563 = vmatpush3.bf16.msra.mxu1 %v600_v27  ;;  %542 = vmatprep.subr.bf16.mxu0 %v601_v28 }
  0x1e   :  { %564 = vmatprep.subr.bf16.mxu1 %v602_v29 }
  0x20   :  { %543 = vmatpush3.bf16.msra.mxu0 %v603_v30 }
  0x21   :  { %8 = vsyncpa [#allocation3], 0  ;;  %565 = vmatpush3.bf16.msra.mxu1 %v604_v31  ;;  %v18_v34 = vunpack.c.l.bf16 %v16_v32  ;;  %v20_v35 = vunpack.c.l.bf16 %v17_v33  ;;  %v19_v36 = vunpack.c.h.bf16 %v16_v32  ;;  %v21_v37 = vunpack.c.h.bf16 %v17_v33  ;;  %s627_s26 = smov [#allocation2]  }
  0x22   :  { %vm195_vm1 = vcmask 1041409   ;;  %s487_s27 = sshll.u32 %s627_s26, 4  ;;  %s488_s27 = int_to_ptr.vmem [resolvable:$true] %s487_s27 }
  0x23   :  { %v26_v38 = vcombine.high %v18_v34, %v18_v34  ;;  %v28_v39 = vcombine.high %v20_v35, %v20_v35  ;;  %v27_v40 = vcombine.high %v19_v36, %v19_v36  ;;  %v29_v41 = vcombine.high %v21_v37, %v21_v37  ;;  %s605_s28 = scalar_lea.vmem %s488_s27, 32  ;;  %p610_p1 = scmp.lt.s32.totalorder %s488_s27, %s488_s27 }
  0x24   :  { %v35_v42 = vsel %vm34_vm0, %v18_v34, 0.0  ;;  %v63_v43 = vsel %vm34_vm0, %v20_v35, 0.0  ;;  %v49_v44 = vsel %vm34_vm0, %v19_v36, 0.0  ;;  %v77_v45 = vsel %vm34_vm0, %v21_v37, 0.0  ;;  %p606_p0 = scmp.ne.s32.totalorder %s488_s27, %s605_s28  ;;  %p611_p2 = scmp.lt.s32.totalorder %s605_s28, %s605_s28 }
  0x25   :  { %v42_v46 = vsel %vm34_vm0, %v26_v38, 0.0  ;;  %v70_v47 = vsel %vm34_vm0, %v28_v39, 0.0  ;;  %v56_v48 = vsel %vm34_vm0, %v27_v40, 0.0  ;;  %v84_v49 = vsel %vm34_vm0, %v29_v41, 0.0 }
  0x26   :  { %v43_v50 = vrot.slane %v42_v46, 4  ;;  %v71_v51 = vrot.slane %v70_v47, 4  ;;  %v57_v52 = vrot.slane %v56_v48, 4  ;;  %v85_v53 = vrot.slane %v84_v49, 4  ;;  %p612_p3 = por %p611_p2, %p610_p1 }
  0x27   :  { %v36_v54 = vrot.slane %v35_v42, 4  ;;  %v64_v55 = vrot.slane %v63_v43, 4  ;;  %v50_v56 = vrot.slane %v49_v44, 4  ;;  %v78_v57 = vrot.slane %v77_v45, 4 }
  0x28   :  { %v44_v58 = vadd.f32 %v43_v50, %v42_v46  ;;  %v72_v59 = vadd.f32 %v71_v51, %v70_v47  ;;  %v58_v60 = vadd.f32 %v57_v52, %v56_v48  ;;  %v86_v61 = vadd.f32 %v85_v53, %v84_v49  ;;  %p613_p4 = pnand %p612_p3, %p606_p0 }
  0x29   :  { %v37_v62 = vadd.f32 %v36_v54, %v35_v42  ;;  %v65_v63 = vadd.f32 %v64_v55, %v63_v43  ;;  %v51_v0 = vadd.f32 %v50_v56, %v49_v44  ;;  %v79_v1 = vadd.f32 %v78_v57, %v77_v45 }
  0x2a   :  { %v45_v2 = vrot.slane %v44_v58, 2  ;;  %v73_v3 = vrot.slane %v72_v59, 2  ;;  %v59_v4 = vrot.slane %v58_v60, 2  ;;  %v87_v5 = vrot.slane %v86_v61, 2 }
  0x2b   :  { %v38_v6 = vrot.slane %v37_v62, 2  ;;  %v66_v7 = vrot.slane %v65_v63, 2  ;;  %v52_v8 = vrot.slane %v51_v0, 2  ;;  %v80_v9 = vrot.slane %v79_v1, 2 }
  0x2c   :  { %v46_v10 = vadd.f32 %v45_v2, %v44_v58  ;;  %v74_v11 = vadd.f32 %v73_v3, %v72_v59  ;;  %v60_v12 = vadd.f32 %v59_v4, %v58_v60  ;;  %v88_v13 = vadd.f32 %v87_v5, %v86_v61  ;;  %v495_v4 = vld [vmem:[%s770_s2] ss:$0 sm:$0xff] }
  0x2d   :  { %v39_v14 = vadd.f32 %v38_v6, %v37_v62  ;;  %v67_v15 = vadd.f32 %v66_v7, %v65_v63  ;;  %v53_v16 = vadd.f32 %v52_v8, %v51_v0  ;;  %v81_v17 = vadd.f32 %v80_v9, %v79_v1 }
  0x2e   :  { %v47_v18 = vrot.slane %v46_v10, 1  ;;  %v75_v19 = vrot.slane %v74_v11, 1  ;;  %v61_v20 = vrot.slane %v60_v12, 1  ;;  %v89_v21 = vrot.slane %v88_v13, 1 }
  0x2f   :  { %v40_v22 = vrot.slane %v39_v14, 1  ;;  %v68_v23 = vrot.slane %v67_v15, 1  ;;  %v54_v24 = vrot.slane %v53_v16, 1  ;;  %v82_v25 = vrot.slane %v81_v17, 1 }
  0x30   :  { %v48_v26 = vadd.f32 %v47_v18, %v46_v10  ;;  %v76_v27 = vadd.f32 %v75_v19, %v74_v11  ;;  %v62_v28 = vadd.f32 %v61_v20, %v60_v12  ;;  %v90_v29 = vadd.f32 %v89_v21, %v88_v13 }
  0x31   :  { %v41_v30 = vadd.f32 %v40_v22, %v39_v14  ;;  %v69_v31 = vadd.f32 %v68_v23, %v67_v15  ;;  %v55_v32 = vadd.f32 %v54_v24, %v53_v16  ;;  %v83_v33 = vadd.f32 %v82_v25, %v81_v17 }
  0x32   :  { %v93_v34 = vmul.f32 0.25, %v48_v26  ;;  %v97_v35 = vmul.f32 0.25, %v76_v27  ;;  %v95_v36 = vmul.f32 0.25, %v62_v28  ;;  %v99_v37 = vmul.f32 0.25, %v90_v29 }
  0x33   :  { %v92_v38 = vmul.f32 0.25, %v41_v30  ;;  %v96_v39 = vmul.f32 0.25, %v69_v31  ;;  %v94_v40 = vmul.f32 0.25, %v55_v32  ;;  %v98_v41 = vmul.f32 0.25, %v83_v33 }
  0x34   :  { %v101_v42 = vpack.c.bf16 %v93_v34, %v93_v34  ;;  %v105_v43 = vpack.c.bf16 %v97_v35, %v97_v35  ;;  %v103_v44 = vpack.c.bf16 %v95_v36, %v95_v36  ;;  %v107_v45 = vpack.c.bf16 %v99_v37, %v99_v37 }
  0x35   :  { %v100_v46 = vpack.c.bf16 %v92_v38, %v92_v38  ;;  %v104_v47 = vpack.c.bf16 %v96_v39, %v96_v39  ;;  %v102_v48 = vpack.c.bf16 %v94_v40, %v94_v40  ;;  %v106_v49 = vpack.c.bf16 %v98_v41, %v98_v41 }
  0x36   :  { %v188_v50 = vunpack.c.l.b16 %v101_v42  ;;  %v192_v51 = vunpack.c.l.b16 %v105_v43  ;;  %v190_v52 = vunpack.c.l.b16 %v103_v44  ;;  %v194_v53 = vunpack.c.l.b16 %v107_v45 }
  0x37   :  { %v187_v54 = vunpack.c.l.b16 %v100_v46  ;;  %v191_v55 = vunpack.c.l.b16 %v104_v47  ;;  %v189_v56 = vunpack.c.l.b16 %v102_v48  ;;  %v193_v57 = vunpack.c.l.b16 %v106_v49 }
  0x38   :  { %v197_v58 = vsel %vm195_vm1, %v192_v51, %v188_v50  ;;  %v199_v59 = vsel %vm195_vm1, %v194_v53, %v190_v52 }
  0x39   :  { %v201_v60 = vpack.c.b16 %v197_v58, %v197_v58  ;;  %v203_v61 = vpack.c.b16 %v199_v59, %v199_v59  ;;  %v196_v62 = vsel %vm195_vm1, %v191_v55, %v187_v54  ;;  %v198_v63 = vsel %vm195_vm1, %v193_v57, %v189_v56 }
  0x3a   :  { %v200_v0 = vpack.c.b16 %v196_v62, %v196_v62  ;;  %v202_v1 = vpack.c.b16 %v198_v63, %v198_v63 }
  0x3b   :  { %432 = vmatprep.mubr.bf16.mxu0 %v201_v60  ;;  %472 = vmatprep.mubr.bf16.mxu1 %v203_v61 }
  0x3c   :  { %433 = vmatmul.mubr.bf16.vlgmr.msra.gmra.mxu0 %v200_v0  ;;  %473 = vmatmul.mubr.bf16.vlgmr.msra.gmra.mxu1 %v202_v1 }
  0xfc   :  { %v544_v2 = vpop.f32.mrf.mxu0  ;;  %v566_v3 = vpop.f32.mrf.mxu1 }
  0xfe   :  { %v545_v5 = vpop.f32.mrf.mxu0  ;;  %v567_v6 = vpop.f32.mrf.mxu1 }
  0xff   :  { %v546_v7 = vadd.f32 %v545_v5, %v544_v2  ;;  %v568_v11 = vadd.f32 %v567_v6, %v566_v3 }
 0x100   :  { %v547_v8 = vpop.f32.mrf.mxu0  ;;  %v569_v9 = vpop.f32.mrf.mxu1 }
 0x101   :  { %v435_v10 = vadd.f32 %v546_v7, %v495_v4 }
 0x102   :  { %v548_v12 = vpop.f32.mrf.mxu0  ;;  %v570_v13 = vpop.f32.mrf.mxu1 }
 0x103   :  { %v475_v14 = vadd.f32 %v568_v11, %v435_v10 }
 0x105   :  { %480 = vst [vmem:[#allocation2] sm:$0x3] %v475_v14 }
 0x106   :  { %616 = shalt.err (!%p613_p4)
}
 0x107   :  { %490 = dma.vmem_to_hbm [thread:$0]  %s488_s27, 32, %s771_s3, [#allocation3]  }
 0x108   :  { %625 = dma.done.wait [#allocation3], 32  }
 0x109   :  { %626 = vsyncadd [#allocation3], 4294967264 }
 0x10a   :  { %494 = vsyncpa [#allocation3], 1 }

// kernel: custom_react_forward.14
= control target key start
LH: loop header
LB: loop body
LE: loop exit
PB: predicated region body
PF: predicated region fallthrough
CT: control target
= control target key end

     0   :  { %s3425_s15 = smov 0   ;;  %s3427_s16 = smov 0   ;;  %s4154_s0 = inlined_call_operand.vmem [shape: bf16[8,4608], index: 0, kind: input, shape index: {}]   ;;  %s4155_s1 = inlined_call_operand.vmem [shape: bf16[4608,512], index: 1, kind: input, shape index: {}]   ;;  %s4156_s2 = inlined_call_operand.vmem [shape: f32[1,512], index: 2, kind: input, shape index: {}]   ;;  %s4157_s3 = inlined_call_operand.vmem [shape: bf16[8,512], index: 3, kind: input, shape index: {}]   ;;  %s4158_s4 = inlined_call_operand.vmem [shape: bf16[8,512], index: 4, kind: output, shape index: {}]  }
   0x1   :  { %s3429_s17 = smov 0   ;;  %s3431_s18 = smov 0  }
   0x2   :  { %s3433_s19 = smov 0   ;;  %s3435_s20 = smov 0  }
   0x3   :  { %s3437_s21 = smov 0  }
   0x4 LB: > { %s26_s22 = sadd.s32 1, %s3389_s19  ;;  %s29_s23 = sadd.s32 1, %s3393_s20  ;;  %s3397_s21 = sphi %s3437_s21, %s14_s21   ;;  %s3393_s20 = sphi %s3435_s20, %s4164_s20   ;;  %s3389_s19 = sphi %s3433_s19, %s4163_s19   ;;  %s3385_s18 = sphi %s3431_s18, %s4162_s18   ;;  %s3381_s17 = sphi %s3429_s17, %s4161_s17   ;;  %s3377_s16 = sphi %s3427_s16, %s4160_s16   ;;  %s3373_s15 = sphi %s3425_s15, %s4159_s15  }
   0x5   : > { %p27_p0 = scmp.ge.s32.totalorder %s26_s22, 3  ;;  %p77_p1 = scmp.ne.s32.totalorder %s3377_s16, %s3373_s15 }
   0x6   : > { %p78_p2 = scmp.eq.s32.totalorder %s3397_s21, 0  ;;  %s70_s27 = sadd.s32 1, %s3377_s16 }
   0x7   : > { %s4166_s22 = smov (%p27_p0, %s26_s22), 0  ;;  %s4168_s23 = smov (!%p27_p0, %s29_s23), %s3393_s20 }
   0x8   : > { %p79_p3 = por %p78_p2, %p77_p1  ;;  %p31_p4 = scmp.ge.s32.totalorder %s4168_s23, 2 }
   0x9   : > { %s65_s24 = ssub.s32 %s3389_s19, %s4166_s22  ;;  %p2762_p6 = scmp.ge.s32.totalorder %s3397_s21, 6 }
   0xa   : > { %s4170_s23 = smov (%p31_p4, %s4168_s23), 0 }
   0xb   : > { %s66_s25 = ssub.s32 %s3393_s20, %s4170_s23  ;;  %185 = sbr.rel (%p2762_p6) target bundleno = 120 (0x78), region = 16 }
   0xc   : > { %s67_s26 = sor.u32 %s66_s25, %s65_s24 }
   0xd   : > { %p68_p5 = scmp.eq.s32.totalorder %s67_s26, 0 }
   0xf   : > { %s3476_s28 = scalar_select %p68_p5, %s3377_s16, %s70_s27  }
  0x10   : > { %201 = sbr.rel (!%p79_p3) target bundleno = 120 (0x78), region = 24  ;;  %s203_s29 = sand.u32 (%p79_p3), 1, %s3377_s16  }
  0x11   : > { %s2984_s30 = smul.u32 (%p79_p3), 1536, %s203_s29  ;;  %s2763_s5 = sshll.u32 (%p79_p3), %s3393_s20, 1 }
  0x12   : > { %s2982_s6 = smul.u32 (%p79_p3), 768, %s3389_s19 }
  0x13   : > { %s3490_s12 = scalar_lea.vmem (%p79_p3), [#allocation3], %s2984_s30 }
  0x14   : > { %s209_s7 = sadd.s32 (%p79_p3), %s2982_s6, %s2763_s5 }
  0x15   : > { %s2765_s8 = sshll.u32 %s209_s7, 2 }
  0x16   : > { %s3485_s11 = scalar_lea.vmem %s4155_s1, %s2765_s8 }
  0x17   : > { %v622_v0 = vld [vmem:[%s3485_s11] sm:$0xff]  ;;  %v624_v1 = vld [vmem:[%s3485_s11 + $0x10] sm:$0xff] }
  0x18   : > { %v626_v2 = vld [vmem:[%s3485_s11 + $0x20] sm:$0xff]  ;;  %623 = vst [vmem:[%s3490_s12] sm:$0xff] %v622_v0  ;;  %625 = vst [vmem:[%s3490_s12 + $0x8] sm:$0xff] %v624_v1  ;;  %v628_v3 = vld [vmem:[%s3485_s11 + $0x30] sm:$0xff] }
  0x19   : > { %627 = vst [vmem:[%s3490_s12 + $0x10] sm:$0xff] %v626_v2  ;;  %v630_v4 = vld [vmem:[%s3485_s11 + $0x40] sm:$0xff]  ;;  %v632_v5 = vld [vmem:[%s3485_s11 + $0x50] sm:$0xff]  ;;  %629 = vst [vmem:[%s3490_s12 + $0x18] sm:$0xff] %v628_v3 }
  0x1a   : > { %631 = vst [vmem:[%s3490_s12 + $0x20] sm:$0xff] %v630_v4  ;;  %633 = vst [vmem:[%s3490_s12 + $0x28] sm:$0xff] %v632_v5  ;;  %v634_v6 = vld [vmem:[%s3485_s11 + $0x60] sm:$0xff]  ;;  %v636_v7 = vld [vmem:[%s3485_s11 + $0x70] sm:$0xff] }
  0x1b   : > { %v638_v8 = vld [vmem:[%s3485_s11 + $0x80] sm:$0xff]  ;;  %635 = vst [vmem:[%s3490_s12 + $0x30] sm:$0xff] %v634_v6  ;;  %637 = vst [vmem:[%s3490_s12 + $0x38] sm:$0xff] %v636_v7  ;;  %v640_v9 = vld [vmem:[%s3485_s11 + $0x90] sm:$0xff] }
  0x1c   : > { %639 = vst [vmem:[%s3490_s12 + $0x40] sm:$0xff] %v638_v8  ;;  %v642_v10 = vld [vmem:[%s3485_s11 + $0xa0] sm:$0xff]  ;;  %v644_v11 = vld [vmem:[%s3485_s11 + $0xb0] sm:$0xff]  ;;  %641 = vst [vmem:[%s3490_s12 + $0x48] sm:$0xff] %v640_v9 }
  0x1d   : > { %643 = vst [vmem:[%s3490_s12 + $0x50] sm:$0xff] %v642_v10  ;;  %645 = vst [vmem:[%s3490_s12 + $0x58] sm:$0xff] %v644_v11  ;;  %v646_v12 = vld [vmem:[%s3485_s11 + $0xc0] sm:$0xff]  ;;  %v648_v13 = vld [vmem:[%s3485_s11 + $0xd0] sm:$0xff] }
  0x1e   : > { %v650_v14 = vld [vmem:[%s3485_s11 + $0xe0] sm:$0xff]  ;;  %647 = vst [vmem:[%s3490_s12 + $0x60] sm:$0xff] %v646_v12  ;;  %649 = vst [vmem:[%s3490_s12 + $0x68] sm:$0xff] %v648_v13  ;;  %v652_v15 = vld [vmem:[%s3485_s11 + $0xf0] sm:$0xff] }
  0x1f   : > { %651 = vst [vmem:[%s3490_s12 + $0x70] sm:$0xff] %v650_v14  ;;  %v654_v16 = vld [vmem:[%s3485_s11 + $0x100] sm:$0xff]  ;;  %v656_v17 = vld [vmem:[%s3485_s11 + $0x110] sm:$0xff]  ;;  %653 = vst [vmem:[%s3490_s12 + $0x78] sm:$0xff] %v652_v15 }
  0x20   : > { %655 = vst [vmem:[%s3490_s12 + $0x80] sm:$0xff] %v654_v16  ;;  %657 = vst [vmem:[%s3490_s12 + $0x88] sm:$0xff] %v656_v17  ;;  %v658_v18 = vld [vmem:[%s3485_s11 + $0x120] sm:$0xff]  ;;  %v660_v19 = vld [vmem:[%s3485_s11 + $0x130] sm:$0xff] }
  0x21   : > { %v662_v20 = vld [vmem:[%s3485_s11 + $0x140] sm:$0xff]  ;;  %659 = vst [vmem:[%s3490_s12 + $0x90] sm:$0xff] %v658_v18  ;;  %661 = vst [vmem:[%s3490_s12 + $0x98] sm:$0xff] %v660_v19  ;;  %v664_v21 = vld [vmem:[%s3485_s11 + $0x150] sm:$0xff] }
  0x22   : > { %663 = vst [vmem:[%s3490_s12 + $0xa0] sm:$0xff] %v662_v20  ;;  %v666_v22 = vld [vmem:[%s3485_s11 + $0x160] sm:$0xff]  ;;  %v668_v23 = vld [vmem:[%s3485_s11 + $0x170] sm:$0xff]  ;;  %665 = vst [vmem:[%s3490_s12 + $0xa8] sm:$0xff] %v664_v21 }
  0x23   : > { %667 = vst [vmem:[%s3490_s12 + $0xb0] sm:$0xff] %v666_v22  ;;  %669 = vst [vmem:[%s3490_s12 + $0xb8] sm:$0xff] %v668_v23  ;;  %v670_v24 = vld [vmem:[%s3485_s11 + $0x180] sm:$0xff]  ;;  %v672_v25 = vld [vmem:[%s3485_s11 + $0x190] sm:$0xff] }
  0x24   : > { %v674_v26 = vld [vmem:[%s3485_s11 + $0x1a0] sm:$0xff]  ;;  %671 = vst [vmem:[%s3490_s12 + $0xc0] sm:$0xff] %v670_v24  ;;  %673 = vst [vmem:[%s3490_s12 + $0xc8] sm:$0xff] %v672_v25  ;;  %v676_v27 = vld [vmem:[%s3485_s11 + $0x1b0] sm:$0xff] }
  0x25   : > { %675 = vst [vmem:[%s3490_s12 + $0xd0] sm:$0xff] %v674_v26  ;;  %v678_v28 = vld [vmem:[%s3485_s11 + $0x1c0] sm:$0xff]  ;;  %v680_v29 = vld [vmem:[%s3485_s11 + $0x1d0] sm:$0xff]  ;;  %677 = vst [vmem:[%s3490_s12 + $0xd8] sm:$0xff] %v676_v27 }
  0x26   : > { %679 = vst [vmem:[%s3490_s12 + $0xe0] sm:$0xff] %v678_v28  ;;  %681 = vst [vmem:[%s3490_s12 + $0xe8] sm:$0xff] %v680_v29  ;;  %v682_v30 = vld [vmem:[%s3485_s11 + $0x1e0] sm:$0xff]  ;;  %v684_v31 = vld [vmem:[%s3485_s11 + $0x1f0] sm:$0xff] }
  0x27   : > { %v686_v32 = vld [vmem:[%s3485_s11 + $0x200] sm:$0xff]  ;;  %683 = vst [vmem:[%s3490_s12 + $0xf0] sm:$0xff] %v682_v30  ;;  %685 = vst [vmem:[%s3490_s12 + $0xf8] sm:$0xff] %v684_v31  ;;  %v688_v33 = vld [vmem:[%s3485_s11 + $0x210] sm:$0xff] }
  0x28   : > { %687 = vst [vmem:[%s3490_s12 + $0x100] sm:$0xff] %v686_v32  ;;  %v690_v34 = vld [vmem:[%s3485_s11 + $0x220] sm:$0xff]  ;;  %v692_v35 = vld [vmem:[%s3485_s11 + $0x230] sm:$0xff]  ;;  %689 = vst [vmem:[%s3490_s12 + $0x108] sm:$0xff] %v688_v33 }
  0x29   : > { %691 = vst [vmem:[%s3490_s12 + $0x110] sm:$0xff] %v690_v34  ;;  %693 = vst [vmem:[%s3490_s12 + $0x118] sm:$0xff] %v692_v35  ;;  %v694_v36 = vld [vmem:[%s3485_s11 + $0x240] sm:$0xff]  ;;  %v696_v37 = vld [vmem:[%s3485_s11 + $0x250] sm:$0xff] }
  0x2a   : > { %v698_v38 = vld [vmem:[%s3485_s11 + $0x260] sm:$0xff]  ;;  %695 = vst [vmem:[%s3490_s12 + $0x120] sm:$0xff] %v694_v36  ;;  %697 = vst [vmem:[%s3490_s12 + $0x128] sm:$0xff] %v696_v37  ;;  %v700_v39 = vld [vmem:[%s3485_s11 + $0x270] sm:$0xff] }
  0x2b   : > { %699 = vst [vmem:[%s3490_s12 + $0x130] sm:$0xff] %v698_v38  ;;  %v702_v40 = vld [vmem:[%s3485_s11 + $0x280] sm:$0xff]  ;;  %v704_v41 = vld [vmem:[%s3485_s11 + $0x290] sm:$0xff]  ;;  %701 = vst [vmem:[%s3490_s12 + $0x138] sm:$0xff] %v700_v39 }
  0x2c   : > { %703 = vst [vmem:[%s3490_s12 + $0x140] sm:$0xff] %v702_v40  ;;  %705 = vst [vmem:[%s3490_s12 + $0x148] sm:$0xff] %v704_v41  ;;  %v706_v42 = vld [vmem:[%s3485_s11 + $0x2a0] sm:$0xff]  ;;  %v708_v43 = vld [vmem:[%s3485_s11 + $0x2b0] sm:$0xff] }
  0x2d   : > { %v710_v44 = vld [vmem:[%s3485_s11 + $0x2c0] sm:$0xff]  ;;  %707 = vst [vmem:[%s3490_s12 + $0x150] sm:$0xff] %v706_v42  ;;  %709 = vst [vmem:[%s3490_s12 + $0x158] sm:$0xff] %v708_v43  ;;  %v712_v45 = vld [vmem:[%s3485_s11 + $0x2d0] sm:$0xff] }
  0x2e   : > { %711 = vst [vmem:[%s3490_s12 + $0x160] sm:$0xff] %v710_v44  ;;  %v714_v46 = vld [vmem:[%s3485_s11 + $0x2e0] sm:$0xff]  ;;  %v716_v47 = vld [vmem:[%s3485_s11 + $0x2f0] sm:$0xff]  ;;  %713 = vst [vmem:[%s3490_s12 + $0x168] sm:$0xff] %v712_v45 }
  0x2f   : > { %715 = vst [vmem:[%s3490_s12 + $0x170] sm:$0xff] %v714_v46  ;;  %717 = vst [vmem:[%s3490_s12 + $0x178] sm:$0xff] %v716_v47  ;;  %v718_v48 = vld [vmem:[%s3485_s11 + $0x300] sm:$0xff]  ;;  %v720_v49 = vld [vmem:[%s3485_s11 + $0x310] sm:$0xff] }
  0x30   : > { %v722_v50 = vld [vmem:[%s3485_s11 + $0x320] sm:$0xff]  ;;  %719 = vst [vmem:[%s3490_s12 + $0x180] sm:$0xff] %v718_v48  ;;  %721 = vst [vmem:[%s3490_s12 + $0x188] sm:$0xff] %v720_v49  ;;  %v724_v51 = vld [vmem:[%s3485_s11 + $0x330] sm:$0xff] }
  0x31   : > { %723 = vst [vmem:[%s3490_s12 + $0x190] sm:$0xff] %v722_v50  ;;  %v726_v52 = vld [vmem:[%s3485_s11 + $0x340] sm:$0xff]  ;;  %v728_v53 = vld [vmem:[%s3485_s11 + $0x350] sm:$0xff]  ;;  %725 = vst [vmem:[%s3490_s12 + $0x198] sm:$0xff] %v724_v51 }
  0x32   : > { %727 = vst [vmem:[%s3490_s12 + $0x1a0] sm:$0xff] %v726_v52  ;;  %729 = vst [vmem:[%s3490_s12 + $0x1a8] sm:$0xff] %v728_v53  ;;  %v730_v54 = vld [vmem:[%s3485_s11 + $0x360] sm:$0xff]  ;;  %v732_v55 = vld [vmem:[%s3485_s11 + $0x370] sm:$0xff] }
  0x33   : > { %v734_v56 = vld [vmem:[%s3485_s11 + $0x380] sm:$0xff]  ;;  %731 = vst [vmem:[%s3490_s12 + $0x1b0] sm:$0xff] %v730_v54  ;;  %733 = vst [vmem:[%s3490_s12 + $0x1b8] sm:$0xff] %v732_v55  ;;  %v736_v57 = vld [vmem:[%s3485_s11 + $0x390] sm:$0xff] }
  0x34   : > { %735 = vst [vmem:[%s3490_s12 + $0x1c0] sm:$0xff] %v734_v56  ;;  %v738_v58 = vld [vmem:[%s3485_s11 + $0x3a0] sm:$0xff]  ;;  %v740_v59 = vld [vmem:[%s3485_s11 + $0x3b0] sm:$0xff]  ;;  %737 = vst [vmem:[%s3490_s12 + $0x1c8] sm:$0xff] %v736_v57 }
  0x35   : > { %739 = vst [vmem:[%s3490_s12 + $0x1d0] sm:$0xff] %v738_v58  ;;  %741 = vst [vmem:[%s3490_s12 + $0x1d8] sm:$0xff] %v740_v59  ;;  %v742_v60 = vld [vmem:[%s3485_s11 + $0x3c0] sm:$0xff]  ;;  %v744_v61 = vld [vmem:[%s3485_s11 + $0x3d0] sm:$0xff] }
  0x36   : > { %v746_v62 = vld [vmem:[%s3485_s11 + $0x3e0] sm:$0xff]  ;;  %743 = vst [vmem:[%s3490_s12 + $0x1e0] sm:$0xff] %v742_v60  ;;  %745 = vst [vmem:[%s3490_s12 + $0x1e8] sm:$0xff] %v744_v61  ;;  %v748_v63 = vld [vmem:[%s3485_s11 + $0x3f0] sm:$0xff] }
  0x37   : > { %747 = vst [vmem:[%s3490_s12 + $0x1f0] sm:$0xff] %v746_v62  ;;  %v750_v0 = vld [vmem:[%s3485_s11 + $0x400] sm:$0xff]  ;;  %v752_v1 = vld [vmem:[%s3485_s11 + $0x410] sm:$0xff]  ;;  %749 = vst [vmem:[%s3490_s12 + $0x1f8] sm:$0xff] %v748_v63 }
  0x38   : > { %751 = vst [vmem:[%s3490_s12 + $0x200] sm:$0xff] %v750_v0  ;;  %753 = vst [vmem:[%s3490_s12 + $0x208] sm:$0xff] %v752_v1  ;;  %v754_v2 = vld [vmem:[%s3485_s11 + $0x420] sm:$0xff]  ;;  %v756_v3 = vld [vmem:[%s3485_s11 + $0x430] sm:$0xff] }
  0x39   : > { %v758_v4 = vld [vmem:[%s3485_s11 + $0x440] sm:$0xff]  ;;  %755 = vst [vmem:[%s3490_s12 + $0x210] sm:$0xff] %v754_v2  ;;  %757 = vst [vmem:[%s3490_s12 + $0x218] sm:$0xff] %v756_v3  ;;  %v760_v5 = vld [vmem:[%s3485_s11 + $0x450] sm:$0xff] }
  0x3a   : > { %759 = vst [vmem:[%s3490_s12 + $0x220] sm:$0xff] %v758_v4  ;;  %v762_v6 = vld [vmem:[%s3485_s11 + $0x460] sm:$0xff]  ;;  %v764_v7 = vld [vmem:[%s3485_s11 + $0x470] sm:$0xff]  ;;  %761 = vst [vmem:[%s3490_s12 + $0x228] sm:$0xff] %v760_v5 }
  0x3b   : > { %763 = vst [vmem:[%s3490_s12 + $0x230] sm:$0xff] %v762_v6  ;;  %765 = vst [vmem:[%s3490_s12 + $0x238] sm:$0xff] %v764_v7  ;;  %v766_v8 = vld [vmem:[%s3485_s11 + $0x480] sm:$0xff]  ;;  %v768_v9 = vld [vmem:[%s3485_s11 + $0x490] sm:$0xff] }
  0x3c   : > { %v770_v10 = vld [vmem:[%s3485_s11 + $0x4a0] sm:$0xff]  ;;  %767 = vst [vmem:[%s3490_s12 + $0x240] sm:$0xff] %v766_v8  ;;  %769 = vst [vmem:[%s3490_s12 + $0x248] sm:$0xff] %v768_v9  ;;  %v772_v11 = vld [vmem:[%s3485_s11 + $0x4b0] sm:$0xff] }
  0x3d   : > { %771 = vst [vmem:[%s3490_s12 + $0x250] sm:$0xff] %v770_v10  ;;  %v774_v12 = vld [vmem:[%s3485_s11 + $0x4c0] sm:$0xff]  ;;  %v776_v13 = vld [vmem:[%s3485_s11 + $0x4d0] sm:$0xff]  ;;  %773 = vst [vmem:[%s3490_s12 + $0x258] sm:$0xff] %v772_v11 }
  0x3e   : > { %775 = vst [vmem:[%s3490_s12 + $0x260] sm:$0xff] %v774_v12  ;;  %777 = vst [vmem:[%s3490_s12 + $0x268] sm:$0xff] %v776_v13  ;;  %v778_v14 = vld [vmem:[%s3485_s11 + $0x4e0] sm:$0xff]  ;;  %v780_v15 = vld [vmem:[%s3485_s11 + $0x4f0] sm:$0xff] }
  0x3f   : > { %v782_v16 = vld [vmem:[%s3485_s11 + $0x500] sm:$0xff]  ;;  %779 = vst [vmem:[%s3490_s12 + $0x270] sm:$0xff] %v778_v14  ;;  %781 = vst [vmem:[%s3490_s12 + $0x278] sm:$0xff] %v780_v15  ;;  %v784_v17 = vld [vmem:[%s3485_s11 + $0x510] sm:$0xff] }
  0x40   : > { %783 = vst [vmem:[%s3490_s12 + $0x280] sm:$0xff] %v782_v16  ;;  %v786_v18 = vld [vmem:[%s3485_s11 + $0x520] sm:$0xff]  ;;  %v788_v19 = vld [vmem:[%s3485_s11 + $0x530] sm:$0xff]  ;;  %785 = vst [vmem:[%s3490_s12 + $0x288] sm:$0xff] %v784_v17 }
  0x41   : > { %787 = vst [vmem:[%s3490_s12 + $0x290] sm:$0xff] %v786_v18  ;;  %789 = vst [vmem:[%s3490_s12 + $0x298] sm:$0xff] %v788_v19  ;;  %v790_v20 = vld [vmem:[%s3485_s11 + $0x540] sm:$0xff]  ;;  %v792_v21 = vld [vmem:[%s3485_s11 + $0x550] sm:$0xff] }
  0x42   : > { %v794_v22 = vld [vmem:[%s3485_s11 + $0x560] sm:$0xff]  ;;  %791 = vst [vmem:[%s3490_s12 + $0x2a0] sm:$0xff] %v790_v20  ;;  %793 = vst [vmem:[%s3490_s12 + $0x2a8] sm:$0xff] %v792_v21  ;;  %v796_v23 = vld [vmem:[%s3485_s11 + $0x570] sm:$0xff] }
  0x43   : > { %795 = vst [vmem:[%s3490_s12 + $0x2b0] sm:$0xff] %v794_v22  ;;  %v798_v24 = vld [vmem:[%s3485_s11 + $0x580] sm:$0xff]  ;;  %v800_v25 = vld [vmem:[%s3485_s11 + $0x590] sm:$0xff]  ;;  %797 = vst [vmem:[%s3490_s12 + $0x2b8] sm:$0xff] %v796_v23 }
  0x44   : > { %799 = vst [vmem:[%s3490_s12 + $0x2c0] sm:$0xff] %v798_v24  ;;  %801 = vst [vmem:[%s3490_s12 + $0x2c8] sm:$0xff] %v800_v25  ;;  %v802_v26 = vld [vmem:[%s3485_s11 + $0x5a0] sm:$0xff]  ;;  %v804_v27 = vld [vmem:[%s3485_s11 + $0x5b0] sm:$0xff] }
  0x45   : > { %v806_v28 = vld [vmem:[%s3485_s11 + $0x5c0] sm:$0xff]  ;;  %803 = vst [vmem:[%s3490_s12 + $0x2d0] sm:$0xff] %v802_v26  ;;  %805 = vst [vmem:[%s3490_s12 + $0x2d8] sm:$0xff] %v804_v27  ;;  %v808_v29 = vld [vmem:[%s3485_s11 + $0x5d0] sm:$0xff] }
  0x46   : > { %807 = vst [vmem:[%s3490_s12 + $0x2e0] sm:$0xff] %v806_v28  ;;  %v810_v30 = vld [vmem:[%s3485_s11 + $0x5e0] sm:$0xff]  ;;  %v812_v31 = vld [vmem:[%s3485_s11 + $0x5f0] sm:$0xff]  ;;  %809 = vst [vmem:[%s3490_s12 + $0x2e8] sm:$0xff] %v808_v29 }
  0x47   : > { %811 = vst [vmem:[%s3490_s12 + $0x2f0] sm:$0xff] %v810_v30  ;;  %813 = vst [vmem:[%s3490_s12 + $0x2f8] sm:$0xff] %v812_v31  ;;  %v814_v32 = vld [vmem:[%s3485_s11 + $0x600] sm:$0xff]  ;;  %v816_v33 = vld [vmem:[%s3485_s11 + $0x610] sm:$0xff] }
  0x48   : > { %v818_v34 = vld [vmem:[%s3485_s11 + $0x620] sm:$0xff]  ;;  %815 = vst [vmem:[%s3490_s12 + $0x300] sm:$0xff] %v814_v32  ;;  %817 = vst [vmem:[%s3490_s12 + $0x308] sm:$0xff] %v816_v33  ;;  %v820_v35 = vld [vmem:[%s3485_s11 + $0x630] sm:$0xff] }
  0x49   : > { %819 = vst [vmem:[%s3490_s12 + $0x310] sm:$0xff] %v818_v34  ;;  %v822_v36 = vld [vmem:[%s3485_s11 + $0x640] sm:$0xff]  ;;  %v824_v37 = vld [vmem:[%s3485_s11 + $0x650] sm:$0xff]  ;;  %821 = vst [vmem:[%s3490_s12 + $0x318] sm:$0xff] %v820_v35 }
  0x4a   : > { %823 = vst [vmem:[%s3490_s12 + $0x320] sm:$0xff] %v822_v36  ;;  %825 = vst [vmem:[%s3490_s12 + $0x328] sm:$0xff] %v824_v37  ;;  %v826_v38 = vld [vmem:[%s3485_s11 + $0x660] sm:$0xff]  ;;  %v828_v39 = vld [vmem:[%s3485_s11 + $0x670] sm:$0xff] }
  0x4b   : > { %v830_v40 = vld [vmem:[%s3485_s11 + $0x680] sm:$0xff]  ;;  %827 = vst [vmem:[%s3490_s12 + $0x330] sm:$0xff] %v826_v38  ;;  %829 = vst [vmem:[%s3490_s12 + $0x338] sm:$0xff] %v828_v39  ;;  %v832_v41 = vld [vmem:[%s3485_s11 + $0x690] sm:$0xff] }
  0x4c   : > { %831 = vst [vmem:[%s3490_s12 + $0x340] sm:$0xff] %v830_v40  ;;  %v834_v42 = vld [vmem:[%s3485_s11 + $0x6a0] sm:$0xff]  ;;  %v836_v43 = vld [vmem:[%s3485_s11 + $0x6b0] sm:$0xff]  ;;  %833 = vst [vmem:[%s3490_s12 + $0x348] sm:$0xff] %v832_v41 }
  0x4d   : > { %835 = vst [vmem:[%s3490_s12 + $0x350] sm:$0xff] %v834_v42  ;;  %837 = vst [vmem:[%s3490_s12 + $0x358] sm:$0xff] %v836_v43  ;;  %v838_v44 = vld [vmem:[%s3485_s11 + $0x6c0] sm:$0xff]  ;;  %v840_v45 = vld [vmem:[%s3485_s11 + $0x6d0] sm:$0xff] }
  0x4e   : > { %v842_v46 = vld [vmem:[%s3485_s11 + $0x6e0] sm:$0xff]  ;;  %839 = vst [vmem:[%s3490_s12 + $0x360] sm:$0xff] %v838_v44  ;;  %841 = vst [vmem:[%s3490_s12 + $0x368] sm:$0xff] %v840_v45  ;;  %v844_v47 = vld [vmem:[%s3485_s11 + $0x6f0] sm:$0xff] }
  0x4f   : > { %843 = vst [vmem:[%s3490_s12 + $0x370] sm:$0xff] %v842_v46  ;;  %v846_v48 = vld [vmem:[%s3485_s11 + $0x700] sm:$0xff]  ;;  %v848_v49 = vld [vmem:[%s3485_s11 + $0x710] sm:$0xff]  ;;  %845 = vst [vmem:[%s3490_s12 + $0x378] sm:$0xff] %v844_v47 }
  0x50   : > { %847 = vst [vmem:[%s3490_s12 + $0x380] sm:$0xff] %v846_v48  ;;  %849 = vst [vmem:[%s3490_s12 + $0x388] sm:$0xff] %v848_v49  ;;  %v850_v50 = vld [vmem:[%s3485_s11 + $0x720] sm:$0xff]  ;;  %v852_v51 = vld [vmem:[%s3485_s11 + $0x730] sm:$0xff] }
  0x51   : > { %v854_v52 = vld [vmem:[%s3485_s11 + $0x740] sm:$0xff]  ;;  %851 = vst [vmem:[%s3490_s12 + $0x390] sm:$0xff] %v850_v50  ;;  %853 = vst [vmem:[%s3490_s12 + $0x398] sm:$0xff] %v852_v51  ;;  %v856_v53 = vld [vmem:[%s3485_s11 + $0x750] sm:$0xff] }
  0x52   : > { %855 = vst [vmem:[%s3490_s12 + $0x3a0] sm:$0xff] %v854_v52  ;;  %v858_v54 = vld [vmem:[%s3485_s11 + $0x760] sm:$0xff]  ;;  %v860_v55 = vld [vmem:[%s3485_s11 + $0x770] sm:$0xff]  ;;  %857 = vst [vmem:[%s3490_s12 + $0x3a8] sm:$0xff] %v856_v53 }
  0x53   : > { %859 = vst [vmem:[%s3490_s12 + $0x3b0] sm:$0xff] %v858_v54  ;;  %861 = vst [vmem:[%s3490_s12 + $0x3b8] sm:$0xff] %v860_v55  ;;  %v862_v56 = vld [vmem:[%s3485_s11 + $0x780] sm:$0xff]  ;;  %v864_v57 = vld [vmem:[%s3485_s11 + $0x790] sm:$0xff] }
  0x54   : > { %v866_v58 = vld [vmem:[%s3485_s11 + $0x7a0] sm:$0xff]  ;;  %863 = vst [vmem:[%s3490_s12 + $0x3c0] sm:$0xff] %v862_v56  ;;  %865 = vst [vmem:[%s3490_s12 + $0x3c8] sm:$0xff] %v864_v57  ;;  %v868_v59 = vld [vmem:[%s3485_s11 + $0x7b0] sm:$0xff] }
  0x55   : > { %867 = vst [vmem:[%s3490_s12 + $0x3d0] sm:$0xff] %v866_v58  ;;  %v870_v60 = vld [vmem:[%s3485_s11 + $0x7c0] sm:$0xff]  ;;  %v872_v61 = vld [vmem:[%s3485_s11 + $0x7d0] sm:$0xff]  ;;  %869 = vst [vmem:[%s3490_s12 + $0x3d8] sm:$0xff] %v868_v59 }
  0x56   : > { %871 = vst [vmem:[%s3490_s12 + $0x3e0] sm:$0xff] %v870_v60  ;;  %873 = vst [vmem:[%s3490_s12 + $0x3e8] sm:$0xff] %v872_v61  ;;  %v874_v62 = vld [vmem:[%s3485_s11 + $0x7e0] sm:$0xff]  ;;  %v876_v63 = vld [vmem:[%s3485_s11 + $0x7f0] sm:$0xff] }
  0x57   : > { %v878_v0 = vld [vmem:[%s3485_s11 + $0x800] sm:$0xff]  ;;  %875 = vst [vmem:[%s3490_s12 + $0x3f0] sm:$0xff] %v874_v62  ;;  %877 = vst [vmem:[%s3490_s12 + $0x3f8] sm:$0xff] %v876_v63  ;;  %v880_v1 = vld [vmem:[%s3485_s11 + $0x810] sm:$0xff] }
  0x58   : > { %879 = vst [vmem:[%s3490_s12 + $0x400] sm:$0xff] %v878_v0  ;;  %v882_v2 = vld [vmem:[%s3485_s11 + $0x820] sm:$0xff]  ;;  %v884_v3 = vld [vmem:[%s3485_s11 + $0x830] sm:$0xff]  ;;  %881 = vst [vmem:[%s3490_s12 + $0x408] sm:$0xff] %v880_v1 }
  0x59   : > { %883 = vst [vmem:[%s3490_s12 + $0x410] sm:$0xff] %v882_v2  ;;  %885 = vst [vmem:[%s3490_s12 + $0x418] sm:$0xff] %v884_v3  ;;  %v886_v4 = vld [vmem:[%s3485_s11 + $0x840] sm:$0xff]  ;;  %v888_v5 = vld [vmem:[%s3485_s11 + $0x850] sm:$0xff] }
  0x5a   : > { %v890_v6 = vld [vmem:[%s3485_s11 + $0x860] sm:$0xff]  ;;  %887 = vst [vmem:[%s3490_s12 + $0x420] sm:$0xff] %v886_v4  ;;  %889 = vst [vmem:[%s3490_s12 + $0x428] sm:$0xff] %v888_v5  ;;  %v892_v7 = vld [vmem:[%s3485_s11 + $0x870] sm:$0xff] }
  0x5b   : > { %891 = vst [vmem:[%s3490_s12 + $0x430] sm:$0xff] %v890_v6  ;;  %v894_v8 = vld [vmem:[%s3485_s11 + $0x880] sm:$0xff]  ;;  %v896_v9 = vld [vmem:[%s3485_s11 + $0x890] sm:$0xff]  ;;  %893 = vst [vmem:[%s3490_s12 + $0x438] sm:$0xff] %v892_v7 }
  0x5c   : > { %895 = vst [vmem:[%s3490_s12 + $0x440] sm:$0xff] %v894_v8  ;;  %897 = vst [vmem:[%s3490_s12 + $0x448] sm:$0xff] %v896_v9  ;;  %v898_v10 = vld [vmem:[%s3485_s11 + $0x8a0] sm:$0xff]  ;;  %v900_v11 = vld [vmem:[%s3485_s11 + $0x8b0] sm:$0xff] }
  0x5d   : > { %v902_v12 = vld [vmem:[%s3485_s11 + $0x8c0] sm:$0xff]  ;;  %899 = vst [vmem:[%s3490_s12 + $0x450] sm:$0xff] %v898_v10  ;;  %901 = vst [vmem:[%s3490_s12 + $0x458] sm:$0xff] %v900_v11  ;;  %v904_v13 = vld [vmem:[%s3485_s11 + $0x8d0] sm:$0xff] }
  0x5e   : > { %903 = vst [vmem:[%s3490_s12 + $0x460] sm:$0xff] %v902_v12  ;;  %v906_v14 = vld [vmem:[%s3485_s11 + $0x8e0] sm:$0xff]  ;;  %v908_v15 = vld [vmem:[%s3485_s11 + $0x8f0] sm:$0xff]  ;;  %905 = vst [vmem:[%s3490_s12 + $0x468] sm:$0xff] %v904_v13 }
  0x5f   : > { %907 = vst [vmem:[%s3490_s12 + $0x470] sm:$0xff] %v906_v14  ;;  %909 = vst [vmem:[%s3490_s12 + $0x478] sm:$0xff] %v908_v15  ;;  %v910_v16 = vld [vmem:[%s3485_s11 + $0x900] sm:$0xff]  ;;  %v912_v17 = vld [vmem:[%s3485_s11 + $0x910] sm:$0xff] }
  0x60   : > { %v914_v18 = vld [vmem:[%s3485_s11 + $0x920] sm:$0xff]  ;;  %911 = vst [vmem:[%s3490_s12 + $0x480] sm:$0xff] %v910_v16  ;;  %913 = vst [vmem:[%s3490_s12 + $0x488] sm:$0xff] %v912_v17  ;;  %v916_v19 = vld [vmem:[%s3485_s11 + $0x930] sm:$0xff] }
  0x61   : > { %915 = vst [vmem:[%s3490_s12 + $0x490] sm:$0xff] %v914_v18  ;;  %v918_v20 = vld [vmem:[%s3485_s11 + $0x940] sm:$0xff]  ;;  %v920_v21 = vld [vmem:[%s3485_s11 + $0x950] sm:$0xff]  ;;  %917 = vst [vmem:[%s3490_s12 + $0x498] sm:$0xff] %v916_v19 }
  0x62   : > { %919 = vst [vmem:[%s3490_s12 + $0x4a0] sm:$0xff] %v918_v20  ;;  %921 = vst [vmem:[%s3490_s12 + $0x4a8] sm:$0xff] %v920_v21  ;;  %v922_v22 = vld [vmem:[%s3485_s11 + $0x960] sm:$0xff]  ;;  %v924_v23 = vld [vmem:[%s3485_s11 + $0x970] sm:$0xff] }
  0x63   : > { %v926_v24 = vld [vmem:[%s3485_s11 + $0x980] sm:$0xff]  ;;  %923 = vst [vmem:[%s3490_s12 + $0x4b0] sm:$0xff] %v922_v22  ;;  %925 = vst [vmem:[%s3490_s12 + $0x4b8] sm:$0xff] %v924_v23  ;;  %v928_v25 = vld [vmem:[%s3485_s11 + $0x990] sm:$0xff] }
  0x64   : > { %927 = vst [vmem:[%s3490_s12 + $0x4c0] sm:$0xff] %v926_v24  ;;  %v930_v26 = vld [vmem:[%s3485_s11 + $0x9a0] sm:$0xff]  ;;  %v932_v27 = vld [vmem:[%s3485_s11 + $0x9b0] sm:$0xff]  ;;  %929 = vst [vmem:[%s3490_s12 + $0x4c8] sm:$0xff] %v928_v25 }
  0x65   : > { %931 = vst [vmem:[%s3490_s12 + $0x4d0] sm:$0xff] %v930_v26  ;;  %933 = vst [vmem:[%s3490_s12 + $0x4d8] sm:$0xff] %v932_v27  ;;  %v934_v28 = vld [vmem:[%s3485_s11 + $0x9c0] sm:$0xff]  ;;  %v936_v29 = vld [vmem:[%s3485_s11 + $0x9d0] sm:$0xff] }
  0x66   : > { %v938_v30 = vld [vmem:[%s3485_s11 + $0x9e0] sm:$0xff]  ;;  %935 = vst [vmem:[%s3490_s12 + $0x4e0] sm:$0xff] %v934_v28  ;;  %937 = vst [vmem:[%s3490_s12 + $0x4e8] sm:$0xff] %v936_v29  ;;  %v940_v31 = vld [vmem:[%s3485_s11 + $0x9f0] sm:$0xff] }
  0x67   : > { %939 = vst [vmem:[%s3490_s12 + $0x4f0] sm:$0xff] %v938_v30  ;;  %v942_v32 = vld [vmem:[%s3485_s11 + $0xa00] sm:$0xff]  ;;  %v944_v33 = vld [vmem:[%s3485_s11 + $0xa10] sm:$0xff]  ;;  %941 = vst [vmem:[%s3490_s12 + $0x4f8] sm:$0xff] %v940_v31 }
  0x68   : > { %943 = vst [vmem:[%s3490_s12 + $0x500] sm:$0xff] %v942_v32  ;;  %945 = vst [vmem:[%s3490_s12 + $0x508] sm:$0xff] %v944_v33  ;;  %v946_v34 = vld [vmem:[%s3485_s11 + $0xa20] sm:$0xff]  ;;  %v948_v35 = vld [vmem:[%s3485_s11 + $0xa30] sm:$0xff] }
  0x69   : > { %v950_v36 = vld [vmem:[%s3485_s11 + $0xa40] sm:$0xff]  ;;  %947 = vst [vmem:[%s3490_s12 + $0x510] sm:$0xff] %v946_v34  ;;  %949 = vst [vmem:[%s3490_s12 + $0x518] sm:$0xff] %v948_v35  ;;  %v952_v37 = vld [vmem:[%s3485_s11 + $0xa50] sm:$0xff] }
  0x6a   : > { %951 = vst [vmem:[%s3490_s12 + $0x520] sm:$0xff] %v950_v36  ;;  %v954_v38 = vld [vmem:[%s3485_s11 + $0xa60] sm:$0xff]  ;;  %v956_v39 = vld [vmem:[%s3485_s11 + $0xa70] sm:$0xff]  ;;  %953 = vst [vmem:[%s3490_s12 + $0x528] sm:$0xff] %v952_v37 }
  0x6b   : > { %955 = vst [vmem:[%s3490_s12 + $0x530] sm:$0xff] %v954_v38  ;;  %957 = vst [vmem:[%s3490_s12 + $0x538] sm:$0xff] %v956_v39  ;;  %v958_v40 = vld [vmem:[%s3485_s11 + $0xa80] sm:$0xff]  ;;  %v960_v41 = vld [vmem:[%s3485_s11 + $0xa90] sm:$0xff] }
  0x6c   : > { %v962_v42 = vld [vmem:[%s3485_s11 + $0xaa0] sm:$0xff]  ;;  %959 = vst [vmem:[%s3490_s12 + $0x540] sm:$0xff] %v958_v40  ;;  %961 = vst [vmem:[%s3490_s12 + $0x548] sm:$0xff] %v960_v41  ;;  %v964_v43 = vld [vmem:[%s3485_s11 + $0xab0] sm:$0xff] }
  0x6d   : > { %963 = vst [vmem:[%s3490_s12 + $0x550] sm:$0xff] %v962_v42  ;;  %v966_v44 = vld [vmem:[%s3485_s11 + $0xac0] sm:$0xff]  ;;  %v968_v45 = vld [vmem:[%s3485_s11 + $0xad0] sm:$0xff]  ;;  %965 = vst [vmem:[%s3490_s12 + $0x558] sm:$0xff] %v964_v43 }
  0x6e   : > { %967 = vst [vmem:[%s3490_s12 + $0x560] sm:$0xff] %v966_v44  ;;  %969 = vst [vmem:[%s3490_s12 + $0x568] sm:$0xff] %v968_v45  ;;  %v970_v46 = vld [vmem:[%s3485_s11 + $0xae0] sm:$0xff]  ;;  %v972_v47 = vld [vmem:[%s3485_s11 + $0xaf0] sm:$0xff] }
  0x6f   : > { %v974_v48 = vld [vmem:[%s3485_s11 + $0xb00] sm:$0xff]  ;;  %971 = vst [vmem:[%s3490_s12 + $0x570] sm:$0xff] %v970_v46  ;;  %973 = vst [vmem:[%s3490_s12 + $0x578] sm:$0xff] %v972_v47  ;;  %v976_v49 = vld [vmem:[%s3485_s11 + $0xb10] sm:$0xff] }
  0x70   : > { %975 = vst [vmem:[%s3490_s12 + $0x580] sm:$0xff] %v974_v48  ;;  %v978_v50 = vld [vmem:[%s3485_s11 + $0xb20] sm:$0xff]  ;;  %v980_v51 = vld [vmem:[%s3485_s11 + $0xb30] sm:$0xff]  ;;  %977 = vst [vmem:[%s3490_s12 + $0x588] sm:$0xff] %v976_v49 }
  0x71   : > { %979 = vst [vmem:[%s3490_s12 + $0x590] sm:$0xff] %v978_v50  ;;  %981 = vst [vmem:[%s3490_s12 + $0x598] sm:$0xff] %v980_v51  ;;  %v982_v52 = vld [vmem:[%s3485_s11 + $0xb40] sm:$0xff]  ;;  %v984_v53 = vld [vmem:[%s3485_s11 + $0xb50] sm:$0xff] }
  0x72   : > { %v986_v54 = vld [vmem:[%s3485_s11 + $0xb60] sm:$0xff]  ;;  %983 = vst [vmem:[%s3490_s12 + $0x5a0] sm:$0xff] %v982_v52  ;;  %985 = vst [vmem:[%s3490_s12 + $0x5a8] sm:$0xff] %v984_v53  ;;  %v988_v55 = vld [vmem:[%s3485_s11 + $0xb70] sm:$0xff] }
  0x73   : > { %987 = vst [vmem:[%s3490_s12 + $0x5b0] sm:$0xff] %v986_v54  ;;  %v990_v56 = vld [vmem:[%s3485_s11 + $0xb80] sm:$0xff]  ;;  %v992_v57 = vld [vmem:[%s3485_s11 + $0xb90] sm:$0xff]  ;;  %989 = vst [vmem:[%s3490_s12 + $0x5b8] sm:$0xff] %v988_v55 }
  0x74   : > { %991 = vst [vmem:[%s3490_s12 + $0x5c0] sm:$0xff] %v990_v56  ;;  %993 = vst [vmem:[%s3490_s12 + $0x5c8] sm:$0xff] %v992_v57  ;;  %v994_v58 = vld [vmem:[%s3485_s11 + $0xba0] sm:$0xff]  ;;  %v996_v59 = vld [vmem:[%s3485_s11 + $0xbb0] sm:$0xff] }
  0x75   : > { %v998_v60 = vld [vmem:[%s3485_s11 + $0xbc0] sm:$0xff]  ;;  %995 = vst [vmem:[%s3490_s12 + $0x5d0] sm:$0xff] %v994_v58  ;;  %997 = vst [vmem:[%s3490_s12 + $0x5d8] sm:$0xff] %v996_v59  ;;  %v1000_v61 = vld [vmem:[%s3485_s11 + $0xbd0] sm:$0xff] }
  0x76   : > { %999 = vst [vmem:[%s3490_s12 + $0x5e0] sm:$0xff] %v998_v60  ;;  %v1002_v62 = vld [vmem:[%s3485_s11 + $0xbe0] sm:$0xff]  ;;  %v1004_v63 = vld [vmem:[%s3485_s11 + $0xbf0] sm:$0xff]  ;;  %1001 = vst [vmem:[%s3490_s12 + $0x5e8] sm:$0xff] %v1000_v61 }
  0x77   : > { %1003 = vst [vmem:[%s3490_s12 + $0x5f0] sm:$0xff] %v1002_v62  ;;  %1005 = vst [vmem:[%s3490_s12 + $0x5f8] sm:$0xff] %v1004_v63 }
  0x78 PF: > { %p2766_p7 = scmp.ge.s32.totalorder %s3397_s21, 1  ;;  %p1031_p8 = scmp.lt.s32.totalorder %s3397_s21, 7 }
  0x7a   : > { %p1032_p9 = pnand %p2766_p7, %p1031_p8 }
  0x7b   : > { %s1038_s13 = sand.u32 (!%p1032_p9), 1, %s3373_s15   ;;  %s1089_s14 = smul.u32 (!%p1032_p9), 12, %s3381_s17 }
  0x7c   : > { %1035 = sbr.rel (%p1032_p9) target bundleno = 550 (0x226), region = 70  ;;  %s2768_s25 = sshll.u32 (!%p1032_p9), %s3385_s18, 1 }
  0x7d   : > { %s2985_s24 = smul.u32 (!%p1032_p9), 1536, %s1038_s13  ;;  %p1092_p10 = scmp.lt.s32.totalorder (!%p1032_p9), %s1089_s14, 35 }
  0x7e   : > { %p1102_p11 = scmp.lt.s32.totalorder (!%p1032_p9), %s2768_s25, 3  ;;  %p2773_p12 = scmp.ne.s32.totalorder (!%p1032_p9), %s3381_s17, 0 }
  0x7f   : > { %s3900_s13 = scalar_lea.vmem (!%p1032_p9), [#allocation3], %s2985_s24 }
  0x81   : > { %s4172_s14 = smov (!%p1092_p10, %s1089_s14), 35  ;;  %s4174_s25 = smov (!%p1102_p11, %s2768_s25), 3 }
  0x82   : > { %s2767_s26 = sshll.u32 %s4172_s14, 2  ;;  %s1104_s15 = scalar_lea.vmem %s4156_s2, %s4174_s25 }
  0x83   : > { %s3883_s30 = scalar_lea.vmem %s4154_s0, %s2767_s26  ;;  %s2770_s7 = sshll.u32 %s4174_s25, 2 }
  0x84   : > { %s3893_s9 = scalar_lea.vmem %s4157_s3, %s2770_s7  ;;  %s3898_s12 = scalar_lea.vmem %s4158_s4, %s2770_s7 }
  0x85   : > { %1129 = sbr.rel (%p2773_p12) target bundleno = 140 (0x8c), region = 78 }
  0x8a   : > { %v3399_v0 = vmov 0.0  }
  0x8b   : > { %1130 = vst [vmem:[#allocation2] sm:$0xff] %v3399_v0  ;;  %1131 = vst [vmem:[#allocation2 + $0x8] sm:$0xff] %v3399_v0 }
  0x8c PF: > { %v3043_v1 = vld [vmem:[%s3900_s13 + $0x74] ss:$8 sps:$4 sm:$0xff]   ;;  %v3047_v3 = vld [vmem:[%s3900_s13 + $0x70] ss:$8 sps:$4 sm:$0xff]   ;;  %v3049_v5 = vld [vmem:[%s3900_s13 + $0x64] ss:$8 sps:$4 sm:$0xff]  }
  0x8d   : > { %v3045_v2 = vld [vmem:[%s3900_s13 + $0x174] ss:$8 sps:$4 sm:$0xff]   ;;  %2334 = vmatprep.subr.bf16.mxu0 %v3043_v1  ;;  %v3048_v4 = vld [vmem:[%s3900_s13 + $0x170] ss:$8 sps:$4 sm:$0xff]   ;;  %v3051_v6 = vld [vmem:[%s3900_s13 + $0x164] ss:$8 sps:$4 sm:$0xff]  }
  0x8e   : > { %2375 = vmatprep.subr.bf16.mxu1 %v3045_v2  ;;  %2335 = vmatpush1.bf16.msra.mxu0 %v3047_v3  ;;  %v3053_v7 = vld [vmem:[%s3900_s13 + $0x60] ss:$8 sps:$4 sm:$0xff]   ;;  %v3055_v9 = vld [vmem:[%s3900_s13 + $0x54] ss:$8 sps:$4 sm:$0xff]   ;;  %v3059_v11 = vld [vmem:[%s3900_s13 + $0x50] ss:$8 sps:$4 sm:$0xff]  }
  0x8f   : > { %2376 = vmatpush1.bf16.msra.mxu1 %v3048_v4  ;;  %2336 = vmatprep.subr.bf16.mxu0 %v3049_v5  ;;  %v3054_v8 = vld [vmem:[%s3900_s13 + $0x160] ss:$8 sps:$4 sm:$0xff]   ;;  %v3057_v10 = vld [vmem:[%s3900_s13 + $0x154] ss:$8 sps:$4 sm:$0xff]   ;;  %v3060_v12 = vld [vmem:[%s3900_s13 + $0x150] ss:$8 sps:$4 sm:$0xff]  }
  0x90   : > { %2377 = vmatprep.subr.bf16.mxu1 %v3051_v6  ;;  %v3061_v13 = vld [vmem:[%s3900_s13 + $0x44] ss:$8 sps:$4 sm:$0xff]   ;;  %v3065_v15 = vld [vmem:[%s3900_s13 + $0x40] ss:$8 sps:$4 sm:$0xff]   ;;  %v3067_v17 = vld [vmem:[%s3900_s13 + $0x34] ss:$8 sps:$4 sm:$0xff]  }
  0x91   : > { %v3063_v14 = vld [vmem:[%s3900_s13 + $0x144] ss:$8 sps:$4 sm:$0xff]   ;;  %v3066_v16 = vld [vmem:[%s3900_s13 + $0x140] ss:$8 sps:$4 sm:$0xff]   ;;  %v3069_v18 = vld [vmem:[%s3900_s13 + $0x134] ss:$8 sps:$4 sm:$0xff]  }
  0x92   : > { %2337 = vmatpush1.bf16.msra.mxu0 %v3053_v7  ;;  %v3071_v19 = vld [vmem:[%s3900_s13 + $0x30] ss:$8 sps:$4 sm:$0xff]   ;;  %v3073_v21 = vld [vmem:[%s3900_s13 + $0x24] ss:$8 sps:$4 sm:$0xff]   ;;  %v3077_v23 = vld [vmem:[%s3900_s13 + $0x20] ss:$8 sps:$4 sm:$0xff]  }
  0x93   : > { %2378 = vmatpush1.bf16.msra.mxu1 %v3054_v8  ;;  %2338 = vmatprep.subr.bf16.mxu0 %v3055_v9  ;;  %v3072_v20 = vld [vmem:[%s3900_s13 + $0x130] ss:$8 sps:$4 sm:$0xff]   ;;  %v3075_v22 = vld [vmem:[%s3900_s13 + $0x124] ss:$8 sps:$4 sm:$0xff]   ;;  %v3078_v24 = vld [vmem:[%s3900_s13 + $0x120] ss:$8 sps:$4 sm:$0xff]  }
  0x94   : > { %2379 = vmatprep.subr.bf16.mxu1 %v3057_v10  ;;  %v3079_v25 = vld [vmem:[%s3900_s13 + $0x14] ss:$8 sps:$4 sm:$0xff]   ;;  %v3083_v27 = vld [vmem:[%s3900_s13 + $0x10] ss:$8 sps:$4 sm:$0xff]   ;;  %v3085_v29 = vld [vmem:[%s3900_s13 + $0x4] ss:$8 sps:$4 sm:$0xff]  }
  0x95   : > { %v3081_v26 = vld [vmem:[%s3900_s13 + $0x114] ss:$8 sps:$4 sm:$0xff]   ;;  %v3084_v28 = vld [vmem:[%s3900_s13 + $0x110] ss:$8 sps:$4 sm:$0xff]   ;;  %v3087_v30 = vld [vmem:[%s3900_s13 + $0x104] ss:$8 sps:$4 sm:$0xff]  }
  0x96   : > { %2339 = vmatpush1.bf16.msra.mxu0 %v3059_v11  ;;  %v3089_v31 = vld [vmem:[%s3900_s13] ss:$8 sps:$4 sm:$0xff]   ;;  %v3091_v33 = vld [vmem:[%s3900_s13 + $0xf4] ss:$8 sps:$4 sm:$0xff]   ;;  %v3095_v35 = vld [vmem:[%s3900_s13 + $0xf0] ss:$8 sps:$4 sm:$0xff]  }
  0x97   : > { %2380 = vmatpush1.bf16.msra.mxu1 %v3060_v12  ;;  %2340 = vmatprep.subr.bf16.mxu0 %v3061_v13  ;;  %v3090_v32 = vld [vmem:[%s3900_s13 + $0x100] ss:$8 sps:$4 sm:$0xff]   ;;  %v3093_v34 = vld [vmem:[%s3900_s13 + $0x1f4] ss:$8 sps:$4 sm:$0xff]   ;;  %v3096_v36 = vld [vmem:[%s3900_s13 + $0x1f0] ss:$8 sps:$4 sm:$0xff]  }
  0x98   : > { %2381 = vmatprep.subr.bf16.mxu1 %v3063_v14  ;;  %v3097_v37 = vld [vmem:[%s3900_s13 + $0xe4] ss:$8 sps:$4 sm:$0xff]   ;;  %v3101_v39 = vld [vmem:[%s3900_s13 + $0xe0] ss:$8 sps:$4 sm:$0xff]   ;;  %v3103_v41 = vld [vmem:[%s3900_s13 + $0xd4] ss:$8 sps:$4 sm:$0xff]  }
  0x99   : > { %v3099_v38 = vld [vmem:[%s3900_s13 + $0x1e4] ss:$8 sps:$4 sm:$0xff]   ;;  %v3102_v40 = vld [vmem:[%s3900_s13 + $0x1e0] ss:$8 sps:$4 sm:$0xff]   ;;  %v3105_v42 = vld [vmem:[%s3900_s13 + $0x1d4] ss:$8 sps:$4 sm:$0xff]  }
  0x9a   : > { %2341 = vmatpush1.bf16.msra.mxu0 %v3065_v15  ;;  %v3107_v43 = vld [vmem:[%s3900_s13 + $0xd0] ss:$8 sps:$4 sm:$0xff]   ;;  %v3109_v45 = vld [vmem:[%s3900_s13 + $0xc4] ss:$8 sps:$4 sm:$0xff]   ;;  %v3113_v50 = vld [vmem:[%s3900_s13 + $0xc0] ss:$8 sps:$4 sm:$0xff]  }
  0x9b   : > { %2382 = vmatpush1.bf16.msra.mxu1 %v3066_v16  ;;  %2342 = vmatprep.subr.bf16.mxu0 %v3067_v17  ;;  %v3108_v44 = vld [vmem:[%s3900_s13 + $0x1d0] ss:$8 sps:$4 sm:$0xff]   ;;  %v3111_v46 = vld [vmem:[%s3900_s13 + $0x1c4] ss:$8 sps:$4 sm:$0xff]   ;;  %v3114_v51 = vld [vmem:[%s3900_s13 + $0x1c0] ss:$8 sps:$4 sm:$0xff]  }
  0x9c   : > { %2383 = vmatprep.subr.bf16.mxu1 %v3069_v18  ;;  %v1134_v47 = vld [vmem:[%s3883_s30] sm:$0xff]  ;;  %v1135_v49 = vld [vmem:[%s3883_s30 + $0x8] sm:$0xff]  ;;  %v3121_v57 = vld [vmem:[%s3900_s13 + $0xa4] ss:$8 sps:$4 sm:$0xff]   ;;  %p2978_p13 = scmp.ne.s32.totalorder %s3381_s17, 2 }
  0x9d   : > { %v2775_v48 = vcombine.high %v1134_v47, %v1134_v47  ;;  %v2777_v52 = vcombine.high %v1135_v49, %v1135_v49  ;;  %v3115_v53 = vld [vmem:[%s3900_s13 + $0xb4] ss:$8 sps:$4 sm:$0xff]   ;;  %v3119_v55 = vld [vmem:[%s3900_s13 + $0xb0] ss:$8 sps:$4 sm:$0xff]   ;;  %v3123_v58 = vld [vmem:[%s3900_s13 + $0x1a4] ss:$8 sps:$4 sm:$0xff]   ;;  %v2774_v7 = vcombine.low %v1134_v47, %v1134_v47  ;;  %v2776_v8 = vcombine.low %v1135_v49, %v1135_v49 }
  0x9e   : > { %2343 = vmatpush1.bf16.msra.mxu0 %v3071_v19  ;;  %v3117_v54 = vld [vmem:[%s3900_s13 + $0x1b4] ss:$8 sps:$4 sm:$0xff]   ;;  %v3120_v56 = vld [vmem:[%s3900_s13 + $0x1b0] ss:$8 sps:$4 sm:$0xff]   ;;  %v3125_v59 = vld [vmem:[%s3900_s13 + $0xa0] ss:$8 sps:$4 sm:$0xff]  }
  0x9f   : > { %2384 = vmatpush1.bf16.msra.mxu1 %v3072_v20  ;;  %2344 = vmatprep.subr.bf16.mxu0 %v3073_v21  ;;  %v3126_v60 = vld [vmem:[%s3900_s13 + $0x1a0] ss:$8 sps:$4 sm:$0xff]   ;;  %v3127_v61 = vld [vmem:[%s3900_s13 + $0x94] ss:$8 sps:$4 sm:$0xff]   ;;  %v3131_v63 = vld [vmem:[%s3900_s13 + $0x90] ss:$8 sps:$4 sm:$0xff]  }
  0xa0   : > { %2385 = vmatprep.subr.bf16.mxu1 %v3075_v22  ;;  %2366 = vmatprep.mubr.bf16.mxu0 %v2775_v48  ;;  %v3129_v62 = vld [vmem:[%s3900_s13 + $0x194] ss:$8 sps:$4 sm:$0xff]   ;;  %v3132_v0 = vld [vmem:[%s3900_s13 + $0x190] ss:$8 sps:$4 sm:$0xff]   ;;  %v3133_v1 = vld [vmem:[%s3900_s13 + $0x84] ss:$8 sps:$4 sm:$0xff]  }
  0xa1   : > { %2407 = vmatprep.mubr.bf16.mxu1 %v2777_v52  ;;  %v3135_v2 = vld [vmem:[%s3900_s13 + $0x184] ss:$8 sps:$4 sm:$0xff]   ;;  %v3137_v3 = vld [vmem:[%s3900_s13 + $0x80] ss:$8 sps:$4 sm:$0xff]   ;;  %v3145_v5 = vld [vmem:[%s3900_s13 + $0x274] ss:$8 sps:$4 sm:$0xff]  }
  0xa2   : > { %2345 = vmatpush1.bf16.msra.mxu0 %v3077_v23  ;;  %v3138_v4 = vld [vmem:[%s3900_s13 + $0x180] ss:$8 sps:$4 sm:$0xff]   ;;  %v3148_v6 = vld [vmem:[%s3900_s13 + $0x374] ss:$8 sps:$4 sm:$0xff]   ;;  %v3143_v9 = vld [vmem:[%s3900_s13 + $0x270] ss:$8 sps:$4 sm:$0xff]  }
  0xa3   : > { %2386 = vmatpush1.bf16.msra.mxu1 %v3078_v24  ;;  %2346 = vmatprep.subr.bf16.mxu0 %v3079_v25  ;;  %v3146_v10 = vld [vmem:[%s3900_s13 + $0x370] ss:$8 sps:$4 sm:$0xff]   ;;  %v3151_v11 = vld [vmem:[%s3900_s13 + $0x264] ss:$8 sps:$4 sm:$0xff]   ;;  %v3149_v13 = vld [vmem:[%s3900_s13 + $0x260] ss:$8 sps:$4 sm:$0xff]  }
  0xa4   : > { %2387 = vmatprep.subr.bf16.mxu1 %v3081_v26  ;;  %v3154_v12 = vld [vmem:[%s3900_s13 + $0x364] ss:$8 sps:$4 sm:$0xff]   ;;  %v3152_v14 = vld [vmem:[%s3900_s13 + $0x360] ss:$8 sps:$4 sm:$0xff]   ;;  %v3157_v15 = vld [vmem:[%s3900_s13 + $0x254] ss:$8 sps:$4 sm:$0xff]  }
  0xa5   : > { %v3160_v16 = vld [vmem:[%s3900_s13 + $0x354] ss:$8 sps:$4 sm:$0xff]   ;;  %v3155_v17 = vld [vmem:[%s3900_s13 + $0x250] ss:$8 sps:$4 sm:$0xff]   ;;  %v3163_v19 = vld [vmem:[%s3900_s13 + $0x244] ss:$8 sps:$4 sm:$0xff]  }
  0xa6   : > { %2347 = vmatpush1.bf16.msra.mxu0 %v3083_v27  ;;  %v3158_v18 = vld [vmem:[%s3900_s13 + $0x350] ss:$8 sps:$4 sm:$0xff]   ;;  %v3166_v20 = vld [vmem:[%s3900_s13 + $0x344] ss:$8 sps:$4 sm:$0xff]   ;;  %v3161_v21 = vld [vmem:[%s3900_s13 + $0x240] ss:$8 sps:$4 sm:$0xff]  }
  0xa7   : > { %2388 = vmatpush1.bf16.msra.mxu1 %v3084_v28  ;;  %2348 = vmatprep.subr.bf16.mxu0 %v3085_v29  ;;  %v3164_v22 = vld [vmem:[%s3900_s13 + $0x340] ss:$8 sps:$4 sm:$0xff]   ;;  %v3169_v23 = vld [vmem:[%s3900_s13 + $0x234] ss:$8 sps:$4 sm:$0xff]   ;;  %v3167_v25 = vld [vmem:[%s3900_s13 + $0x230] ss:$8 sps:$4 sm:$0xff]  }
  0xa8   : > { %2389 = vmatprep.subr.bf16.mxu1 %v3087_v30  ;;  %v3172_v24 = vld [vmem:[%s3900_s13 + $0x334] ss:$8 sps:$4 sm:$0xff]   ;;  %v3170_v26 = vld [vmem:[%s3900_s13 + $0x330] ss:$8 sps:$4 sm:$0xff]   ;;  %v3175_v27 = vld [vmem:[%s3900_s13 + $0x224] ss:$8 sps:$4 sm:$0xff]  }
  0xa9   : > { %v3178_v28 = vld [vmem:[%s3900_s13 + $0x324] ss:$8 sps:$4 sm:$0xff]   ;;  %v3173_v29 = vld [vmem:[%s3900_s13 + $0x220] ss:$8 sps:$4 sm:$0xff]   ;;  %v3208_v52 = vld [vmem:[%s3900_s13 + $0x3d4] ss:$8 sps:$4 sm:$0xff]  }
  0xaa   : > { %2349 = vmatpush1.bf16.msra.mxu0 %v3089_v31  ;;  %v3176_v30 = vld [vmem:[%s3900_s13 + $0x320] ss:$8 sps:$4 sm:$0xff]   ;;  %v3181_v31 = vld [vmem:[%s3900_s13 + $0x214] ss:$8 sps:$4 sm:$0xff]   ;;  %v3199_v47 = vld [vmem:[%s3900_s13 + $0x2e4] ss:$8 sps:$4 sm:$0xff]  }
  0xab   : > { %2390 = vmatpush1.bf16.msra.mxu1 %v3090_v32  ;;  %2350 = vmatprep.subr.bf16.mxu0 %v3091_v33  ;;  %v3184_v32 = vld [vmem:[%s3900_s13 + $0x314] ss:$8 sps:$4 sm:$0xff]   ;;  %v3996_v33 = vld [vmem:[%s3883_s30 + $0x10] sm:$0xff] }
  0xac   : > { %2391 = vmatprep.subr.bf16.mxu1 %v3093_v34  ;;  %v3999_v34 = vld [vmem:[%s3883_s30 + $0x18] sm:$0xff] }
  0xad   : > { %v3202_v48 = vld [vmem:[%s3900_s13 + $0x3e4] ss:$8 sps:$4 sm:$0xff]   ;;  %v3197_v49 = vld [vmem:[%s3900_s13 + $0x2e0] ss:$8 sps:$4 sm:$0xff]  }
  0xae   : > { %2351 = vmatpush2.bf16.msra.mxu0 %v3095_v35  ;;  %v3179_v35 = vld [vmem:[%s3900_s13 + $0x210] ss:$8 sps:$4 sm:$0xff]  }
  0xaf   : > { %2392 = vmatpush2.bf16.msra.mxu1 %v3096_v36  ;;  %2352 = vmatprep.subr.bf16.mxu0 %v3097_v37  ;;  %v3182_v36 = vld [vmem:[%s3900_s13 + $0x310] ss:$8 sps:$4 sm:$0xff]   ;;  %v2779_v37 = vcombine.high %v3996_v33, %v3996_v33 }
  0xb0   : > { %2393 = vmatprep.subr.bf16.mxu1 %v3099_v38  ;;  %v2781_v38 = vcombine.high %v3999_v34, %v3999_v34 }
  0xb2   : > { %2353 = vmatpush2.bf16.msra.mxu0 %v3101_v39  ;;  %v3187_v39 = vld [vmem:[%s3900_s13 + $0x204] ss:$8 sps:$4 sm:$0xff]  }
  0xb3   : > { %2394 = vmatpush2.bf16.msra.mxu1 %v3102_v40  ;;  %2354 = vmatprep.subr.bf16.mxu0 %v3103_v41  ;;  %v3190_v40 = vld [vmem:[%s3900_s13 + $0x304] ss:$8 sps:$4 sm:$0xff]   ;;  %v3185_v41 = vld [vmem:[%s3900_s13 + $0x200] ss:$8 sps:$4 sm:$0xff]  }
  0xb4   : > { %2395 = vmatprep.subr.bf16.mxu1 %v3105_v42  ;;  %v3188_v42 = vld [vmem:[%s3900_s13 + $0x300] ss:$8 sps:$4 sm:$0xff]  }
  0xb6   : > { %2355 = vmatpush2.bf16.msra.mxu0 %v3107_v43  ;;  %v3193_v43 = vld [vmem:[%s3900_s13 + $0x2f4] ss:$8 sps:$4 sm:$0xff]  }
  0xb7   : > { %2396 = vmatpush2.bf16.msra.mxu1 %v3108_v44  ;;  %2356 = vmatprep.subr.bf16.mxu0 %v3109_v45  ;;  %v3196_v44 = vld [vmem:[%s3900_s13 + $0x3f4] ss:$8 sps:$4 sm:$0xff]   ;;  %v3191_v45 = vld [vmem:[%s3900_s13 + $0x2f0] ss:$8 sps:$4 sm:$0xff]  }
  0xb8   : > { %2397 = vmatprep.subr.bf16.mxu1 %v3111_v46  ;;  %v3194_v46 = vld [vmem:[%s3900_s13 + $0x3f0] ss:$8 sps:$4 sm:$0xff]  }
  0xba   : > { %2357 = vmatpush2.bf16.msra.mxu0 %v3113_v50  ;;  %v3200_v50 = vld [vmem:[%s3900_s13 + $0x3e0] ss:$8 sps:$4 sm:$0xff]  }
  0xbb   : > { %2398 = vmatpush2.bf16.msra.mxu1 %v3114_v51  ;;  %2358 = vmatprep.subr.bf16.mxu0 %v3115_v53  ;;  %v3205_v51 = vld [vmem:[%s3900_s13 + $0x2d4] ss:$8 sps:$4 sm:$0xff]   ;;  %v3203_v53 = vld [vmem:[%s3900_s13 + $0x2d0] ss:$8 sps:$4 sm:$0xff]  }
  0xbc   : > { %2399 = vmatprep.subr.bf16.mxu1 %v3117_v54  ;;  %v3206_v54 = vld [vmem:[%s3900_s13 + $0x3d0] ss:$8 sps:$4 sm:$0xff]  }
  0xbe   : > { %2359 = vmatpush2.bf16.msra.mxu0 %v3119_v55  ;;  %v3211_v55 = vld [vmem:[%s3900_s13 + $0x2c4] ss:$8 sps:$4 sm:$0xff]  }
  0xbf   : > { %2400 = vmatpush2.bf16.msra.mxu1 %v3120_v56  ;;  %2360 = vmatprep.subr.bf16.mxu0 %v3121_v57  ;;  %v3214_v56 = vld [vmem:[%s3900_s13 + $0x3c4] ss:$8 sps:$4 sm:$0xff]   ;;  %v3209_v57 = vld [vmem:[%s3900_s13 + $0x2c0] ss:$8 sps:$4 sm:$0xff]  }
  0xc0   : > { %2401 = vmatprep.subr.bf16.mxu1 %v3123_v58  ;;  %v3212_v58 = vld [vmem:[%s3900_s13 + $0x3c0] ss:$8 sps:$4 sm:$0xff]  }
  0xc2   : > { %2361 = vmatpush2.bf16.msra.mxu0 %v3125_v59  ;;  %v3217_v59 = vld [vmem:[%s3900_s13 + $0x2b4] ss:$8 sps:$4 sm:$0xff]  }
  0xc3   : > { %2402 = vmatpush2.bf16.msra.mxu1 %v3126_v60  ;;  %2362 = vmatprep.subr.bf16.mxu0 %v3127_v61  ;;  %v3220_v60 = vld [vmem:[%s3900_s13 + $0x3b4] ss:$8 sps:$4 sm:$0xff]   ;;  %v3215_v61 = vld [vmem:[%s3900_s13 + $0x2b0] ss:$8 sps:$4 sm:$0xff]  }
  0xc4   : > { %2403 = vmatprep.subr.bf16.mxu1 %v3129_v62  ;;  %v3218_v62 = vld [vmem:[%s3900_s13 + $0x3b0] ss:$8 sps:$4 sm:$0xff]  }
  0xc6   : > { %2363 = vmatpush2.bf16.msra.mxu0 %v3131_v63  ;;  %v3223_v63 = vld [vmem:[%s3900_s13 + $0x2a4] ss:$8 sps:$4 sm:$0xff]  }
  0xc7   : > { %2404 = vmatpush2.bf16.msra.mxu1 %v3132_v0  ;;  %2364 = vmatprep.subr.bf16.mxu0 %v3133_v1  ;;  %v3226_v0 = vld [vmem:[%s3900_s13 + $0x3a4] ss:$8 sps:$4 sm:$0xff]   ;;  %v3221_v1 = vld [vmem:[%s3900_s13 + $0x2a0] ss:$8 sps:$4 sm:$0xff]  }
  0xc8   : > { %2405 = vmatprep.subr.bf16.mxu1 %v3135_v2  ;;  %v3224_v2 = vld [vmem:[%s3900_s13 + $0x3a0] ss:$8 sps:$4 sm:$0xff]  }
  0xca   : > { %2365 = vmatpush2.bf16.msra.mxu0 %v3137_v3  ;;  %v3229_v3 = vld [vmem:[%s3900_s13 + $0x294] ss:$8 sps:$4 sm:$0xff]  }
  0xcb   : > { %2406 = vmatpush2.bf16.msra.mxu1 %v3138_v4  ;;  %2416 = vmatprep.subr.bf16.mxu0 %v3145_v5  ;;  %v3232_v4 = vld [vmem:[%s3900_s13 + $0x394] ss:$8 sps:$4 sm:$0xff]   ;;  %v3227_v5 = vld [vmem:[%s3900_s13 + $0x290] ss:$8 sps:$4 sm:$0xff]  }
  0xcc   : > { %2457 = vmatprep.subr.bf16.mxu1 %v3148_v6  ;;  %v3230_v6 = vld [vmem:[%s3900_s13 + $0x390] ss:$8 sps:$4 sm:$0xff]  }
  0xcd   : > { %2367 = vmatmul.mubr.bf16.vlgmr.msra.gmra.mxu0 %v2774_v7  ;;  %v3235_v7 = vld [vmem:[%s3900_s13 + $0x284] ss:$8 sps:$4 sm:$0xff]  }
  0xce   : > { %2408 = vmatmul.mubr.bf16.vlgmr.msra.gmra.mxu1 %v2776_v8  ;;  %2417 = vmatpush1.bf16.msra.mxu0 %v3143_v9  ;;  %v3238_v8 = vld [vmem:[%s3900_s13 + $0x384] ss:$8 sps:$4 sm:$0xff]   ;;  %v3233_v9 = vld [vmem:[%s3900_s13 + $0x280] ss:$8 sps:$4 sm:$0xff]  }
  0xcf   : > { %2458 = vmatpush1.bf16.msra.mxu1 %v3146_v10  ;;  %2418 = vmatprep.subr.bf16.mxu0 %v3151_v11  ;;  %v3236_v10 = vld [vmem:[%s3900_s13 + $0x380] ss:$8 sps:$4 sm:$0xff]   ;;  %v3245_v11 = vld [vmem:[%s3900_s13 + $0x474] ss:$8 sps:$4 sm:$0xff]  }
  0xd0   : > { %2459 = vmatprep.subr.bf16.mxu1 %v3154_v12  ;;  %2448 = vmatprep.mubr.bf16.mxu0 %v2779_v37  ;;  %v3248_v12 = vld [vmem:[%s3900_s13 + $0x574] ss:$8 sps:$4 sm:$0xff]   ;;  %v3275_v37 = vld [vmem:[%s3900_s13 + $0x424] ss:$8 sps:$4 sm:$0xff]  }
  0xd1   : > { %2489 = vmatprep.mubr.bf16.mxu1 %v2781_v38  ;;  %v3278_v38 = vld [vmem:[%s3900_s13 + $0x524] ss:$8 sps:$4 sm:$0xff]  }
  0xd2   : > { %2419 = vmatpush1.bf16.msra.mxu0 %v3149_v13  ;;  %v2778_v13 = vcombine.low %v3996_v33, %v3996_v33  ;;  %v3269_v33 = vld [vmem:[%s3900_s13 + $0x434] ss:$8 sps:$4 sm:$0xff]  }
  0xd3   : > { %2460 = vmatpush1.bf16.msra.mxu1 %v3152_v14  ;;  %2420 = vmatprep.subr.bf16.mxu0 %v3157_v15  ;;  %v2780_v14 = vcombine.low %v3999_v34, %v3999_v34  ;;  %v3243_v15 = vld [vmem:[%s3900_s13 + $0x470] ss:$8 sps:$4 sm:$0xff]   ;;  %v3272_v34 = vld [vmem:[%s3900_s13 + $0x534] ss:$8 sps:$4 sm:$0xff]  }
  0xd4   : > { %2461 = vmatprep.subr.bf16.mxu1 %v3160_v16  ;;  %v3246_v16 = vld [vmem:[%s3900_s13 + $0x570] ss:$8 sps:$4 sm:$0xff]  }
  0xd6   : > { %2421 = vmatpush1.bf16.msra.mxu0 %v3155_v17  ;;  %v3251_v17 = vld [vmem:[%s3900_s13 + $0x464] ss:$8 sps:$4 sm:$0xff]  }
  0xd7   : > { %2462 = vmatpush1.bf16.msra.mxu1 %v3158_v18  ;;  %2422 = vmatprep.subr.bf16.mxu0 %v3163_v19  ;;  %v3254_v18 = vld [vmem:[%s3900_s13 + $0x564] ss:$8 sps:$4 sm:$0xff]   ;;  %v4054_v19 = vld [vmem:[%s3883_s30 + $0x20] sm:$0xff] }
  0xd8   : > { %2463 = vmatprep.subr.bf16.mxu1 %v3166_v20  ;;  %v4057_v20 = vld [vmem:[%s3883_s30 + $0x28] sm:$0xff] }
  0xda   : > { %2423 = vmatpush1.bf16.msra.mxu0 %v3161_v21  ;;  %v2783_v21 = vcombine.high %v4054_v19, %v4054_v19 }
  0xdb   : > { %2464 = vmatpush1.bf16.msra.mxu1 %v3164_v22  ;;  %2424 = vmatprep.subr.bf16.mxu0 %v3169_v23  ;;  %v2785_v22 = vcombine.high %v4057_v20, %v4057_v20  ;;  %v3249_v23 = vld [vmem:[%s3900_s13 + $0x460] ss:$8 sps:$4 sm:$0xff]  }
  0xdc   : > { %2465 = vmatprep.subr.bf16.mxu1 %v3172_v24  ;;  %v3252_v24 = vld [vmem:[%s3900_s13 + $0x560] ss:$8 sps:$4 sm:$0xff]  }
  0xde   : > { %2425 = vmatpush1.bf16.msra.mxu0 %v3167_v25  ;;  %v3257_v25 = vld [vmem:[%s3900_s13 + $0x454] ss:$8 sps:$4 sm:$0xff]  }
  0xdf   : > { %2466 = vmatpush1.bf16.msra.mxu1 %v3170_v26  ;;  %2426 = vmatprep.subr.bf16.mxu0 %v3175_v27  ;;  %v3260_v26 = vld [vmem:[%s3900_s13 + $0x554] ss:$8 sps:$4 sm:$0xff]   ;;  %v3255_v27 = vld [vmem:[%s3900_s13 + $0x450] ss:$8 sps:$4 sm:$0xff]  }
  0xe0   : > { %2467 = vmatprep.subr.bf16.mxu1 %v3178_v28  ;;  %v3258_v28 = vld [vmem:[%s3900_s13 + $0x550] ss:$8 sps:$4 sm:$0xff]  }
  0xe2   : > { %2427 = vmatpush1.bf16.msra.mxu0 %v3173_v29  ;;  %v3263_v29 = vld [vmem:[%s3900_s13 + $0x444] ss:$8 sps:$4 sm:$0xff]  }
  0xe3   : > { %2468 = vmatpush1.bf16.msra.mxu1 %v3176_v30  ;;  %2428 = vmatprep.subr.bf16.mxu0 %v3181_v31  ;;  %v3266_v30 = vld [vmem:[%s3900_s13 + $0x544] ss:$8 sps:$4 sm:$0xff]   ;;  %v3261_v31 = vld [vmem:[%s3900_s13 + $0x440] ss:$8 sps:$4 sm:$0xff]  }
  0xe4   : > { %2469 = vmatprep.subr.bf16.mxu1 %v3184_v32  ;;  %v3264_v32 = vld [vmem:[%s3900_s13 + $0x540] ss:$8 sps:$4 sm:$0xff]  }
  0xe6   : > { %2429 = vmatpush1.bf16.msra.mxu0 %v3179_v35  ;;  %v3267_v35 = vld [vmem:[%s3900_s13 + $0x430] ss:$8 sps:$4 sm:$0xff]  }
  0xe7   : > { %2470 = vmatpush1.bf16.msra.mxu1 %v3182_v36  ;;  %2430 = vmatprep.subr.bf16.mxu0 %v3187_v39  ;;  %v3270_v36 = vld [vmem:[%s3900_s13 + $0x530] ss:$8 sps:$4 sm:$0xff]   ;;  %v3273_v39 = vld [vmem:[%s3900_s13 + $0x420] ss:$8 sps:$4 sm:$0xff]  }
  0xe8   : > { %2471 = vmatprep.subr.bf16.mxu1 %v3190_v40  ;;  %v3276_v40 = vld [vmem:[%s3900_s13 + $0x520] ss:$8 sps:$4 sm:$0xff]  }
  0xea   : > { %2431 = vmatpush1.bf16.msra.mxu0 %v3185_v41  ;;  %v3281_v41 = vld [vmem:[%s3900_s13 + $0x414] ss:$8 sps:$4 sm:$0xff]  }
  0xeb   : > { %2472 = vmatpush1.bf16.msra.mxu1 %v3188_v42  ;;  %2432 = vmatprep.subr.bf16.mxu0 %v3193_v43  ;;  %v3284_v42 = vld [vmem:[%s3900_s13 + $0x514] ss:$8 sps:$4 sm:$0xff]   ;;  %v3279_v43 = vld [vmem:[%s3900_s13 + $0x410] ss:$8 sps:$4 sm:$0xff]  }
  0xec   : > { %2473 = vmatprep.subr.bf16.mxu1 %v3196_v44  ;;  %v3282_v44 = vld [vmem:[%s3900_s13 + $0x510] ss:$8 sps:$4 sm:$0xff]  }
  0xee   : > { %2433 = vmatpush2.bf16.msra.mxu0 %v3191_v45  ;;  %v3287_v45 = vld [vmem:[%s3900_s13 + $0x404] ss:$8 sps:$4 sm:$0xff]  }
  0xef   : > { %2474 = vmatpush2.bf16.msra.mxu1 %v3194_v46  ;;  %2434 = vmatprep.subr.bf16.mxu0 %v3199_v47  ;;  %v3290_v46 = vld [vmem:[%s3900_s13 + $0x504] ss:$8 sps:$4 sm:$0xff]   ;;  %v3285_v47 = vld [vmem:[%s3900_s13 + $0x400] ss:$8 sps:$4 sm:$0xff]  }
  0xf0   : > { %2475 = vmatprep.subr.bf16.mxu1 %v3202_v48  ;;  %v3288_v48 = vld [vmem:[%s3900_s13 + $0x500] ss:$8 sps:$4 sm:$0xff]  }
  0xf2   : > { %2435 = vmatpush2.bf16.msra.mxu0 %v3197_v49  ;;  %v3293_v49 = vld [vmem:[%s3900_s13 + $0x4f4] ss:$8 sps:$4 sm:$0xff]  }
  0xf3   : > { %2476 = vmatpush2.bf16.msra.mxu1 %v3200_v50  ;;  %2436 = vmatprep.subr.bf16.mxu0 %v3205_v51  ;;  %v3296_v50 = vld [vmem:[%s3900_s13 + $0x5f4] ss:$8 sps:$4 sm:$0xff]   ;;  %v3291_v51 = vld [vmem:[%s3900_s13 + $0x4f0] ss:$8 sps:$4 sm:$0xff]  }
  0xf4   : > { %2477 = vmatprep.subr.bf16.mxu1 %v3208_v52  ;;  %v3294_v52 = vld [vmem:[%s3900_s13 + $0x5f0] ss:$8 sps:$4 sm:$0xff]  }
  0xf6   : > { %2437 = vmatpush2.bf16.msra.mxu0 %v3203_v53  ;;  %v3299_v53 = vld [vmem:[%s3900_s13 + $0x4e4] ss:$8 sps:$4 sm:$0xff]  }
  0xf7   : > { %2478 = vmatpush2.bf16.msra.mxu1 %v3206_v54  ;;  %2438 = vmatprep.subr.bf16.mxu0 %v3211_v55  ;;  %v3302_v54 = vld [vmem:[%s3900_s13 + $0x5e4] ss:$8 sps:$4 sm:$0xff]   ;;  %v3297_v55 = vld [vmem:[%s3900_s13 + $0x4e0] ss:$8 sps:$4 sm:$0xff]  }
  0xf8   : > { %2479 = vmatprep.subr.bf16.mxu1 %v3214_v56  ;;  %v3300_v56 = vld [vmem:[%s3900_s13 + $0x5e0] ss:$8 sps:$4 sm:$0xff]  }
  0xfa   : > { %2439 = vmatpush2.bf16.msra.mxu0 %v3209_v57  ;;  %v3305_v57 = vld [vmem:[%s3900_s13 + $0x4d4] ss:$8 sps:$4 sm:$0xff]  }
  0xfb   : > { %2480 = vmatpush2.bf16.msra.mxu1 %v3212_v58  ;;  %2440 = vmatprep.subr.bf16.mxu0 %v3217_v59  ;;  %v3308_v58 = vld [vmem:[%s3900_s13 + $0x5d4] ss:$8 sps:$4 sm:$0xff]   ;;  %v3303_v59 = vld [vmem:[%s3900_s13 + $0x4d0] ss:$8 sps:$4 sm:$0xff]  }
  0xfc   : > { %2481 = vmatprep.subr.bf16.mxu1 %v3220_v60  ;;  %v3306_v60 = vld [vmem:[%s3900_s13 + $0x5d0] ss:$8 sps:$4 sm:$0xff]  }
  0xfe   : > { %2441 = vmatpush2.bf16.msra.mxu0 %v3215_v61  ;;  %v3311_v61 = vld [vmem:[%s3900_s13 + $0x4c4] ss:$8 sps:$4 sm:$0xff]  }
  0xff   : > { %2482 = vmatpush2.bf16.msra.mxu1 %v3218_v62  ;;  %2442 = vmatprep.subr.bf16.mxu0 %v3223_v63  ;;  %v3314_v62 = vld [vmem:[%s3900_s13 + $0x5c4] ss:$8 sps:$4 sm:$0xff]   ;;  %v3309_v63 = vld [vmem:[%s3900_s13 + $0x4c0] ss:$8 sps:$4 sm:$0xff]  }
 0x100   : > { %2483 = vmatprep.subr.bf16.mxu1 %v3226_v0  ;;  %v3312_v0 = vld [vmem:[%s3900_s13 + $0x5c0] ss:$8 sps:$4 sm:$0xff]  }
 0x102   : > { %2443 = vmatpush2.bf16.msra.mxu0 %v3221_v1  ;;  %v3317_v1 = vld [vmem:[%s3900_s13 + $0x4b4] ss:$8 sps:$4 sm:$0xff]  }
 0x103   : > { %2484 = vmatpush2.bf16.msra.mxu1 %v3224_v2  ;;  %2444 = vmatprep.subr.bf16.mxu0 %v3229_v3  ;;  %v3320_v2 = vld [vmem:[%s3900_s13 + $0x5b4] ss:$8 sps:$4 sm:$0xff]   ;;  %v3315_v3 = vld [vmem:[%s3900_s13 + $0x4b0] ss:$8 sps:$4 sm:$0xff]  }
 0x104   : > { %2485 = vmatprep.subr.bf16.mxu1 %v3232_v4  ;;  %v3318_v4 = vld [vmem:[%s3900_s13 + $0x5b0] ss:$8 sps:$4 sm:$0xff]  }
 0x106   : > { %2445 = vmatpush2.bf16.msra.mxu0 %v3227_v5  ;;  %v3323_v5 = vld [vmem:[%s3900_s13 + $0x4a4] ss:$8 sps:$4 sm:$0xff]  }
 0x107   : > { %2486 = vmatpush2.bf16.msra.mxu1 %v3230_v6  ;;  %2446 = vmatprep.subr.bf16.mxu0 %v3235_v7  ;;  %v3326_v6 = vld [vmem:[%s3900_s13 + $0x5a4] ss:$8 sps:$4 sm:$0xff]   ;;  %v3321_v7 = vld [vmem:[%s3900_s13 + $0x4a0] ss:$8 sps:$4 sm:$0xff]  }
 0x108   : > { %2487 = vmatprep.subr.bf16.mxu1 %v3238_v8  ;;  %v3324_v8 = vld [vmem:[%s3900_s13 + $0x5a0] ss:$8 sps:$4 sm:$0xff]  }
 0x10a   : > { %2447 = vmatpush2.bf16.msra.mxu0 %v3233_v9  ;;  %v3329_v9 = vld [vmem:[%s3900_s13 + $0x494] ss:$8 sps:$4 sm:$0xff]  }
 0x10b   : > { %2488 = vmatpush2.bf16.msra.mxu1 %v3236_v10  ;;  %2498 = vmatprep.subr.bf16.mxu0 %v3245_v11  ;;  %v3332_v10 = vld [vmem:[%s3900_s13 + $0x594] ss:$8 sps:$4 sm:$0xff]   ;;  %v3327_v11 = vld [vmem:[%s3900_s13 + $0x490] ss:$8 sps:$4 sm:$0xff]  }
 0x10c   : > { %2539 = vmatprep.subr.bf16.mxu1 %v3248_v12  ;;  %v3330_v12 = vld [vmem:[%s3900_s13 + $0x590] ss:$8 sps:$4 sm:$0xff]  }
 0x10d   : > { %2449 = vmatmul.mubr.bf16.vlgmr.msra.gmra.mxu0 %v2778_v13  ;;  %v3335_v13 = vld [vmem:[%s3900_s13 + $0x484] ss:$8 sps:$4 sm:$0xff]  }
 0x10e   : > { %2490 = vmatmul.mubr.bf16.vlgmr.msra.gmra.mxu1 %v2780_v14  ;;  %2499 = vmatpush1.bf16.msra.mxu0 %v3243_v15  ;;  %v3338_v14 = vld [vmem:[%s3900_s13 + $0x584] ss:$8 sps:$4 sm:$0xff]   ;;  %v3333_v15 = vld [vmem:[%s3900_s13 + $0x480] ss:$8 sps:$4 sm:$0xff]  }
 0x10f   : > { %2540 = vmatpush1.bf16.msra.mxu1 %v3246_v16  ;;  %2500 = vmatprep.subr.bf16.mxu0 %v3251_v17  ;;  %v3336_v16 = vld [vmem:[%s3900_s13 + $0x580] ss:$8 sps:$4 sm:$0xff]   ;;  %v2782_v17 = vcombine.low %v4054_v19, %v4054_v19 }
 0x110   : > { %2541 = vmatprep.subr.bf16.mxu1 %v3254_v18  ;;  %2530 = vmatprep.mubr.bf16.mxu0 %v2783_v21  ;;  %v2784_v18 = vcombine.low %v4057_v20, %v4057_v20 }
 0x111   : > { %2571 = vmatprep.mubr.bf16.mxu1 %v2785_v22 }
 0x112   : > { %2501 = vmatpush1.bf16.msra.mxu0 %v3249_v23 }
 0x113   : > { %2542 = vmatpush1.bf16.msra.mxu1 %v3252_v24  ;;  %2502 = vmatprep.subr.bf16.mxu0 %v3257_v25 }
 0x114   : > { %2543 = vmatprep.subr.bf16.mxu1 %v3260_v26 }
 0x116   : > { %2503 = vmatpush1.bf16.msra.mxu0 %v3255_v27 }
 0x117   : > { %2544 = vmatpush1.bf16.msra.mxu1 %v3258_v28  ;;  %2504 = vmatprep.subr.bf16.mxu0 %v3263_v29 }
 0x118   : > { %2545 = vmatprep.subr.bf16.mxu1 %v3266_v30 }
 0x11a   : > { %2505 = vmatpush1.bf16.msra.mxu0 %v3261_v31 }
 0x11b   : > { %2546 = vmatpush1.bf16.msra.mxu1 %v3264_v32  ;;  %2506 = vmatprep.subr.bf16.mxu0 %v3269_v33 }
 0x11c   : > { %2547 = vmatprep.subr.bf16.mxu1 %v3272_v34 }
 0x11e   : > { %2507 = vmatpush1.bf16.msra.mxu0 %v3267_v35 }
 0x11f   : > { %2548 = vmatpush1.bf16.msra.mxu1 %v3270_v36  ;;  %2508 = vmatprep.subr.bf16.mxu0 %v3275_v37 }
 0x120   : > { %2549 = vmatprep.subr.bf16.mxu1 %v3278_v38 }
 0x122   : > { %2509 = vmatpush1.bf16.msra.mxu0 %v3273_v39 }
 0x123   : > { %2550 = vmatpush1.bf16.msra.mxu1 %v3276_v40  ;;  %2510 = vmatprep.subr.bf16.mxu0 %v3281_v41 }
 0x124   : > { %2551 = vmatprep.subr.bf16.mxu1 %v3284_v42 }
 0x126   : > { %2511 = vmatpush1.bf16.msra.mxu0 %v3279_v43 }
 0x127   : > { %2552 = vmatpush1.bf16.msra.mxu1 %v3282_v44  ;;  %2512 = vmatprep.subr.bf16.mxu0 %v3287_v45  ;;  %v1132_v44 = vld [vmem:[#allocation2] sm:$0xff] }
 0x128   : > { %2553 = vmatprep.subr.bf16.mxu1 %v3290_v46 }
 0x12a   : > { %2513 = vmatpush1.bf16.msra.mxu0 %v3285_v47 }
 0x12b   : > { %2554 = vmatpush1.bf16.msra.mxu1 %v3288_v48  ;;  %2514 = vmatprep.subr.bf16.mxu0 %v3293_v49  ;;  %v1133_v49 = vld [vmem:[#allocation2 + $0x8] sm:$0xff] }
 0x12c   : > { %2555 = vmatprep.subr.bf16.mxu1 %v3296_v50 }
 0x12e   : > { %2515 = vmatpush2.bf16.msra.mxu0 %v3291_v51 }
 0x12f   : > { %2556 = vmatpush2.bf16.msra.mxu1 %v3294_v52  ;;  %2516 = vmatprep.subr.bf16.mxu0 %v3299_v53 }
 0x130   : > { %2557 = vmatprep.subr.bf16.mxu1 %v3302_v54 }
 0x132   : > { %2517 = vmatpush2.bf16.msra.mxu0 %v3297_v55 }
 0x133   : > { %2558 = vmatpush2.bf16.msra.mxu1 %v3300_v56  ;;  %2518 = vmatprep.subr.bf16.mxu0 %v3305_v57 }
 0x134   : > { %2559 = vmatprep.subr.bf16.mxu1 %v3308_v58 }
 0x136   : > { %2519 = vmatpush2.bf16.msra.mxu0 %v3303_v59 }
 0x137   : > { %2560 = vmatpush2.bf16.msra.mxu1 %v3306_v60  ;;  %2520 = vmatprep.subr.bf16.mxu0 %v3311_v61 }
 0x138   : > { %2561 = vmatprep.subr.bf16.mxu1 %v3314_v62 }
 0x13a   : > { %2521 = vmatpush2.bf16.msra.mxu0 %v3309_v63 }
 0x13b   : > { %2562 = vmatpush2.bf16.msra.mxu1 %v3312_v0  ;;  %2522 = vmatprep.subr.bf16.mxu0 %v3317_v1 }
 0x13c   : > { %2563 = vmatprep.subr.bf16.mxu1 %v3320_v2 }
 0x13e   : > { %2523 = vmatpush2.bf16.msra.mxu0 %v3315_v3 }
 0x13f   : > { %2564 = vmatpush2.bf16.msra.mxu1 %v3318_v4  ;;  %2524 = vmatprep.subr.bf16.mxu0 %v3323_v5 }
 0x140   : > { %2565 = vmatprep.subr.bf16.mxu1 %v3326_v6 }
 0x142   : > { %2525 = vmatpush2.bf16.msra.mxu0 %v3321_v7 }
 0x143   : > { %2566 = vmatpush2.bf16.msra.mxu1 %v3324_v8  ;;  %2526 = vmatprep.subr.bf16.mxu0 %v3329_v9 }
 0x144   : > { %2567 = vmatprep.subr.bf16.mxu1 %v3332_v10 }
 0x146   : > { %2527 = vmatpush2.bf16.msra.mxu0 %v3327_v11 }
 0x147   : > { %2568 = vmatpush2.bf16.msra.mxu1 %v3330_v12  ;;  %2528 = vmatprep.subr.bf16.mxu0 %v3335_v13 }
 0x148   : > { %2569 = vmatprep.subr.bf16.mxu1 %v3338_v14 }
 0x14a   : > { %2529 = vmatpush2.bf16.msra.mxu0 %v3333_v15 }
 0x14b   : > { %2570 = vmatpush2.bf16.msra.mxu1 %v3336_v16 }
 0x14d   : > { %2531 = vmatmul.mubr.bf16.vlgmr.msra.gmra.mxu0 %v2782_v17 }
 0x14e   : > { %2572 = vmatmul.mubr.bf16.vlgmr.msra.gmra.mxu1 %v2784_v18 }
 0x18d   : > { %v2368_v21 = vpop.f32.mrf.mxu0 }
 0x18e   : > { %v2409_v22 = vpop.f32.mrf.mxu1 }
 0x18f   : > { %v2410_v23 = vadd.f32 %v2409_v22, %v2368_v21  ;;  %v2370_v24 = vpop.f32.mrf.mxu0 }
 0x190   : > { %v2411_v25 = vpop.f32.mrf.mxu1 }
 0x191   : > { %v2412_v26 = vadd.f32 %v2411_v25, %v2370_v24  ;;  %v2372_v27 = vpop.f32.mrf.mxu0 }
 0x192   : > { %v2413_v28 = vpop.f32.mrf.mxu1 }
 0x193   : > { %v2373_v29 = vpop.f32.mrf.mxu0 }
 0x194   : > { %v2414_v30 = vpop.f32.mrf.mxu1 }
 0x1cd   : > { %v2450_v31 = vpop.f32.mrf.mxu0 }
 0x1ce   : > { %v2491_v32 = vpop.f32.mrf.mxu1  ;;  %v2451_v37 = vadd.f32 %v2450_v31, %v2410_v23 }
 0x1cf   : > { %v2452_v19 = vpop.f32.mrf.mxu0 }
 0x1d0   : > { %v2493_v33 = vpop.f32.mrf.mxu1  ;;  %v2453_v38 = vadd.f32 %v2452_v19, %v2412_v26  ;;  %v2492_v39 = vadd.f32 %v2491_v32, %v2451_v37 }
 0x1d1   : > { %v2454_v34 = vpop.f32.mrf.mxu0 }
 0x1d2   : > { %v2495_v20 = vpop.f32.mrf.mxu1  ;;  %v2494_v42 = vadd.f32 %v2493_v33, %v2453_v38 }
 0x1d3   : > { %v2455_v35 = vpop.f32.mrf.mxu0 }
 0x1d4   : > { %v2496_v36 = vpop.f32.mrf.mxu1 }
 0x20d   : > { %v2532_v40 = vpop.f32.mrf.mxu0 }
 0x20e   : > { %v2573_v41 = vpop.f32.mrf.mxu1  ;;  %v2533_v43 = vadd.f32 %v2532_v40, %v2492_v39 }
 0x20f   : > { %v2534_v45 = vpop.f32.mrf.mxu0 }
 0x210   : > { %v2575_v46 = vpop.f32.mrf.mxu1  ;;  %v2574_v47 = vadd.f32 %v2573_v41, %v2533_v43  ;;  %v2535_v48 = vadd.f32 %v2534_v45, %v2494_v42 }
 0x211   : > { %v2536_v50 = vpop.f32.mrf.mxu0 }
 0x212   : > { %v2577_v51 = vpop.f32.mrf.mxu1  ;;  %v2580_v52 = vadd.f32 %v2574_v47, %v1132_v44  ;;  %v2576_v53 = vadd.f32 %v2575_v46, %v2535_v48  ;;  %2587 = sbr.rel (%p2978_p13) target bundleno = 550 (0x226), region = 82 }
 0x213   : > { %v2537_v54 = vpop.f32.mrf.mxu0 }
 0x214   : > { %v2578_v55 = vpop.f32.mrf.mxu1  ;;  %2582 = vst [vmem:[#allocation2] sm:$0xff] %v2580_v52  ;;  %v2581_v56 = vadd.f32 %v2576_v53, %v1133_v49 }
 0x216   : > { %2583 = vst [vmem:[#allocation2 + $0x8] sm:$0xff] %v2581_v56 }
 0x217   : > { %v2592_v57 = vlaneseq  ;;  %v2590_v59 = vld [vmem:[%s1104_s15] sm:$0x3] }
 0x218   : > { %v2604_v60 = vld [vmem:[%s3893_s9] sm:$0xff] }
 0x219   : > { %v2593_v58 = vshrl.u32 %v2592_v57, 7  ;;  %v2605_v3 = vunpack.c.l.bf16 %v2604_v60  ;;  %v2606_v4 = vunpack.c.h.bf16 %v2604_v60 }
 0x21b   : > { %v2594_v61 = vsub.s32 0, %v2593_v58  ;;  %v2598_v62 = vsub.s32 1, %v2593_v58  ;;  %v2588_v63 = vld [vmem:[#allocation2] sm:$0xff] }
 0x21d   : > { %v2589_v0 = vld [vmem:[#allocation2 + $0x8] sm:$0xff]  ;;  %v2595_v1 = vrot.slane %v2590_v59, %v2594_v61  ;;  %v2599_v2 = vrot.slane %v2590_v59, %v2598_v62 }
 0x21f   : > { %v2602_v5 = vadd.f32 %v2595_v1, %v2588_v63  ;;  %v2603_v6 = vadd.f32 %v2599_v2, %v2589_v0 }
 0x221   : > { %v2607_v7 = vadd.f32 %v2605_v3, %v2602_v5  ;;  %v2608_v8 = vadd.f32 %v2606_v4, %v2603_v6 }
 0x223   : > { %v2983_v9 = vpack.c.bf16 %v2608_v8, %v2607_v7 }
 0x225   : > { %2617 = vst [vmem:[%s3898_s12] sm:$0xff] %v2983_v9 }
 0x226 PF: > { %s14_s21 = sadd.s32 1, %s3397_s21   ;;  %s4159_s15 = smov %s3377_s16 }
 0x227   : > { %p11_p0 = scmp.ge.s32.totalorder %s14_s21, 8   ;;  %s4160_s16 = smov %s3476_s28 }
 0x228   : > { %s4161_s17 = smov %s3389_s19  ;;  %s4162_s18 = smov %s3393_s20 }
 0x229   : > { %s4163_s19 = smov %s4166_s22  ;;  %s4164_s20 = smov %s4170_s23 }
 0x22a   :  { %13 = sbr.rel (!%p11_p0) target bundleno = 4 (0x4), region = 126 }

</bundles_post_ra>
